<compile_context>
chip_gen: v7x
topology: tpu7x:2x2x1
jax: 0.10.0
libtpu: 0.0.40
codegen_flags: <defaults>
</compile_context>

<pallas_src>
import functools

import jax
import jax.numpy as jnp
from jax.experimental import pallas as pl
from jax.experimental.pallas import tpu as pltpu


def _shift_back(x, d):
    """y[m] = x[m - d]; wrapped rows (m < d) are always masked by the caller."""
    if d == 0:
        return x
    # static roll lowers to a concat of two slices; tiny vs the matmuls.
    return jnp.roll(x, d, axis=0)


def _shift_fwd(x, d):
    """y[m] = x[m + d]; wrapped rows (m >= M - d) are always masked by the caller."""
    if d == 0:
        return x
    return jnp.roll(x, -d, axis=0)


def _temporal_transformer_kernel(
        x_ref, pos_ref, hh_ref, wqkv_ref, wproj_ref, bproj_ref,
        lng_ref, lnb_ref, wf1_ref, bf1_ref, wf2_ref, bf2_ref, o_ref,
        *, depth, t, window, rows, ln_eps):
    f32, bf16 = jnp.float32, jnp.bfloat16
    M, C = x_ref.shape                   # tokens in this block, channels
    W = window
    NEG = jnp.float32(-1e30)

    # residual stream in f32; positional embedding broadcast over the block's rows
    h = (x_ref[...].astype(f32).reshape(rows, t, C)
         + pos_ref[...][None]).reshape(M, C)

    # window position of every token (windows = W consecutive time steps; t % W == 0
    # so windows never straddle a (b*n) row boundary, matching reshape(-1, W, C)).
    wpos = jax.lax.broadcasted_iota(jnp.int32, (M, 1), 0) % W
    n_future = (W - 1 - wpos).astype(f32)          # in-window keys ahead of the query
    hh = hh_ref[...]                               # (C, C) per-head block of ones

    # depth is small -> static unroll.
    # TODO(synk): use lax.fori_loop with dynamic wqkv_ref[l] indexing for depth > ~4.
    for l in range(depth):
        # ----- TemporalAttention: windowed causal MHA, double softmax ------------
        qkv = jnp.dot(h.astype(bf16), wqkv_ref[l], preferred_element_type=f32)
        q, k, v = qkv[:, :C], qkv[:, C:2 * C], qkv[:, 2 * C:]

        # scores for key = query - d (scale already folded into the q weights);
        # (q * k_d) @ hh sums over each head's D lanes and broadcasts the head
        # score back across them -> lane-dense (M, C) score tensors.
        s = []
        for d in range(W):
            kd = _shift_back(k, d)
            sd = jnp.dot((q * kd).astype(bf16), hh, preferred_element_type=f32)
            s.append(jnp.where(wpos >= d, sd, NEG))        # causal + window mask

        # softmax #1 over the masked offsets (elementwise across the offset list)
        m1 = functools.reduce(jnp.maximum, s)
        e1 = [jnp.exp(sd - m1) for sd in s]                # masked -> exp(-1e30) = 0
        l1 = functools.reduce(lambda a, b: a + b, e1)
        inv1 = pl.reciprocal(l1, approx=True)

        # softmax #2 over the whole window (no max-sub needed: p1 in [0,1]).
        # The reference's quirk: causally-masked in-window keys keep p1 = 0 and
        # therefore weight exp(0) = 1 in the second softmax.
        e2 = [jnp.where(wpos >= d, jnp.exp(e1[d] * inv1), 0.0) for d in range(W)]
        denom2 = functools.reduce(lambda a, b: a + b, e2) + n_future

        acc = e2[0] * v                                    # d = 0: the query itself
        for d in range(1, W):
            acc = acc + e2[d] * _shift_back(v, d)                        # past keys
            acc = acc + jnp.where(wpos < W - d, _shift_fwd(v, d), 0.0)   # future keys
        attn_out = acc * pl.reciprocal(denom2, approx=True)

        h = h + jnp.dot(attn_out.astype(bf16), wproj_ref[l],
                        preferred_element_type=f32) + bproj_ref[l]

        # ----- PreNorm(LayerNorm) + FeedForward ---------------------------------
        mu = jnp.mean(h, axis=-1, keepdims=True)
        var = jnp.mean(jnp.square(h - mu), axis=-1, keepdims=True)
        xn = (h - mu) * jax.lax.rsqrt(var + ln_eps) * lng_ref[l] + lnb_ref[l]

        f1 = jnp.dot(xn.astype(bf16), wf1_ref[l],
                     preferred_element_type=f32) + bf1_ref[l]
        # tanh-approximate GELU (EUP tanh path).
        # TODO(synk): nn.GELU() default is the exact erf form; use lax.erf if the
        #             Mosaic lowering supports it.
        g = 0.5 * f1 * (1.0 + jnp.tanh(0.7978845608028654
                                       * (f1 + 0.044715 * f1 * f1 * f1)))
        h = h + jnp.dot(g.astype(bf16), wf2_ref[l],
                        preferred_element_type=f32) + bf2_ref[l]

    o_ref[...] = h.astype(o_ref.dtype)


def temporal_transformer(x, params, *, heads, window_size):
    """x: (b, c, n, t).  params: {'pos': (1, t, c), 'layers': [per-layer dicts]}."""
    b, c, n, t = x.shape
    C, H, W = c, heads, window_size
    assert C % H == 0 and W > 0 and t % W == 0
    D = C // H
    depth = len(params['layers'])
    F = params['layers'][0]['w_ff1'].shape[1]
    scale = float(D) ** -0.5

    BN = b * n
    Mtot = BN * t

    # block size decoupled from batch: whole (b*n) rows per step, target ~512
    # tokens, >= 2 steps (even count for v7x's two TensorCores), Mblk % 8 == 0.
    target_rows = max(1, 512 // t)
    divisors = [r for r in range(1, BN + 1)
                if BN % r == 0 and ((r * t) % 8 == 0 or r == BN)]
    multi = [r for r in divisors if r <= target_rows and BN // r >= 2]
    if multi:
        even = [r for r in multi if (BN // r) % 2 == 0]
        rows_blk = max(even) if even else max(multi)
    else:
        rows_blk = BN
    num_blocks = BN // rows_blk
    Mblk = rows_blk * t

    # tokens-major, lane-dense layout: (b, c, n, t) -> (b*n*t, c), bf16 activations.
    x_tok = jnp.transpose(x, (0, 2, 3, 1)).reshape(Mtot, C).astype(jnp.bfloat16)
    pos = params['pos'][0].astype(jnp.float32)                      # (t, C)

    # per-head block-diagonal ones: sums q*k over each head's D lanes and
    # broadcasts the head score back across those lanes.
    hh = jnp.kron(jnp.eye(H, dtype=jnp.float32),
                  jnp.ones((D, D), jnp.float32)).astype(jnp.bfloat16)

    def stack(name):
        return jnp.stack([lp[name] for lp in params['layers']])

    w_qkv = stack('w_qkv')                                          # (depth, C, 3C)
    w_qkv = w_qkv.at[:, :, :C].multiply(scale)                      # fold 1/sqrt(D)
    wqkv = w_qkv.astype(jnp.bfloat16)
    wproj = stack('w_proj').astype(jnp.bfloat16)                    # (depth, C, C)
    bproj = stack('b_proj').reshape(depth, 1, C).astype(jnp.float32)
    lng = stack('ln_g').reshape(depth, 1, C).astype(jnp.float32)
    lnb = stack('ln_b').reshape(depth, 1, C).astype(jnp.float32)
    wf1 = stack('w_ff1').astype(jnp.bfloat16)                       # (depth, C, F)
    bf1 = stack('b_ff1').reshape(depth, 1, F).astype(jnp.float32)
    wf2 = stack('w_ff2').astype(jnp.bfloat16)                       # (depth, F, C)
    bf2 = stack('b_ff2').reshape(depth, 1, C).astype(jnp.float32)

    kernel = functools.partial(
        _temporal_transformer_kernel,
        depth=depth, t=t, window=W, rows=rows_blk, ln_eps=1e-5)

    def resident(nd):
        return lambda i: (0,) * nd

    out = pl.pallas_call(
        kernel,
        out_shape=jax.ShapeDtypeStruct((Mtot, C), jnp.bfloat16),
        grid=(num_blocks,),
        in_specs=[
            pl.BlockSpec((Mblk, C), lambda i: (i, 0)),        # activations (blocked)
            pl.BlockSpec((t, C), resident(2)),                # positional embedding
            pl.BlockSpec((C, C), resident(2)),                # per-head ones matrix
            pl.BlockSpec((depth, C, 3 * C), resident(3)),     # fused qkv weight
            pl.BlockSpec((depth, C, C), resident(3)),         # out-proj weight
            pl.BlockSpec((depth, 1, C), resident(3)),         # out-proj bias
            pl.BlockSpec((depth, 1, C), resident(3)),         # LN gamma
            pl.BlockSpec((depth, 1, C), resident(3)),         # LN beta
            pl.BlockSpec((depth, C, F), resident(3)),         # ff1 weight
            pl.BlockSpec((depth, 1, F), resident(3)),         # ff1 bias
            pl.BlockSpec((depth, F, C), resident(3)),         # ff2 weight
            pl.BlockSpec((depth, 1, C), resident(3)),         # ff2 bias
        ],
        out_specs=pl.BlockSpec((Mblk, C), lambda i: (i, 0)),
        compiler_params=pltpu.CompilerParams(
            dimension_semantics=("parallel",)),
    )(x_tok, pos, hh, wqkv, wproj, bproj, lng, lnb, wf1, bf1, wf2, bf2)

    return out.astype(jnp.float32).reshape(b, n, t, C).transpose(0, 3, 1, 2)


def temporal_transformer_ref(x, params, *, heads, window_size, eps=1e-5):
    """Pure-JAX f32 reference mirroring the PyTorch forward (incl. double softmax)."""
    b, c, n, t = x.shape
    H, W = heads, window_size
    D = c // H
    scale = D ** -0.5
    h = jnp.transpose(x, (0, 2, 3, 1)).reshape(b * n, t, c)
    h = h + params['pos']
    for lp in params['layers']:
        BN = h.shape[0]
        xw = h.reshape(-1, W, c)
        Bw = xw.shape[0]
        qkv = (xw @ lp['w_qkv']).reshape(Bw, W, 3, H, D).transpose(2, 0, 3, 1, 4)
        q, k, v = qkv[0], qkv[1], qkv[2]                      # (Bw, H, W, D)
        attn = jnp.einsum('bhqd,bhkd->bhqk', q, k) * scale
        causal = jnp.tril(jnp.ones((W, W), dtype=bool))
        attn = jnp.where(causal, attn, -jnp.inf)
        attn = jax.nn.softmax(attn, axis=-1)
        attn = jax.nn.softmax(attn, axis=-1)                  # module's double softmax
        o = jnp.einsum('bhqk,bhkd->bhqd', attn, v)
        o = o.transpose(0, 2, 1, 3).reshape(Bw, W, c)
        o = o @ lp['w_proj'] + lp['b_proj']
        h = h + o.reshape(BN, t, c)
        mu = h.mean(-1, keepdims=True)
        var = ((h - mu) ** 2).mean(-1, keepdims=True)
        xn = (h - mu) / jnp.sqrt(var + eps) * lp['ln_g'] + lp['ln_b']
        f = xn @ lp['w_ff1'] + lp['b_ff1']
        f = 0.5 * f * (1.0 + jax.lax.erf(f / jnp.sqrt(2.0)))  # exact (erf) GELU
        f = f @ lp['w_ff2'] + lp['b_ff2']
        h = h + f
    return h.reshape(b, n, t, c).transpose(0, 3, 1, 2)


if __name__ == "__main__":
    # small config consistent with the module: dim divisible by heads, t divisible
    # by window_size; dim=128 keeps the channel (lane) dim TPU-tile aligned.
    B, N_SP, T = 2, 8, 8                 # batch, spatial positions, time steps
    DIM, HEADS, MLP = 128, 8, 256
    DEPTH, WINDOW = 2, 4

    root = jax.random.PRNGKey(0)
    kx, kpos, kl = jax.random.split(root, 3)
    x = jax.random.normal(kx, (B, DIM, N_SP, T), dtype=jnp.float32)

    def make_layer(key):
        ks = jax.random.split(key, 9)
        s = DIM ** -0.5
        return dict(
            w_qkv=s * jax.random.normal(ks[0], (DIM, 3 * DIM), jnp.float32),
            w_proj=s * jax.random.normal(ks[1], (DIM, DIM), jnp.float32),
            b_proj=0.02 * jax.random.normal(ks[2], (DIM,), jnp.float32),
            ln_g=1.0 + 0.1 * jax.random.normal(ks[3], (DIM,), jnp.float32),
            ln_b=0.02 * jax.random.normal(ks[4], (DIM,), jnp.float32),
            w_ff1=s * jax.random.normal(ks[5], (DIM, MLP), jnp.float32),
            b_ff1=0.02 * jax.random.normal(ks[6], (MLP,), jnp.float32),
            w_ff2=(MLP ** -0.5) * jax.random.normal(ks[7], (MLP, DIM), jnp.float32),
            b_ff2=0.02 * jax.random.normal(ks[8], (DIM,), jnp.float32),
        )

    params = dict(
        pos=jax.random.normal(kpos, (1, T, DIM), dtype=jnp.float32),
        layers=[make_layer(k) for k in jax.random.split(kl, DEPTH)],
    )

    y = temporal_transformer(x, params, heads=HEADS, window_size=WINDOW)
    y = jax.block_until_ready(y)

    y_ref = temporal_transformer_ref(x, params, heads=HEADS, window_size=WINDOW)
    assert y.shape == x.shape
    assert bool(jnp.isfinite(y).all())
    rel = float(jnp.linalg.norm(y - y_ref) / jnp.linalg.norm(y_ref))
    max_abs = float(jnp.max(jnp.abs(y - y_ref)))
    # kernel uses bf16 MXU operands, bf16 output, approx reciprocal and tanh-GELU ->
    # small bounded deviation from the f32/erf reference; algorithmic bugs would be O(1).
    assert rel < 2e-2, f"relative L2 error {rel:.3e} too large"
    assert max_abs < 0.35, f"max abs error {max_abs:.3e} too large"
    print("KERNEL_OK")
</pallas_src>

<mosaic_0001>
module attributes {stable_mosaic.version = 11 : i64} {
  func.func @_temporal_transformer_kernel(%arg0: i32, %arg1: memref<64x128xbf16, #tpu.memory_space<vmem>>, %arg2: memref<8x128xf32, #tpu.memory_space<vmem>>, %arg3: memref<128x128xbf16, #tpu.memory_space<vmem>>, %arg4: memref<2x128x384xbf16, #tpu.memory_space<vmem>>, %arg5: memref<2x128x128xbf16, #tpu.memory_space<vmem>>, %arg6: memref<2x1x128xf32, #tpu.memory_space<vmem>>, %arg7: memref<2x1x128xf32, #tpu.memory_space<vmem>>, %arg8: memref<2x1x128xf32, #tpu.memory_space<vmem>>, %arg9: memref<2x128x256xbf16, #tpu.memory_space<vmem>>, %arg10: memref<2x1x256xf32, #tpu.memory_space<vmem>>, %arg11: memref<2x256x128xbf16, #tpu.memory_space<vmem>>, %arg12: memref<2x1x128xf32, #tpu.memory_space<vmem>>, %arg13: memref<64x128xbf16, #tpu.memory_space<vmem>>) attributes {dimension_semantics = [#tpu.dimension_semantics<parallel>], iteration_bounds = array<i64: 2>, scalar_prefetch = 0 : i64, scratch_operands = 0 : i64, tpu.core_type = #tpu.core_type<tc>, window_params = [{transform_indices = @transform_0, window_bounds = array<i64: 64, 128>}, {pipeline_mode = #tpu.pipeline_mode<synchronous>, transform_indices = @transform_1, window_bounds = array<i64: 8, 128>}, {pipeline_mode = #tpu.pipeline_mode<synchronous>, transform_indices = @transform_2, window_bounds = array<i64: 128, 128>}, {pipeline_mode = #tpu.pipeline_mode<synchronous>, transform_indices = @transform_3, window_bounds = array<i64: 2, 128, 384>}, {pipeline_mode = #tpu.pipeline_mode<synchronous>, transform_indices = @transform_4, window_bounds = array<i64: 2, 128, 128>}, {pipeline_mode = #tpu.pipeline_mode<synchronous>, transform_indices = @transform_5, window_bounds = array<i64: 2, 1, 128>}, {pipeline_mode = #tpu.pipeline_mode<synchronous>, transform_indices = @transform_6, window_bounds = array<i64: 2, 1, 128>}, {pipeline_mode = #tpu.pipeline_mode<synchronous>, transform_indices = @transform_7, window_bounds = array<i64: 2, 1, 128>}, {pipeline_mode = #tpu.pipeline_mode<synchronous>, transform_indices = @transform_8, window_bounds = array<i64: 2, 128, 256>}, {pipeline_mode = #tpu.pipeline_mode<synchronous>, transform_indices = @transform_9, window_bounds = array<i64: 2, 1, 256>}, {pipeline_mode = #tpu.pipeline_mode<synchronous>, transform_indices = @transform_10, window_bounds = array<i64: 2, 256, 128>}, {pipeline_mode = #tpu.pipeline_mode<synchronous>, transform_indices = @transform_11, window_bounds = array<i64: 2, 1, 128>}, {transform_indices = @transform_12, window_bounds = array<i64: 64, 128>}]} {
    %c0 = arith.constant 0 : index
    %c0_0 = arith.constant 0 : index
    %0 = vector.load %arg1[%c0, %c0_0] : memref<64x128xbf16, #tpu.memory_space<vmem>>, vector<64x128xbf16>
    %1 = arith.extf %0 : vector<64x128xbf16> to vector<64x128xf32>
    %2 = vector.shape_cast %1 : vector<64x128xf32> to vector<8x8x128xf32>
    %c0_1 = arith.constant 0 : index
    %c0_2 = arith.constant 0 : index
    %3 = vector.load %arg2[%c0_1, %c0_2] : memref<8x128xf32, #tpu.memory_space<vmem>>, vector<8x128xf32>
    %4 = vector.shape_cast %3 : vector<8x128xf32> to vector<1x8x128xf32>
    %5 = vector.broadcast %4 : vector<1x8x128xf32> to vector<8x8x128xf32>
    %6 = arith.addf %2, %5 : vector<8x8x128xf32>
    %7 = vector.shape_cast %6 : vector<8x8x128xf32> to vector<64x128xf32>
    %8 = tpu.iota {dimensions = array<i32: 0>} : vector<64x1xi32>
    %c4_i32 = arith.constant 4 : i32
    %c0_i32 = arith.constant 0 : i32
    %9 = arith.cmpi eq, %c4_i32, %c0_i32 : i32
    %c1_i32 = arith.constant 1 : i32
    %10 = arith.select %9, %c1_i32, %c4_i32 : i32
    %11 = vector.broadcast %10 : i32 to vector<64x1xi32>
    %12 = arith.remsi %8, %11 : vector<64x1xi32>
    %c0_i32_3 = arith.constant 0 : i32
    %13 = vector.broadcast %c0_i32_3 : i32 to vector<64x1xi32>
    %14 = arith.cmpi ne, %12, %13 : vector<64x1xi32>
    %c0_i32_4 = arith.constant 0 : i32
    %15 = vector.broadcast %c0_i32_4 : i32 to vector<64x1xi32>
    %16 = arith.cmpi slt, %12, %15 : vector<64x1xi32>
    %c0_i32_5 = arith.constant 0 : i32
    %17 = arith.cmpi slt, %10, %c0_i32_5 : i32
    %18 = vector.broadcast %17 : i1 to vector<64x1xi1>
    %19 = vector.broadcast %18 : vector<64x1xi1> to vector<64x1xi1>
    %20 = arith.xori %16, %19 : vector<64x1xi1>
    %21 = arith.andi %20, %14 : vector<64x1xi1>
    %22 = vector.broadcast %10 : i32 to vector<64x1xi32>
    %23 = arith.addi %12, %22 : vector<64x1xi32>
    %24 = arith.select %21, %23, %12 : vector<64x1xi1>, vector<64x1xi32>
    %c3_i32 = arith.constant 3 : i32
    %25 = vector.broadcast %c3_i32 : i32 to vector<64x1xi32>
    %26 = arith.subi %25, %24 : vector<64x1xi32>
    %27 = arith.sitofp %26 : vector<64x1xi32> to vector<64x1xf32>
    %c0_6 = arith.constant 0 : index
    %c0_7 = arith.constant 0 : index
    %28 = vector.load %arg3[%c0_6, %c0_7] : memref<128x128xbf16, #tpu.memory_space<vmem>>, vector<128x128xbf16>
    %29 = arith.truncf %7 : vector<64x128xf32> to vector<64x128xbf16>
    %c0_8 = arith.constant 0 : index
    %c0_9 = arith.constant 0 : index
    %c0_10 = arith.constant 0 : index
    %30 = vector.load %arg4[%c0_8, %c0_9, %c0_10] : memref<2x128x384xbf16, #tpu.memory_space<vmem>>, vector<1x128x384xbf16>
    %31 = vector.shape_cast %30 : vector<1x128x384xbf16> to vector<128x384xbf16>
    %cst = arith.constant dense<0.000000e+00> : vector<64x384xf32>
    %32 = tpu.matmul %29, %31, %cst {dimension_numbers = #tpu.dot_dimension_numbers<[1], [0], [0], [1], [0, 0, 1, 1], [], []>} : vector<64x128xbf16>, vector<128x384xbf16>, vector<64x384xf32> -> vector<64x384xf32>
    %33 = vector.extract_strided_slice %32 {offsets = [0, 0], sizes = [64, 128], strides = [1, 1]} : vector<64x384xf32> to vector<64x128xf32>
    %34 = vector.extract_strided_slice %32 {offsets = [0, 128], sizes = [64, 128], strides = [1, 1]} : vector<64x384xf32> to vector<64x128xf32>
    %35 = vector.extract_strided_slice %32 {offsets = [0, 256], sizes = [64, 128], strides = [1, 1]} : vector<64x384xf32> to vector<64x128xf32>
    %36 = arith.mulf %33, %34 : vector<64x128xf32>
    %37 = arith.truncf %36 : vector<64x128xf32> to vector<64x128xbf16>
    %cst_11 = arith.constant dense<0.000000e+00> : vector<64x128xf32>
    %38 = tpu.matmul %37, %28, %cst_11 {dimension_numbers = #tpu.dot_dimension_numbers<[1], [0], [0], [1], [0, 0, 1, 1], [], []>} : vector<64x128xbf16>, vector<128x128xbf16>, vector<64x128xf32> -> vector<64x128xf32>
    %c0_i32_12 = arith.constant 0 : i32
    %39 = vector.broadcast %c0_i32_12 : i32 to vector<64x1xi32>
    %40 = arith.cmpi sge, %24, %39 : vector<64x1xi32>
    %cst_13 = arith.constant -1.000000e+30 : f32
    %41 = vector.shape_cast %40 : vector<64x1xi1> to vector<64x1xi1>
    %42 = vector.broadcast %41 : vector<64x1xi1> to vector<64x128xi1>
    %43 = vector.broadcast %cst_13 : f32 to vector<64x128xf32>
    %44 = arith.select %42, %38, %43 : vector<64x128xi1>, vector<64x128xf32>
    %45 = vector.extract_strided_slice %34 {offsets = [63, 0], sizes = [1, 128], strides = [1, 1]} : vector<64x128xf32> to vector<1x128xf32>
    %46 = vector.extract_strided_slice %34 {offsets = [0, 0], sizes = [63, 128], strides = [1, 1]} : vector<64x128xf32> to vector<63x128xf32>
    %47 = tpu.concatenate %45, %46 in 0 : vector<1x128xf32>, vector<63x128xf32> -> vector<64x128xf32>
    %48 = arith.mulf %33, %47 : vector<64x128xf32>
    %49 = arith.truncf %48 : vector<64x128xf32> to vector<64x128xbf16>
    %cst_14 = arith.constant dense<0.000000e+00> : vector<64x128xf32>
    %50 = tpu.matmul %49, %28, %cst_14 {dimension_numbers = #tpu.dot_dimension_numbers<[1], [0], [0], [1], [0, 0, 1, 1], [], []>} : vector<64x128xbf16>, vector<128x128xbf16>, vector<64x128xf32> -> vector<64x128xf32>
    %c1_i32_15 = arith.constant 1 : i32
    %51 = vector.broadcast %c1_i32_15 : i32 to vector<64x1xi32>
    %52 = arith.cmpi sge, %24, %51 : vector<64x1xi32>
    %cst_16 = arith.constant -1.000000e+30 : f32
    %53 = vector.shape_cast %52 : vector<64x1xi1> to vector<64x1xi1>
    %54 = vector.broadcast %53 : vector<64x1xi1> to vector<64x128xi1>
    %55 = vector.broadcast %cst_16 : f32 to vector<64x128xf32>
    %56 = arith.select %54, %50, %55 : vector<64x128xi1>, vector<64x128xf32>
    %57 = vector.extract_strided_slice %34 {offsets = [62, 0], sizes = [2, 128], strides = [1, 1]} : vector<64x128xf32> to vector<2x128xf32>
    %58 = vector.extract_strided_slice %34 {offsets = [0, 0], sizes = [62, 128], strides = [1, 1]} : vector<64x128xf32> to vector<62x128xf32>
    %59 = tpu.concatenate %57, %58 in 0 : vector<2x128xf32>, vector<62x128xf32> -> vector<64x128xf32>
    %60 = arith.mulf %33, %59 : vector<64x128xf32>
    %61 = arith.truncf %60 : vector<64x128xf32> to vector<64x128xbf16>
    %cst_17 = arith.constant dense<0.000000e+00> : vector<64x128xf32>
    %62 = tpu.matmul %61, %28, %cst_17 {dimension_numbers = #tpu.dot_dimension_numbers<[1], [0], [0], [1], [0, 0, 1, 1], [], []>} : vector<64x128xbf16>, vector<128x128xbf16>, vector<64x128xf32> -> vector<64x128xf32>
    %c2_i32 = arith.constant 2 : i32
    %63 = vector.broadcast %c2_i32 : i32 to vector<64x1xi32>
    %64 = arith.cmpi sge, %24, %63 : vector<64x1xi32>
    %cst_18 = arith.constant -1.000000e+30 : f32
    %65 = vector.shape_cast %64 : vector<64x1xi1> to vector<64x1xi1>
    %66 = vector.broadcast %65 : vector<64x1xi1> to vector<64x128xi1>
    %67 = vector.broadcast %cst_18 : f32 to vector<64x128xf32>
    %68 = arith.select %66, %62, %67 : vector<64x128xi1>, vector<64x128xf32>
    %69 = vector.extract_strided_slice %34 {offsets = [61, 0], sizes = [3, 128], strides = [1, 1]} : vector<64x128xf32> to vector<3x128xf32>
    %70 = vector.extract_strided_slice %34 {offsets = [0, 0], sizes = [61, 128], strides = [1, 1]} : vector<64x128xf32> to vector<61x128xf32>
    %71 = tpu.concatenate %69, %70 in 0 : vector<3x128xf32>, vector<61x128xf32> -> vector<64x128xf32>
    %72 = arith.mulf %33, %71 : vector<64x128xf32>
    %73 = arith.truncf %72 : vector<64x128xf32> to vector<64x128xbf16>
    %cst_19 = arith.constant dense<0.000000e+00> : vector<64x128xf32>
    %74 = tpu.matmul %73, %28, %cst_19 {dimension_numbers = #tpu.dot_dimension_numbers<[1], [0], [0], [1], [0, 0, 1, 1], [], []>} : vector<64x128xbf16>, vector<128x128xbf16>, vector<64x128xf32> -> vector<64x128xf32>
    %c3_i32_20 = arith.constant 3 : i32
    %75 = vector.broadcast %c3_i32_20 : i32 to vector<64x1xi32>
    %76 = arith.cmpi sge, %24, %75 : vector<64x1xi32>
    %cst_21 = arith.constant -1.000000e+30 : f32
    %77 = vector.shape_cast %76 : vector<64x1xi1> to vector<64x1xi1>
    %78 = vector.broadcast %77 : vector<64x1xi1> to vector<64x128xi1>
    %79 = vector.broadcast %cst_21 : f32 to vector<64x128xf32>
    %80 = arith.select %78, %74, %79 : vector<64x128xi1>, vector<64x128xf32>
    %81 = arith.maximumf %44, %56 : vector<64x128xf32>
    %82 = arith.maximumf %81, %68 : vector<64x128xf32>
    %83 = arith.maximumf %82, %80 : vector<64x128xf32>
    %84 = arith.subf %44, %83 : vector<64x128xf32>
    %85 = math.exp %84 : vector<64x128xf32>
    %86 = arith.subf %56, %83 : vector<64x128xf32>
    %87 = math.exp %86 : vector<64x128xf32>
    %88 = arith.subf %68, %83 : vector<64x128xf32>
    %89 = math.exp %88 : vector<64x128xf32>
    %90 = arith.subf %80, %83 : vector<64x128xf32>
    %91 = math.exp %90 : vector<64x128xf32>
    %92 = arith.addf %85, %87 : vector<64x128xf32>
    %93 = arith.addf %92, %89 : vector<64x128xf32>
    %94 = arith.addf %93, %91 : vector<64x128xf32>
    %95 = tpu.reciprocal %94 {approx = true} : vector<64x128xf32> -> vector<64x128xf32>
    %c0_i32_22 = arith.constant 0 : i32
    %96 = vector.broadcast %c0_i32_22 : i32 to vector<64x1xi32>
    %97 = arith.cmpi sge, %24, %96 : vector<64x1xi32>
    %98 = arith.mulf %85, %95 : vector<64x128xf32>
    %99 = math.exp %98 : vector<64x128xf32>
    %cst_23 = arith.constant 0.000000e+00 : f32
    %100 = vector.shape_cast %97 : vector<64x1xi1> to vector<64x1xi1>
    %101 = vector.broadcast %100 : vector<64x1xi1> to vector<64x128xi1>
    %102 = vector.broadcast %cst_23 : f32 to vector<64x128xf32>
    %103 = arith.select %101, %99, %102 : vector<64x128xi1>, vector<64x128xf32>
    %c1_i32_24 = arith.constant 1 : i32
    %104 = vector.broadcast %c1_i32_24 : i32 to vector<64x1xi32>
    %105 = arith.cmpi sge, %24, %104 : vector<64x1xi32>
    %106 = arith.mulf %87, %95 : vector<64x128xf32>
    %107 = math.exp %106 : vector<64x128xf32>
    %cst_25 = arith.constant 0.000000e+00 : f32
    %108 = vector.shape_cast %105 : vector<64x1xi1> to vector<64x1xi1>
    %109 = vector.broadcast %108 : vector<64x1xi1> to vector<64x128xi1>
    %110 = vector.broadcast %cst_25 : f32 to vector<64x128xf32>
    %111 = arith.select %109, %107, %110 : vector<64x128xi1>, vector<64x128xf32>
    %c2_i32_26 = arith.constant 2 : i32
    %112 = vector.broadcast %c2_i32_26 : i32 to vector<64x1xi32>
    %113 = arith.cmpi sge, %24, %112 : vector<64x1xi32>
    %114 = arith.mulf %89, %95 : vector<64x128xf32>
    %115 = math.exp %114 : vector<64x128xf32>
    %cst_27 = arith.constant 0.000000e+00 : f32
    %116 = vector.shape_cast %113 : vector<64x1xi1> to vector<64x1xi1>
    %117 = vector.broadcast %116 : vector<64x1xi1> to vector<64x128xi1>
    %118 = vector.broadcast %cst_27 : f32 to vector<64x128xf32>
    %119 = arith.select %117, %115, %118 : vector<64x128xi1>, vector<64x128xf32>
    %c3_i32_28 = arith.constant 3 : i32
    %120 = vector.broadcast %c3_i32_28 : i32 to vector<64x1xi32>
    %121 = arith.cmpi sge, %24, %120 : vector<64x1xi32>
    %122 = arith.mulf %91, %95 : vector<64x128xf32>
    %123 = math.exp %122 : vector<64x128xf32>
    %cst_29 = arith.constant 0.000000e+00 : f32
    %124 = vector.shape_cast %121 : vector<64x1xi1> to vector<64x1xi1>
    %125 = vector.broadcast %124 : vector<64x1xi1> to vector<64x128xi1>
    %126 = vector.broadcast %cst_29 : f32 to vector<64x128xf32>
    %127 = arith.select %125, %123, %126 : vector<64x128xi1>, vector<64x128xf32>
    %128 = arith.addf %103, %111 : vector<64x128xf32>
    %129 = arith.addf %128, %119 : vector<64x128xf32>
    %130 = arith.addf %129, %127 : vector<64x128xf32>
    %131 = vector.broadcast %27 : vector<64x1xf32> to vector<64x128xf32>
    %132 = arith.addf %130, %131 : vector<64x128xf32>
    %133 = arith.mulf %103, %35 : vector<64x128xf32>
    %134 = vector.extract_strided_slice %35 {offsets = [63, 0], sizes = [1, 128], strides = [1, 1]} : vector<64x128xf32> to vector<1x128xf32>
    %135 = vector.extract_strided_slice %35 {offsets = [0, 0], sizes = [63, 128], strides = [1, 1]} : vector<64x128xf32> to vector<63x128xf32>
    %136 = tpu.concatenate %134, %135 in 0 : vector<1x128xf32>, vector<63x128xf32> -> vector<64x128xf32>
    %137 = arith.mulf %111, %136 : vector<64x128xf32>
    %138 = arith.addf %133, %137 : vector<64x128xf32>
    %c3_i32_30 = arith.constant 3 : i32
    %139 = vector.broadcast %c3_i32_30 : i32 to vector<64x1xi32>
    %140 = arith.cmpi slt, %24, %139 : vector<64x1xi32>
    %141 = vector.extract_strided_slice %35 {offsets = [1, 0], sizes = [63, 128], strides = [1, 1]} : vector<64x128xf32> to vector<63x128xf32>
    %142 = vector.extract_strided_slice %35 {offsets = [0, 0], sizes = [1, 128], strides = [1, 1]} : vector<64x128xf32> to vector<1x128xf32>
    %143 = tpu.concatenate %141, %142 in 0 : vector<63x128xf32>, vector<1x128xf32> -> vector<64x128xf32>
    %cst_31 = arith.constant 0.000000e+00 : f32
    %144 = vector.shape_cast %140 : vector<64x1xi1> to vector<64x1xi1>
    %145 = vector.broadcast %144 : vector<64x1xi1> to vector<64x128xi1>
    %146 = vector.broadcast %cst_31 : f32 to vector<64x128xf32>
    %147 = arith.select %145, %143, %146 : vector<64x128xi1>, vector<64x128xf32>
    %148 = arith.addf %138, %147 : vector<64x128xf32>
    %149 = vector.extract_strided_slice %35 {offsets = [62, 0], sizes = [2, 128], strides = [1, 1]} : vector<64x128xf32> to vector<2x128xf32>
    %150 = vector.extract_strided_slice %35 {offsets = [0, 0], sizes = [62, 128], strides = [1, 1]} : vector<64x128xf32> to vector<62x128xf32>
    %151 = tpu.concatenate %149, %150 in 0 : vector<2x128xf32>, vector<62x128xf32> -> vector<64x128xf32>
    %152 = arith.mulf %119, %151 : vector<64x128xf32>
    %153 = arith.addf %148, %152 : vector<64x128xf32>
    %c2_i32_32 = arith.constant 2 : i32
    %154 = vector.broadcast %c2_i32_32 : i32 to vector<64x1xi32>
    %155 = arith.cmpi slt, %24, %154 : vector<64x1xi32>
    %156 = vector.extract_strided_slice %35 {offsets = [2, 0], sizes = [62, 128], strides = [1, 1]} : vector<64x128xf32> to vector<62x128xf32>
    %157 = vector.extract_strided_slice %35 {offsets = [0, 0], sizes = [2, 128], strides = [1, 1]} : vector<64x128xf32> to vector<2x128xf32>
    %158 = tpu.concatenate %156, %157 in 0 : vector<62x128xf32>, vector<2x128xf32> -> vector<64x128xf32>
    %cst_33 = arith.constant 0.000000e+00 : f32
    %159 = vector.shape_cast %155 : vector<64x1xi1> to vector<64x1xi1>
    %160 = vector.broadcast %159 : vector<64x1xi1> to vector<64x128xi1>
    %161 = vector.broadcast %cst_33 : f32 to vector<64x128xf32>
    %162 = arith.select %160, %158, %161 : vector<64x128xi1>, vector<64x128xf32>
    %163 = arith.addf %153, %162 : vector<64x128xf32>
    %164 = vector.extract_strided_slice %35 {offsets = [61, 0], sizes = [3, 128], strides = [1, 1]} : vector<64x128xf32> to vector<3x128xf32>
    %165 = vector.extract_strided_slice %35 {offsets = [0, 0], sizes = [61, 128], strides = [1, 1]} : vector<64x128xf32> to vector<61x128xf32>
    %166 = tpu.concatenate %164, %165 in 0 : vector<3x128xf32>, vector<61x128xf32> -> vector<64x128xf32>
    %167 = arith.mulf %127, %166 : vector<64x128xf32>
    %168 = arith.addf %163, %167 : vector<64x128xf32>
    %c1_i32_34 = arith.constant 1 : i32
    %169 = vector.broadcast %c1_i32_34 : i32 to vector<64x1xi32>
    %170 = arith.cmpi slt, %24, %169 : vector<64x1xi32>
    %171 = vector.extract_strided_slice %35 {offsets = [3, 0], sizes = [61, 128], strides = [1, 1]} : vector<64x128xf32> to vector<61x128xf32>
    %172 = vector.extract_strided_slice %35 {offsets = [0, 0], sizes = [3, 128], strides = [1, 1]} : vector<64x128xf32> to vector<3x128xf32>
    %173 = tpu.concatenate %171, %172 in 0 : vector<61x128xf32>, vector<3x128xf32> -> vector<64x128xf32>
    %cst_35 = arith.constant 0.000000e+00 : f32
    %174 = vector.shape_cast %170 : vector<64x1xi1> to vector<64x1xi1>
    %175 = vector.broadcast %174 : vector<64x1xi1> to vector<64x128xi1>
    %176 = vector.broadcast %cst_35 : f32 to vector<64x128xf32>
    %177 = arith.select %175, %173, %176 : vector<64x128xi1>, vector<64x128xf32>
    %178 = arith.addf %168, %177 : vector<64x128xf32>
    %179 = tpu.reciprocal %132 {approx = true} : vector<64x128xf32> -> vector<64x128xf32>
    %180 = arith.mulf %178, %179 : vector<64x128xf32>
    %181 = arith.truncf %180 : vector<64x128xf32> to vector<64x128xbf16>
    %c0_36 = arith.constant 0 : index
    %c0_37 = arith.constant 0 : index
    %c0_38 = arith.constant 0 : index
    %182 = vector.load %arg5[%c0_36, %c0_37, %c0_38] : memref<2x128x128xbf16, #tpu.memory_space<vmem>>, vector<1x128x128xbf16>
    %183 = vector.shape_cast %182 : vector<1x128x128xbf16> to vector<128x128xbf16>
    %cst_39 = arith.constant dense<0.000000e+00> : vector<64x128xf32>
    %184 = tpu.matmul %181, %183, %cst_39 {dimension_numbers = #tpu.dot_dimension_numbers<[1], [0], [0], [1], [0, 0, 1, 1], [], []>} : vector<64x128xbf16>, vector<128x128xbf16>, vector<64x128xf32> -> vector<64x128xf32>
    %185 = arith.addf %7, %184 : vector<64x128xf32>
    %c0_40 = arith.constant 0 : index
    %c0_41 = arith.constant 0 : index
    %c0_42 = arith.constant 0 : index
    %186 = vector.load %arg6[%c0_40, %c0_41, %c0_42] : memref<2x1x128xf32, #tpu.memory_space<vmem>>, vector<1x1x128xf32>
    %187 = vector.shape_cast %186 : vector<1x1x128xf32> to vector<1x128xf32>
    %188 = vector.broadcast %187 : vector<1x128xf32> to vector<64x128xf32>
    %189 = arith.addf %185, %188 : vector<64x128xf32>
    %cst_43 = arith.constant dense<0.000000e+00> : vector<64xf32>
    %190 = vector.multi_reduction <add>, %189, %cst_43 [1] : vector<64x128xf32> to vector<64xf32>
    %191 = vector.shape_cast %190 : vector<64xf32> to vector<64x1xf32>
    %cst_44 = arith.constant 1.280000e+02 : f32
    %192 = vector.broadcast %cst_44 : f32 to vector<64x1xf32>
    %193 = arith.divf %191, %192 : vector<64x1xf32>
    %194 = vector.broadcast %193 : vector<64x1xf32> to vector<64x128xf32>
    %195 = arith.subf %189, %194 : vector<64x128xf32>
    %196 = arith.mulf %195, %195 : vector<64x128xf32>
    %cst_45 = arith.constant dense<0.000000e+00> : vector<64xf32>
    %197 = vector.multi_reduction <add>, %196, %cst_45 [1] : vector<64x128xf32> to vector<64xf32>
    %198 = vector.shape_cast %197 : vector<64xf32> to vector<64x1xf32>
    %cst_46 = arith.constant 1.280000e+02 : f32
    %199 = vector.broadcast %cst_46 : f32 to vector<64x1xf32>
    %200 = arith.divf %198, %199 : vector<64x1xf32>
    %201 = vector.broadcast %193 : vector<64x1xf32> to vector<64x128xf32>
    %202 = arith.subf %189, %201 : vector<64x128xf32>
    %cst_47 = arith.constant 9.99999974E-6 : f32
    %203 = vector.broadcast %cst_47 : f32 to vector<64x1xf32>
    %204 = arith.addf %200, %203 : vector<64x1xf32>
    %205 = math.rsqrt %204 : vector<64x1xf32>
    %206 = vector.broadcast %205 : vector<64x1xf32> to vector<64x128xf32>
    %207 = arith.mulf %202, %206 : vector<64x128xf32>
    %c0_48 = arith.constant 0 : index
    %c0_49 = arith.constant 0 : index
    %c0_50 = arith.constant 0 : index
    %208 = vector.load %arg7[%c0_48, %c0_49, %c0_50] : memref<2x1x128xf32, #tpu.memory_space<vmem>>, vector<1x1x128xf32>
    %209 = vector.shape_cast %208 : vector<1x1x128xf32> to vector<1x128xf32>
    %210 = vector.broadcast %209 : vector<1x128xf32> to vector<64x128xf32>
    %211 = arith.mulf %207, %210 : vector<64x128xf32>
    %c0_51 = arith.constant 0 : index
    %c0_52 = arith.constant 0 : index
    %c0_53 = arith.constant 0 : index
    %212 = vector.load %arg8[%c0_51, %c0_52, %c0_53] : memref<2x1x128xf32, #tpu.memory_space<vmem>>, vector<1x1x128xf32>
    %213 = vector.shape_cast %212 : vector<1x1x128xf32> to vector<1x128xf32>
    %214 = vector.broadcast %213 : vector<1x128xf32> to vector<64x128xf32>
    %215 = arith.addf %211, %214 : vector<64x128xf32>
    %216 = arith.truncf %215 : vector<64x128xf32> to vector<64x128xbf16>
    %c0_54 = arith.constant 0 : index
    %c0_55 = arith.constant 0 : index
    %c0_56 = arith.constant 0 : index
    %217 = vector.load %arg9[%c0_54, %c0_55, %c0_56] : memref<2x128x256xbf16, #tpu.memory_space<vmem>>, vector<1x128x256xbf16>
    %218 = vector.shape_cast %217 : vector<1x128x256xbf16> to vector<128x256xbf16>
    %cst_57 = arith.constant dense<0.000000e+00> : vector<64x256xf32>
    %219 = tpu.matmul %216, %218, %cst_57 {dimension_numbers = #tpu.dot_dimension_numbers<[1], [0], [0], [1], [0, 0, 1, 1], [], []>} : vector<64x128xbf16>, vector<128x256xbf16>, vector<64x256xf32> -> vector<64x256xf32>
    %c0_58 = arith.constant 0 : index
    %c0_59 = arith.constant 0 : index
    %c0_60 = arith.constant 0 : index
    %220 = vector.load %arg10[%c0_58, %c0_59, %c0_60] : memref<2x1x256xf32, #tpu.memory_space<vmem>>, vector<1x1x256xf32>
    %221 = vector.shape_cast %220 : vector<1x1x256xf32> to vector<1x256xf32>
    %222 = vector.broadcast %221 : vector<1x256xf32> to vector<64x256xf32>
    %223 = arith.addf %219, %222 : vector<64x256xf32>
    %cst_61 = arith.constant 5.000000e-01 : f32
    %224 = vector.broadcast %cst_61 : f32 to vector<64x256xf32>
    %225 = arith.mulf %224, %223 : vector<64x256xf32>
    %cst_62 = arith.constant 4.471500e-02 : f32
    %226 = vector.broadcast %cst_62 : f32 to vector<64x256xf32>
    %227 = arith.mulf %226, %223 : vector<64x256xf32>
    %228 = arith.mulf %227, %223 : vector<64x256xf32>
    %229 = arith.mulf %228, %223 : vector<64x256xf32>
    %230 = arith.addf %223, %229 : vector<64x256xf32>
    %cst_63 = arith.constant 0.797884583 : f32
    %231 = vector.broadcast %cst_63 : f32 to vector<64x256xf32>
    %232 = arith.mulf %231, %230 : vector<64x256xf32>
    %233 = math.tanh %232 : vector<64x256xf32>
    %cst_64 = arith.constant 1.000000e+00 : f32
    %234 = vector.broadcast %cst_64 : f32 to vector<64x256xf32>
    %235 = arith.addf %234, %233 : vector<64x256xf32>
    %236 = arith.mulf %225, %235 : vector<64x256xf32>
    %237 = arith.truncf %236 : vector<64x256xf32> to vector<64x256xbf16>
    %c0_65 = arith.constant 0 : index
    %c0_66 = arith.constant 0 : index
    %c0_67 = arith.constant 0 : index
    %238 = vector.load %arg11[%c0_65, %c0_66, %c0_67] : memref<2x256x128xbf16, #tpu.memory_space<vmem>>, vector<1x256x128xbf16>
    %239 = vector.shape_cast %238 : vector<1x256x128xbf16> to vector<256x128xbf16>
    %cst_68 = arith.constant dense<0.000000e+00> : vector<64x128xf32>
    %240 = tpu.matmul %237, %239, %cst_68 {dimension_numbers = #tpu.dot_dimension_numbers<[1], [0], [0], [1], [0, 0, 1, 1], [], []>} : vector<64x256xbf16>, vector<256x128xbf16>, vector<64x128xf32> -> vector<64x128xf32>
    %241 = arith.addf %189, %240 : vector<64x128xf32>
    %c0_69 = arith.constant 0 : index
    %c0_70 = arith.constant 0 : index
    %c0_71 = arith.constant 0 : index
    %242 = vector.load %arg12[%c0_69, %c0_70, %c0_71] : memref<2x1x128xf32, #tpu.memory_space<vmem>>, vector<1x1x128xf32>
    %243 = vector.shape_cast %242 : vector<1x1x128xf32> to vector<1x128xf32>
    %244 = vector.broadcast %243 : vector<1x128xf32> to vector<64x128xf32>
    %245 = arith.addf %241, %244 : vector<64x128xf32>
    %246 = arith.truncf %245 : vector<64x128xf32> to vector<64x128xbf16>
    %c1 = arith.constant 1 : index
    %c0_72 = arith.constant 0 : index
    %c0_73 = arith.constant 0 : index
    %247 = vector.load %arg4[%c1, %c0_72, %c0_73] : memref<2x128x384xbf16, #tpu.memory_space<vmem>>, vector<1x128x384xbf16>
    %248 = vector.shape_cast %247 : vector<1x128x384xbf16> to vector<128x384xbf16>
    %cst_74 = arith.constant dense<0.000000e+00> : vector<64x384xf32>
    %249 = tpu.matmul %246, %248, %cst_74 {dimension_numbers = #tpu.dot_dimension_numbers<[1], [0], [0], [1], [0, 0, 1, 1], [], []>} : vector<64x128xbf16>, vector<128x384xbf16>, vector<64x384xf32> -> vector<64x384xf32>
    %250 = vector.extract_strided_slice %249 {offsets = [0, 0], sizes = [64, 128], strides = [1, 1]} : vector<64x384xf32> to vector<64x128xf32>
    %251 = vector.extract_strided_slice %249 {offsets = [0, 128], sizes = [64, 128], strides = [1, 1]} : vector<64x384xf32> to vector<64x128xf32>
    %252 = vector.extract_strided_slice %249 {offsets = [0, 256], sizes = [64, 128], strides = [1, 1]} : vector<64x384xf32> to vector<64x128xf32>
    %253 = arith.mulf %250, %251 : vector<64x128xf32>
    %254 = arith.truncf %253 : vector<64x128xf32> to vector<64x128xbf16>
    %cst_75 = arith.constant dense<0.000000e+00> : vector<64x128xf32>
    %255 = tpu.matmul %254, %28, %cst_75 {dimension_numbers = #tpu.dot_dimension_numbers<[1], [0], [0], [1], [0, 0, 1, 1], [], []>} : vector<64x128xbf16>, vector<128x128xbf16>, vector<64x128xf32> -> vector<64x128xf32>
    %c0_i32_76 = arith.constant 0 : i32
    %256 = vector.broadcast %c0_i32_76 : i32 to vector<64x1xi32>
    %257 = arith.cmpi sge, %24, %256 : vector<64x1xi32>
    %cst_77 = arith.constant -1.000000e+30 : f32
    %258 = vector.shape_cast %257 : vector<64x1xi1> to vector<64x1xi1>
    %259 = vector.broadcast %258 : vector<64x1xi1> to vector<64x128xi1>
    %260 = vector.broadcast %cst_77 : f32 to vector<64x128xf32>
    %261 = arith.select %259, %255, %260 : vector<64x128xi1>, vector<64x128xf32>
    %262 = vector.extract_strided_slice %251 {offsets = [63, 0], sizes = [1, 128], strides = [1, 1]} : vector<64x128xf32> to vector<1x128xf32>
    %263 = vector.extract_strided_slice %251 {offsets = [0, 0], sizes = [63, 128], strides = [1, 1]} : vector<64x128xf32> to vector<63x128xf32>
    %264 = tpu.concatenate %262, %263 in 0 : vector<1x128xf32>, vector<63x128xf32> -> vector<64x128xf32>
    %265 = arith.mulf %250, %264 : vector<64x128xf32>
    %266 = arith.truncf %265 : vector<64x128xf32> to vector<64x128xbf16>
    %cst_78 = arith.constant dense<0.000000e+00> : vector<64x128xf32>
    %267 = tpu.matmul %266, %28, %cst_78 {dimension_numbers = #tpu.dot_dimension_numbers<[1], [0], [0], [1], [0, 0, 1, 1], [], []>} : vector<64x128xbf16>, vector<128x128xbf16>, vector<64x128xf32> -> vector<64x128xf32>
    %c1_i32_79 = arith.constant 1 : i32
    %268 = vector.broadcast %c1_i32_79 : i32 to vector<64x1xi32>
    %269 = arith.cmpi sge, %24, %268 : vector<64x1xi32>
    %cst_80 = arith.constant -1.000000e+30 : f32
    %270 = vector.shape_cast %269 : vector<64x1xi1> to vector<64x1xi1>
    %271 = vector.broadcast %270 : vector<64x1xi1> to vector<64x128xi1>
    %272 = vector.broadcast %cst_80 : f32 to vector<64x128xf32>
    %273 = arith.select %271, %267, %272 : vector<64x128xi1>, vector<64x128xf32>
    %274 = vector.extract_strided_slice %251 {offsets = [62, 0], sizes = [2, 128], strides = [1, 1]} : vector<64x128xf32> to vector<2x128xf32>
    %275 = vector.extract_strided_slice %251 {offsets = [0, 0], sizes = [62, 128], strides = [1, 1]} : vector<64x128xf32> to vector<62x128xf32>
    %276 = tpu.concatenate %274, %275 in 0 : vector<2x128xf32>, vector<62x128xf32> -> vector<64x128xf32>
    %277 = arith.mulf %250, %276 : vector<64x128xf32>
    %278 = arith.truncf %277 : vector<64x128xf32> to vector<64x128xbf16>
    %cst_81 = arith.constant dense<0.000000e+00> : vector<64x128xf32>
    %279 = tpu.matmul %278, %28, %cst_81 {dimension_numbers = #tpu.dot_dimension_numbers<[1], [0], [0], [1], [0, 0, 1, 1], [], []>} : vector<64x128xbf16>, vector<128x128xbf16>, vector<64x128xf32> -> vector<64x128xf32>
    %c2_i32_82 = arith.constant 2 : i32
    %280 = vector.broadcast %c2_i32_82 : i32 to vector<64x1xi32>
    %281 = arith.cmpi sge, %24, %280 : vector<64x1xi32>
    %cst_83 = arith.constant -1.000000e+30 : f32
    %282 = vector.shape_cast %281 : vector<64x1xi1> to vector<64x1xi1>
    %283 = vector.broadcast %282 : vector<64x1xi1> to vector<64x128xi1>
    %284 = vector.broadcast %cst_83 : f32 to vector<64x128xf32>
    %285 = arith.select %283, %279, %284 : vector<64x128xi1>, vector<64x128xf32>
    %286 = vector.extract_strided_slice %251 {offsets = [61, 0], sizes = [3, 128], strides = [1, 1]} : vector<64x128xf32> to vector<3x128xf32>
    %287 = vector.extract_strided_slice %251 {offsets = [0, 0], sizes = [61, 128], strides = [1, 1]} : vector<64x128xf32> to vector<61x128xf32>
    %288 = tpu.concatenate %286, %287 in 0 : vector<3x128xf32>, vector<61x128xf32> -> vector<64x128xf32>
    %289 = arith.mulf %250, %288 : vector<64x128xf32>
    %290 = arith.truncf %289 : vector<64x128xf32> to vector<64x128xbf16>
    %cst_84 = arith.constant dense<0.000000e+00> : vector<64x128xf32>
    %291 = tpu.matmul %290, %28, %cst_84 {dimension_numbers = #tpu.dot_dimension_numbers<[1], [0], [0], [1], [0, 0, 1, 1], [], []>} : vector<64x128xbf16>, vector<128x128xbf16>, vector<64x128xf32> -> vector<64x128xf32>
    %c3_i32_85 = arith.constant 3 : i32
    %292 = vector.broadcast %c3_i32_85 : i32 to vector<64x1xi32>
    %293 = arith.cmpi sge, %24, %292 : vector<64x1xi32>
    %cst_86 = arith.constant -1.000000e+30 : f32
    %294 = vector.shape_cast %293 : vector<64x1xi1> to vector<64x1xi1>
    %295 = vector.broadcast %294 : vector<64x1xi1> to vector<64x128xi1>
    %296 = vector.broadcast %cst_86 : f32 to vector<64x128xf32>
    %297 = arith.select %295, %291, %296 : vector<64x128xi1>, vector<64x128xf32>
    %298 = arith.maximumf %261, %273 : vector<64x128xf32>
    %299 = arith.maximumf %298, %285 : vector<64x128xf32>
    %300 = arith.maximumf %299, %297 : vector<64x128xf32>
    %301 = arith.subf %261, %300 : vector<64x128xf32>
    %302 = math.exp %301 : vector<64x128xf32>
    %303 = arith.subf %273, %300 : vector<64x128xf32>
    %304 = math.exp %303 : vector<64x128xf32>
    %305 = arith.subf %285, %300 : vector<64x128xf32>
    %306 = math.exp %305 : vector<64x128xf32>
    %307 = arith.subf %297, %300 : vector<64x128xf32>
    %308 = math.exp %307 : vector<64x128xf32>
    %309 = arith.addf %302, %304 : vector<64x128xf32>
    %310 = arith.addf %309, %306 : vector<64x128xf32>
    %311 = arith.addf %310, %308 : vector<64x128xf32>
    %312 = tpu.reciprocal %311 {approx = true} : vector<64x128xf32> -> vector<64x128xf32>
    %c0_i32_87 = arith.constant 0 : i32
    %313 = vector.broadcast %c0_i32_87 : i32 to vector<64x1xi32>
    %314 = arith.cmpi sge, %24, %313 : vector<64x1xi32>
    %315 = arith.mulf %302, %312 : vector<64x128xf32>
    %316 = math.exp %315 : vector<64x128xf32>
    %cst_88 = arith.constant 0.000000e+00 : f32
    %317 = vector.shape_cast %314 : vector<64x1xi1> to vector<64x1xi1>
    %318 = vector.broadcast %317 : vector<64x1xi1> to vector<64x128xi1>
    %319 = vector.broadcast %cst_88 : f32 to vector<64x128xf32>
    %320 = arith.select %318, %316, %319 : vector<64x128xi1>, vector<64x128xf32>
    %c1_i32_89 = arith.constant 1 : i32
    %321 = vector.broadcast %c1_i32_89 : i32 to vector<64x1xi32>
    %322 = arith.cmpi sge, %24, %321 : vector<64x1xi32>
    %323 = arith.mulf %304, %312 : vector<64x128xf32>
    %324 = math.exp %323 : vector<64x128xf32>
    %cst_90 = arith.constant 0.000000e+00 : f32
    %325 = vector.shape_cast %322 : vector<64x1xi1> to vector<64x1xi1>
    %326 = vector.broadcast %325 : vector<64x1xi1> to vector<64x128xi1>
    %327 = vector.broadcast %cst_90 : f32 to vector<64x128xf32>
    %328 = arith.select %326, %324, %327 : vector<64x128xi1>, vector<64x128xf32>
    %c2_i32_91 = arith.constant 2 : i32
    %329 = vector.broadcast %c2_i32_91 : i32 to vector<64x1xi32>
    %330 = arith.cmpi sge, %24, %329 : vector<64x1xi32>
    %331 = arith.mulf %306, %312 : vector<64x128xf32>
    %332 = math.exp %331 : vector<64x128xf32>
    %cst_92 = arith.constant 0.000000e+00 : f32
    %333 = vector.shape_cast %330 : vector<64x1xi1> to vector<64x1xi1>
    %334 = vector.broadcast %333 : vector<64x1xi1> to vector<64x128xi1>
    %335 = vector.broadcast %cst_92 : f32 to vector<64x128xf32>
    %336 = arith.select %334, %332, %335 : vector<64x128xi1>, vector<64x128xf32>
    %c3_i32_93 = arith.constant 3 : i32
    %337 = vector.broadcast %c3_i32_93 : i32 to vector<64x1xi32>
    %338 = arith.cmpi sge, %24, %337 : vector<64x1xi32>
    %339 = arith.mulf %308, %312 : vector<64x128xf32>
    %340 = math.exp %339 : vector<64x128xf32>
    %cst_94 = arith.constant 0.000000e+00 : f32
    %341 = vector.shape_cast %338 : vector<64x1xi1> to vector<64x1xi1>
    %342 = vector.broadcast %341 : vector<64x1xi1> to vector<64x128xi1>
    %343 = vector.broadcast %cst_94 : f32 to vector<64x128xf32>
    %344 = arith.select %342, %340, %343 : vector<64x128xi1>, vector<64x128xf32>
    %345 = arith.addf %320, %328 : vector<64x128xf32>
    %346 = arith.addf %345, %336 : vector<64x128xf32>
    %347 = arith.addf %346, %344 : vector<64x128xf32>
    %348 = vector.broadcast %27 : vector<64x1xf32> to vector<64x128xf32>
    %349 = arith.addf %347, %348 : vector<64x128xf32>
    %350 = arith.mulf %320, %252 : vector<64x128xf32>
    %351 = vector.extract_strided_slice %252 {offsets = [63, 0], sizes = [1, 128], strides = [1, 1]} : vector<64x128xf32> to vector<1x128xf32>
    %352 = vector.extract_strided_slice %252 {offsets = [0, 0], sizes = [63, 128], strides = [1, 1]} : vector<64x128xf32> to vector<63x128xf32>
    %353 = tpu.concatenate %351, %352 in 0 : vector<1x128xf32>, vector<63x128xf32> -> vector<64x128xf32>
    %354 = arith.mulf %328, %353 : vector<64x128xf32>
    %355 = arith.addf %350, %354 : vector<64x128xf32>
    %c3_i32_95 = arith.constant 3 : i32
    %356 = vector.broadcast %c3_i32_95 : i32 to vector<64x1xi32>
    %357 = arith.cmpi slt, %24, %356 : vector<64x1xi32>
    %358 = vector.extract_strided_slice %252 {offsets = [1, 0], sizes = [63, 128], strides = [1, 1]} : vector<64x128xf32> to vector<63x128xf32>
    %359 = vector.extract_strided_slice %252 {offsets = [0, 0], sizes = [1, 128], strides = [1, 1]} : vector<64x128xf32> to vector<1x128xf32>
    %360 = tpu.concatenate %358, %359 in 0 : vector<63x128xf32>, vector<1x128xf32> -> vector<64x128xf32>
    %cst_96 = arith.constant 0.000000e+00 : f32
    %361 = vector.shape_cast %357 : vector<64x1xi1> to vector<64x1xi1>
    %362 = vector.broadcast %361 : vector<64x1xi1> to vector<64x128xi1>
    %363 = vector.broadcast %cst_96 : f32 to vector<64x128xf32>
    %364 = arith.select %362, %360, %363 : vector<64x128xi1>, vector<64x128xf32>
    %365 = arith.addf %355, %364 : vector<64x128xf32>
    %366 = vector.extract_strided_slice %252 {offsets = [62, 0], sizes = [2, 128], strides = [1, 1]} : vector<64x128xf32> to vector<2x128xf32>
    %367 = vector.extract_strided_slice %252 {offsets = [0, 0], sizes = [62, 128], strides = [1, 1]} : vector<64x128xf32> to vector<62x128xf32>
    %368 = tpu.concatenate %366, %367 in 0 : vector<2x128xf32>, vector<62x128xf32> -> vector<64x128xf32>
    %369 = arith.mulf %336, %368 : vector<64x128xf32>
    %370 = arith.addf %365, %369 : vector<64x128xf32>
    %c2_i32_97 = arith.constant 2 : i32
    %371 = vector.broadcast %c2_i32_97 : i32 to vector<64x1xi32>
    %372 = arith.cmpi slt, %24, %371 : vector<64x1xi32>
    %373 = vector.extract_strided_slice %252 {offsets = [2, 0], sizes = [62, 128], strides = [1, 1]} : vector<64x128xf32> to vector<62x128xf32>
    %374 = vector.extract_strided_slice %252 {offsets = [0, 0], sizes = [2, 128], strides = [1, 1]} : vector<64x128xf32> to vector<2x128xf32>
    %375 = tpu.concatenate %373, %374 in 0 : vector<62x128xf32>, vector<2x128xf32> -> vector<64x128xf32>
    %cst_98 = arith.constant 0.000000e+00 : f32
    %376 = vector.shape_cast %372 : vector<64x1xi1> to vector<64x1xi1>
    %377 = vector.broadcast %376 : vector<64x1xi1> to vector<64x128xi1>
    %378 = vector.broadcast %cst_98 : f32 to vector<64x128xf32>
    %379 = arith.select %377, %375, %378 : vector<64x128xi1>, vector<64x128xf32>
    %380 = arith.addf %370, %379 : vector<64x128xf32>
    %381 = vector.extract_strided_slice %252 {offsets = [61, 0], sizes = [3, 128], strides = [1, 1]} : vector<64x128xf32> to vector<3x128xf32>
    %382 = vector.extract_strided_slice %252 {offsets = [0, 0], sizes = [61, 128], strides = [1, 1]} : vector<64x128xf32> to vector<61x128xf32>
    %383 = tpu.concatenate %381, %382 in 0 : vector<3x128xf32>, vector<61x128xf32> -> vector<64x128xf32>
    %384 = arith.mulf %344, %383 : vector<64x128xf32>
    %385 = arith.addf %380, %384 : vector<64x128xf32>
    %c1_i32_99 = arith.constant 1 : i32
    %386 = vector.broadcast %c1_i32_99 : i32 to vector<64x1xi32>
    %387 = arith.cmpi slt, %24, %386 : vector<64x1xi32>
    %388 = vector.extract_strided_slice %252 {offsets = [3, 0], sizes = [61, 128], strides = [1, 1]} : vector<64x128xf32> to vector<61x128xf32>
    %389 = vector.extract_strided_slice %252 {offsets = [0, 0], sizes = [3, 128], strides = [1, 1]} : vector<64x128xf32> to vector<3x128xf32>
    %390 = tpu.concatenate %388, %389 in 0 : vector<61x128xf32>, vector<3x128xf32> -> vector<64x128xf32>
    %cst_100 = arith.constant 0.000000e+00 : f32
    %391 = vector.shape_cast %387 : vector<64x1xi1> to vector<64x1xi1>
    %392 = vector.broadcast %391 : vector<64x1xi1> to vector<64x128xi1>
    %393 = vector.broadcast %cst_100 : f32 to vector<64x128xf32>
    %394 = arith.select %392, %390, %393 : vector<64x128xi1>, vector<64x128xf32>
    %395 = arith.addf %385, %394 : vector<64x128xf32>
    %396 = tpu.reciprocal %349 {approx = true} : vector<64x128xf32> -> vector<64x128xf32>
    %397 = arith.mulf %395, %396 : vector<64x128xf32>
    %398 = arith.truncf %397 : vector<64x128xf32> to vector<64x128xbf16>
    %c1_101 = arith.constant 1 : index
    %c0_102 = arith.constant 0 : index
    %c0_103 = arith.constant 0 : index
    %399 = vector.load %arg5[%c1_101, %c0_102, %c0_103] : memref<2x128x128xbf16, #tpu.memory_space<vmem>>, vector<1x128x128xbf16>
    %400 = vector.shape_cast %399 : vector<1x128x128xbf16> to vector<128x128xbf16>
    %cst_104 = arith.constant dense<0.000000e+00> : vector<64x128xf32>
    %401 = tpu.matmul %398, %400, %cst_104 {dimension_numbers = #tpu.dot_dimension_numbers<[1], [0], [0], [1], [0, 0, 1, 1], [], []>} : vector<64x128xbf16>, vector<128x128xbf16>, vector<64x128xf32> -> vector<64x128xf32>
    %402 = arith.addf %245, %401 : vector<64x128xf32>
    %c1_105 = arith.constant 1 : index
    %c0_106 = arith.constant 0 : index
    %c0_107 = arith.constant 0 : index
    %403 = vector.load %arg6[%c1_105, %c0_106, %c0_107] : memref<2x1x128xf32, #tpu.memory_space<vmem>>, vector<1x1x128xf32>
    %404 = vector.shape_cast %403 : vector<1x1x128xf32> to vector<1x128xf32>
    %405 = vector.broadcast %404 : vector<1x128xf32> to vector<64x128xf32>
    %406 = arith.addf %402, %405 : vector<64x128xf32>
    %cst_108 = arith.constant dense<0.000000e+00> : vector<64xf32>
    %407 = vector.multi_reduction <add>, %406, %cst_108 [1] : vector<64x128xf32> to vector<64xf32>
    %408 = vector.shape_cast %407 : vector<64xf32> to vector<64x1xf32>
    %cst_109 = arith.constant 1.280000e+02 : f32
    %409 = vector.broadcast %cst_109 : f32 to vector<64x1xf32>
    %410 = arith.divf %408, %409 : vector<64x1xf32>
    %411 = vector.broadcast %410 : vector<64x1xf32> to vector<64x128xf32>
    %412 = arith.subf %406, %411 : vector<64x128xf32>
    %413 = arith.mulf %412, %412 : vector<64x128xf32>
    %cst_110 = arith.constant dense<0.000000e+00> : vector<64xf32>
    %414 = vector.multi_reduction <add>, %413, %cst_110 [1] : vector<64x128xf32> to vector<64xf32>
    %415 = vector.shape_cast %414 : vector<64xf32> to vector<64x1xf32>
    %cst_111 = arith.constant 1.280000e+02 : f32
    %416 = vector.broadcast %cst_111 : f32 to vector<64x1xf32>
    %417 = arith.divf %415, %416 : vector<64x1xf32>
    %418 = vector.broadcast %410 : vector<64x1xf32> to vector<64x128xf32>
    %419 = arith.subf %406, %418 : vector<64x128xf32>
    %cst_112 = arith.constant 9.99999974E-6 : f32
    %420 = vector.broadcast %cst_112 : f32 to vector<64x1xf32>
    %421 = arith.addf %417, %420 : vector<64x1xf32>
    %422 = math.rsqrt %421 : vector<64x1xf32>
    %423 = vector.broadcast %422 : vector<64x1xf32> to vector<64x128xf32>
    %424 = arith.mulf %419, %423 : vector<64x128xf32>
    %c1_113 = arith.constant 1 : index
    %c0_114 = arith.constant 0 : index
    %c0_115 = arith.constant 0 : index
    %425 = vector.load %arg7[%c1_113, %c0_114, %c0_115] : memref<2x1x128xf32, #tpu.memory_space<vmem>>, vector<1x1x128xf32>
    %426 = vector.shape_cast %425 : vector<1x1x128xf32> to vector<1x128xf32>
    %427 = vector.broadcast %426 : vector<1x128xf32> to vector<64x128xf32>
    %428 = arith.mulf %424, %427 : vector<64x128xf32>
    %c1_116 = arith.constant 1 : index
    %c0_117 = arith.constant 0 : index
    %c0_118 = arith.constant 0 : index
    %429 = vector.load %arg8[%c1_116, %c0_117, %c0_118] : memref<2x1x128xf32, #tpu.memory_space<vmem>>, vector<1x1x128xf32>
    %430 = vector.shape_cast %429 : vector<1x1x128xf32> to vector<1x128xf32>
    %431 = vector.broadcast %430 : vector<1x128xf32> to vector<64x128xf32>
    %432 = arith.addf %428, %431 : vector<64x128xf32>
    %433 = arith.truncf %432 : vector<64x128xf32> to vector<64x128xbf16>
    %c1_119 = arith.constant 1 : index
    %c0_120 = arith.constant 0 : index
    %c0_121 = arith.constant 0 : index
    %434 = vector.load %arg9[%c1_119, %c0_120, %c0_121] : memref<2x128x256xbf16, #tpu.memory_space<vmem>>, vector<1x128x256xbf16>
    %435 = vector.shape_cast %434 : vector<1x128x256xbf16> to vector<128x256xbf16>
    %cst_122 = arith.constant dense<0.000000e+00> : vector<64x256xf32>
    %436 = tpu.matmul %433, %435, %cst_122 {dimension_numbers = #tpu.dot_dimension_numbers<[1], [0], [0], [1], [0, 0, 1, 1], [], []>} : vector<64x128xbf16>, vector<128x256xbf16>, vector<64x256xf32> -> vector<64x256xf32>
    %c1_123 = arith.constant 1 : index
    %c0_124 = arith.constant 0 : index
    %c0_125 = arith.constant 0 : index
    %437 = vector.load %arg10[%c1_123, %c0_124, %c0_125] : memref<2x1x256xf32, #tpu.memory_space<vmem>>, vector<1x1x256xf32>
    %438 = vector.shape_cast %437 : vector<1x1x256xf32> to vector<1x256xf32>
    %439 = vector.broadcast %438 : vector<1x256xf32> to vector<64x256xf32>
    %440 = arith.addf %436, %439 : vector<64x256xf32>
    %cst_126 = arith.constant 5.000000e-01 : f32
    %441 = vector.broadcast %cst_126 : f32 to vector<64x256xf32>
    %442 = arith.mulf %441, %440 : vector<64x256xf32>
    %cst_127 = arith.constant 4.471500e-02 : f32
    %443 = vector.broadcast %cst_127 : f32 to vector<64x256xf32>
    %444 = arith.mulf %443, %440 : vector<64x256xf32>
    %445 = arith.mulf %444, %440 : vector<64x256xf32>
    %446 = arith.mulf %445, %440 : vector<64x256xf32>
    %447 = arith.addf %440, %446 : vector<64x256xf32>
    %cst_128 = arith.constant 0.797884583 : f32
    %448 = vector.broadcast %cst_128 : f32 to vector<64x256xf32>
    %449 = arith.mulf %448, %447 : vector<64x256xf32>
    %450 = math.tanh %449 : vector<64x256xf32>
    %cst_129 = arith.constant 1.000000e+00 : f32
    %451 = vector.broadcast %cst_129 : f32 to vector<64x256xf32>
    %452 = arith.addf %451, %450 : vector<64x256xf32>
    %453 = arith.mulf %442, %452 : vector<64x256xf32>
    %454 = arith.truncf %453 : vector<64x256xf32> to vector<64x256xbf16>
    %c1_130 = arith.constant 1 : index
    %c0_131 = arith.constant 0 : index
    %c0_132 = arith.constant 0 : index
    %455 = vector.load %arg11[%c1_130, %c0_131, %c0_132] : memref<2x256x128xbf16, #tpu.memory_space<vmem>>, vector<1x256x128xbf16>
    %456 = vector.shape_cast %455 : vector<1x256x128xbf16> to vector<256x128xbf16>
    %cst_133 = arith.constant dense<0.000000e+00> : vector<64x128xf32>
    %457 = tpu.matmul %454, %456, %cst_133 {dimension_numbers = #tpu.dot_dimension_numbers<[1], [0], [0], [1], [0, 0, 1, 1], [], []>} : vector<64x256xbf16>, vector<256x128xbf16>, vector<64x128xf32> -> vector<64x128xf32>
    %458 = arith.addf %406, %457 : vector<64x128xf32>
    %c1_134 = arith.constant 1 : index
    %c0_135 = arith.constant 0 : index
    %c0_136 = arith.constant 0 : index
    %459 = vector.load %arg12[%c1_134, %c0_135, %c0_136] : memref<2x1x128xf32, #tpu.memory_space<vmem>>, vector<1x1x128xf32>
    %460 = vector.shape_cast %459 : vector<1x1x128xf32> to vector<1x128xf32>
    %461 = vector.broadcast %460 : vector<1x128xf32> to vector<64x128xf32>
    %462 = arith.addf %458, %461 : vector<64x128xf32>
    %463 = arith.truncf %462 : vector<64x128xf32> to vector<64x128xbf16>
    %c0_137 = arith.constant 0 : index
    %c0_138 = arith.constant 0 : index
    %464 = vector.load %arg13[%c0_137, %c0_138] : memref<64x128xbf16, #tpu.memory_space<vmem>>, vector<64x128xbf16>
    tpu.vector_store %arg13[%c0_137, %c0_138], %463 {strides = array<i32>} : memref<64x128xbf16, #tpu.memory_space<vmem>>, vector<64x128xbf16>,
    return
  }
  func.func @transform_0(%arg0: i32) -> (i32, i32) {
    %c0_i32 = arith.constant 0 : i32
    %c0_i32_0 = arith.constant 0 : i32
    return %arg0, %c0_i32 : i32, i32
  }
  func.func @transform_1(%arg0: i32) -> (i32, i32) {
    %c0_i32 = arith.constant 0 : i32
    %c0_i32_0 = arith.constant 0 : i32
    %c0_i32_1 = arith.constant 0 : i32
    return %c0_i32, %c0_i32_0 : i32, i32
  }
  func.func @transform_2(%arg0: i32) -> (i32, i32) {
    %c0_i32 = arith.constant 0 : i32
    %c0_i32_0 = arith.constant 0 : i32
    %c0_i32_1 = arith.constant 0 : i32
    return %c0_i32, %c0_i32_0 : i32, i32
  }
  func.func @transform_3(%arg0: i32) -> (i32, i32, i32) {
    %c0_i32 = arith.constant 0 : i32
    %c0_i32_0 = arith.constant 0 : i32
    %c0_i32_1 = arith.constant 0 : i32
    %c0_i32_2 = arith.constant 0 : i32
    return %c0_i32, %c0_i32_0, %c0_i32_1 : i32, i32, i32
  }
  func.func @transform_4(%arg0: i32) -> (i32, i32, i32) {
    %c0_i32 = arith.constant 0 : i32
    %c0_i32_0 = arith.constant 0 : i32
    %c0_i32_1 = arith.constant 0 : i32
    %c0_i32_2 = arith.constant 0 : i32
    return %c0_i32, %c0_i32_0, %c0_i32_1 : i32, i32, i32
  }
  func.func @transform_5(%arg0: i32) -> (i32, i32, i32) {
    %c0_i32 = arith.constant 0 : i32
    %c0_i32_0 = arith.constant 0 : i32
    %c0_i32_1 = arith.constant 0 : i32
    %c0_i32_2 = arith.constant 0 : i32
    return %c0_i32, %c0_i32_0, %c0_i32_1 : i32, i32, i32
  }
  func.func @transform_6(%arg0: i32) -> (i32, i32, i32) {
    %c0_i32 = arith.constant 0 : i32
    %c0_i32_0 = arith.constant 0 : i32
    %c0_i32_1 = arith.constant 0 : i32
    %c0_i32_2 = arith.constant 0 : i32
    return %c0_i32, %c0_i32_0, %c0_i32_1 : i32, i32, i32
  }
  func.func @transform_7(%arg0: i32) -> (i32, i32, i32) {
    %c0_i32 = arith.constant 0 : i32
    %c0_i32_0 = arith.constant 0 : i32
    %c0_i32_1 = arith.constant 0 : i32
    %c0_i32_2 = arith.constant 0 : i32
    return %c0_i32, %c0_i32_0, %c0_i32_1 : i32, i32, i32
  }
  func.func @transform_8(%arg0: i32) -> (i32, i32, i32) {
    %c0_i32 = arith.constant 0 : i32
    %c0_i32_0 = arith.constant 0 : i32
    %c0_i32_1 = arith.constant 0 : i32
    %c0_i32_2 = arith.constant 0 : i32
    return %c0_i32, %c0_i32_0, %c0_i32_1 : i32, i32, i32
  }
  func.func @transform_9(%arg0: i32) -> (i32, i32, i32) {
    %c0_i32 = arith.constant 0 : i32
    %c0_i32_0 = arith.constant 0 : i32
    %c0_i32_1 = arith.constant 0 : i32
    %c0_i32_2 = arith.constant 0 : i32
    return %c0_i32, %c0_i32_0, %c0_i32_1 : i32, i32, i32
  }
  func.func @transform_10(%arg0: i32) -> (i32, i32, i32) {
    %c0_i32 = arith.constant 0 : i32
    %c0_i32_0 = arith.constant 0 : i32
    %c0_i32_1 = arith.constant 0 : i32
    %c0_i32_2 = arith.constant 0 : i32
    return %c0_i32, %c0_i32_0, %c0_i32_1 : i32, i32, i32
  }
  func.func @transform_11(%arg0: i32) -> (i32, i32, i32) {
    %c0_i32 = arith.constant 0 : i32
    %c0_i32_0 = arith.constant 0 : i32
    %c0_i32_1 = arith.constant 0 : i32
    %c0_i32_2 = arith.constant 0 : i32
    return %c0_i32, %c0_i32_0, %c0_i32_1 : i32, i32, i32
  }
  func.func @transform_12(%arg0: i32) -> (i32, i32) {
    %c0_i32 = arith.constant 0 : i32
    %c0_i32_0 = arith.constant 0 : i32
    return %arg0, %c0_i32 : i32, i32
  }
}

</mosaic_0001>

<bundles_post_ra>
// kernel: tpu_custom_call.1
= control target key start
LH: loop header
LB: loop body
LE: loop exit
PB: predicated region body
PF: predicated region fallthrough
CT: control target
= control target key end

     0   :  { %s10213_s0 = inlined_call_operand.hbm [shape: bf16[128,128], index: 0, kind: input, shape index: {}]   ;;  %s10214_s1 = inlined_call_operand.hbm [shape: f32[8,128], index: 1, kind: input, shape index: {}]   ;;  %s10215_s2 = inlined_call_operand.hbm [shape: bf16[128,128], index: 2, kind: input, shape index: {}]   ;;  %s10216_s3 = inlined_call_operand.hbm [shape: bf16[2,128,384], index: 3, kind: input, shape index: {}]   ;;  %s10217_s4 = inlined_call_operand.hbm [shape: bf16[2,128,128], index: 4, kind: input, shape index: {}]   ;;  %s10218_s5 = inlined_call_operand.vmem [shape: f32[2,1,128], index: 5, kind: input, shape index: {}]   ;;  %s10219_s6 = inlined_call_operand.vmem [shape: f32[2,1,128], index: 6, kind: input, shape index: {}]   ;;  %s10220_s7 = inlined_call_operand.vmem [shape: f32[2,1,128], index: 7, kind: input, shape index: {}]   ;;  %s10221_s8 = inlined_call_operand.hbm [shape: bf16[2,128,256], index: 8, kind: input, shape index: {}]   ;;  %s10222_s9 = inlined_call_operand.vmem [shape: f32[2,1,256], index: 9, kind: input, shape index: {}]   ;;  %s10223_s10 = inlined_call_operand.hbm [shape: bf16[2,256,128], index: 10, kind: input, shape index: {}]   ;;  %s10224_s11 = inlined_call_operand.vmem [shape: f32[2,1,128], index: 11, kind: input, shape index: {}]   ;;  %s10225_s12 = inlined_call_operand.hbm [shape: bf16[128,128], index: 12, kind: output, shape index: {}]  }
   0x1   :  { %10346 = sst [smem:[#allocation88_spill]] %s10214_s1 }
   0x2   :  { %10347 = sst [smem:[#allocation89_spill]] %s10216_s3 }
   0x3   :  { %10348 = sst [smem:[#allocation90_spill]] %s10224_s11 }
   0x4   :  { %10349 = sst [smem:[#allocation91_spill]] %s10225_s12 }
   0x5   :  { %17 = vsyncpa [#allocation3], 0 }
   0x6   :  { %19 = vsyncpa [#allocation3 + $0x1], 0 }
   0x7   :  { %20 = vsyncpa [#allocation6], 0 }
   0x8   :  { %21 = vsyncpa [#allocation9], 0 }
   0x9   :  { %22 = vsyncpa [#allocation12], 0 }
   0xa   :  { %23 = vsyncpa [#allocation4], 0 }
   0xb   :  { %25 = vsyncpa [#allocation4 + $0x1], 0  ;;  %s7197_s21 = smov 0   ;;  %s7199_s22 = smov 0  }
   0xc   :  { %s7201_s23 = smov 0   ;;  %s7203_s24 = smov 0  }
   0xd LB: > { %s7115_s25 = smov [#allocation5]   ;;  %s7218_s27 = sadd.s32 4294967295, %s7113_s24   ;;  %s7113_s24 = sphi %s7203_s24, %s10832_s24   ;;  %s7109_s23 = sphi %s7201_s23, %s10831_s23   ;;  %s7105_s22 = sphi %s7199_s22, %s10830_s22   ;;  %s7101_s21 = sphi %s7197_s21, %s10829_s21  }
   0xe   : > { %s332_s26 = sshll.u32 %s7115_s25, 4  ;;  %p5383_p0 = scmp.ge.s32.totalorder %s7113_s24, 1  ;;  %s333_s26 = int_to_ptr.vmem [resolvable:$true] %s332_s26 }
   0xf   : > { %p10226_p1 = scmp.eq.s32.totalorder %s7218_s27, 0  ;;  %p319_p2 = scmp.lt.s32.totalorder %s7113_s24, 3 }
  0x10   : > { %s7116_s29 = smov [#allocation8]   ;;  %s7117_s14 = smov [#allocation11]  }
  0x11   : > { %p7223_p3 = pnand %p5383_p0, %p319_p2  ;;  %s355_s30 = sshll.u32 %s7116_s29, 4  ;;  %s7230_s30 = int_to_ptr.vmem [resolvable:$true] %s355_s30 }
  0x12   : > { %s390_s15 = sshll.u32 %s7117_s14, 4  ;;  %s10352_s1 = sld [smem:[#allocation88_spill]]  ;;  %s7238_s15 = int_to_ptr.vmem [resolvable:$true] %s390_s15 }
  0x13   : > { %s10350_s28 = scalar_select %p7223_p3, 1, 0 }
  0x14   : > { %p6157_p5 = pneg %p7223_p3 }
  0x16   : > { %p7234_p6 = pnand %p6157_p5, %p10226_p1 }
  0x18   : > { %s6837_s18 = scalar_lea.hbm %s10352_s1, 128  ;;  %p7248_p8 = pneg %p7234_p6 }
  0x19   : > { %p6838_p7 = scmp.ne.s32.totalorder %s10352_s1, %s6837_s18  ;;  %p6844_p11 = scmp.lt.u32.totalorder %s6837_s18, %s10352_s1 }
  0x1b   : > { %p6840_p9 = pnand %p7248_p8, %p6838_p7 }
  0x1d   : > { %p6841_p10 = pneg %p6840_p9 }
  0x1f   : > { %p6846_p12 = pnand %p6844_p11, %p6841_p10 }
  0x21   : > { %6849 = shalt.err (!%p6846_p12)
}
  0x22   : > { %s6850_s16 = scalar_lea.vmem %s333_s26, 128  ;;  %p6858_p5 = scmp.lt.s32.totalorder %s333_s26, %s333_s26 }
  0x23   : > { %p6851_p13 = scmp.ne.s32.totalorder %s333_s26, %s6850_s16  ;;  %p6859_p4 = scmp.lt.s32.totalorder %s6850_s16, %s6850_s16 }
  0x25   : > { %p6853_p0 = pnand %p6851_p13, %p7248_p8  ;;  %p6860_p1 = por %p6859_p4, %p6858_p5 }
  0x27   : > { %p6854_p2 = pneg %p6853_p0 }
  0x29   : > { %p6861_p3 = pnand %p6860_p1, %p6854_p2 }
  0x2b   : > { %6864 = shalt.err (!%p6861_p3)
}
  0x2c   : > { %6160 = dma.hbm_to_vmem [thread:$0]  (!%p7234_p6), %s10352_s1, 128, %s333_s26, [#allocation6]  }
  0x2d   : > { %s10354_s3 = sld [smem:[#allocation89_spill]] }
  0x33   : > { %s6865_s29 = scalar_lea.hbm %s10354_s3, 6144 }
  0x34   : > { %p6866_p7 = scmp.ne.s32.totalorder %s10354_s3, %s6865_s29  ;;  %p6872_p1 = scmp.lt.u32.totalorder %s6865_s29, %s10354_s3 }
  0x36   : > { %p6868_p9 = pnand %p6866_p7, %p7248_p8 }
  0x38   : > { %p6869_p4 = pneg %p6868_p9 }
  0x3a   : > { %p6874_p3 = pnand %p6872_p1, %p6869_p4 }
  0x3c   : > { %6877 = shalt.err (!%p6874_p3)
}
  0x3d   : > { %s6878_s26 = scalar_lea.vmem %s7230_s30, 6144  ;;  %p6886_p13 = scmp.lt.s32.totalorder %s7230_s30, %s7230_s30 }
  0x3e   : > { %p6879_p10 = scmp.ne.s32.totalorder %s7230_s30, %s6878_s26  ;;  %p6887_p0 = scmp.lt.s32.totalorder %s6878_s26, %s6878_s26 }
  0x40   : > { %p6881_p11 = pnand %p6879_p10, %p7248_p8  ;;  %p6888_p2 = por %p6887_p0, %p6886_p13 }
  0x42   : > { %p6882_p12 = pneg %p6881_p11 }
  0x44   : > { %p6889_p5 = pnand %p6888_p2, %p6882_p12 }
  0x46   : > { %6892 = shalt.err (!%p6889_p5)
}
  0x47   : > { %s7118_s12 = smov 192   ;;  %s7119_s11 = smov 12  }
  0x48   : > { %6166 = dma.hbm_to_vmem [thread:$0]  (!%p7234_p6), %s10354_s3, 6144, %s7230_s30, [#allocation9], %s7118_s12, %s7118_s12, %s7119_s11  }
  0x49   : > { %s6893_s29 = scalar_lea.hbm %s10221_s8, 4096 }
  0x4a   : > { %p6894_p7 = scmp.ne.s32.totalorder %s10221_s8, %s6893_s29  ;;  %p6900_p1 = scmp.lt.u32.totalorder %s6893_s29, %s10221_s8 }
  0x4c   : > { %p6896_p9 = pnand %p6894_p7, %p7248_p8 }
  0x4e   : > { %p6897_p4 = pneg %p6896_p9 }
  0x50   : > { %p6902_p3 = pnand %p6900_p1, %p6897_p4 }
  0x52   : > { %6905 = shalt.err (!%p6902_p3)
}
  0x53   : > { %s6906_s30 = scalar_lea.vmem %s7238_s15, 4096  ;;  %p6914_p13 = scmp.lt.s32.totalorder %s7238_s15, %s7238_s15 }
  0x54   : > { %p6907_p10 = scmp.ne.s32.totalorder %s7238_s15, %s6906_s30  ;;  %p6915_p0 = scmp.lt.s32.totalorder %s6906_s30, %s6906_s30 }
  0x56   : > { %p6909_p11 = pnand %p6907_p10, %p7248_p8  ;;  %p6916_p2 = por %p6915_p0, %p6914_p13 }
  0x58   : > { %p6910_p12 = pneg %p6909_p11 }
  0x5a   : > { %p6917_p5 = pnand %p6916_p2, %p6910_p12 }
  0x5c   : > { %6920 = shalt.err (!%p6917_p5)
}
  0x5d   : > { %s7120_s12 = smov 128   ;;  %s7121_s1 = smov 8  }
  0x5e   : > { %6172 = dma.hbm_to_vmem [thread:$0]  (!%p7234_p6), %s10221_s8, 4096, %s7238_s15, [#allocation12], %s7120_s12, %s7120_s12, %s7121_s1  }
  0x5f   : > { %s7122_s19 = smov [#allocation7]   ;;  %s6921_s14 = scalar_lea.hbm %s10215_s2, 1024 }
  0x60   : > { %s342_s18 = sshll.u32 %s7122_s19, 4  ;;  %p6922_p7 = scmp.ne.s32.totalorder %s10215_s2, %s6921_s14  ;;  %s343_s18 = int_to_ptr.vmem [resolvable:$true] %s342_s18 }
  0x61   : > { %p6928_p1 = scmp.lt.u32.totalorder %s6921_s14, %s10215_s2 }
  0x62   : > { %p6924_p9 = pnand %p6922_p7, %p7248_p8 }
  0x64   : > { %p6925_p4 = pneg %p6924_p9 }
  0x66   : > { %p6930_p3 = pnand %p6928_p1, %p6925_p4 }
  0x68   : > { %6933 = shalt.err (!%p6930_p3)
}
  0x69   : > { %s6934_s15 = scalar_lea.vmem %s343_s18, 1024  ;;  %p6942_p13 = scmp.lt.s32.totalorder %s343_s18, %s343_s18 }
  0x6a   : > { %p6935_p10 = scmp.ne.s32.totalorder %s343_s18, %s6934_s15  ;;  %p6943_p0 = scmp.lt.s32.totalorder %s6934_s15, %s6934_s15 }
  0x6c   : > { %p6937_p11 = pnand %p6935_p10, %p7248_p8  ;;  %p6944_p2 = por %p6943_p0, %p6942_p13 }
  0x6e   : > { %p6938_p12 = pneg %p6937_p11 }
  0x70   : > { %p6945_p5 = pnand %p6944_p2, %p6938_p12 }
  0x72   : > { %6948 = shalt.err (!%p6945_p5)
}
  0x73   : > { %s10230_s12 = smov 64   ;;  %s10231_s1 = smov 4  }
  0x74   : > { %6163 = dma.hbm_to_vmem [thread:$0]  (!%p7234_p6), %s10215_s2, 1024, %s343_s18, [#allocation6], %s10230_s12, %s10230_s12, %s10231_s1  }
  0x75   : > { %s7125_s17 = smov [#allocation10]   ;;  %s7126_s20 = smov [#allocation13]  }
  0x76   : > { %s368_s19 = sshll.u32 %s7125_s17, 4  ;;  %s406_s29 = sshll.u32 %s7126_s20, 4  ;;  %s369_s19 = int_to_ptr.vmem [resolvable:$true] %s368_s19  ;;  %s7331_s29 = int_to_ptr.vmem [resolvable:$true] %s406_s29 }
  0x77   : > { %s6949_s26 = scalar_lea.hbm %s10217_s4, 2048 }
  0x78   : > { %p6950_p7 = scmp.ne.s32.totalorder %s10217_s4, %s6949_s26  ;;  %p6956_p1 = scmp.lt.u32.totalorder %s6949_s26, %s10217_s4 }
  0x7a   : > { %p6952_p9 = pnand %p6950_p7, %p7248_p8 }
  0x7c   : > { %p6953_p4 = pneg %p6952_p9 }
  0x7e   : > { %p6958_p3 = pnand %p6956_p1, %p6953_p4 }
  0x80   : > { %6961 = shalt.err (!%p6958_p3)
}
  0x81   : > { %s6962_s11 = scalar_lea.vmem %s369_s19, 2048  ;;  %p6970_p13 = scmp.lt.s32.totalorder %s369_s19, %s369_s19 }
  0x82   : > { %p6963_p10 = scmp.ne.s32.totalorder %s369_s19, %s6962_s11  ;;  %p6971_p0 = scmp.lt.s32.totalorder %s6962_s11, %s6962_s11 }
  0x84   : > { %p6965_p11 = pnand %p6963_p10, %p7248_p8  ;;  %p6972_p2 = por %p6971_p0, %p6970_p13 }
  0x86   : > { %p6966_p12 = pneg %p6965_p11 }
  0x88   : > { %p6973_p5 = pnand %p6972_p2, %p6966_p12 }
  0x8a   : > { %6976 = shalt.err (!%p6973_p5)
}
  0x8b   : > { %6169 = dma.hbm_to_vmem [thread:$0]  (!%p7234_p6), %s10217_s4, 2048, %s369_s19, [#allocation9], %s10230_s12, %s10230_s12, %s10231_s1  }
  0x8c   : > { %s6977_s26 = scalar_lea.hbm %s10223_s10, 4096 }
  0x8d   : > { %p6978_p7 = scmp.ne.s32.totalorder %s10223_s10, %s6977_s26  ;;  %p6984_p1 = scmp.lt.u32.totalorder %s6977_s26, %s10223_s10 }
  0x8f   : > { %p6980_p9 = pnand %p6978_p7, %p7248_p8 }
  0x91   : > { %p6981_p4 = pneg %p6980_p9 }
  0x93   : > { %p6986_p3 = pnand %p6984_p1, %p6981_p4 }
  0x95   : > { %6989 = shalt.err (!%p6986_p3)
}
  0x96   : > { %s6990_s19 = scalar_lea.vmem %s7331_s29, 4096  ;;  %p6998_p13 = scmp.lt.s32.totalorder %s7331_s29, %s7331_s29 }
  0x97   : > { %p6991_p10 = scmp.ne.s32.totalorder %s7331_s29, %s6990_s19  ;;  %p6999_p0 = scmp.lt.s32.totalorder %s6990_s19, %s6990_s19 }
  0x99   : > { %p6993_p11 = pnand %p6991_p10, %p7248_p8  ;;  %p7000_p2 = por %p6999_p0, %p6998_p13 }
  0x9b   : > { %p6994_p12 = pneg %p6993_p11 }
  0x9d   : > { %p7001_p5 = pnand %p7000_p2, %p6994_p12 }
  0x9f   : > { %7004 = shalt.err (!%p7001_p5)
}
  0xa0   : > { %6175 = dma.hbm_to_vmem [thread:$0]  (!%p7234_p6), %s10223_s10, 4096, %s7331_s29, [#allocation12], %s10230_s12, %s10230_s12, %s10231_s1  }
  0xa1   : > { %s5382_s13 = sadd.s32 4294967294, %s7113_s24   ;;  %s7382_s25 = sadd.s32 1, %s7113_s24  }
  0xa2   : > { %s35_s20 = ssub.s32 %s7113_s24, %s7382_s25  ;;  %s38_s14 = sadd.s32 1, %s7109_s23 }
  0xa3   : > { %p36_p8 = scmp.eq.s32.totalorder %s35_s20, 0  ;;  %p45_p7 = scmp.ne.s32.totalorder %s7109_s23, %s7105_s22 }
  0xa4   : > { %p46_p9 = scmp.eq.s32.totalorder %s7113_s24, 0  ;;  %p51_p4 = scmp.ne.s32.totalorder %s7105_s22, %s7101_s21 }
  0xa5   : > { %s7393_s16 = scalar_select %p36_p8, %s7109_s23, %s38_s14  }
  0xa6   : > { %p7395_p1 = por %p46_p9, %p45_p7  ;;  %p10356_p3 = scmp.eq.s32.totalorder %s7218_s27, 0 }
  0xa7   : > { %p306_p10 = scmp.eq.s32.totalorder %s7218_s27, 1  ;;  %p312_p11 = scmp.eq.s32.totalorder %s5382_s13, 1 }
  0xa8   : > { %p7401_p6 = por %p10356_p3, %p51_p4  ;;  %p6190_p12 = scmp.lt.s32.totalorder %s7113_s24, 2 }
  0xa9   : > { %s423_s30 = sand.u32 1, %s7109_s23   ;;  %p7408_p13 = por %p306_p10, %p45_p7 }
  0xaa   : > { %p7412_p0 = por %p312_p11, %p51_p4  ;;  %s5391_s18 = sshll.u32 %s423_s30, 5 }
  0xab   : > { %s10358_s15 = scalar_select %p7408_p13, 1, 0 }
  0xac   : > { %s10359_s3 = scalar_select %p7412_p0, 1, 0 }
  0xad   : > { %s5565_s19 = sshll.u32 %s7113_s24, 9  ;;  %s427_s13 = scalar_lea.vmem [#allocation2], %s5391_s18 }
  0xae   : > { %s7420_s20 = scalar_lea.hbm %s10213_s0, %s5565_s19  ;;  %s434_s14 = sshll.u32 %s427_s13, 4  ;;  %s7422_s14 = int_to_ptr.vmem [resolvable:$true] %s434_s14 }
  0xaf   : > { %p7426_p2 = pnand %p6190_p12, %p7395_p1  ;;  %s7430_s1 = scalar_lea.sflag [#allocation3], %s423_s30 }
  0xb0   : > { %s7005_s11 = scalar_lea.hbm %s7420_s20, 512  ;;  %s7010_s26 = scalar_lea.hbm %s10213_s0, 1024 }
  0xb1   : > { %p7006_p5 = scmp.ne.s32.totalorder %s7420_s20, %s7005_s11  ;;  %p7007_p8 = pneg %p7426_p2 }
  0xb2   : > { %p7011_p4 = scmp.lt.u32.totalorder %s7420_s20, %s10213_s0  ;;  %p7012_p1 = scmp.lt.u32.totalorder %s7010_s26, %s7005_s11 }
  0xb3   : > { %p7008_p7 = pnand %p7007_p8, %p7006_p5  ;;  %p7014_p10 = scmp.lt.u32.totalorder %s7005_s11, %s7420_s20 }
  0xb4   : > { %p7013_p3 = por %p7012_p1, %p7011_p4 }
  0xb5   : > { %p7009_p9 = pneg %p7008_p7 }
  0xb6   : > { %p7015_p11 = por %p7014_p10, %p7013_p3 }
  0xb8   : > { %p7016_p12 = pnand %p7015_p11, %p7009_p9 }
  0xba   : > { %7019 = shalt.err (!%p7016_p12)
}
  0xbb   : > { %s7020_s30 = scalar_lea.vmem %s7422_s14, 512  ;;  %s7127_s18 = smov [#allocation2]  }
  0xbc   : > { %p7021_p5 = scmp.ne.s32.totalorder %s7422_s14, %s7020_s30  ;;  %s7025_s19 = sshll.u32 %s7127_s18, 4  ;;  %s7026_s19 = int_to_ptr.vmem [resolvable:$false] %s7025_s19 }
  0xbd   : > { %s7027_s17 = scalar_lea.vmem %s7026_s19, 1024  ;;  %p7028_p13 = scmp.lt.s32.totalorder %s7422_s14, %s7026_s19 }
  0xbe   : > { %p7023_p7 = pnand %p7021_p5, %p7007_p8  ;;  %p7029_p4 = scmp.lt.s32.totalorder %s7027_s17, %s7020_s30 }
  0xc0   : > { %p7024_p0 = pneg %p7023_p7  ;;  %p7030_p1 = por %p7029_p4, %p7028_p13 }
  0xc2   : > { %p7031_p3 = pnand %p7030_p1, %p7024_p0 }
  0xc4   : > { %7034 = shalt.err (!%p7031_p3)
}
  0xc5   : > { %s10361_s11 = smov 4   ;;  %s10362_s26 = smov 64  }
  0xc6   : > { %6179 = dma.hbm_to_vmem [thread:$0]  (!%p7426_p2), %s7420_s20, 512, %s7422_s14, %s7430_s1, %s10362_s26, %s10362_s26, %s10361_s11  }
  0xc7   : > { %p10363_p8 = scmp.ne.s32.totalorder %s10350_s28, 0 }
  0xc9   : > { %446 = sbr.rel (%p10363_p8) target bundleno = 3549 (0xddd), region = 68 }
  0xd0   : > { %s7464_s13 = sand.u32 1, %s7105_s22  }
  0xd1   : > { %s5395_s30 = sshll.u32 %s7464_s13, 5  ;;  %s449_s18 = scalar_lea.sflag [#allocation3], %s7464_s13 }
  0xd2   : > { %s7470_s12 = scalar_lea.vmem [#allocation2], %s5395_s30 }
  0xd3   : > { %7080 = dma.done.wait (%p7401_p6), %s449_s18, 512  }
  0xd4   : > { %7082 = vsyncadd (%p7401_p6), %s449_s18, 4294966784  ;;  %p10364_p13 = scmp.eq.s32.totalorder %s7218_s27, 0 }
  0xd6   : > { %7084 = dma.done.wait (%p10364_p13), [#allocation6], 1152   ;;  %p10365_p0 = pmov %p10364_p13 }
  0xd8   : > { %7086 = vsyncadd (%p10365_p0), [#allocation6], 4294966144  ;;  %p10366_p2 = pmov %p10365_p0 }
  0xd9   : > { %p10367_p9 = pmov %p10365_p0 }
  0xda   : > { %7088 = dma.done.wait (%p10366_p2), [#allocation9], 8192  }
  0xdb   : > { %7090 = vsyncadd (%p10367_p9), [#allocation9], 4294959104  ;;  %p10368_p10 = pmov %p10365_p0 }
  0xdc   : > { %p10369_p11 = pmov %p10365_p0 }
  0xdd   : > { %7092 = dma.done.wait (%p10368_p10), [#allocation12], 8192  }
  0xde   : > { %7094 = vsyncadd (%p10369_p11), [#allocation12], 4294959104  ;;  %v10233_v0 = vmov 0   ;;  %v6245_v1 = vld [vmem:[#allocation8 + $0x4] ss:$12 sps:$4 sm:$0xff]   ;;  %v5576_v8 = vld [vmem:[%s7470_s12] sm:$0xff]  }
  0xdf   : > { %878 = vmatprep.mubr.bf16.mxu0 %v10233_v0  ;;  %v6247_v2 = vld [vmem:[#allocation8] ss:$12 sps:$4 sm:$0xff]   ;;  %846 = vmatprep.subr.bf16.mxu0 %v6245_v1  ;;  %v6248_v3 = vld [vmem:[#allocation8 + $0x1c] ss:$12 sps:$4 sm:$0xff]   ;;  %v6250_v4 = vld [vmem:[#allocation8 + $0x18] ss:$12 sps:$4 sm:$0xff]   ;;  %v5577_v10 = vunpack.c.l.bf16 %v5576_v8  ;;  %v5578_v11 = vunpack.c.h.bf16 %v5576_v8 }
  0xe0   : > { %847 = vmatpush1.bf16.msra.mxu0 %v6247_v2  ;;  %v6251_v5 = vld [vmem:[#allocation8 + $0x34] ss:$12 sps:$4 sm:$0xff]   ;;  %v6253_v6 = vld [vmem:[#allocation8 + $0x30] ss:$12 sps:$4 sm:$0xff]   ;;  %v6254_v7 = vld [vmem:[#allocation8 + $0x4c] ss:$12 sps:$4 sm:$0xff]  }
  0xe1   : > { %848 = vmatprep.subr.bf16.mxu0 %v6248_v3  ;;  %v6256_v9 = vld [vmem:[#allocation8 + $0x48] ss:$12 sps:$4 sm:$0xff]   ;;  %v7490_v12 = vld [vmem:[#allocation5] sm:$0xff]  ;;  %v6257_v13 = vld [vmem:[#allocation8 + $0x64] ss:$12 sps:$4 sm:$0xff]   ;;  %vm10259_vm0 = vcmask 1040384  }
  0xe2   : > { %v7493_v14 = vadd.f32 %v5577_v10, %v7490_v12  ;;  %v7496_v15 = vadd.f32 %v5578_v11, %v7490_v12  ;;  %v6269_v16 = vld [vmem:[#allocation8 + $0x8] ss:$12 sps:$4 sm:$0xff]   ;;  %v6270_v17 = vld [vmem:[#allocation8 + $0x20] ss:$12 sps:$4 sm:$0xff]   ;;  %v6271_v21 = vld [vmem:[#allocation8 + $0x38] ss:$12 sps:$4 sm:$0xff]  }
  0xe3   : > { %v6259_v18 = vld [vmem:[#allocation8 + $0x60] ss:$12 sps:$4 sm:$0xff]   ;;  %5841 = vmatprep.subr.bf16.mxu1 %v6269_v16  ;;  %v6260_v20 = vld [vmem:[#allocation8 + $0x7c] ss:$12 sps:$4 sm:$0xff]   ;;  %v6262_v22 = vld [vmem:[#allocation8 + $0x78] ss:$12 sps:$4 sm:$0xff]  }
  0xe4   : > { %849 = vmatpush1.bf16.msra.mxu0 %v6250_v4  ;;  %10370 = vst [vmem:[#allocation20_spill] sm:$0xff] %v7493_v14  ;;  %10371 = vst [vmem:[#allocation21_spill] sm:$0xff] %v7496_v15  ;;  %v682_v19 = vpack.c.bf16 %v7496_v15, %v7493_v14  ;;  %5842 = vmatpush3.bf16.msra.mxu1 %v6269_v16  ;;  %v6263_v23 = vld [vmem:[#allocation8 + $0x94] ss:$12 sps:$4 sm:$0xff]   ;;  %v6272_v24 = vld [vmem:[#allocation8 + $0x50] ss:$12 sps:$4 sm:$0xff]  }
  0xe5   : > { %850 = vmatprep.subr.bf16.mxu0 %v6251_v5  ;;  %5843 = vmatprep.subr.bf16.mxu1 %v6270_v17  ;;  %v6265_v25 = vld [vmem:[#allocation8 + $0x90] ss:$12 sps:$4 sm:$0xff]   ;;  %v6266_v26 = vld [vmem:[#allocation8 + $0xac] ss:$12 sps:$4 sm:$0xff]   ;;  %v6268_v27 = vld [vmem:[#allocation8 + $0xa8] ss:$12 sps:$4 sm:$0xff]  }
  0xe6   : > { %5857 = vmatprep.mubr.bf16.mxu1 %v682_v19  ;;  %v5611_v28 = vld [vmem:[%s7470_s12 + $0x8] sm:$0xff]   ;;  %v6273_v29 = vld [vmem:[#allocation8 + $0x68] ss:$12 sps:$4 sm:$0xff]   ;;  %v6278_v40 = vld [vmem:[#allocation8 + $0xb0] ss:$12 sps:$4 sm:$0xff]   ;;  %vm10258_vm1 = vcmask 1041408  }
  0xe7   : > { %v7501_v30 = vld [vmem:[#allocation7] sm:$0xff]   ;;  %v5581_v32 = vunpack.c.l.bf16 %v5611_v28  ;;  %v5582_v33 = vunpack.c.h.bf16 %v5611_v28  ;;  %v7503_v34 = vld [vmem:[#allocation7 + $0x8] sm:$0xff]   ;;  %v7513_v39 = vld [vmem:[#allocation7 + $0x10] sm:$0xff]   ;;  %vm10257_vm2 = vcmask 1042432   ;;  %vm10256_vm3 = vcmask 1046528   ;;  %s10150_s28 = scalar_lea.vmem [#allocation14], %s5395_s30 }
  0xe8   : > { %851 = vmatpush1.bf16.msra.mxu0 %v6253_v6  ;;  %5844 = vmatpush3.bf16.msra.mxu1 %v6270_v17  ;;  %v6274_v31 = vld [vmem:[#allocation8 + $0x80] ss:$12 sps:$4 sm:$0xff]   ;;  %v6276_v35 = vld [vmem:[#allocation8 + $0x98] ss:$12 sps:$4 sm:$0xff]   ;;  %v5613_v45 = vld [vmem:[%s7470_s12 + $0x18] sm:$0xff]   ;;  %vm10254_vm4 = vcmask 1045504  }
  0xe9   : > { %852 = vmatprep.subr.bf16.mxu0 %v6254_v7  ;;  %5845 = vmatprep.subr.bf16.mxu1 %v6271_v21  ;;  %v5612_v36 = vld [vmem:[%s7470_s12 + $0x10] sm:$0xff]   ;;  %v7508_v37 = vadd.f32 %v5581_v32, %v7490_v12  ;;  %v7511_v38 = vadd.f32 %v5582_v33, %v7490_v12  ;;  %v7520_v44 = vld [vmem:[#allocation7 + $0x18] sm:$0xff]   ;;  %v7531_v48 = vld [vmem:[#allocation7 + $0x20] sm:$0xff]   ;;  %v5589_v49 = vunpack.c.l.bf16 %v5613_v45  ;;  %v5590_v50 = vunpack.c.h.bf16 %v5613_v45  ;;  %s10529_s12 = sld [smem:[#allocation90_spill]]  ;;  %s5252_s30 = sshll.u32 %s10150_s28, 4  ;;  %s10163_s30 = int_to_ptr.vmem [resolvable:$true] %s5252_s30 }
  0xea   : > { %v5585_v42 = vunpack.c.l.bf16 %v5612_v36  ;;  %v5586_v43 = vunpack.c.h.bf16 %v5612_v36  ;;  %v7560_v55 = vld [vmem:[#allocation7 + $0x28] sm:$0xff]   ;;  %v7565_v56 = vld [vmem:[#allocation7 + $0x30] sm:$0xff]   ;;  %v7572_v57 = vld [vmem:[#allocation7 + $0x38] sm:$0xff]   ;;  %vm10253_vm5 = vcmask 1044480   ;;  %s5574_s1 = sshll.u32 %s7218_s27, 9  ;;  %s10825_s14 = sld [smem:[#allocation91_spill]] }
  0xeb   : > { %10372 = vst [vmem:[#allocation22_spill] sm:$0xff] %v7508_v37  ;;  %10373 = vst [vmem:[#allocation23_spill] sm:$0xff] %v7511_v38  ;;  %v683_v41 = vpack.c.bf16 %v7511_v38, %v7508_v37  ;;  %v7542_v52 = vadd.f32 %v5589_v49, %v7490_v12  ;;  %v7545_v53 = vadd.f32 %v5590_v50, %v7490_v12  ;;  %s5239_s17 = scalar_lea.sflag [#allocation4], %s7464_s13  ;;  %s7035_s11 = scalar_lea.vmem %s10163_s30, 512 }
  0xec   : > { %853 = vmatpush1.bf16.msra.mxu0 %v6256_v9  ;;  %5846 = vmatpush3.bf16.msra.mxu1 %v6271_v21  ;;  %v7526_v46 = vadd.f32 %v5585_v42, %v7490_v12  ;;  %v7529_v47 = vadd.f32 %v5586_v43, %v7490_v12  ;;  %p7036_p6 = scmp.ne.s32.totalorder %s10163_s30, %s7035_s11  ;;  %p10826_p12 = scmp.ne.s32.totalorder %s10358_s15, 0 }
  0xed   : > { %854 = vmatprep.subr.bf16.mxu0 %v6257_v13  ;;  %5847 = vmatprep.subr.bf16.mxu1 %v6272_v24  ;;  %10376 = vst [vmem:[#allocation26_spill] sm:$0xff] %v7542_v52  ;;  %10377 = vst [vmem:[#allocation27_spill] sm:$0xff] %v7545_v53  ;;  %v685_v54 = vpack.c.bf16 %v7545_v53, %v7542_v52  ;;  %s7129_s27 = smov [#allocation14]  }
  0xee   : > { %10374 = vst [vmem:[#allocation24_spill] sm:$0xff] %v7526_v46  ;;  %10375 = vst [vmem:[#allocation25_spill] sm:$0xff] %v7529_v47  ;;  %v684_v51 = vpack.c.bf16 %v7529_v47, %v7526_v46  ;;  %p7037_p5 = pnand %p7036_p6, %p10826_p12  ;;  %s7039_s26 = sshll.u32 %s7129_s27, 4  ;;  %s7040_s26 = int_to_ptr.vmem [resolvable:$false] %s7039_s26 }
  0xef   : > { %s7041_s18 = scalar_lea.vmem %s7040_s26, 1024  ;;  %p7042_p4 = scmp.lt.s32.totalorder %s10163_s30, %s7040_s26 }
  0xf0   : > { %855 = vmatpush1.bf16.msra.mxu0 %v6259_v18  ;;  %5848 = vmatpush3.bf16.msra.mxu1 %v6272_v24  ;;  %s10168_s19 = scalar_lea.hbm %s10825_s14, %s5574_s1  ;;  %p7038_p7 = pneg %p7037_p5 }
  0xf1   : > { %856 = vmatprep.subr.bf16.mxu0 %v6260_v20  ;;  %5849 = vmatprep.subr.bf16.mxu1 %v6273_v29  ;;  %p7043_p1 = scmp.lt.s32.totalorder %s7041_s18, %s7035_s11 }
  0xf3   : > { %p7044_p3 = por %p7043_p1, %p7042_p4 }
  0xf4   : > { %857 = vmatpush1.bf16.msra.mxu0 %v6262_v22  ;;  %5850 = vmatpush3.bf16.msra.mxu1 %v6273_v29 }
  0xf5   : > { %858 = vmatprep.subr.bf16.mxu0 %v6263_v23  ;;  %5851 = vmatprep.subr.bf16.mxu1 %v6274_v31  ;;  %p7045_p8 = pnand %p7044_p3, %p7038_p7 }
  0xf8   : > { %859 = vmatpush1.bf16.msra.mxu0 %v6265_v25  ;;  %5852 = vmatpush3.bf16.msra.mxu1 %v6274_v31 }
  0xf9   : > { %860 = vmatprep.subr.bf16.mxu0 %v6266_v26  ;;  %5853 = vmatprep.subr.bf16.mxu1 %v6276_v35 }
  0xfc   : > { %861 = vmatpush1.bf16.msra.mxu0 %v6268_v27  ;;  %5854 = vmatpush3.bf16.msra.mxu1 %v6276_v35 }
  0xfd   : > { %5865 = vmatprep.subr.bf16.mxu0 %v7501_v30  ;;  %5855 = vmatprep.subr.bf16.mxu1 %v6278_v40 }
  0xff   : > { %879 = vmatmul.mubr.bf16.vlgmr.msra.gmra.mrb[0].mxu0 %v682_v19 }
 0x100   : > { %888 = vmatprep.mubr.bf16.mxu0 %v10233_v0  ;;  %5866 = vmatpush3.bf16.msra.mxu0 %v7501_v30 }
 0x101   : > { %5867 = vmatprep.subr.bf16.mxu0 %v7503_v34  ;;  %5856 = vmatpush3.bf16.msra.mxu1 %v6278_v40 }
 0x102   : > { %5889 = vmatprep.subr.bf16.mxu1 %v7501_v30 }
 0x104   : > { %5868 = vmatpush3.bf16.msra.mxu0 %v7503_v34  ;;  %5858 = vmatmul.mubr.bf16.vlgmr.msra.gmra.mrb[0].mxu1 %v683_v41 }
 0x105   : > { %5869 = vmatprep.subr.bf16.mxu0 %v7513_v39  ;;  %5861 = vmatprep.mubr.bf16.mxu1 %v684_v51 }
 0x106   : > { %5890 = vmatpush3.bf16.msra.mxu1 %v7501_v30 }
 0x107   : > { %889 = vmatmul.mubr.bf16.gmra.mrb[4].mxu0 %v683_v41  ;;  %5891 = vmatprep.subr.bf16.mxu1 %v7503_v34 }
 0x108   : > { %898 = vmatprep.mubr.bf16.mxu0 %v10233_v0  ;;  %5870 = vmatpush3.bf16.msra.mxu0 %v7513_v39 }
 0x109   : > { %5871 = vmatprep.subr.bf16.mxu0 %v7520_v44 }
 0x10a   : > { %5892 = vmatpush3.bf16.msra.mxu1 %v7503_v34 }
 0x10b   : > { %5893 = vmatprep.subr.bf16.mxu1 %v7513_v39 }
 0x10c   : > { %5872 = vmatpush3.bf16.msra.mxu0 %v7520_v44  ;;  %5862 = vmatmul.mubr.bf16.gmra.mrb[4].mxu1 %v685_v54 }
 0x10d   : > { %5873 = vmatprep.subr.bf16.mxu0 %v7531_v48 }
 0x10e   : > { %5894 = vmatpush3.bf16.msra.mxu1 %v7513_v39 }
 0x10f   : > { %899 = vmatmul.mubr.bf16.gmra.mrb[8].mxu0 %v684_v51  ;;  %5895 = vmatprep.subr.bf16.mxu1 %v7520_v44 }
 0x110   : > { %908 = vmatprep.mubr.bf16.mxu0 %v10233_v0  ;;  %5874 = vmatpush3.bf16.msra.mxu0 %v7531_v48 }
 0x111   : > { %5875 = vmatprep.subr.bf16.mxu0 %v7560_v55 }
 0x112   : > { %5896 = vmatpush3.bf16.msra.mxu1 %v7520_v44 }
 0x113   : > { %5897 = vmatprep.subr.bf16.mxu1 %v7531_v48 }
 0x114   : > { %5876 = vmatpush3.bf16.msra.mxu0 %v7560_v55 }
 0x115   : > { %5877 = vmatprep.subr.bf16.mxu0 %v7565_v56 }
 0x116   : > { %5898 = vmatpush3.bf16.msra.mxu1 %v7531_v48 }
 0x117   : > { %909 = vmatmul.mubr.bf16.gmra.mrb[12].mxu0 %v685_v54  ;;  %5899 = vmatprep.subr.bf16.mxu1 %v7560_v55 }
 0x118   : > { %5878 = vmatpush3.bf16.msra.mxu0 %v7565_v56 }
 0x119   : > { %5879 = vmatprep.subr.bf16.mxu0 %v7572_v57 }
 0x11a   : > { %5900 = vmatpush3.bf16.msra.mxu1 %v7560_v55 }
 0x11b   : > { %5901 = vmatprep.subr.bf16.mxu1 %v7565_v56 }
 0x11c   : > { %5880 = vmatpush3.bf16.msra.mxu0 %v7572_v57 }
 0x11d   : > { %5913 = vmatprep.subr.bf16.mxu0 %v7501_v30 }
 0x11e   : > { %5902 = vmatpush3.bf16.msra.mxu1 %v7565_v56 }
 0x11f   : > { %5903 = vmatprep.subr.bf16.mxu1 %v7572_v57 }
 0x122   : > { %5904 = vmatpush3.bf16.msra.mxu1 %v7572_v57 }
 0x123   : > { %5937 = vmatprep.subr.bf16.mxu1 %v7501_v30 }
 0x1d2   : > { %v7580_v58 = vpop.f32.mrb[0].mxu0 }
 0x1d3   : > { %v7582_v59 = vpop.f32.mrb[1].mxu0 }
 0x1d4   : > { %v984_v60 = vmul.f32 %v7582_v59, %v7580_v58  ;;  %v884_v61 = vpop.f32.mrb[2].mxu0  ;;  %v1152_v62 = vrot.slane %v7582_v59, 7  ;;  %v1287_v63 = vrot.slane %v7582_v59, 6  ;;  %v1422_v1 = vrot.slane %v7582_v59, 5 }
 0x1d5   : > { %v886_v2 = vpop.f32.mrb[3].mxu0 }
 0x1d6   : > { %v985_v3 = vmul.f32 %v886_v2, %v884_v61  ;;  %v1153_v4 = vrot.slane %v886_v2, 7  ;;  %v1288_v5 = vrot.slane %v886_v2, 6  ;;  %v1423_v6 = vrot.slane %v886_v2, 5 }
 0x1d7   : > { %v7613_v33 = vpop.f32.mrb[0].mxu1 }
 0x1d8   : > { %v992_v7 = vpack.c.bf16 %v985_v3, %v984_v60  ;;  %v1154_v8 = vsel %vm10259_vm0, %v1152_v62, %v1153_v4  ;;  %v1289_v9 = vsel %vm10258_vm1, %v1287_v63, %v1288_v5  ;;  %v1424_v10 = vsel %vm10257_vm2, %v1422_v1, %v1423_v6  ;;  %10378 = vst [vmem:[#allocation28_spill] sm:$0xff] %v7613_v33  ;;  %v7615_v41 = vpop.f32.mrb[1].mxu1 }
 0x1d9   : > { %v7598_v11 = vmul.f32 %v1154_v8, %v884_v61  ;;  %v7600_v12 = vmul.f32 %v1289_v9, %v884_v61  ;;  %v7602_v13 = vmul.f32 %v1424_v10, %v884_v61  ;;  %10379 = vst [vmem:[#allocation29_spill] sm:$0xff] %v7615_v41  ;;  %v7618_v43 = vpop.f32.mrb[2].mxu1  ;;  %v10417_v47 = vrot.slane %v7613_v33, 3 }
 0x1da   : > { %v890_v16 = vpop.f32.mrb[4].mxu0  ;;  %5881 = vmatprep.mubr.bf16.mxu0 %v992_v7  ;;  %10380 = vst [vmem:[#allocation30_spill] sm:$0xff] %v7618_v43  ;;  %v7624_v54 = vpop.f32.mrb[3].mxu1 }
 0x1db   : > { %v892_v17 = vpop.f32.mrb[5].mxu0  ;;  %10381 = vst [vmem:[#allocation31_spill] sm:$0xff] %v7624_v54 }
 0x1dc   : > { %v986_v18 = vmul.f32 %v892_v17, %v890_v16  ;;  %v1155_v19 = vrot.slane %v892_v17, 7  ;;  %v1290_v20 = vrot.slane %v892_v17, 6  ;;  %v1425_v21 = vrot.slane %v892_v17, 5  ;;  %v894_v22 = vpop.f32.mrb[6].mxu0 }
 0x1dd   : > { %v896_v23 = vpop.f32.mrb[7].mxu0 }
 0x1de   : > { %v1156_v24 = vsel %vm10259_vm0, %v1153_v4, %v1155_v19  ;;  %v1291_v25 = vsel %vm10258_vm1, %v1288_v5, %v1290_v20  ;;  %v1426_v26 = vsel %vm10257_vm2, %v1423_v6, %v1425_v21  ;;  %v987_v27 = vmul.f32 %v896_v23, %v894_v22 }
 0x1df   : > { %v7607_v28 = vmul.f32 %v1156_v24, %v890_v16  ;;  %v7609_v29 = vmul.f32 %v1291_v25, %v890_v16  ;;  %v7611_v31 = vmul.f32 %v1426_v26, %v890_v16  ;;  %v1157_v32 = vrot.slane %v896_v23, 7  ;;  %v7642_v24 = vpop.f32.mrb[4].mxu1 }
 0x1e0   : > { %v993_v35 = vpack.c.bf16 %v987_v27, %v986_v18  ;;  %v1292_v36 = vrot.slane %v896_v23, 6  ;;  %v1427_v40 = vrot.slane %v896_v23, 5  ;;  %10382 = vst [vmem:[#allocation32_spill] sm:$0xff] %v7642_v24  ;;  %v2050_v38 = vrot.slane %v7642_v24, 2 }
 0x1e1   : > { %v1158_v42 = vsel %vm10259_vm0, %v1155_v19, %v1157_v32 }
 0x1e2   : > { %v7620_v45 = vmul.f32 %v1158_v42, %v894_v22  ;;  %v1293_v49 = vsel %vm10258_vm1, %v1290_v20, %v1292_v36  ;;  %v1428_v50 = vsel %vm10257_vm2, %v1425_v21, %v1427_v40  ;;  %v900_v51 = vpop.f32.mrb[8].mxu0  ;;  %5882 = vmatmul.mubr.bf16.vlgmr.msra.gmra.mrb[16].mxu0 %v993_v35  ;;  %v7649_v42 = vpop.f32.mrb[5].mxu1 }
 0x1e3   : > { %v7626_v60 = vmul.f32 %v1293_v49, %v894_v22  ;;  %v7628_v61 = vmul.f32 %v1428_v50, %v894_v22  ;;  %5914 = vmatpush3.bf16.msra.mxu0 %v7501_v30  ;;  %v902_v2 = vpop.f32.mrb[9].mxu0  ;;  %10383 = vst [vmem:[#allocation33_spill] sm:$0xff] %v7649_v42  ;;  %v10425_v14 = vrot.slane %v7649_v42, 1 }
 0x1e4   : > { %v988_v3 = vmul.f32 %v902_v2, %v900_v51  ;;  %v1159_v4 = vrot.slane %v902_v2, 7  ;;  %v1294_v5 = vrot.slane %v902_v2, 6  ;;  %v1429_v6 = vrot.slane %v902_v2, 5  ;;  %v904_v7 = vpop.f32.mrb[10].mxu0  ;;  %5915 = vmatprep.subr.bf16.mxu0 %v7503_v34 }
 0x1e5   : > { %v906_v8 = vpop.f32.mrb[11].mxu0  ;;  %v1184_v9 = vpack.c.bf16 %v7620_v45, %v7607_v28  ;;  %v10238_v28 = vrot.slane %v7613_v33, 3  ;;  %v1991_v45 = vrot.slane %v7615_v41, 6 }
 0x1e6   : > { %v989_v17 = vmul.f32 %v906_v8, %v904_v7  ;;  %v1161_v18 = vrot.slane %v906_v8, 7  ;;  %v1296_v19 = vrot.slane %v906_v8, 6  ;;  %v1431_v20 = vrot.slane %v906_v8, 5 }
 0x1e7   : > { %5916 = vmatpush3.bf16.msra.mxu0 %v7503_v34  ;;  %v1160_v21 = vsel %vm10259_vm0, %v1157_v32, %v1159_v4  ;;  %v1295_v22 = vsel %vm10258_vm1, %v1292_v36, %v1294_v5  ;;  %v1430_v23 = vsel %vm10257_vm2, %v1427_v40, %v1429_v6  ;;  %v7656_v40 = vpop.f32.mrb[6].mxu1 }
 0x1e8   : > { %5917 = vmatprep.subr.bf16.mxu0 %v7513_v39  ;;  %v994_v25 = vpack.c.bf16 %v989_v17, %v988_v3  ;;  %v1162_v26 = vsel %vm10259_vm0, %v1159_v4, %v1161_v18  ;;  %v7646_v27 = vmul.f32 %v1160_v21, %v900_v51  ;;  %v1297_v35 = vsel %vm10258_vm1, %v1294_v5, %v1296_v19 }
 0x1e9   : > { %v1180_v49 = vmul.f32 %v1162_v26, %v904_v7  ;;  %v7651_v50 = vmul.f32 %v1295_v22, %v900_v51  ;;  %v7653_v32 = vmul.f32 %v1297_v35, %v904_v7  ;;  %v1432_v36 = vsel %vm10257_vm2, %v1429_v6, %v1431_v20  ;;  %10384 = vst [vmem:[#allocation34_spill] sm:$0xff] %v7656_v40 }
 0x1ea   : > { %v910_v2 = vpop.f32.mrb[12].mxu0  ;;  %5885 = vmatprep.mubr.bf16.mxu0 %v994_v25  ;;  %v7658_v3 = vmul.f32 %v1430_v23, %v900_v51  ;;  %v7660_v4 = vmul.f32 %v1432_v36, %v904_v7 }
 0x1eb   : > { %5918 = vmatpush3.bf16.msra.mxu0 %v7513_v39  ;;  %v912_v5 = vpop.f32.mrb[13].mxu0  ;;  %v1185_v8 = vpack.c.bf16 %v1180_v49, %v7646_v27  ;;  %v1320_v17 = vpack.c.bf16 %v7653_v32, %v7651_v50 }
 0x1ec   : > { %v990_v21 = vmul.f32 %v912_v5, %v910_v2  ;;  %v1163_v22 = vrot.slane %v912_v5, 7  ;;  %v1298_v26 = vrot.slane %v912_v5, 6  ;;  %v1433_v6 = vrot.slane %v912_v5, 5  ;;  %v914_v35 = vpop.f32.mrb[14].mxu0  ;;  %5919 = vmatprep.subr.bf16.mxu0 %v7520_v44 }
 0x1ed   : > { %v916_v25 = vpop.f32.mrb[15].mxu0 }
 0x1ee   : > { %v991_v7 = vmul.f32 %v916_v25, %v914_v35  ;;  %v1142_v23 = vrot.slane %v916_v25, 7  ;;  %v1284_v36 = vrot.slane %v916_v25, 6  ;;  %v1419_v0 = vrot.slane %v916_v25, 5 }
 0x1ef   : > { %5920 = vmatpush3.bf16.msra.mxu0 %v7520_v44  ;;  %v1164_v27 = vsel %vm10259_vm0, %v1161_v18, %v1163_v22  ;;  %v1299_v49 = vsel %vm10258_vm1, %v1296_v19, %v1298_v26  ;;  %v1434_v50 = vsel %vm10257_vm2, %v1431_v20, %v1433_v6 }
 0x1f0   : > { %5921 = vmatprep.subr.bf16.mxu0 %v7531_v48  ;;  %v995_v32 = vpack.c.bf16 %v991_v7, %v990_v21  ;;  %v1174_v5 = vsel %vm10259_vm0, %v1142_v23, %v1152_v62  ;;  %v1309_v51 = vsel %vm10258_vm1, %v1284_v36, %v1287_v63  ;;  %v1165_v25 = vsel %vm10259_vm0, %v1163_v22, %v1142_v23 }
 0x1f1   : > { %v1175_v16 = vmul.f32 %v1174_v5, %v7580_v58  ;;  %v1310_v18 = vmul.f32 %v1309_v51, %v7580_v58  ;;  %v1181_v19 = vmul.f32 %v1164_v27, %v910_v2  ;;  %v1182_v10 = vmul.f32 %v1165_v25, %v914_v35 }
 0x1f2   : > { %5886 = vmatmul.mubr.bf16.gmra.mrb[20].mxu0 %v995_v32  ;;  %v1444_v20 = vsel %vm10257_vm2, %v1419_v0, %v1422_v1  ;;  %v1300_v21 = vsel %vm10258_vm1, %v1298_v26, %v1284_v36  ;;  %v1316_v62 = vmul.f32 %v1299_v49, %v910_v2  ;;  %v1435_v7 = vsel %vm10257_vm2, %v1433_v6, %v1419_v0 }
 0x1f3   : > { %5922 = vmatpush3.bf16.msra.mxu0 %v7531_v48  ;;  %v1183_v63 = vpack.c.bf16 %v7598_v11, %v1175_v16  ;;  %v1318_v22 = vpack.c.bf16 %v7600_v12, %v1310_v18  ;;  %v1186_v23 = vpack.c.bf16 %v1182_v10, %v1181_v19  ;;  %v1445_v51 = vmul.f32 %v1444_v20, %v7580_v58 }
 0x1f4   : > { %5923 = vmatprep.subr.bf16.mxu0 %v7560_v55  ;;  %v1317_v27 = vmul.f32 %v1300_v21, %v914_v35  ;;  %v1451_v59 = vmul.f32 %v1434_v50, %v910_v2  ;;  %v1452_v32 = vmul.f32 %v1435_v7, %v914_v35  ;;  %v1937_v58 = vrot.slane %v7618_v43, 1 }
 0x1f5   : > { %5905 = vmatprep.mubr.bf16.mxu1 %v1183_v63  ;;  %5929 = vmatprep.mubr.bf16.mxu0 %v1318_v22  ;;  %v1453_v1 = vpack.c.bf16 %v7602_v13, %v1445_v51  ;;  %v1992_v12 = vrot.slane %v7624_v54, 6  ;;  %v2042_v13 = vrot.slane %v7613_v33, 2  ;;  %v2099_v10 = vrot.slane %v7624_v54, 5  ;;  %v7792_v63 = vpop.f32.mrb[7].mxu1 }
 0x1f6   : > { %5906 = vmatmul.mubr.bf16.vlgmr.msra.gmra.mrb[8].mxu1 %v1184_v9  ;;  %v1321_v0 = vpack.c.bf16 %v1317_v27, %v1316_v62  ;;  %v1456_v11 = vpack.c.bf16 %v1452_v32, %v1451_v59  ;;  %v1989_v9 = vrot.slane %v7656_v40, 6  ;;  %v2101_v26 = vrot.slane %v7613_v33, 5  ;;  %10396 = vst [vmem:[#allocation42_spill] sm:$0xff] %v7792_v63 }
 0x1f7   : > { %5924 = vmatpush3.bf16.msra.mxu0 %v7560_v55  ;;  %5938 = vmatpush3.bf16.msra.mxu1 %v7501_v30  ;;  %v10385_v30 = vpack.c.bf16 %v7626_v60, %v7609_v29  ;;  %v2044_v29 = vrot.slane %v7618_v43, 2  ;;  %v2151_v60 = vrot.slane %v7618_v43, 3  ;;  %v10237_v6 = vrot.slane %v7649_v42, 1 }
 0x1f8   : > { %5909 = vmatprep.mubr.bf16.mxu1 %v1185_v8  ;;  %5925 = vmatprep.subr.bf16.mxu0 %v7565_v56  ;;  %v1996_v8 = vrot.slane %v7618_v43, 6  ;;  %v10236_v35 = vrot.slane %v7649_v42, 2  ;;  %v2096_v36 = vrot.slane %v7656_v40, 5  ;;  %v7765_v49 = vsel %vm10257_vm2, %v2099_v10, %v2101_v26 }
 0x1f9   : > { %5939 = vmatprep.subr.bf16.mxu1 %v7503_v34  ;;  %10391 = vst [vmem:[#allocation37_spill] sm:$0xff] %v7765_v49  ;;  %v7770_v50 = vsel %vm10253_vm5, %v10238_v28, %v2151_v60  ;;  %v7776_v25 = vsel %vm10258_vm1, %v1989_v9, %v1991_v45  ;;  %v2098_v18 = vrot.slane %v7615_v41, 5  ;;  %v10235_v19 = vrot.slane %v7649_v42, 3 }
 0x1fa   : > { %10393 = vst [vmem:[#allocation39_spill] sm:$0xff] %v7776_v25  ;;  %v2103_v20 = vrot.slane %v7618_v43, 5  ;;  %v7790_v7 = vsel %vm10256_vm3, %v1937_v58, %v10237_v6  ;;  %v7814_v32 = vsel %vm10258_vm1, %v1991_v45, %v1992_v12  ;;  %v2146_v6 = vrot.slane %v7615_v41, 3  ;;  %v6286_v25 = vld [vmem:[#allocation10 + $0x8] sm:$0xff]  }
 0x1fb   : > { %5926 = vmatpush3.bf16.msra.mxu0 %v7565_v56  ;;  %5940 = vmatpush3.bf16.msra.mxu1 %v7503_v34  ;;  %v10386_v34 = vpack.c.bf16 %v7628_v61, %v7611_v31  ;;  %v1884_v31 = vrot.slane %v7615_v41, 7  ;;  %v1875_v61 = vrot.slane %v7656_v40, 7  ;;  %v7782_v21 = vsel %vm10257_vm2, %v2096_v36, %v2098_v18  ;;  %10401 = vst [vmem:[#allocation47_spill] sm:$0xff] %v7814_v32 }
 0x1fc   : > { %5927 = vmatprep.subr.bf16.mxu0 %v7572_v57  ;;  %5941 = vmatprep.subr.bf16.mxu1 %v7513_v39  ;;  %10394 = vst [vmem:[#allocation40_spill] sm:$0xff] %v7782_v21  ;;  %v7803_v51 = vsel %vm10257_vm2, %v2101_v26, %v2103_v20  ;;  %v7808_v27 = vsel %vm10253_vm5, %v2151_v60, %v10235_v19  ;;  %v2039_v19 = vrot.slane %v7615_v41, 2  ;;  %v2147_v28 = vrot.slane %v7624_v54, 3 }
 0x1fd   : > { %v7773_v5 = vsel %vm10259_vm0, %v1875_v61, %v1884_v31  ;;  %10398 = vst [vmem:[#allocation44_spill] sm:$0xff] %v7803_v51  ;;  %10399 = vst [vmem:[#allocation45_spill] sm:$0xff] %v7808_v27  ;;  %v2048_v15 = vrot.slane %v7792_v63, 2 }
 0x1fe   : > { %5910 = vmatmul.mubr.bf16.gmra.mrb[12].mxu1 %v1186_v23  ;;  %10392 = vst [vmem:[#allocation38_spill] sm:$0xff] %v7773_v5  ;;  %v7800_v23 = vsel %vm10254_vm4, %v2044_v29, %v10236_v35  ;;  %v2040_v35 = vrot.slane %v7624_v54, 2  ;;  %v7881_v53 = vsel %vm10253_vm5, %v2146_v6, %v2147_v28 }
 0x1ff   : > { %5928 = vmatpush3.bf16.msra.mxu0 %v7572_v57  ;;  %5942 = vmatpush3.bf16.msra.mxu1 %v7513_v39  ;;  %v10387_v39 = vpack.c.bf16 %v7660_v4, %v7658_v3  ;;  %v1889_v4 = vrot.slane %v7618_v43, 7  ;;  %10416 = vst [vmem:[#allocation62_spill] sm:$0xff] %v7881_v53 }
 0x200   : > { %5953 = vmatprep.mubr.bf16.mxu1 %v1453_v1  ;;  %5943 = vmatprep.subr.bf16.mxu1 %v7520_v44  ;;  %v7817_v1 = vsel %vm10257_vm2, %v2098_v18, %v2099_v10  ;;  %v1932_v18 = vrot.slane %v7615_v41, 1 }
 0x201   : > { %10402 = vst [vmem:[#allocation48_spill] sm:$0xff] %v7817_v1 }
 0x202   : > { %5930 = vmatmul.mubr.bf16.vlgmr.msra.gmra.mrb[24].mxu0 %v10385_v30  ;;  %v2105_v30 = vrot.slane %v7649_v42, 5 }
 0x203   : > { %5933 = vmatprep.mubr.bf16.mxu0 %v1320_v17  ;;  %5944 = vmatpush3.bf16.msra.mxu1 %v7520_v44  ;;  %v10388_v44 = vmov 0   ;;  %v7758_v17 = vsel %vm10254_vm4, %v2042_v13, %v2044_v29  ;;  %v2107_v29 = vrot.slane %v7792_v63, 5 }
 0x204   : > { %5945 = vmatprep.subr.bf16.mxu1 %v7531_v48 }
 0x207   : > { %5946 = vmatpush3.bf16.msra.mxu1 %v7531_v48  ;;  %v1887_v48 = vrot.slane %v7613_v33, 7 }
 0x208   : > { %5947 = vmatprep.subr.bf16.mxu1 %v7560_v55 }
 0x209   : > { %v7785_v62 = vsel %vm10259_vm0, %v1887_v48, %v1889_v4 }
 0x20a   : > { %5934 = vmatmul.mubr.bf16.gmra.mrb[28].mxu0 %v1321_v0  ;;  %10395 = vst [vmem:[#allocation41_spill] sm:$0xff] %v7785_v62  ;;  %v1891_v0 = vrot.slane %v7649_v42, 7 }
 0x20b   : > { %5948 = vmatpush3.bf16.msra.mxu1 %v7560_v55  ;;  %v1935_v55 = vrot.slane %v7613_v33, 1 }
 0x20c   : > { %5949 = vmatprep.subr.bf16.mxu1 %v7565_v56 }
 0x20d   : > { %v7748_v2 = vsel %vm10256_vm3, %v1935_v55, %v1937_v58  ;;  %v2002_v58 = vrot.slane %v7642_v24, 6 }
 0x20f   : > { %5950 = vmatpush3.bf16.msra.mxu1 %v7565_v56  ;;  %v1994_v56 = vrot.slane %v7613_v33, 6 }
 0x210   : > { %5951 = vmatprep.subr.bf16.mxu1 %v7572_v57 }
 0x211   : > { %v7751_v3 = vsel %vm10258_vm1, %v1992_v12, %v1994_v56  ;;  %v7795_v22 = vsel %vm10258_vm1, %v1994_v56, %v1996_v8  ;;  %v1895_v56 = vrot.slane %v7642_v24, 7  ;;  %v2000_v12 = vrot.slane %v7792_v63, 6 }
 0x212   : > { %10390 = vst [vmem:[#allocation36_spill] sm:$0xff] %v7751_v3  ;;  %10397 = vst [vmem:[#allocation43_spill] sm:$0xff] %v7795_v22 }
 0x213   : > { %5952 = vmatpush3.bf16.msra.mxu1 %v7572_v57  ;;  %v1885_v57 = vrot.slane %v7624_v54, 7  ;;  %v7841_v60 = vsel %vm10258_vm1, %v2000_v12, %v2002_v58 }
 0x214   : > { %10407 = vst [vmem:[#allocation53_spill] sm:$0xff] %v7841_v60 }
 0x215   : > { %v7743_v16 = vsel %vm10259_vm0, %v1885_v57, %v1887_v48  ;;  %v7811_v59 = vsel %vm10259_vm0, %v1884_v31, %v1885_v57  ;;  %v7829_v48 = vsel %vm10257_vm2, %v2103_v20, %v2105_v30  ;;  %v1893_v57 = vrot.slane %v7792_v63, 7 }
 0x216   : > { %5954 = vmatmul.mubr.bf16.vlgmr.msra.gmra.mrb[16].mxu1 %v10386_v34  ;;  %10389 = vst [vmem:[#allocation35_spill] sm:$0xff] %v7743_v16  ;;  %10400 = vst [vmem:[#allocation46_spill] sm:$0xff] %v7811_v59  ;;  %v7823_v34 = vsel %vm10259_vm0, %v1889_v4, %v1891_v0  ;;  %v2109_v31 = vrot.slane %v7642_v24, 5  ;;  %v7847_v4 = vsel %vm10259_vm0, %v1895_v56, %v1875_v61  ;;  %v1933_v20 = vrot.slane %v7624_v54, 1 }
 0x217   : > { %5957 = vmatprep.mubr.bf16.mxu1 %v10387_v39  ;;  %10403 = vst [vmem:[#allocation49_spill] sm:$0xff] %v7823_v34  ;;  %10405 = vst [vmem:[#allocation51_spill] sm:$0xff] %v7829_v48  ;;  %v7838_v45 = vsel %vm10259_vm0, %v1893_v57, %v1895_v56  ;;  %v1945_v61 = vrot.slane %v7656_v40, 1  ;;  %v2052_v56 = vrot.slane %v7656_v40, 2 }
 0x218   : > { %10406 = vst [vmem:[#allocation52_spill] sm:$0xff] %v7838_v45  ;;  %v7844_v10 = vsel %vm10257_vm2, %v2107_v29, %v2109_v31  ;;  %10409 = vst [vmem:[#allocation55_spill] sm:$0xff] %v7847_v4  ;;  %v7853_v26 = vsel %vm10257_vm2, %v2109_v31, %v2096_v36  ;;  %v7868_v36 = vsel %vm10256_vm3, %v1933_v20, %v1935_v55 }
 0x219   : > { %10408 = vst [vmem:[#allocation54_spill] sm:$0xff] %v7844_v10  ;;  %10411 = vst [vmem:[#allocation57_spill] sm:$0xff] %v7853_v26  ;;  %v7877_v31 = vsel %vm10254_vm4, %v2040_v35, %v2042_v13  ;;  %v7886_v55 = vsel %vm10253_vm5, %v2147_v28, %v10417_v47  ;;  %v7892_v52 = vsel %vm10254_vm4, %v2052_v56, %v2039_v19  ;;  %v1943_v13 = vrot.slane %v7642_v24, 1 }
 0x21a   : > { %10413 = vst [vmem:[#allocation59_spill] sm:$0xff] %v7868_v36  ;;  %10415 = vst [vmem:[#allocation61_spill] sm:$0xff] %v7877_v31  ;;  %v2155_v47 = vrot.slane %v7792_v63, 3  ;;  %v7903_v28 = vsel %vm10259_vm0, %v1891_v0, %v1893_v57 }
 0x21b   : > { %10418 = vst [vmem:[#allocation63_spill] sm:$0xff] %v7886_v55  ;;  %10420 = vst [vmem:[#allocation65_spill] sm:$0xff] %v7892_v52 }
 0x21c   : > { %10422 = vst [vmem:[#allocation67_spill] sm:$0xff] %v7903_v28 }
 0x21e   : > { %5958 = vmatmul.mubr.bf16.gmra.mrb[20].mxu1 %v1456_v11  ;;  %v1998_v11 = vrot.slane %v7649_v42, 6 }
 0x21f   : > { %2638 = vmatprep.mubr.bf16.mxu1 %v10388_v44  ;;  %v2159_v44 = vrot.slane %v7656_v40, 3 }
 0x220   : > { %v7826_v39 = vsel %vm10258_vm1, %v1996_v8, %v1998_v11  ;;  %v7850_v8 = vsel %vm10258_vm1, %v2002_v58, %v1989_v9  ;;  %v7863_v9 = vsel %vm10256_vm3, %v1932_v18, %v1933_v20  ;;  %v7872_v58 = vsel %vm10254_vm4, %v2039_v19, %v2040_v35 }
 0x221   : > { %10404 = vst [vmem:[#allocation50_spill] sm:$0xff] %v7826_v39  ;;  %10410 = vst [vmem:[#allocation56_spill] sm:$0xff] %v7850_v8  ;;  %v7889_v20 = vsel %vm10256_vm3, %v1945_v61, %v1932_v18  ;;  %v7895_v46 = vsel %vm10253_vm5, %v2159_v44, %v2146_v6  ;;  %v1941_v35 = vrot.slane %v7792_v63, 1  ;;  %v7906_v18 = vsel %vm10258_vm1, %v1998_v11, %v2000_v12 }
 0x222   : > { %10412 = vst [vmem:[#allocation58_spill] sm:$0xff] %v7863_v9  ;;  %10414 = vst [vmem:[#allocation60_spill] sm:$0xff] %v7872_v58  ;;  %v7909_v19 = vsel %vm10257_vm2, %v2105_v30, %v2107_v29  ;;  %v2157_v6 = vrot.slane %v7642_v24, 3  ;;  %v10428_v63 = vrot.slane %v7649_v42, 2  ;;  %v7926_v11 = vsel %vm10254_vm4, %v2048_v15, %v2050_v38 }
 0x223   : > { %10419 = vst [vmem:[#allocation64_spill] sm:$0xff] %v7889_v20  ;;  %10421 = vst [vmem:[#allocation66_spill] sm:$0xff] %v7895_v46  ;;  %v7915_v37 = vsel %vm10256_vm3, %v10425_v14, %v1941_v35  ;;  %v7918_v46 = vsel %vm10256_vm3, %v1941_v35, %v1943_v13  ;;  %v10431_v30 = vrot.slane %v7649_v42, 3  ;;  %v7937_v14 = vsel %vm10256_vm3, %v1943_v13, %v1945_v61 }
 0x224   : > { %10423 = vst [vmem:[#allocation68_spill] sm:$0xff] %v7906_v18  ;;  %10424 = vst [vmem:[#allocation69_spill] sm:$0xff] %v7909_v19  ;;  %v7923_v0 = vsel %vm10254_vm4, %v10428_v63, %v2048_v15  ;;  %v7934_v12 = vsel %vm10253_vm5, %v2155_v47, %v2157_v6  ;;  %v7940_v29 = vsel %vm10254_vm4, %v2050_v38, %v2052_v56 }
 0x225   : > { %10426 = vst [vmem:[#allocation70_spill] sm:$0xff] %v7915_v37  ;;  %10427 = vst [vmem:[#allocation71_spill] sm:$0xff] %v7918_v46  ;;  %v7931_v57 = vsel %vm10253_vm5, %v10431_v30, %v2155_v47  ;;  %v7943_v63 = vsel %vm10253_vm5, %v2157_v6, %v2159_v44  ;;  %v545_v46 = vlaneseq }
 0x226   : > { %10429 = vst [vmem:[#allocation72_spill] sm:$0xff] %v7923_v0  ;;  %10430 = vst [vmem:[#allocation73_spill] sm:$0xff] %v7926_v11 }
 0x227   : > { %10432 = vst [vmem:[#allocation74_spill] sm:$0xff] %v7931_v57  ;;  %10433 = vst [vmem:[#allocation75_spill] sm:$0xff] %v7934_v12  ;;  %v7953_v47 = vshrl.u32 %v545_v46, 7 }
 0x228   : > { %10434 = vst [vmem:[#allocation76_spill] sm:$0xff] %v7937_v14  ;;  %10435 = vst [vmem:[#allocation77_spill] sm:$0xff] %v7940_v29 }
 0x229   : > { %10436 = vst [vmem:[#allocation78_spill] sm:$0xff] %v7943_v63  ;;  %10437 = vst [vmem:[#allocation79_spill] sm:$0xff] %v7953_v47  ;;  %v548_v61 = vadd.s32 16, %v7953_v47  ;;  %v549_v13 = vadd.s32 24, %v7953_v47  ;;  %v547_v38 = vadd.s32 8, %v7953_v47  ;;  %v7965_v12 = vand.u32 3, %v7953_v47 }
 0x22a   : > { %v553_v8 = vadd.s32 56, %v7953_v47  ;;  %v551_v48 = vadd.s32 40, %v7953_v47 }
 0x22b   : > { %v7960_v44 = vand.u32 3, %v548_v61  ;;  %v7970_v46 = vand.u32 3, %v549_v13  ;;  %vm1252_vm7 = vcmp.ge.s32.totalorder %v7965_v12, 1  ;;  %v7975_v28 = vand.u32 3, %v547_v38 }
 0x22c   : > { %v552_v61 = vadd.s32 48, %v7953_v47  ;;  %v550_v13 = vadd.s32 32, %v7953_v47  ;;  %v8015_v47 = vand.u32 3, %v551_v48  ;;  %vm1387_vm15 = vcmp.ge.s32.totalorder %v7965_v12, 2 }
 0x22d   : > { %vm1254_vm6 = vcmp.ge.s32.totalorder %v7960_v44, 1  ;;  %vm1255_vm8 = vcmp.ge.s32.totalorder %v7970_v46, 1  ;;  %vm1253_vm9 = vcmp.ge.s32.totalorder %v7975_v28, 1  ;;  %vm1389_vm14 = vcmp.ge.s32.totalorder %v7960_v44, 2 }
 0x22e   : > { %v8005_v34 = vand.u32 3, %v552_v61  ;;  %v8009_v42 = vand.u32 3, %v550_v13  ;;  %10438 = vst [vmem:[#allocation80_spill] sm:$0xff] %v8015_v47  ;;  %vm10261_vm13 = vcmp.ge.s32.totalorder %v8015_v47, 1  ;;  %vm1390_vm5 = vcmp.ge.s32.totalorder %v7970_v46, 2 }
 0x22f   : > { %vm10278_vm4 = vcmp.ge.s32.totalorder %v7975_v28, 2  ;;  %vm10265_vm0 = vcmp.ge.s32.totalorder %v8015_v47, 2 }
 0x230   : > { %vm10273_vm10 = vcmp.ge.s32.totalorder %v8005_v34, 1  ;;  %vm10268_vm11 = vcmp.ge.s32.totalorder %v8009_v42, 1  ;;  %vm10269_vm3 = vcmp.ge.s32.totalorder %v8005_v34, 2  ;;  %vm10267_vm2 = vcmp.ge.s32.totalorder %v8009_v42, 2 }
 0x2b5   : > { %v7945_v35 = vpop.f32.mrb[16].mxu0 }
 0x2b6   : > { %v7947_v15 = vpop.f32.mrb[17].mxu0 }
 0x2b7   : > { %v7949_v11 = vpop.f32.mrb[18].mxu0 }
 0x2b8   : > { %v7951_v30 = vpop.f32.mrb[19].mxu0 }
 0x2c5   : > { %v7958_v56 = vpop.f32.mrb[20].mxu0 }
 0x2c6   : > { %v7962_v6 = vpop.f32.mrb[21].mxu0 }
 0x2c7   : > { %v7967_v19 = vpop.f32.mrb[22].mxu0 }
 0x2c8   : > { %v7972_v18 = vpop.f32.mrb[23].mxu0 }
 0x2c9   : > { %v5907_v52 = vpop.f32.mrb[8].mxu1 }
 0x2ca   : > { %v7981_v57 = vsel %vm1254_vm6, %v5907_v52, -1e+30  ;;  %v1221_v63 = vpop.f32.mrb[9].mxu1 }
 0x2cb   : > { %v1556_v0 = vmax.f32 %v7945_v35, %v7981_v57  ;;  %v7989_v38 = vsel %vm1252_vm7, %v1221_v63, -1e+30  ;;  %v5908_v26 = vpop.f32.mrb[10].mxu1 }
 0x2cc   : > { %v1554_v4 = vmax.f32 %v7947_v15, %v7989_v38  ;;  %v7996_v52 = vsel %vm1255_vm8, %v5908_v26, -1e+30  ;;  %v1224_v40 = vpop.f32.mrb[11].mxu1  ;;  %v8012_v26 = vand.u32 3, %v553_v8 }
 0x2cd   : > { %v1557_v39 = vmax.f32 %v7949_v11, %v7996_v52  ;;  %v8003_v63 = vsel %vm1253_vm9, %v1224_v40, -1e+30 }
 0x2ce   : > { %v1555_v29 = vmax.f32 %v7951_v30, %v8003_v63  ;;  %vm10263_vm12 = vcmp.ge.s32.totalorder %v8012_v26, 1  ;;  %vm10262_vm1 = vcmp.ge.s32.totalorder %v8012_v26, 2 }
 0x2d1   : > { %v5911_v10 = vpop.f32.mrb[12].mxu1 }
 0x2d2   : > { %v8020_v40 = vsel %vm10273_vm10, %v5911_v10, -1e+30  ;;  %v1237_v61 = vpop.f32.mrb[13].mxu1  ;;  %vm10286_vm10 = vcmp.lt.s32.totalorder %v7960_v44, 1 }
 0x2d3   : > { %v1560_v13 = vmax.f32 %v7958_v56, %v8020_v40  ;;  %v8027_v8 = vsel %vm10268_vm11, %v1237_v61, -1e+30  ;;  %v5912_v60 = vpop.f32.mrb[14].mxu1  ;;  %vm10271_vm11 = vcmp.ge.s32.totalorder %v8009_v42, 3 }
 0x2d4   : > { %v1558_v48 = vmax.f32 %v7962_v6, %v8027_v8  ;;  %v8034_v10 = vsel %vm10263_vm12, %v5912_v60, -1e+30  ;;  %v1240_v45 = vpop.f32.mrb[15].mxu1  ;;  %vm1525_vm12 = vcmp.ge.s32.totalorder %v7970_v46, 3 }
 0x2d5   : > { %v1561_v24 = vmax.f32 %v7967_v19, %v8034_v10  ;;  %v8041_v61 = vsel %vm10261_vm13, %v1240_v45, -1e+30  ;;  %v5931_v14 = vpop.f32.mrb[24].mxu0  ;;  %vm1524_vm13 = vcmp.ge.s32.totalorder %v7960_v44, 3 }
 0x2d6   : > { %v1559_v37 = vmax.f32 %v7972_v18, %v8041_v61  ;;  %v8048_v60 = vsel %vm1389_vm14, %v5931_v14, -1e+30  ;;  %v1356_v20 = vpop.f32.mrb[25].mxu0 }
 0x2d7   : > { %v1564_v55 = vmax.f32 %v1556_v0, %v8048_v60  ;;  %v8054_v1 = vsel %vm1387_vm15, %v1356_v20, -1e+30  ;;  %v5932_v45 = vpop.f32.mrb[26].mxu0 }
 0x2d8   : > { %v1562_v32 = vmax.f32 %v1554_v4, %v8054_v1  ;;  %v8059_v59 = vsel %vm1390_vm5, %v5932_v45, -1e+30  ;;  %v1359_v54 = vpop.f32.mrb[27].mxu0 }
 0x2d9   : > { %v1565_v14 = vmax.f32 %v1557_v39, %v8059_v59  ;;  %v8064_v51 = vsel %vm10278_vm4, %v1359_v54, -1e+30  ;;  %v6285_v39 = vld [vmem:[#allocation10] sm:$0xff]   ;;  %vm10295_vm4 = vcmp.lt.s32.totalorder %v7975_v28, 3 }
 0x2da   : > { %v8067_v0 = vmax.f32 %v1555_v29, %v8064_v51  ;;  %5961 = vmatprep.subr.bf16.mxu0 %v6285_v39 }
 0x2db   : > { %5962 = vmatpush3.bf16.msra.mxu0 %v6285_v39 }
 0x2dc   : > { %5963 = vmatprep.subr.bf16.mxu0 %v6286_v25 }
 0x2dd   : > { %v5935_v20 = vpop.f32.mrb[28].mxu0 }
 0x2de   : > { %v8074_v4 = vsel %vm10269_vm3, %v5935_v20, -1e+30  ;;  %v1372_v45 = vpop.f32.mrb[29].mxu0  ;;  %vm10276_vm3 = vcmp.lt.s32.totalorder %v7960_v44, 3 }
 0x2df   : > { %v8078_v54 = vmax.f32 %v1560_v13, %v8074_v4  ;;  %v8082_v29 = vsel %vm10267_vm2, %v1372_v45, -1e+30  ;;  %v5936_v22 = vpop.f32.mrb[30].mxu0  ;;  %5964 = vmatpush3.bf16.msra.mxu0 %v6286_v25  ;;  %vm10270_vm2 = vcmp.ge.s32.totalorder %v8005_v34, 3 }
 0x2e0   : > { %v8085_v62 = vmax.f32 %v1558_v48, %v8082_v29  ;;  %v8089_v43 = vsel %vm10262_vm1, %v5936_v22, -1e+30  ;;  %v1375_v20 = vpop.f32.mrb[31].mxu0  ;;  %v6287_v48 = vld [vmem:[#allocation10 + $0x10] sm:$0xff]   ;;  %vm1522_vm1 = vcmp.ge.s32.totalorder %v7965_v12, 3 }
 0x2e1   : > { %v8092_v21 = vmax.f32 %v1561_v24, %v8089_v43  ;;  %v8096_v13 = vsel %vm10265_vm0, %v1375_v20, -1e+30  ;;  %5965 = vmatprep.subr.bf16.mxu0 %v6287_v48  ;;  %v6288_v20 = vld [vmem:[#allocation10 + $0x18] sm:$0xff]   ;;  %vm10274_vm0 = vcmp.ge.s32.totalorder %v7975_v28, 3 }
 0x2e2   : > { %v8099_v45 = vmax.f32 %v1559_v37, %v8096_v13 }
 0x2e3   : > { %5966 = vmatpush3.bf16.msra.mxu0 %v6287_v48 }
 0x2e4   : > { %5967 = vmatprep.subr.bf16.mxu0 %v6288_v20 }
 0x2e7   : > { %5968 = vmatpush3.bf16.msra.mxu0 %v6288_v20  ;;  %v6291_v20 = vld [vmem:[#allocation10 + $0x30] sm:$0xff]  }
 0x2e9   : > { %v5955_v22 = vpop.f32.mrb[16].mxu1 }
 0x2ea   : > { %v1548_v24 = vsel %vm1524_vm13, %v5955_v22, -1e+30  ;;  %v1491_v39 = vpop.f32.mrb[17].mxu1 }
 0x2eb   : > { %v1572_v37 = vmax.f32 %v1564_v55, %v1548_v24  ;;  %v1546_v5 = vsel %vm1522_vm1, %v1491_v39, -1e+30  ;;  %v5956_v25 = vpop.f32.mrb[18].mxu1 }
 0x2ec   : > { %v1570_v41 = vmax.f32 %v1562_v32, %v1546_v5  ;;  %v1549_v49 = vsel %vm1525_vm12, %v5956_v25, -1e+30  ;;  %v1494_v3 = vpop.f32.mrb[19].mxu1  ;;  %v6289_v25 = vld [vmem:[#allocation10 + $0x20] sm:$0xff]  }
 0x2ed   : > { %v1580_v48 = vsub.f32 %v7945_v35, %v1572_v37  ;;  %v1604_v16 = vsub.f32 %v7981_v57, %v1572_v37  ;;  %v1628_v22 = vsub.f32 %v8048_v60, %v1572_v37  ;;  %v1652_v33 = vsub.f32 %v1548_v24, %v1572_v37  ;;  %5969 = vmatprep.subr.bf16.mxu0 %v6289_v25 }
 0x2ee   : > { %v1578_v55 = vsub.f32 %v7947_v15, %v1570_v41  ;;  %v1602_v39 = vsub.f32 %v7989_v38, %v1570_v41  ;;  %v1626_v32 = vsub.f32 %v8054_v1, %v1570_v41  ;;  %v1650_v53 = vsub.f32 %v1546_v5, %v1570_v41  ;;  %5970 = vmatpush3.bf16.msra.mxu0 %v6289_v25  ;;  %v6290_v1 = vld [vmem:[#allocation10 + $0x28] sm:$0xff]  }
 0x2ef   : > { %v1590_v31 = vmul.f32 1.442695, %v1580_v48  ;;  %v1614_v58 = vmul.f32 1.442695, %v1604_v16  ;;  %v1638_v36 = vmul.f32 1.442695, %v1628_v22  ;;  %v1573_v9 = vmax.f32 %v1565_v14, %v1549_v49  ;;  %5971 = vmatprep.subr.bf16.mxu0 %v6290_v1 }
 0x2f0   : > { %v1662_v27 = vmul.f32 1.442695, %v1652_v33  ;;  %v1586_v35 = vmul.f32 1.442695, %v1578_v55  ;;  %v1610_v57 = vmul.f32 1.442695, %v1602_v39 }
 0x2f1   : > { %6413 = vpow2.f32 %v1590_v31  ;;  %v1634_v15 = vmul.f32 1.442695, %v1626_v32  ;;  %v1581_v38 = vsub.f32 %v7949_v11, %v1573_v9  ;;  %v5959_v60 = vpop.f32.mrb[20].mxu1  ;;  %v1605_v41 = vsub.f32 %v7996_v52, %v1573_v9 }
 0x2f2   : > { %6415 = vpow2.f32 %v1614_v58  ;;  %v1629_v16 = vsub.f32 %v8059_v59, %v1573_v9  ;;  %v1653_v5 = vsub.f32 %v1549_v49, %v1573_v9  ;;  %v1507_v33 = vpop.f32.mrb[21].mxu1  ;;  %v1658_v14 = vmul.f32 1.442695, %v1650_v53  ;;  %5972 = vmatpush3.bf16.msra.mxu0 %v6290_v1 }
 0x2f3   : > { %6417 = vpow2.f32 %v1638_v36  ;;  %v1547_v31 = vsel %vm10274_vm0, %v1494_v3, -1e+30  ;;  %v8127_v11 = vsel %vm10270_vm2, %v5959_v60, -1e+30  ;;  %v1592_v58 = vmul.f32 1.442695, %v1581_v38  ;;  %5973 = vmatprep.subr.bf16.mxu0 %v6291_v20 }
 0x2f4   : > { %6419 = vpow2.f32 %v1662_v27  ;;  %v1616_v24 = vmul.f32 1.442695, %v1605_v41  ;;  %v1640_v52 = vmul.f32 1.442695, %v1629_v16  ;;  %v1571_v49 = vmax.f32 %v8067_v0, %v1547_v31  ;;  %v5960_v3 = vpop.f32.mrb[22].mxu1  ;;  %v6292_v0 = vld [vmem:[#allocation10 + $0x38] sm:$0xff]  }
 0x2f5   : > { %6421 = vpow2.f32 %v1586_v35  ;;  %v1576_v59 = vmax.f32 %v8078_v54, %v8127_v11  ;;  %v8134_v53 = vsel %vm10271_vm11, %v1507_v33, -1e+30  ;;  %v1664_v9 = vmul.f32 1.442695, %v1653_v5  ;;  %v1510_v36 = vpop.f32.mrb[23].mxu1 }
 0x2f6   : > { %6423 = vpow2.f32 %v1610_v57  ;;  %v8138_v27 = vmax.f32 %v8085_v62, %v8134_v53  ;;  %vm10272_vm2 = vcmp.ge.s32.totalorder %v8012_v26, 3  ;;  %v1579_v54 = vsub.f32 %v7951_v30, %v1571_v49  ;;  %5974 = vmatpush3.bf16.msra.mxu0 %v6291_v20 }
 0x2f7   : > { %6425 = vpow2.f32 %v1634_v15  ;;  %v1603_v37 = vsub.f32 %v8003_v63, %v1571_v49  ;;  %v1627_v48 = vsub.f32 %v8064_v51, %v1571_v49  ;;  %v1651_v22 = vsub.f32 %v1547_v31, %v1571_v49  ;;  %5975 = vmatprep.subr.bf16.mxu0 %v6292_v0 }
 0x2f8   : > { %6427 = vpow2.f32 %v1658_v14  ;;  %v1584_v55 = vsub.f32 %v7958_v56, %v1576_v59  ;;  %v1608_v39 = vsub.f32 %v8020_v40, %v1576_v59  ;;  %vm10275_vm11 = vcmp.lt.s32.totalorder %v7960_v44, 2 }
 0x2f9   : > { %6429 = vpow2.f32 %v1592_v58  ;;  %v1588_v62 = vmul.f32 1.442695, %v1579_v54  ;;  %v8149_v32 = vsel %vm10272_vm2, %v5960_v3, -1e+30  ;;  %v1612_v30 = vmul.f32 1.442695, %v1603_v37 }
 0x2fa   : > { %6431 = vpow2.f32 %v1616_v24  ;;  %v1636_v63 = vmul.f32 1.442695, %v1627_v48  ;;  %v1660_v51 = vmul.f32 1.442695, %v1651_v22  ;;  %v1632_v56 = vsub.f32 %v8074_v4, %v1576_v59  ;;  %5976 = vmatpush3.bf16.msra.mxu0 %v6292_v0  ;;  %v10452_v22 = vld [vmem:[#allocation37_spill] sm:$0xff] }
 0x2fb   : > { %v8151_v25 = vpop.eup %6413  ;;  %6433 = vpow2.f32 %v1640_v52  ;;  %v1656_v40 = vsub.f32 %v8127_v11, %v1576_v59  ;;  %v1582_v35 = vsub.f32 %v7962_v6, %v8138_v27  ;;  %v1606_v15 = vsub.f32 %v8027_v8, %v8138_v27 }
 0x2fc   : > { %v8157_v57 = vpop.eup %6415  ;;  %6435 = vpow2.f32 %v1664_v9  ;;  %v1630_v38 = vsub.f32 %v8082_v29, %v8138_v27  ;;  %v1654_v60 = vsub.f32 %v8134_v53, %v8138_v27  ;;  %v1598_v16 = vmul.f32 1.442695, %v1584_v55 }
 0x2fd   : > { %v8165_v41 = vpop.eup %6417  ;;  %v1676_v4 = vadd.f32 %v8157_v57, %v8151_v25  ;;  %6437 = vpow2.f32 %v1588_v62  ;;  %vm10277_vm2 = vcmp.ge.s32.totalorder %v8015_v47, 3  ;;  %v8175_v8 = vsel %vm10276_vm3, %v7748_v2, 0.0 }
 0x2fe   : > { %v8170_v6 = vpop.eup %6419  ;;  %v8180_v29 = vsel %vm10275_vm11, %v7758_v17, 0.0  ;;  %6439 = vpow2.f32 %v1612_v30  ;;  %v1622_v5 = vmul.f32 1.442695, %v1608_v39  ;;  %vm10281_vm0 = vcmp.lt.s32.totalorder %v7970_v46, 3 }
 0x2ff   : > { %v8182_v33 = vpop.eup %6421  ;;  %v1684_v1 = vadd.f32 %v8165_v41, %v1676_v4  ;;  %6441 = vpow2.f32 %v1636_v63  ;;  %v1646_v14 = vmul.f32 1.442695, %v1632_v56  ;;  %v8189_v2 = vmax.f32 %v8092_v21, %v8149_v32 }
 0x300   : > { %v8191_v31 = vpop.eup %6423  ;;  %6443 = vpow2.f32 %v1660_v51  ;;  %v1670_v17 = vmul.f32 1.442695, %v1656_v40  ;;  %v1594_v11 = vmul.f32 1.442695, %v1582_v35  ;;  %v8195_v58 = vsel %vm10277_vm2, %v1510_v36, -1e+30 }
 0x301   : > { %10439 = vst [vmem:[#allocation81_spill] sm:$0xff] %v8195_v58  ;;  %v8197_v24 = vpop.eup %6425  ;;  %v1692_v52 = vadd.f32 %v8170_v6, %v1684_v1  ;;  %v1674_v49 = vadd.f32 %v8191_v31, %v8182_v33  ;;  %6445 = vpow2.f32 %v1598_v16  ;;  %v1585_v21 = vsub.f32 %v7967_v19, %v8189_v2 }
 0x302   : > { %v8204_v59 = vpop.eup %6427  ;;  %6447 = vpow2.f32 %v1622_v5  ;;  %v1609_v53 = vsub.f32 %v8034_v10, %v8189_v2  ;;  %v1633_v3 = vsub.f32 %v8089_v43, %v8189_v2  ;;  %v1657_v9 = vsub.f32 %v8149_v32, %v8189_v2  ;;  %v10441_v2 = vld [vmem:[#allocation45_spill] sm:$0xff] }
 0x303   : > { %v8212_v27 = vpop.eup %6429  ;;  %6449 = vrcp.f32 %v1692_v52  ;;  %v1682_v36 = vadd.f32 %v8197_v24, %v1674_v49  ;;  %vm10280_vm11 = vcmp.lt.s32.totalorder %v7970_v46, 2  ;;  %v8218_v19 = vmax.f32 %v8099_v45, %v8195_v58  ;;  %v10442_v52 = vld [vmem:[#allocation58_spill] sm:$0xff]  ;;  %v10443_v49 = vld [vmem:[#allocation59_spill] sm:$0xff]  ;;  %v10453_v58 = vld [vmem:[#allocation29_spill] sm:$0xff] }
 0x304   : > { %v8220_v20 = vpop.eup %6431  ;;  %6451 = vpow2.f32 %v1646_v14  ;;  %v1618_v10 = vmul.f32 1.442695, %v1606_v15  ;;  %v1642_v0 = vmul.f32 1.442695, %v1630_v38  ;;  %v1666_v43 = vmul.f32 1.442695, %v1654_v60 }
 0x305   : > { %v8222_v54 = vpop.eup %6433  ;;  %v1690_v37 = vadd.f32 %v8204_v59, %v1682_v36  ;;  %v1677_v48 = vadd.f32 %v8220_v20, %v8212_v27  ;;  %6453 = vpow2.f32 %v1670_v17  ;;  %v652_v30 = vsub.s32 3, %v7960_v44 }
 0x306   : > { %v8229_v55 = vpop.eup %6435  ;;  %6455 = vpow2.f32 %v1594_v11  ;;  %vm10279_vm3 = vcmp.lt.s32.totalorder %v7970_v46, 1  ;;  %v1600_v56 = vmul.f32 1.442695, %v1585_v21  ;;  %vm1923_vm2 = vcmp.lt.s32.totalorder %v7965_v12, 3 }
 0x307   : > { %v8237_v32 = vpop.eup %6437  ;;  %6457 = vrcp.f32 %v1690_v37  ;;  %v1685_v63 = vadd.f32 %v8222_v54, %v1677_v48  ;;  %v1624_v38 = vmul.f32 1.442695, %v1609_v53  ;;  %v8256_v4 = vsel %vm10286_vm10, %v7770_v50, 0.0 }
 0x308   : > { %v8242_v51 = vpop.eup %6439  ;;  %6459 = vpow2.f32 %v1618_v10  ;;  %v8261_v16 = vsel %vm10281_vm0, %v7790_v7, 0.0  ;;  %v8266_v5 = vsel %vm10280_vm11, %v7800_v23, 0.0  ;;  %v8270_v14 = vcvt.s32.f32 %v652_v30 }
 0x309   : > { %v8246_v40 = vpop.eup %6441  ;;  %v1693_v35 = vadd.f32 %v8229_v55, %v1685_v63  ;;  %v1675_v15 = vadd.f32 %v8242_v51, %v8237_v32  ;;  %6461 = vpow2.f32 %v1642_v0  ;;  %v8275_v50 = vsel %vm10279_vm3, %v10441_v2, 0.0 }
 0x30a   : > { %v8251_v60 = vpop.eup %6443  ;;  %6463 = vpow2.f32 %v1666_v43  ;;  %10440 = vst [vmem:[#allocation82_spill] sm:$0xff] %v8270_v14  ;;  %v1648_v11 = vmul.f32 1.442695, %v1633_v3  ;;  %v8283_v23 = vsel %vm1923_vm2, %v10442_v52, 0.0  ;;  %v8288_v21 = vsel %vm10295_vm4, %v10443_v49, 0.0 }
 0x30b   : > { %v8268_v1 = vpop.eup %6445  ;;  %6465 = vrcp.f32 %v1693_v35  ;;  %v1683_v17 = vadd.f32 %v8246_v40, %v1675_v15  ;;  %v1672_v0 = vmul.f32 1.442695, %v1657_v9  ;;  %vm10291_vm3 = vcmp.lt.s32.totalorder %v7965_v12, 2 }
 0x30c   : > { %v8278_v7 = vpop.eup %6447  ;;  %6467 = vpow2.f32 %v1600_v56  ;;  %vm10288_vm11 = vcmp.lt.s32.totalorder %v7975_v28, 2  ;;  %vm10287_vm0 = vcmp.lt.s32.totalorder %v7965_v12, 1  ;;  %vm10289_vm10 = vcmp.lt.s32.totalorder %v7975_v28, 1 }
 0x30d   : > { %v6450_v53 = vpop.eup %6449  ;;  %v1691_v36 = vadd.f32 %v8251_v60, %v1683_v17  ;;  %v1680_v10 = vadd.f32 %v8278_v7, %v8268_v1  ;;  %6469 = vpow2.f32 %v1624_v38  ;;  %vm10498_vm4 = vcmp.ge.s32.totalorder %v8012_v26, 3 }
 0x30e   : > { %v8293_v43 = vpop.eup %6451  ;;  %v1708_v3 = vmul.f32 %v6450_v53, %v8151_v25  ;;  %v1740_v37 = vmul.f32 %v6450_v53, %v8157_v57  ;;  %v1772_v48 = vmul.f32 %v6450_v53, %v8165_v41  ;;  %v1804_v30 = vmul.f32 %v6450_v53, %v8170_v6 }
 0x30f   : > { %v8299_v63 = vpop.eup %6453  ;;  %6471 = vrcp.f32 %v1691_v36  ;;  %v1688_v56 = vadd.f32 %v8293_v43, %v1680_v10  ;;  %v10444_v36 = vld [vmem:[#allocation60_spill] sm:$0xff] }
 0x310   : > { %v8304_v9 = vpop.eup %6455  ;;  %v1718_v35 = vmul.f32 1.442695, %v1708_v3  ;;  %v1750_v15 = vmul.f32 1.442695, %v1740_v37  ;;  %v1782_v25 = vmul.f32 1.442695, %v1772_v48  ;;  %6473 = vpow2.f32 %v1648_v11 }
 0x311   : > { %v6458_v57 = vpop.eup %6457  ;;  %v1814_v38 = vmul.f32 1.442695, %v1804_v30  ;;  %v8307_v41 = vadd.f32 %v8299_v63, %v1688_v56  ;;  %6475 = vpow2.f32 %v1672_v0  ;;  %v8323_v10 = vsel %vm10291_vm3, %v10444_v36, 0.0 }
 0x312   : > { %v8310_v6 = vpop.eup %6459  ;;  %6477 = vpow2.f32 %v1718_v35  ;;  %v1706_v2 = vmul.f32 %v6458_v57, %v8182_v33  ;;  %v1738_v17 = vmul.f32 %v6458_v57, %v8191_v31  ;;  %v1770_v52 = vmul.f32 %v6458_v57, %v8197_v24 }
 0x313   : > { %v8315_v49 = vpop.eup %6461  ;;  %6479 = vpow2.f32 %v1750_v15  ;;  %v1802_v11 = vmul.f32 %v6458_v57, %v8204_v59  ;;  %v1678_v53 = vadd.f32 %v8310_v6, %v8304_v9  ;;  %v10445_v59 = vld [vmem:[#allocation61_spill] sm:$0xff]  ;;  %vm10477_vm3 = vcmp.ge.s32.totalorder %v8005_v34, 1 }
 0x314   : > { %v8325_v0 = vpop.eup %6463  ;;  %6481 = vpow2.f32 %v1782_v25  ;;  %v1714_v33 = vmul.f32 1.442695, %v1706_v2  ;;  %v1746_v31 = vmul.f32 1.442695, %v1738_v17  ;;  %v1778_v3 = vmul.f32 1.442695, %v1770_v52 }
 0x315   : > { %v6466_v24 = vpop.eup %6465  ;;  %6483 = vpow2.f32 %v1814_v38  ;;  %v1810_v37 = vmul.f32 1.442695, %v1802_v11  ;;  %v1686_v48 = vadd.f32 %v8315_v49, %v1678_v53  ;;  %v8331_v30 = vsel %vm10288_vm11, %v10445_v59, 0.0  ;;  %v10446_v17 = vld [vmem:[#allocation62_spill] sm:$0xff] }
 0x316   : > { %v8333_v56 = vpop.eup %6467  ;;  %6485 = vpow2.f32 %v1714_v33  ;;  %v1709_v35 = vmul.f32 %v6466_v24, %v8212_v27  ;;  %v1741_v15 = vmul.f32 %v6466_v24, %v8220_v20  ;;  %v1773_v25 = vmul.f32 %v6466_v24, %v8222_v54 }
 0x317   : > { %v8338_v57 = vpop.eup %6469  ;;  %6487 = vpow2.f32 %v1746_v31  ;;  %v1805_v38 = vmul.f32 %v6466_v24, %v8229_v55  ;;  %v8342_v2 = vadd.f32 %v8325_v0, %v1686_v48  ;;  %v8347_v52 = vsel %vm10287_vm0, %v10446_v17, 0.0 }
 0x318   : > { %6489 = vpow2.f32 %v1778_v3  ;;  %v1720_v11 = vmul.f32 1.442695, %v1709_v35  ;;  %v1752_v27 = vmul.f32 1.442695, %v1741_v15  ;;  %v1784_v53 = vmul.f32 1.442695, %v1773_v25 }
 0x319   : > { %v6472_v20 = vpop.eup %6471  ;;  %v650_v54 = vsub.s32 3, %v7965_v12  ;;  %6491 = vpow2.f32 %v1810_v37  ;;  %v1816_v36 = vmul.f32 1.442695, %v1805_v38  ;;  %v1681_v55 = vadd.f32 %v8338_v57, %v8333_v56 }
 0x31a   : > { %v8352_v33 = vpop.eup %6473  ;;  %6493 = vpow2.f32 %v1720_v11  ;;  %v1707_v31 = vmul.f32 %v6472_v20, %v8237_v32  ;;  %v1739_v24 = vmul.f32 %v6472_v20, %v8242_v51  ;;  %v1771_v3 = vmul.f32 %v6472_v20, %v8246_v40  ;;  %v10447_v32 = vld [vmem:[#allocation28_spill] sm:$0xff] }
 0x31b   : > { %v8357_v48 = vpop.eup %6475  ;;  %v653_v59 = vsub.s32 3, %v7970_v46  ;;  %6495 = vpow2.f32 %v1752_v27  ;;  %v1803_v37 = vmul.f32 %v6472_v20, %v8251_v60  ;;  %v1689_v35 = vadd.f32 %v8352_v33, %v1681_v55 }
 0x31c   : > { %v6478_v15 = vpop.eup %6477  ;;  %6497 = vpow2.f32 %v1784_v53  ;;  %v1716_v25 = vmul.f32 1.442695, %v1707_v31  ;;  %v1748_v38 = vmul.f32 1.442695, %v1739_v24  ;;  %v1780_v17 = vmul.f32 1.442695, %v1771_v3 }
 0x31d   : > { %v6480_v11 = vpop.eup %6479  ;;  %v1868_v62 = vmul.f32 %v6478_v15, %v10447_v32  ;;  %v8363_v51 = vcvt.s32.f32 %v650_v54  ;;  %6499 = vpow2.f32 %v1816_v36  ;;  %v8366_v40 = vadd.f32 %v8357_v48, %v1689_v35  ;;  %v10449_v24 = vld [vmem:[#allocation35_spill] sm:$0xff]  ;;  %v10450_v35 = vld [vmem:[#allocation36_spill] sm:$0xff] }
 0x31e   : > { %v6482_v39 = vpop.eup %6481  ;;  %v1764_v60 = vsel %vm1254_vm6, %v6480_v11, 0.0  ;;  %v651_v27 = vsub.s32 3, %v7975_v28  ;;  %6501 = vpow2.f32 %v1716_v25  ;;  %v1812_v53 = vmul.f32 1.442695, %v1803_v37 }
 0x31f   : > { %10448 = vst [vmem:[#allocation45_spill] sm:$0xff] %v8363_v51  ;;  %v6484_v20 = vpop.eup %6483  ;;  %v1796_v55 = vsel %vm1389_vm14, %v6482_v39, 0.0  ;;  %v1836_v31 = vadd.f32 %v6478_v15, %v1764_v60  ;;  %v1909_v54 = vmul.f32 %v10449_v24, %v1764_v60  ;;  %6503 = vpow2.f32 %v1748_v38 }
 0x320   : > { %v6486_v36 = vpop.eup %6485  ;;  %v1828_v3 = vsel %vm1524_vm13, %v6484_v20, 0.0  ;;  %v2016_v32 = vmul.f32 %v10450_v35, %v1796_v55  ;;  %v8377_v45 = vcvt.s32.f32 %v653_v59  ;;  %6505 = vpow2.f32 %v1780_v17  ;;  %v10457_v35 = vld [vmem:[#allocation39_spill] sm:$0xff] }
 0x321   : > { %v6488_v11 = vpop.eup %6487  ;;  %v1844_v25 = vadd.f32 %v1836_v31, %v1796_v55  ;;  %v1917_v37 = vadd.f32 %v1909_v54, %v1868_v62  ;;  %v2123_v47 = vmul.f32 %v10452_v22, %v1828_v3  ;;  %v1866_v39 = vmul.f32 %v6486_v36, %v10453_v58  ;;  %v10456_v54 = vld [vmem:[#allocation38_spill] sm:$0xff] }
 0x322   : > { %10451 = vst [vmem:[#allocation58_spill] sm:$0xff] %v8377_v45  ;;  %v6490_v15 = vpop.eup %6489  ;;  %v1762_v38 = vsel %vm1252_vm7, %v6488_v11, 0.0  ;;  %v8383_v60 = vcvt.s32.f32 %v651_v27  ;;  %6507 = vpow2.f32 %v1812_v53  ;;  %v10455_v20 = vsub.f32 %v7972_v18, %v8218_v19 }
 0x323   : > { %v6492_v24 = vpop.eup %6491  ;;  %v1852_v17 = vadd.f32 %v1844_v25, %v1828_v3  ;;  %v1983_v55 = vadd.f32 %v8175_v8, %v1917_v37  ;;  %v1794_v22 = vsel %vm1387_vm15, %v6490_v15, 0.0  ;;  %v1834_v62 = vadd.f32 %v6486_v36, %v1762_v38  ;;  %v10458_v25 = vld [vmem:[#allocation40_spill] sm:$0xff] }
 0x324   : > { %10454 = vst [vmem:[#allocation59_spill] sm:$0xff] %v8383_v60  ;;  %v1596_v59 = vmul.f32 1.442695, %v10455_v20  ;;  %v6494_v58 = vpop.eup %6493  ;;  %v1826_v31 = vsel %vm1522_vm1, %v6492_v24, 0.0  ;;  %v1907_v27 = vmul.f32 %v10456_v54, %v1762_v38  ;;  %v8395_v53 = vmul.f32 %v10457_v35, %v1794_v22  ;;  %v10459_v24 = vld [vmem:[#allocation30_spill] sm:$0xff] }
 0x325   : > { %6509 = vrcp.f32 %v8307_v41  ;;  %v6496_v18 = vpop.eup %6495  ;;  %v1860_v3 = vadd.f32 %v1852_v17, %v8270_v14  ;;  %v2024_v11 = vadd.f32 %v2016_v32, %v1983_v55  ;;  %v1842_v8 = vadd.f32 %v1834_v62, %v1794_v22  ;;  %v10460_v22 = vld [vmem:[#allocation41_spill] sm:$0xff]  ;;  %v10462_v14 = vld [vmem:[#allocation44_spill] sm:$0xff] }
 0x326   : > { %v8400_v37 = vmul.f32 %v10458_v25, %v1826_v31  ;;  %v6498_v36 = vpop.eup %6497  ;;  %v1915_v15 = vadd.f32 %v1907_v27, %v1866_v39  ;;  %v1765_v20 = vsel %vm1255_vm8, %v6496_v18, 0.0  ;;  %v1869_v38 = vmul.f32 %v6494_v58, %v10459_v24  ;;  %v10461_v27 = vld [vmem:[#allocation43_spill] sm:$0xff] }
 0x327   : > { %6511 = vrcp.f32 %v8342_v2  ;;  %v6500_v54 = vpop.eup %6499  ;;  %v2090_v41 = vadd.f32 %v8180_v29, %v2024_v11  ;;  %v1850_v35 = vadd.f32 %v1842_v8, %v1826_v31  ;;  %v1797_v32 = vsel %vm1390_vm5, %v6498_v36, 0.0 }
 0x328   : > { %6513 = vrcp.f32 %v1860_v3  ;;  %v6502_v17 = vpop.eup %6501  ;;  %v1829_v55 = vsel %vm1525_vm12, %v6500_v54, 0.0  ;;  %v1837_v39 = vadd.f32 %v6494_v58, %v1765_v20  ;;  %v1910_v62 = vmul.f32 %v10460_v22, %v1765_v20  ;;  %v10463_v3 = vld [vmem:[#allocation31_spill] sm:$0xff]  ;;  %v10465_v22 = vld [vmem:[#allocation46_spill] sm:$0xff] }
 0x329   : > { %v2017_v18 = vmul.f32 %v10461_v27, %v1797_v32  ;;  %v6504_v25 = vpop.eup %6503  ;;  %v2131_v24 = vadd.f32 %v2123_v47, %v2090_v41  ;;  %v1858_v2 = vadd.f32 %v1850_v35, %v8363_v51  ;;  %v2124_v29 = vmul.f32 %v10462_v14, %v1829_v55 }
 0x32a   : > { %v1867_v31 = vmul.f32 %v6502_v17, %v10463_v3  ;;  %v6506_v11 = vpop.eup %6505  ;;  %v1845_v8 = vadd.f32 %v1837_v39, %v1797_v32  ;;  %v1918_v36 = vadd.f32 %v1910_v62, %v1869_v38  ;;  %v1763_v58 = vsel %vm1253_vm9, %v6504_v25, 0.0  ;;  %v10466_v38 = vld [vmem:[#allocation47_spill] sm:$0xff] }
 0x32b   : > { %6515 = vrcp.f32 %v8366_v40  ;;  %v8421_v20 = vadd.f32 %v8256_v4, %v2131_v24  ;;  %vm10464_vm0 = vcmp.ge.s32.totalorder %v7975_v28, 2  ;;  %v1835_v14 = vadd.f32 %v6502_v17, %v1763_v58 }
 0x32c   : > { %6517 = vrcp.f32 %v1858_v2  ;;  %v1795_v47 = vsel %vm10464_vm0, %v6506_v11, 0.0  ;;  %v6508_v54 = vpop.eup %6507  ;;  %v1853_v41 = vadd.f32 %v1845_v8, %v1829_v55  ;;  %v1984_v35 = vadd.f32 %v8261_v16, %v1918_v36  ;;  %v10468_v2 = vld [vmem:[#allocation48_spill] sm:$0xff] }
 0x32d   : > { %v1908_v32 = vmul.f32 %v10465_v22, %v1763_v58  ;;  %v2015_v39 = vmul.f32 %v10466_v38, %v1795_v47  ;;  %vm10467_vm11 = vcmp.ge.s32.totalorder %v7975_v28, 3  ;;  %v1843_v40 = vadd.f32 %v1835_v14, %v1795_v47 }
 0x32e   : > { %v1827_v62 = vsel %vm10467_vm11, %v6508_v54, 0.0  ;;  %6519 = vpow2.f32 %v1596_v59  ;;  %v1981_v4 = vadd.f32 %v8283_v23, %v1915_v15  ;;  %v1861_v25 = vadd.f32 %v1853_v41, %v8377_v45 }
 0x32f   : > { %v6510_v27 = vpop.eup %6509  ;;  %v2025_v24 = vadd.f32 %v2017_v18, %v1984_v35  ;;  %v1916_v17 = vadd.f32 %v1908_v32, %v1867_v31  ;;  %v2122_v55 = vmul.f32 %v10468_v2, %v1827_v62  ;;  %v1851_v3 = vadd.f32 %v1843_v40, %v1827_v62  ;;  %v10469_v32 = vld [vmem:[#allocation63_spill] sm:$0xff] }
 0x330   : > { %v1712_v16 = vmul.f32 %v6510_v27, %v8268_v1  ;;  %v1744_v11 = vmul.f32 %v6510_v27, %v8278_v7  ;;  %v1776_v8 = vmul.f32 %v6510_v27, %v8293_v43  ;;  %6521 = vrcp.f32 %v1861_v25 }
 0x331   : > { %v6512_v36 = vpop.eup %6511  ;;  %v2091_v58 = vadd.f32 %v8266_v5, %v2025_v24  ;;  %v1808_v23 = vmul.f32 %v6510_v27, %v8299_v63  ;;  %v1982_v59 = vadd.f32 %v8288_v21, %v1916_v17  ;;  %v1859_v18 = vadd.f32 %v1851_v3, %v8383_v60 }
 0x332   : > { %v6514_v15 = vpop.eup %6513  ;;  %v1726_v31 = vmul.f32 1.442695, %v1712_v16  ;;  %v1758_v47 = vmul.f32 1.442695, %v1744_v11  ;;  %v1790_v14 = vmul.f32 1.442695, %v1776_v8  ;;  %v1710_v43 = vmul.f32 %v6512_v36, %v8304_v9 }
 0x333   : > { %vm10290_vm0 = vcmp.lt.s32.totalorder %v8012_v26, 3  ;;  %v2132_v1 = vadd.f32 %v2124_v29, %v2091_v58  ;;  %v1822_v7 = vmul.f32 1.442695, %v1808_v23  ;;  %v1742_v54 = vmul.f32 %v6512_v36, %v8310_v6  ;;  %v10471_v11 = vld [vmem:[#allocation64_spill] sm:$0xff] }
 0x334   : > { %6523 = vrcp.f32 %v1859_v18  ;;  %v1774_v5 = vmul.f32 %v6512_v36, %v8315_v49  ;;  %v1806_v63 = vmul.f32 %v6512_v36, %v8325_v0  ;;  %v2022_v21 = vadd.f32 %v8395_v53, %v1981_v4  ;;  %v10474_v18 = vld [vmem:[#allocation76_spill] sm:$0xff] }
 0x335   : > { %v6516_v41 = vpop.eup %6515  ;;  %v2198_v35 = vadd.f32 %v8275_v50, %v2132_v1  ;;  %6525 = vpow2.f32 %v1726_v31  ;;  %v1722_v22 = vmul.f32 1.442695, %v1710_v43  ;;  %v2188_v29 = vsel %vm10289_vm10, %v10469_v32, 0.0  ;;  %v10481_v32 = vld [vmem:[#allocation52_spill] sm:$0xff] }
 0x336   : > { %v6518_v38 = vpop.eup %6517  ;;  %6527 = vpow2.f32 %v1758_v47  ;;  %v1754_v9 = vmul.f32 1.442695, %v1742_v54  ;;  %v1786_v6 = vmul.f32 1.442695, %v1774_v5  ;;  %v1713_v62 = vmul.f32 %v6516_v41, %v8333_v56  ;;  %v10478_v5 = vld [vmem:[#allocation81_spill] sm:$0xff] }
 0x337   : > { %6529 = vpow2.f32 %v1790_v14  ;;  %v1745_v49 = vmul.f32 %v6516_v41, %v8338_v57  ;;  %v1777_v0 = vmul.f32 %v6516_v41, %v8352_v33  ;;  %v1809_v53 = vmul.f32 %v6516_v41, %v8357_v48  ;;  %v10475_v14 = vld [vmem:[#allocation32_spill] sm:$0xff] }
 0x338   : > { %v8454_v50 = vpop.eup %6519  ;;  %6531 = vpow2.f32 %v1822_v7  ;;  %v1818_v40 = vmul.f32 1.442695, %v1806_v63  ;;  %v2023_v4 = vadd.f32 %v2015_v39, %v1982_v59  ;;  %v2088_v27 = vadd.f32 %v8323_v10, %v2022_v21 }
 0x339   : > { %6533 = vpow2.f32 %v1722_v22  ;;  %v1728_v25 = vmul.f32 1.442695, %v1713_v62  ;;  %v1760_v24 = vmul.f32 1.442695, %v1745_v49  ;;  %vm10293_vm11 = vcmp.lt.s32.totalorder %v8009_v42, 3  ;;  %v10483_v62 = vld [vmem:[#allocation53_spill] sm:$0xff] }
 0x33a   : > { %6535 = vpow2.f32 %v1754_v9  ;;  %v2089_v56 = vadd.f32 %v8331_v30, %v2023_v4  ;;  %v2129_v57 = vadd.f32 %v8400_v37, %v2088_v27  ;;  %v2213_v33 = vmul.f32 %v6514_v15, %v8421_v20  ;;  %v6522_v48 = vpop.eup %6521  ;;  %v10473_v15 = vld [vmem:[#allocation70_spill] sm:$0xff] }
 0x33b   : > { %6537 = vpow2.f32 %v1786_v6  ;;  %v1792_v17 = vmul.f32 1.442695, %v1777_v0  ;;  %v1824_v2 = vmul.f32 1.442695, %v1809_v53  ;;  %vm10292_vm10 = vcmp.lt.s32.totalorder %v8005_v34, 3  ;;  %v10484_v4 = vld [vmem:[#allocation54_spill] sm:$0xff] }
 0x33c   : > { %6539 = vpow2.f32 %v1818_v40  ;;  %v2130_v10 = vadd.f32 %v2122_v55, %v2089_v56  ;;  %v2195_v39 = vadd.f32 %v8347_v52, %v2129_v57  ;;  %v2214_v3 = vmul.f32 %v6522_v48, %v2198_v35  ;;  %v10487_v48 = vld [vmem:[#allocation77_spill] sm:$0xff] }
 0x33d   : > { %v656_v16 = vsub.s32 3, %v8005_v34  ;;  %6541 = vpow2.f32 %v1728_v25  ;;  %v10470_v30 = vsub.f32 %v8041_v61, %v8218_v19  ;;  %v8470_v20 = vsel %vm10290_vm0, %v10471_v11, 0.0  ;;  %v10485_v25 = vld [vmem:[#allocation33_spill] sm:$0xff] }
 0x33e   : > { %v6524_v8 = vpop.eup %6523  ;;  %6543 = vpow2.f32 %v1760_v24  ;;  %v2196_v36 = vadd.f32 %v2188_v29, %v2130_v10  ;;  %v2211_v58 = vmul.f32 %v6518_v38, %v2195_v39  ;;  %v2220_v55 = vpack.c.bf16 %v2214_v3, %v2213_v33 }
 0x33f   : > { %v1620_v37 = vmul.f32 1.442695, %v10470_v30  ;;  %v6526_v23 = vpop.eup %6525  ;;  %6545 = vpow2.f32 %v1792_v17  ;;  %v10472_v52 = vsub.f32 %v8096_v13, %v8218_v19  ;;  %v8478_v61 = vsel %vm10293_vm11, %v10473_v15, 0.0 }
 0x340   : > { %v1979_v31 = vsel %vm10292_vm10, %v10474_v18, 0.0  ;;  %v6528_v47 = vpop.eup %6527  ;;  %v1872_v1 = vmul.f32 %v6526_v23, %v10475_v14  ;;  %6547 = vpow2.f32 %v1824_v2  ;;  %v2212_v7 = vmul.f32 %v6524_v8, %v2196_v36  ;;  %v10492_v36 = vld [vmem:[#allocation50_spill] sm:$0xff] }
 0x341   : > { %v1644_v59 = vmul.f32 1.442695, %v10472_v52  ;;  %vm10294_vm0 = vcmp.lt.s32.totalorder %v8005_v34, 2  ;;  %v6530_v43 = vpop.eup %6529  ;;  %v8485_v54 = vcvt.s32.f32 %v656_v16  ;;  %v1768_v13 = vsel %vm10477_vm3, %v6528_v47, 0.0  ;;  %v10489_v16 = vld [vmem:[#allocation49_spill] sm:$0xff]  ;;  %v10493_v47 = vld [vmem:[#allocation51_spill] sm:$0xff] }
 0x342   : > { %6549 = vpow2.f32 %v1620_v37  ;;  %v10479_v63 = vsub.f32 %v10478_v5, %v8218_v19  ;;  %v6532_v41 = vpop.eup %6531  ;;  %vm10480_vm10 = vcmp.ge.s32.totalorder %v8005_v34, 2  ;;  %v1840_v22 = vadd.f32 %v6526_v23, %v1768_v13 }
 0x343   : > { %10476 = vst [vmem:[#allocation60_spill] sm:$0xff] %v8485_v54  ;;  %v1800_v35 = vsel %vm10480_vm10, %v6530_v43, 0.0  ;;  %v1913_v29 = vmul.f32 %v10481_v32, %v1768_v13  ;;  %v654_v38 = vsub.s32 3, %v8009_v42  ;;  %v6534_v9 = vpop.eup %6533  ;;  %vm10482_vm11 = vcmp.ge.s32.totalorder %v8005_v34, 3  ;;  %v10496_v43 = vld [vmem:[#allocation34_spill] sm:$0xff]  ;;  %v10499_v32 = vld [vmem:[#allocation55_spill] sm:$0xff] }
 0x344   : > { %v1668_v21 = vmul.f32 1.442695, %v10479_v63  ;;  %v1832_v6 = vsel %vm10482_vm11, %v6532_v41, 0.0  ;;  %v2020_v49 = vmul.f32 %v10483_v62, %v1800_v35  ;;  %6551 = vpow2.f32 %v1644_v59  ;;  %v6536_v19 = vpop.eup %6535 }
 0x345   : > { %v2219_v0 = vpack.c.bf16 %v2212_v7, %v2211_v58  ;;  %vm10333_vm3 = vcmp.lt.s32.totalorder %v8009_v42, 2  ;;  %v1848_v53 = vadd.f32 %v1840_v22, %v1800_v35  ;;  %v1921_v40 = vadd.f32 %v1913_v29, %v1872_v1  ;;  %v6538_v56 = vpop.eup %6537 }
 0x346   : > { %v2127_v27 = vmul.f32 %v10484_v4, %v1832_v6  ;;  %v1870_v24 = vmul.f32 %v6534_v9, %v10485_v25  ;;  %vm10486_vm10 = vcmp.ge.s32.totalorder %v8009_v42, 1  ;;  %v657_v33 = vsub.s32 3, %v8012_v26  ;;  %v6540_v2 = vpop.eup %6539 }
 0x347   : > { %v1766_v57 = vsel %vm10486_vm10, %v6536_v19, 0.0  ;;  %6553 = vpow2.f32 %v1668_v21  ;;  %5977 = vmatprep.mubr.bf16.mxu0 %v2219_v0  ;;  %v2086_v17 = vsel %vm10294_vm0, %v10487_v48, 0.0  ;;  %v1856_v10 = vadd.f32 %v1848_v53, %v1832_v6  ;;  %v6542_v37 = vpop.eup %6541  ;;  %v10501_v0 = vld [vmem:[#allocation57_spill] sm:$0xff] }
 0x348   : > { %vm10488_vm11 = vcmp.ge.s32.totalorder %v8009_v42, 2  ;;  %v1838_v3 = vadd.f32 %v6534_v9, %v1766_v57  ;;  %v1911_v30 = vmul.f32 %v10489_v16, %v1766_v57  ;;  %5978 = vmatmul.mubr.bf16.vlgmr.msra.gmra.mrb[32].mxu0 %v2220_v55  ;;  %v8511_v11 = vcvt.s32.f32 %v654_v38  ;;  %v6544_v52 = vpop.eup %6543  ;;  %v10500_v38 = vld [vmem:[#allocation56_spill] sm:$0xff] }
 0x349   : > { %v1798_v39 = vsel %vm10488_vm11, %v6538_v56, 0.0  ;;  %vm10491_vm10 = vcmp.ge.s32.totalorder %v8009_v42, 3  ;;  %v1987_v23 = vadd.f32 %v1979_v31, %v1921_v40  ;;  %vm10297_vm0 = vcmp.lt.s32.totalorder %v8012_v26, 2  ;;  %v6546_v1 = vpop.eup %6545 }
 0x34a   : > { %10490 = vst [vmem:[#allocation61_spill] sm:$0xff] %v8511_v11  ;;  %v1830_v8 = vsel %vm10491_vm10, %v6540_v2, 0.0  ;;  %v2018_v58 = vmul.f32 %v10492_v36, %v1798_v39  ;;  %v1864_v59 = vadd.f32 %v1856_v10, %v8485_v54  ;;  %v1846_v15 = vadd.f32 %v1838_v3, %v1798_v39  ;;  %v6548_v63 = vpop.eup %6547 }
 0x34b   : > { %v1919_v18 = vadd.f32 %v1911_v30, %v1870_v24  ;;  %v2125_v14 = vmul.f32 %v10493_v47, %v1830_v8  ;;  %v8519_v55 = vcvt.s32.f32 %v657_v33  ;;  %vm10495_vm11 = vcmp.ge.s32.totalorder %v8012_v26, 1  ;;  %v10502_v33 = vld [vmem:[#allocation72_spill] sm:$0xff] }
 0x34c   : > { %v1769_v7 = vsel %vm10495_vm11, %v6544_v52, 0.0  ;;  %v1873_v13 = vmul.f32 %v6542_v37, %v10496_v43  ;;  %v2028_v5 = vadd.f32 %v2020_v49, %v1987_v23  ;;  %6555 = vrcp.f32 %v1864_v59  ;;  %v6550_v35 = vpop.eup %6549  ;;  %v10505_v52 = vld [vmem:[#allocation65_spill] sm:$0xff] }
 0x34d   : > { %10494 = vst [vmem:[#allocation62_spill] sm:$0xff] %v8519_v55  ;;  %v1854_v31 = vadd.f32 %v1846_v15, %v1830_v8  ;;  %vm10497_vm10 = vcmp.ge.s32.totalorder %v8012_v26, 2  ;;  %v1841_v41 = vadd.f32 %v6542_v37, %v1769_v7  ;;  %v1833_v22 = vsel %vm10498_vm4, %v6548_v63, 0.0 }
 0x34e   : > { %v1801_v21 = vsel %vm10497_vm10, %v6546_v1, 0.0  ;;  %v1914_v29 = vmul.f32 %v10499_v32, %v1769_v7  ;;  %v1985_v6 = vadd.f32 %v8478_v61, %v1919_v18  ;;  %v2128_v19 = vmul.f32 %v10501_v0, %v1833_v22  ;;  %v6552_v40 = vpop.eup %6551 }
 0x34f   : > { %v2021_v9 = vmul.f32 %v10500_v38, %v1801_v21  ;;  %v1862_v62 = vadd.f32 %v1854_v31, %v8511_v11  ;;  %v1849_v49 = vadd.f32 %v1841_v41, %v1801_v21  ;;  %v1679_v53 = vadd.f32 %v6550_v35, %v8454_v50 }
 0x350   : > { %v1922_v4 = vadd.f32 %v1914_v29, %v1873_v13  ;;  %v2026_v25 = vadd.f32 %v2018_v58, %v1985_v6  ;;  %v2094_v24 = vadd.f32 %v2086_v17, %v2028_v5  ;;  %vm10298_vm11 = vcmp.lt.s32.totalorder %v8005_v34, 1  ;;  %v10503_v17 = vld [vmem:[#allocation78_spill] sm:$0xff] }
 0x351   : > { %6557 = vrcp.f32 %v1862_v62  ;;  %v1857_v56 = vadd.f32 %v1849_v49, %v1833_v22  ;;  %v1687_v57 = vadd.f32 %v6552_v40, %v1679_v53  ;;  %v2084_v61 = vsel %vm10333_vm3, %v10502_v33, 0.0  ;;  %v6554_v48 = vpop.eup %6553  ;;  %v10504_v58 = vld [vmem:[#allocation74_spill] sm:$0xff] }
 0x352   : > { %v2092_v2 = vadd.f32 %v2084_v61, %v2026_v25  ;;  %vm10299_vm4 = vcmp.lt.s32.totalorder %v8009_v42, 1  ;;  %v1988_v10 = vadd.f32 %v8470_v20, %v1922_v4  ;;  %v2135_v39 = vadd.f32 %v2127_v27, %v2094_v24  ;;  %v10508_v4 = vld [vmem:[#allocation42_spill] sm:$0xff] }
 0x353   : > { %v1865_v3 = vadd.f32 %v1857_v56, %v8519_v55  ;;  %v1695_v16 = vadd.f32 %v6554_v48, %v1687_v57  ;;  %v2193_v30 = vsel %vm10298_vm11, %v10503_v17, 0.0  ;;  %v2191_v23 = vsel %vm10299_vm4, %v10504_v58, 0.0  ;;  %v10511_v57 = vld [vmem:[#allocation67_spill] sm:$0xff] }
 0x354   : > { %v2133_v37 = vadd.f32 %v2125_v14, %v2092_v2  ;;  %v2029_v8 = vadd.f32 %v2021_v9, %v1988_v10  ;;  %v2201_v36 = vadd.f32 %v2193_v30, %v2135_v39  ;;  %v2087_v20 = vsel %vm10297_vm0, %v10505_v52, 0.0  ;;  %v10506_v14 = vld [vmem:[#allocation66_spill] sm:$0xff]  ;;  %v10516_v30 = vld [vmem:[#allocation71_spill] sm:$0xff]  ;;  %v10517_v52 = vld [vmem:[#allocation73_spill] sm:$0xff] }
 0x355   : > { %6559 = vrcp.f32 %v1865_v3  ;;  %vm10296_vm10 = vcmp.lt.s32.totalorder %v8012_v26, 1 }
 0x356   : > { %6561 = vrcp.f32 %v1695_v16  ;;  %v2199_v27 = vadd.f32 %v2191_v23, %v2133_v37  ;;  %v2095_v59 = vadd.f32 %v2087_v20, %v2029_v8  ;;  %v6556_v15 = vpop.eup %6555  ;;  %v2194_v1 = vsel %vm10296_vm10, %v10506_v14, 0.0  ;;  %v10515_v16 = vld [vmem:[#allocation69_spill] sm:$0xff] }
 0x357   : > { %v2217_v47 = vmul.f32 %v6556_v15, %v2201_v36  ;;  %v10518_v15 = vld [vmem:[#allocation75_spill] sm:$0xff] }
 0x358   : > { %v2136_v18 = vadd.f32 %v2128_v19, %v2095_v59  ;;  %v10507_v19 = vld [vmem:[#allocation80_spill] sm:$0xff] }
 0x359   : > { %v655_v53 = vsub.s32 3, %v10507_v19  ;;  %vm10509_vm10 = vcmp.ge.s32.totalorder %v10507_v19, 1  ;;  %vm10510_vm0 = vcmp.ge.s32.totalorder %v10507_v19, 2  ;;  %vm10310_vm11 = vcmp.lt.s32.totalorder %v10507_v19, 3 }
 0x35a   : > { %v2202_v7 = vadd.f32 %v2194_v1, %v2136_v18  ;;  %vm10512_vm4 = vcmp.ge.s32.totalorder %v10507_v19, 3  ;;  %v1978_v37 = vsel %vm10310_vm11, %v10516_v30, 0.0  ;;  %v6293_v30 = vld [vmem:[#allocation11] ss:$8 sps:$4 sm:$0xff]   ;;  %vm10550_vm11 = vcmask 1045504  }
 0x35b   : > { %v6558_v43 = vpop.eup %6557  ;;  %v8566_v10 = vcvt.s32.f32 %v655_v53 }
 0x35c   : > { %v2215_v13 = vmul.f32 %v6558_v43, %v2199_v27 }
 0x35d   : > { %10514 = vst [vmem:[#allocation28_spill] sm:$0xff] %v8566_v10 }
 0x35f   : > { %v6560_v5 = vpop.eup %6559 }
 0x360   : > { %v6562_v63 = vpop.eup %6561  ;;  %v2218_v31 = vmul.f32 %v6560_v5, %v2202_v7  ;;  %v5443_v5 = vld [vmem:[%s10218_s5] ss:$0 sm:$0xff] }
 0x361   : > { %v1711_v21 = vmul.f32 %v6562_v63, %v8454_v50  ;;  %v1743_v41 = vmul.f32 %v6562_v63, %v6550_v35  ;;  %v1775_v22 = vmul.f32 %v6562_v63, %v6552_v40  ;;  %v1807_v32 = vmul.f32 %v6562_v63, %v6554_v48  ;;  %v10513_v48 = vld [vmem:[#allocation68_spill] sm:$0xff]  ;;  %v10519_v63 = vld [vmem:[#allocation22_spill] sm:$0xff] }
 0x362   : > { %v2222_v29 = vpack.c.bf16 %v2218_v31, %v2217_v47 }
 0x363   : > { %v1724_v38 = vmul.f32 1.442695, %v1711_v21  ;;  %v1756_v9 = vmul.f32 1.442695, %v1743_v41  ;;  %v1788_v6 = vmul.f32 1.442695, %v1775_v22 }
 0x364   : > { %v1820_v62 = vmul.f32 1.442695, %v1807_v32  ;;  %v10520_v41 = vld [vmem:[#allocation20_spill] sm:$0xff] }
 0x365   : > { %6563 = vpow2.f32 %v1724_v38 }
 0x366   : > { %6565 = vpow2.f32 %v1756_v9  ;;  %v10521_v9 = vld [vmem:[#allocation23_spill] sm:$0xff] }
 0x367   : > { %6567 = vpow2.f32 %v1788_v6 }
 0x368   : > { %6569 = vpow2.f32 %v1820_v62 }
 0x36f   : > { %v6564_v49 = vpop.eup %6563 }
 0x370   : > { %v6566_v0 = vpop.eup %6565  ;;  %v1871_v25 = vmul.f32 %v6564_v49, %v10508_v4 }
 0x371   : > { %v6568_v24 = vpop.eup %6567  ;;  %v1767_v50 = vsel %vm10509_vm10, %v6566_v0, 0.0  ;;  %vm10538_vm10 = vcmask 1040384  }
 0x372   : > { %v6570_v35 = vpop.eup %6569  ;;  %v1799_v40 = vsel %vm10510_vm0, %v6568_v24, 0.0  ;;  %v1839_v56 = vadd.f32 %v6564_v49, %v1767_v50  ;;  %v1912_v33 = vmul.f32 %v10511_v57, %v1767_v50  ;;  %vm10301_vm0 = vcmp.lt.s32.totalorder %v10507_v19, 2  ;;  %v10523_v24 = vld [vmem:[#allocation24_spill] sm:$0xff] }
 0x373   : > { %v1831_v61 = vsel %vm10512_vm4, %v6570_v35, 0.0  ;;  %v2019_v2 = vmul.f32 %v10513_v48, %v1799_v40  ;;  %v2085_v20 = vsel %vm10301_vm0, %v10517_v52, 0.0  ;;  %vm10300_vm4 = vcmp.lt.s32.totalorder %v10507_v19, 1 }
 0x374   : > { %v1847_v39 = vadd.f32 %v1839_v56, %v1799_v40  ;;  %v1920_v3 = vadd.f32 %v1912_v33, %v1871_v25  ;;  %v2126_v17 = vmul.f32 %v10515_v16, %v1831_v61  ;;  %v2192_v18 = vsel %vm10300_vm4, %v10518_v15, 0.0  ;;  %v10524_v56 = vld [vmem:[#allocation26_spill] sm:$0xff] }
 0x375   : > { %vm10539_vm4 = vcmask 1041408   ;;  %vm10540_vm0 = vcmask 1042432  }
 0x376   : > { %v1855_v8 = vadd.f32 %v1847_v39, %v1831_v61  ;;  %v1986_v36 = vadd.f32 %v1978_v37, %v1920_v3  ;;  %v10525_v61 = vld [vmem:[#allocation25_spill] sm:$0xff] }
 0x377   : > { %v6295_v37 = vld [vmem:[#allocation11 + $0x4] ss:$8 sps:$4 sm:$0xff]  }
 0x378   : > { %v1863_v58 = vadd.f32 %v1855_v8, %v8566_v10  ;;  %v2027_v23 = vadd.f32 %v2019_v2, %v1986_v36  ;;  %v10526_v2 = vld [vmem:[#allocation27_spill] sm:$0xff]  ;;  %2606 = vmatprep.subr.bf16.mxu1 %v6295_v37 }
 0x379   : > { %v6298_v8 = vld [vmem:[#allocation11 + $0x14] ss:$8 sps:$4 sm:$0xff]   ;;  %2607 = vmatpush1.bf16.msra.mxu1 %v6293_v30  ;;  %v6296_v36 = vld [vmem:[#allocation11 + $0x10] ss:$8 sps:$4 sm:$0xff]   ;;  %v6305_v30 = vld [vmem:[#allocation11 + $0x40] ss:$8 sps:$4 sm:$0xff]  }
 0x37a   : > { %6571 = vrcp.f32 %v1863_v58  ;;  %v2093_v27 = vadd.f32 %v2085_v20, %v2027_v23  ;;  %2608 = vmatprep.subr.bf16.mxu1 %v6298_v8  ;;  %v6310_v37 = vld [vmem:[#allocation11 + $0x54] ss:$8 sps:$4 sm:$0xff]   ;;  %v6308_v8 = vld [vmem:[#allocation11 + $0x50] ss:$8 sps:$4 sm:$0xff]  }
 0x37c   : > { %v2134_v59 = vadd.f32 %v2126_v17, %v2093_v27 }
 0x37d   : > { %2609 = vmatpush1.bf16.msra.mxu1 %v6296_v36  ;;  %v6311_v36 = vld [vmem:[#allocation11 + $0x60] ss:$8 sps:$4 sm:$0xff]  }
 0x37e   : > { %v2200_v47 = vadd.f32 %v2192_v18, %v2134_v59 }
 0x384   : > { %v6572_v14 = vpop.eup %6571 }
 0x385   : > { %v2216_v1 = vmul.f32 %v6572_v14, %v2200_v47 }
 0x387   : > { %v2221_v7 = vpack.c.bf16 %v2216_v1, %v2215_v13  ;;  %v10522_v13 = vld [vmem:[#allocation21_spill] sm:$0xff] }
 0x389   : > { %5981 = vmatprep.mubr.bf16.mxu0 %v2221_v7 }
 0x38a   : > { %5982 = vmatmul.mubr.bf16.gmra.mrb[36].mxu0 %v2222_v29 }
 0x41b   : > { %v5979_v43 = vpop.f32.mrb[32].mxu0 }
 0x41c   : > { %v2354_v31 = vadd.f32 %v5979_v43, %v10519_v63  ;;  %v2321_v21 = vpop.f32.mrb[33].mxu0 }
 0x41d   : > { %v2352_v22 = vadd.f32 %v2321_v21, %v10520_v41  ;;  %v5980_v32 = vpop.f32.mrb[34].mxu0  ;;  %v6299_v21 = vld [vmem:[#allocation11 + $0x20] ss:$8 sps:$4 sm:$0xff]   ;;  %v6301_v41 = vld [vmem:[#allocation11 + $0x24] ss:$8 sps:$4 sm:$0xff]  }
 0x41e   : > { %v8586_v38 = vadd.f32 %v5443_v5, %v2354_v31  ;;  %v2355_v6 = vadd.f32 %v5980_v32, %v10521_v9  ;;  %v2324_v62 = vpop.f32.mrb[35].mxu0  ;;  %2610 = vmatprep.subr.bf16.mxu1 %v6301_v41  ;;  %v6304_v32 = vld [vmem:[#allocation11 + $0x34] ss:$8 sps:$4 sm:$0xff]  }
 0x41f   : > { %v8589_v49 = vadd.f32 %v5443_v5, %v2352_v22  ;;  %v2353_v29 = vadd.f32 %v2324_v62, %v10522_v13  ;;  %2611 = vmatpush1.bf16.msra.mxu1 %v6299_v21  ;;  %v6302_v22 = vld [vmem:[#allocation11 + $0x30] ss:$8 sps:$4 sm:$0xff]  }
 0x420   : > { %2379 = vadd.xlane.f32.xlu1 %v8586_v38  ;;  %v8594_v0 = vadd.f32 %v5443_v5, %v2355_v6  ;;  %2612 = vmatprep.subr.bf16.mxu1 %v6304_v32 }
 0x421   : > { %2375 = vadd.xlane.f32.xlu0 %v8589_v49  ;;  %v8596_v53 = vadd.f32 %v5443_v5, %v2353_v29 }
 0x423   : > { %2613 = vmatpush1.bf16.msra.mxu1 %v6302_v22 }
 0x424   : > { %2381 = vadd.xlane.f32.xlu1 %v8594_v0 }
 0x425   : > { %2377 = vadd.xlane.f32.xlu0 %v8596_v53 }
 0x45d   : > { %v5983_v4 = vpop.f32.mrb[36].mxu0 }
 0x45e   : > { %v2337_v25 = vpop.f32.mrb[37].mxu0  ;;  %v2358_v57 = vadd.f32 %v5983_v4, %v10524_v56 }
 0x45f   : > { %v2356_v50 = vadd.f32 %v2337_v25, %v10523_v24  ;;  %v5984_v35 = vpop.f32.mrb[38].mxu0 }
 0x460   : > { %v2340_v40 = vpop.f32.mrb[39].mxu0  ;;  %v2359_v39 = vadd.f32 %v5984_v35, %v10526_v2  ;;  %v8609_v16 = vadd.f32 %v5443_v5, %v2358_v57 }
 0x461   : > { %v8602_v33 = vadd.f32 %v5443_v5, %v2356_v50  ;;  %v2357_v48 = vadd.f32 %v2340_v40, %v10525_v61 }
 0x462   : > { %v8612_v17 = vadd.f32 %v5443_v5, %v2359_v39  ;;  %v6307_v39 = vld [vmem:[#allocation11 + $0x44] ss:$8 sps:$4 sm:$0xff]  }
 0x463   : > { %v8606_v3 = vadd.f32 %v5443_v5, %v2357_v48  ;;  %2383 = vadd.xlane.f32.xlu0 %v8602_v33  ;;  %2614 = vmatprep.subr.bf16.mxu1 %v6307_v39 }
 0x464   : > { %2615 = vmatpush1.bf16.msra.mxu1 %v6305_v30 }
 0x465   : > { %2385 = vadd.xlane.f32.xlu1 %v8606_v3  ;;  %2616 = vmatprep.subr.bf16.mxu1 %v6310_v37 }
 0x467   : > { %2387 = vadd.xlane.f32.xlu0 %v8609_v16 }
 0x468   : > { %2617 = vmatpush1.bf16.msra.mxu1 %v6308_v8  ;;  %v10527_v8 = vmov 0  }
 0x469   : > { %2389 = vadd.xlane.f32.xlu1 %v8612_v17 }
 0x4ad   : > { %v2380_v58 = vpop.xlane.xlu1 %2379 }
 0x4ae   : > { %v2376_v23 = vpop.xlane.xlu0 %2375  ;;  %v2394_v52 = vmul.f32 0.0078125, %v2380_v58  ;;  %v6313_v58 = vld [vmem:[#allocation11 + $0x64] ss:$8 sps:$4 sm:$0xff]  }
 0x4af   : > { %v2392_v20 = vmul.f32 0.0078125, %v2376_v23  ;;  %v6316_v23 = vld [vmem:[#allocation11 + $0x74] ss:$8 sps:$4 sm:$0xff]   ;;  %2618 = vmatprep.subr.bf16.mxu1 %v6313_v58 }
 0x4b0   : > { %v8620_v18 = vsub.f32 %v8586_v38, %v2394_v52  ;;  %2619 = vmatpush1.bf16.msra.mxu1 %v6311_v36  ;;  %v6314_v52 = vld [vmem:[#allocation11 + $0x70] ss:$8 sps:$4 sm:$0xff]  }
 0x4b1   : > { %v8617_v27 = vsub.f32 %v8589_v49, %v2392_v20  ;;  %v2382_v59 = vpop.xlane.xlu1 %2381  ;;  %2620 = vmatprep.subr.bf16.mxu1 %v6316_v23 }
 0x4b2   : > { %v2378_v15 = vpop.xlane.xlu0 %2377  ;;  %v2395_v47 = vmul.f32 0.0078125, %v2382_v59  ;;  %v2410_v5 = vmul.f32 %v8620_v18, %v8620_v18 }
 0x4b3   : > { %v2393_v14 = vmul.f32 0.0078125, %v2378_v15  ;;  %v2408_v1 = vmul.f32 %v8617_v27, %v8617_v27 }
 0x4b4   : > { %v8628_v43 = vsub.f32 %v8594_v0, %v2395_v47  ;;  %2621 = vmatpush1.bf16.msra.mxu1 %v6314_v52 }
 0x4b5   : > { %v8625_v7 = vsub.f32 %v8596_v53, %v2393_v14  ;;  %2416 = vadd.xlane.f32.xlu0 %v2408_v1 }
 0x4b6   : > { %v2411_v31 = vmul.f32 %v8628_v43, %v8628_v43 }
 0x4b7   : > { %v2409_v63 = vmul.f32 %v8625_v7, %v8625_v7 }
 0x4b9   : > { %2420 = vadd.xlane.f32.xlu0 %v2410_v5  ;;  %2418 = vadd.xlane.f32.xlu1 %v2409_v63 }
 0x4bd   : > { %2422 = vadd.xlane.f32.xlu1 %v2411_v31 }
 0x4f0   : > { %v2384_v9 = vpop.xlane.xlu0 %2383 }
 0x4f1   : > { %v2396_v6 = vmul.f32 0.0078125, %v2384_v9 }
 0x4f2   : > { %v2386_v62 = vpop.xlane.xlu1 %2385 }
 0x4f3   : > { %v8637_v13 = vsub.f32 %v8602_v33, %v2396_v6  ;;  %v2397_v29 = vmul.f32 0.0078125, %v2386_v62  ;;  %v5444_v6 = vld [vmem:[%s10219_s6] ss:$0 sm:$0xff] }
 0x4f4   : > { %v2388_v4 = vpop.xlane.xlu0 %2387 }
 0x4f5   : > { %v8640_v25 = vsub.f32 %v8606_v3, %v2397_v29  ;;  %v2398_v24 = vmul.f32 0.0078125, %v2388_v4  ;;  %v2412_v50 = vmul.f32 %v8637_v13, %v8637_v13 }
 0x4f6   : > { %v2390_v35 = vpop.xlane.xlu1 %2389 }
 0x4f7   : > { %v8645_v40 = vsub.f32 %v8609_v16, %v2398_v24  ;;  %v2399_v56 = vmul.f32 0.0078125, %v2390_v35  ;;  %2424 = vadd.xlane.f32.xlu0 %v2412_v50  ;;  %v2413_v57 = vmul.f32 %v8640_v25, %v8640_v25  ;;  %v5445_v50 = vld [vmem:[%s10220_s7] ss:$0 sm:$0xff] }
 0x4f9   : > { %v8650_v61 = vsub.f32 %v8612_v17, %v2399_v56  ;;  %v2414_v48 = vmul.f32 %v8645_v40, %v8645_v40  ;;  %2426 = vadd.xlane.f32.xlu1 %v2413_v57 }
 0x4fb   : > { %2428 = vadd.xlane.f32.xlu0 %v2414_v48  ;;  %v2415_v2 = vmul.f32 %v8650_v61, %v8650_v61 }
 0x4fd   : > { %2430 = vadd.xlane.f32.xlu1 %v2415_v2 }
 0x542   : > { %v2417_v20 = vpop.xlane.xlu0 %2416 }
 0x543   : > { %v2432_v59 = vmul.f32 0.0078125, %v2417_v20 }
 0x545   : > { %v2440_v15 = vadd.f32 1e-05, %v2432_v59 }
 0x546   : > { %v2421_v47 = vpop.xlane.xlu0 %2420  ;;  %v2419_v14 = vpop.xlane.xlu1 %2418 }
 0x547   : > { %6573 = vrsqrt.f32 %v2440_v15  ;;  %v2434_v1 = vmul.f32 0.0078125, %v2421_v47  ;;  %v2433_v5 = vmul.f32 0.0078125, %v2419_v14 }
 0x549   : > { %v2441_v63 = vadd.f32 1e-05, %v2433_v5  ;;  %v2442_v31 = vadd.f32 1e-05, %v2434_v1 }
 0x54a   : > { %v2423_v21 = vpop.xlane.xlu1 %2422 }
 0x54b   : > { %v2435_v41 = vmul.f32 0.0078125, %v2423_v21  ;;  %6575 = vrsqrt.f32 %v2441_v63 }
 0x54c   : > { %6577 = vrsqrt.f32 %v2442_v31 }
 0x54d   : > { %v2443_v22 = vadd.f32 1e-05, %v2435_v41 }
 0x54f   : > { %6579 = vrsqrt.f32 %v2443_v22 }
 0x551   : > { %v6574_v32 = vpop.eup %6573 }
 0x552   : > { %v2456_v9 = vmul.f32 %v6574_v32, %v8617_v27 }
 0x554   : > { %v2471_v29 = vmul.f32 %v5444_v6, %v2456_v9 }
 0x555   : > { %v6576_v62 = vpop.eup %6575 }
 0x556   : > { %v2457_v4 = vmul.f32 %v6576_v62, %v8625_v7  ;;  %v6578_v24 = vpop.eup %6577  ;;  %v2486_v48 = vadd.f32 %v5445_v50, %v2471_v29 }
 0x557   : > { %v2458_v27 = vmul.f32 %v6578_v24, %v8620_v18 }
 0x558   : > { %v2472_v56 = vmul.f32 %v5444_v6, %v2457_v4 }
 0x559   : > { %v6580_v35 = vpop.eup %6579  ;;  %v2473_v37 = vmul.f32 %v5444_v6, %v2458_v27 }
 0x55a   : > { %v2459_v57 = vmul.f32 %v6580_v35, %v8628_v43  ;;  %v2487_v2 = vadd.f32 %v5445_v50, %v2472_v56 }
 0x55b   : > { %v2488_v36 = vadd.f32 %v5445_v50, %v2473_v37  ;;  %v6319_v37 = vld [vmem:[#allocation13 + $0x48] sm:$0xff]  }
 0x55c   : > { %v2494_v39 = vpack.c.bf16 %v2487_v2, %v2486_v48  ;;  %v2474_v30 = vmul.f32 %v5444_v6, %v2459_v57 }
 0x55e   : > { %2639 = vmatmul.mubr.bf16.vlgmr.msra.gmra.mrb[24].mxu1 %v2494_v39  ;;  %v2489_v7 = vadd.f32 %v5445_v50, %v2474_v30  ;;  %v6318_v30 = vld [vmem:[#allocation13] sm:$0xff]  }
 0x55f   : > { %2648 = vmatprep.mubr.bf16.mxu1 %v10527_v8 }
 0x560   : > { %v2495_v58 = vpack.c.bf16 %v2489_v7, %v2488_v36  ;;  %v6322_v7 = vld [vmem:[#allocation13 + $0x10] sm:$0xff]   ;;  %v6324_v36 = vld [vmem:[#allocation13 + $0x18] sm:$0xff]  }
 0x566   : > { %2649 = vmatmul.mubr.bf16.gmra.mrb[28].mxu1 %v2495_v58  ;;  %v6326_v58 = vld [vmem:[#allocation13 + $0x20] sm:$0xff]  }
 0x567   : > { %2658 = vmatprep.mubr.bf16.mxu1 %v10527_v8 }
 0x584   : > { %v2425_v23 = vpop.xlane.xlu0 %2424 }
 0x585   : > { %v2436_v52 = vmul.f32 0.0078125, %v2425_v23  ;;  %v6327_v23 = vld [vmem:[#allocation13 + $0x68] sm:$0xff]  }
 0x586   : > { %v2427_v20 = vpop.xlane.xlu1 %2426 }
 0x587   : > { %v2444_v43 = vadd.f32 1e-05, %v2436_v52  ;;  %v2437_v59 = vmul.f32 0.0078125, %v2427_v20  ;;  %v6328_v52 = vld [vmem:[#allocation13 + $0x28] sm:$0xff]   ;;  %v6329_v20 = vld [vmem:[#allocation13 + $0x70] sm:$0xff]  }
 0x588   : > { %v2429_v15 = vpop.xlane.xlu0 %2428 }
 0x589   : > { %6581 = vrsqrt.f32 %v2444_v43  ;;  %v2438_v18 = vmul.f32 0.0078125, %v2429_v15  ;;  %v2445_v47 = vadd.f32 1e-05, %v2437_v59  ;;  %v6330_v43 = vld [vmem:[#allocation13 + $0x30] sm:$0xff]   ;;  %v6331_v59 = vld [vmem:[#allocation13 + $0x78] sm:$0xff]  }
 0x58a   : > { %v2431_v14 = vpop.xlane.xlu1 %2430  ;;  %v6332_v15 = vld [vmem:[#allocation13 + $0x38] sm:$0xff]  }
 0x58b   : > { %v2446_v1 = vadd.f32 1e-05, %v2438_v18  ;;  %6583 = vrsqrt.f32 %v2445_v47  ;;  %v2439_v5 = vmul.f32 0.0078125, %v2431_v14  ;;  %v6333_v18 = vld [vmem:[#allocation8 + $0xc0] ss:$12 sps:$4 sm:$0xff]  }
 0x58c   : > { %v6335_v47 = vld [vmem:[#allocation8 + $0xc4] ss:$12 sps:$4 sm:$0xff]   ;;  %v6338_v14 = vld [vmem:[#allocation8 + $0xdc] ss:$12 sps:$4 sm:$0xff]  }
 0x58d   : > { %6585 = vrsqrt.f32 %v2446_v1  ;;  %v2447_v63 = vadd.f32 1e-05, %v2439_v5  ;;  %3212 = vmatprep.subr.bf16.mxu1 %v6335_v47  ;;  %v8674_v1 = vld [vmem:[#allocation8 + $0xc8] ss:$12 sps:$4 sm:$0xff]   ;;  %v6336_v5 = vld [vmem:[#allocation8 + $0xd8] ss:$12 sps:$4 sm:$0xff]  }
 0x58e   : > { %3213 = vmatpush1.bf16.msra.mxu1 %v6333_v18 }
 0x58f   : > { %6587 = vrsqrt.f32 %v2447_v63  ;;  %3214 = vmatprep.subr.bf16.mxu1 %v6338_v14  ;;  %v6341_v63 = vld [vmem:[#allocation8 + $0xf4] ss:$12 sps:$4 sm:$0xff]  }
 0x592   : > { %3215 = vmatpush1.bf16.msra.mxu1 %v6336_v5 }
 0x593   : > { %v6582_v31 = vpop.eup %6581  ;;  %3216 = vmatprep.subr.bf16.mxu1 %v6341_v63 }
 0x594   : > { %v2460_v21 = vmul.f32 %v6582_v31, %v8637_v13  ;;  %v6339_v31 = vld [vmem:[#allocation8 + $0xf0] ss:$12 sps:$4 sm:$0xff]  }
 0x595   : > { %v6584_v41 = vpop.eup %6583 }
 0x596   : > { %v2461_v22 = vmul.f32 %v6584_v41, %v8640_v25  ;;  %v2475_v32 = vmul.f32 %v5444_v6, %v2460_v21  ;;  %v6317_v25 = vld [vmem:[#allocation13 + $0x40] sm:$0xff]   ;;  %v6345_v21 = vld [vmem:[#allocation8 + $0x10c] ss:$12 sps:$4 sm:$0xff]   ;;  %3217 = vmatpush1.bf16.msra.mxu1 %v6339_v31  ;;  %v6343_v41 = vld [vmem:[#allocation8 + $0x108] ss:$12 sps:$4 sm:$0xff]  }
 0x597   : > { %v6586_v9 = vpop.eup %6585  ;;  %5689 = vmatprep.subr.bf16.mxu0 %v6317_v25  ;;  %3218 = vmatprep.subr.bf16.mxu1 %v6345_v21 }
 0x598   : > { %v2476_v62 = vmul.f32 %v5444_v6, %v2461_v22  ;;  %v2490_v4 = vadd.f32 %v5445_v50, %v2475_v32  ;;  %v2462_v35 = vmul.f32 %v6586_v9, %v8645_v40  ;;  %5690 = vmatpush3.bf16.msra.mxu0 %v6318_v30  ;;  %v6320_v40 = vld [vmem:[#allocation13 + $0x8] sm:$0xff]   ;;  %v6349_v22 = vld [vmem:[#allocation8 + $0x124] ss:$12 sps:$4 sm:$0xff]  }
 0x599   : > { %v6588_v29 = vpop.eup %6587  ;;  %5691 = vmatprep.subr.bf16.mxu0 %v6319_v37  ;;  %v6347_v32 = vld [vmem:[#allocation8 + $0x120] ss:$12 sps:$4 sm:$0xff]   ;;  %v6353_v9 = vld [vmem:[#allocation8 + $0x13c] ss:$12 sps:$4 sm:$0xff]  }
 0x59a   : > { %v2491_v24 = vadd.f32 %v5445_v50, %v2476_v62  ;;  %v2463_v56 = vmul.f32 %v6588_v29, %v8650_v61  ;;  %v2477_v2 = vmul.f32 %v5444_v6, %v2462_v35  ;;  %v6321_v61 = vld [vmem:[#allocation13 + $0x50] sm:$0xff]   ;;  %3219 = vmatpush1.bf16.msra.mxu1 %v6343_v41  ;;  %v10528_v62 = vld [vmem:[#allocation79_spill] sm:$0xff] }
 0x59b   : > { %3220 = vmatprep.subr.bf16.mxu1 %v6349_v22  ;;  %v10303_v29 = vsub.s32 0, %v10528_v62  ;;  %v6351_v35 = vld [vmem:[#allocation8 + $0x138] ss:$12 sps:$4 sm:$0xff]  }
 0x59c   : > { %v2496_v57 = vpack.c.bf16 %v2491_v24, %v2490_v4  ;;  %v2478_v48 = vmul.f32 %v5444_v6, %v2463_v56  ;;  %v2492_v27 = vadd.f32 %v5445_v50, %v2477_v2  ;;  %5692 = vmatpush3.bf16.msra.mxu0 %v6320_v40  ;;  %v6323_v6 = vld [vmem:[#allocation13 + $0x58] sm:$0xff]   ;;  %v10302_v24 = vsub.s32 1, %v10528_v62 }
 0x59d   : > { %5693 = vmatprep.subr.bf16.mxu0 %v6321_v61  ;;  %v2514_v4 = vld [vmem:[%s10222_s9] sm:$0x3] }
 0x59e   : > { %2659 = vmatmul.mubr.bf16.gmra.mrb[32].mxu1 %v2496_v57  ;;  %v2493_v13 = vadd.f32 %v5445_v50, %v2478_v48  ;;  %v6325_v50 = vld [vmem:[#allocation13 + $0x60] sm:$0xff]   ;;  %v8684_v56 = vrot.slane %v2514_v4, %v10303_v29  ;;  %v8688_v57 = vrot.slane %v2514_v4, %v10302_v24 }
 0x59f   : > { %2668 = vmatprep.mubr.bf16.mxu1 %v10527_v8  ;;  %3221 = vmatpush1.bf16.msra.mxu1 %v6347_v32 }
 0x5a0   : > { %v2497_v39 = vpack.c.bf16 %v2493_v13, %v2492_v27  ;;  %5694 = vmatpush3.bf16.msra.mxu0 %v6322_v7  ;;  %3222 = vmatprep.subr.bf16.mxu1 %v6353_v9 }
 0x5a1   : > { %5695 = vmatprep.subr.bf16.mxu0 %v6323_v6 }
 0x5a3   : > { %3223 = vmatpush1.bf16.msra.mxu1 %v6351_v35 }
 0x5a4   : > { %5696 = vmatpush3.bf16.msra.mxu0 %v6324_v36 }
 0x5a5   : > { %5697 = vmatprep.subr.bf16.mxu0 %v6325_v50 }
 0x5a6   : > { %2669 = vmatmul.mubr.bf16.gmra.mrb[36].mxu1 %v2497_v39 }
 0x5a7   : > { %3244 = vmatprep.mubr.bf16.mxu1 %v10527_v8 }
 0x5a8   : > { %5698 = vmatpush3.bf16.msra.mxu0 %v6326_v58 }
 0x5a9   : > { %5699 = vmatprep.subr.bf16.mxu0 %v6327_v23 }
 0x5ac   : > { %5700 = vmatpush3.bf16.msra.mxu0 %v6328_v52 }
 0x5ad   : > { %5701 = vmatprep.subr.bf16.mxu0 %v6329_v20 }
 0x5b0   : > { %5702 = vmatpush3.bf16.msra.mxu0 %v6330_v43 }
 0x5b1   : > { %5703 = vmatprep.subr.bf16.mxu0 %v6331_v59 }
 0x5b4   : > { %5704 = vmatpush3.bf16.msra.mxu0 %v6332_v15 }
 0x5b5   : > { %5985 = vmatprep.subr.bf16.mxu0 %v8674_v1 }
 0x631   : > { %v2640_v48 = vpop.f32.mrb[24].mxu1 }
 0x632   : > { %v8691_v2 = vadd.f32 %v2640_v48, %v8684_v56  ;;  %v2642_v13 = vpop.f32.mrb[25].mxu1 }
 0x633   : > { %v8694_v27 = vadd.f32 %v2642_v13, %v8688_v57  ;;  %v2644_v39 = vpop.f32.mrb[26].mxu1 }
 0x634   : > { %v2695_v25 = vmul.f32 0.044715, %v8691_v2  ;;  %v8698_v30 = vadd.f32 %v2644_v39, %v8684_v56  ;;  %v2646_v37 = vpop.f32.mrb[27].mxu1 }
 0x635   : > { %v2696_v40 = vmul.f32 0.044715, %v8694_v27  ;;  %v8702_v61 = vadd.f32 %v2646_v37, %v8688_v57 }
 0x636   : > { %v2711_v7 = vmul.f32 %v2695_v25, %v8691_v2  ;;  %v2697_v6 = vmul.f32 0.044715, %v8698_v30 }
 0x637   : > { %v2712_v36 = vmul.f32 %v2696_v40, %v8694_v27  ;;  %v2698_v50 = vmul.f32 0.044715, %v8702_v61 }
 0x638   : > { %v2727_v58 = vmul.f32 %v2711_v7, %v8691_v2  ;;  %v2713_v23 = vmul.f32 %v2697_v6, %v8698_v30 }
 0x639   : > { %v2728_v52 = vmul.f32 %v2712_v36, %v8694_v27  ;;  %v2714_v20 = vmul.f32 %v2698_v50, %v8702_v61  ;;  %v2650_v43 = vpop.f32.mrb[28].mxu1 }
 0x63a   : > { %v2743_v59 = vadd.f32 %v2727_v58, %v8691_v2  ;;  %v2729_v15 = vmul.f32 %v2713_v23, %v8698_v30  ;;  %v8715_v18 = vadd.f32 %v2650_v43, %v8684_v56  ;;  %v2652_v47 = vpop.f32.mrb[29].mxu1 }
 0x63b   : > { %v2730_v14 = vmul.f32 %v2714_v20, %v8702_v61  ;;  %v8719_v5 = vadd.f32 %v2652_v47, %v8688_v57  ;;  %v2654_v63 = vpop.f32.mrb[30].mxu1  ;;  %v2744_v31 = vadd.f32 %v2728_v52, %v8694_v27 }
 0x63c   : > { %v2759_v21 = vmul.f32 0.7978846, %v2743_v59  ;;  %v2745_v41 = vadd.f32 %v2729_v15, %v8698_v30  ;;  %v2699_v22 = vmul.f32 0.044715, %v8715_v18  ;;  %v2655_v32 = vadd.f32 %v2654_v63, %v8684_v56  ;;  %v2656_v9 = vpop.f32.mrb[31].mxu1 }
 0x63d   : > { %v2700_v4 = vmul.f32 0.044715, %v8719_v5  ;;  %v2657_v35 = vadd.f32 %v2656_v9, %v8688_v57  ;;  %v2746_v48 = vadd.f32 %v2730_v14, %v8702_v61  ;;  %v2760_v13 = vmul.f32 0.7978846, %v2744_v31 }
 0x63e   : > { %6589 = vtanh.f32 %v2759_v21  ;;  %v2761_v39 = vmul.f32 0.7978846, %v2745_v41  ;;  %v2715_v25 = vmul.f32 %v2699_v22, %v8715_v18  ;;  %v2701_v37 = vmul.f32 0.044715, %v2655_v32 }
 0x63f   : > { %v2716_v40 = vmul.f32 %v2700_v4, %v8719_v5  ;;  %v2702_v7 = vmul.f32 0.044715, %v2657_v35  ;;  %v2762_v6 = vmul.f32 0.7978846, %v2746_v48  ;;  %6591 = vtanh.f32 %v2760_v13 }
 0x640   : > { %6593 = vtanh.f32 %v2761_v39  ;;  %v2731_v36 = vmul.f32 %v2715_v25, %v8715_v18  ;;  %v2717_v50 = vmul.f32 %v2701_v37, %v2655_v32  ;;  %v2679_v39 = vmul.f32 0.5, %v8691_v2 }
 0x641   : > { %v2732_v58 = vmul.f32 %v2716_v40, %v8719_v5  ;;  %v2718_v23 = vmul.f32 %v2702_v7, %v2657_v35  ;;  %6595 = vtanh.f32 %v2762_v6  ;;  %v2681_v25 = vmul.f32 0.5, %v8698_v30 }
 0x642   : > { %v2733_v52 = vmul.f32 %v2717_v50, %v2655_v32  ;;  %v2747_v20 = vadd.f32 %v2731_v36, %v8715_v18  ;;  %v2680_v40 = vmul.f32 0.5, %v8694_v27  ;;  %v2682_v7 = vmul.f32 0.5, %v8702_v61 }
 0x643   : > { %v2734_v43 = vmul.f32 %v2718_v23, %v2657_v35  ;;  %v2748_v59 = vadd.f32 %v2732_v58, %v8719_v5  ;;  %v2683_v27 = vmul.f32 0.5, %v8715_v18 }
 0x644   : > { %v2749_v15 = vadd.f32 %v2733_v52, %v2655_v32  ;;  %v2763_v47 = vmul.f32 0.7978846, %v2747_v20 }
 0x645   : > { %v2750_v14 = vadd.f32 %v2734_v43, %v2657_v35  ;;  %v2764_v63 = vmul.f32 0.7978846, %v2748_v59 }
 0x646   : > { %v2765_v31 = vmul.f32 0.7978846, %v2749_v15  ;;  %6597 = vtanh.f32 %v2763_v47  ;;  %v6346_v47 = vld [vmem:[#allocation8 + $0xe0] ss:$12 sps:$4 sm:$0xff]  }
 0x647   : > { %v2766_v21 = vmul.f32 0.7978846, %v2750_v14  ;;  %6599 = vtanh.f32 %v2764_v63  ;;  %v2685_v63 = vmul.f32 0.5, %v2655_v32 }
 0x648   : > { %v6590_v41 = vpop.eup %6589  ;;  %6601 = vtanh.f32 %v2765_v31  ;;  %v2684_v31 = vmul.f32 0.5, %v8719_v5 }
 0x649   : > { %v6592_v22 = vpop.eup %6591  ;;  %v2791_v9 = vadd.f32 1.0, %v6590_v41  ;;  %6603 = vtanh.f32 %v2766_v21  ;;  %v2686_v21 = vmul.f32 0.5, %v2657_v35 }
 0x64a   : > { %v6594_v4 = vpop.eup %6593  ;;  %v2792_v48 = vadd.f32 1.0, %v6592_v22 }
 0x64b   : > { %v6596_v13 = vpop.eup %6595  ;;  %v2793_v37 = vadd.f32 1.0, %v6594_v4  ;;  %v2807_v36 = vmul.f32 %v2791_v9, %v2679_v39  ;;  %v6350_v4 = vld [vmem:[#allocation8 + $0xf8] ss:$12 sps:$4 sm:$0xff]  }
 0x64c   : > { %v2794_v6 = vadd.f32 1.0, %v6596_v13  ;;  %v2808_v58 = vmul.f32 %v2792_v48, %v2680_v40 }
 0x64d   : > { %v2809_v50 = vmul.f32 %v2793_v37, %v2681_v25 }
 0x64e   : > { %v2810_v23 = vmul.f32 %v2794_v6, %v2682_v7 }
 0x64f   : > { %v2823_v52 = vpack.c.bf16 %v2809_v50, %v2807_v36 }
 0x650   : > { %v6598_v20 = vpop.eup %6597  ;;  %v2824_v43 = vpack.c.bf16 %v2810_v23, %v2808_v58 }
 0x651   : > { %v6600_v59 = vpop.eup %6599  ;;  %v2795_v15 = vadd.f32 1.0, %v6598_v20 }
 0x652   : > { %v6602_v14 = vpop.eup %6601  ;;  %2991 = vmatprep.mubr.bf16.mxu0 %v2824_v43  ;;  %v2796_v2 = vadd.f32 1.0, %v6600_v59 }
 0x653   : > { %v6604_v30 = vpop.eup %6603  ;;  %2992 = vmatmul.mubr.bf16.vlgmr.msra.gmra.mrb[40].mxu0 %v2823_v52  ;;  %v2797_v61 = vadd.f32 1.0, %v6602_v14  ;;  %v2811_v22 = vmul.f32 %v2795_v15, %v2683_v27 }
 0x654   : > { %v2798_v41 = vadd.f32 1.0, %v6604_v30  ;;  %5986 = vmatpush3.bf16.msra.mxu0 %v8674_v1  ;;  %v2812_v48 = vmul.f32 %v2796_v2, %v2684_v31 }
 0x655   : > { %v2813_v9 = vmul.f32 %v2797_v61, %v2685_v63  ;;  %5987 = vmatprep.subr.bf16.mxu0 %v6346_v47 }
 0x656   : > { %v2814_v13 = vmul.f32 %v2798_v41, %v2686_v21 }
 0x657   : > { %v2825_v39 = vpack.c.bf16 %v2813_v9, %v2811_v22 }
 0x658   : > { %v2826_v25 = vpack.c.bf16 %v2814_v13, %v2812_v48  ;;  %5988 = vmatpush3.bf16.msra.mxu0 %v6346_v47 }
 0x659   : > { %5989 = vmatprep.subr.bf16.mxu0 %v6350_v4 }
 0x65a   : > { %2999 = vmatprep.mubr.bf16.mxu0 %v2826_v25 }
 0x65b   : > { %3000 = vmatmul.mubr.bf16.gmra.mrb[44].mxu0 %v2825_v39 }
 0x65c   : > { %5990 = vmatpush3.bf16.msra.mxu0 %v6350_v4 }
 0x671   : > { %v2660_v18 = vpop.f32.mrb[32].mxu1 }
 0x672   : > { %v8742_v5 = vadd.f32 %v2660_v18, %v8684_v56  ;;  %v2662_v32 = vpop.f32.mrb[33].mxu1 }
 0x673   : > { %v8745_v1 = vadd.f32 %v2662_v32, %v8688_v57  ;;  %v2664_v35 = vpop.f32.mrb[34].mxu1 }
 0x674   : > { %v2703_v37 = vmul.f32 0.044715, %v8742_v5  ;;  %v8749_v40 = vadd.f32 %v2664_v35, %v8684_v56  ;;  %v2666_v7 = vpop.f32.mrb[35].mxu1 }
 0x675   : > { %v2704_v6 = vmul.f32 0.044715, %v8745_v1  ;;  %v8753_v36 = vadd.f32 %v2666_v7, %v8688_v57 }
 0x676   : > { %v2719_v50 = vmul.f32 %v2703_v37, %v8742_v5  ;;  %v2705_v58 = vmul.f32 0.044715, %v8749_v40 }
 0x677   : > { %v2720_v23 = vmul.f32 %v2704_v6, %v8745_v1  ;;  %v2706_v52 = vmul.f32 0.044715, %v8753_v36 }
 0x678   : > { %v2735_v20 = vmul.f32 %v2719_v50, %v8742_v5  ;;  %v2721_v43 = vmul.f32 %v2705_v58, %v8749_v40 }
 0x679   : > { %v2736_v59 = vmul.f32 %v2720_v23, %v8745_v1  ;;  %v2722_v15 = vmul.f32 %v2706_v52, %v8753_v36  ;;  %v2670_v47 = vpop.f32.mrb[36].mxu1 }
 0x67a   : > { %v2737_v14 = vmul.f32 %v2721_v43, %v8749_v40  ;;  %v8765_v2 = vadd.f32 %v2670_v47, %v8684_v56  ;;  %v2672_v30 = vpop.f32.mrb[37].mxu1  ;;  %v2751_v27 = vadd.f32 %v2735_v20, %v8742_v5 }
 0x67b   : > { %v2738_v63 = vmul.f32 %v2722_v15, %v8753_v36  ;;  %v8770_v61 = vadd.f32 %v2672_v30, %v8688_v57  ;;  %v2674_v31 = vpop.f32.mrb[38].mxu1  ;;  %v2752_v21 = vadd.f32 %v2736_v59, %v8745_v1 }
 0x67c   : > { %v2707_v41 = vmul.f32 0.044715, %v8765_v2  ;;  %v2675_v22 = vadd.f32 %v2674_v31, %v8684_v56  ;;  %v2676_v9 = vpop.f32.mrb[39].mxu1  ;;  %v2753_v4 = vadd.f32 %v2737_v14, %v8749_v40  ;;  %v2767_v48 = vmul.f32 0.7978846, %v2751_v27 }
 0x67d   : > { %v2708_v13 = vmul.f32 0.044715, %v8770_v61  ;;  %v2677_v39 = vadd.f32 %v2676_v9, %v8688_v57  ;;  %v2754_v25 = vadd.f32 %v2738_v63, %v8753_v36  ;;  %v2768_v18 = vmul.f32 0.7978846, %v2752_v21 }
 0x67e   : > { %v2723_v32 = vmul.f32 %v2707_v41, %v8765_v2  ;;  %v2709_v35 = vmul.f32 0.044715, %v2675_v22  ;;  %v2769_v37 = vmul.f32 0.7978846, %v2753_v4  ;;  %6605 = vtanh.f32 %v2767_v48 }
 0x67f   : > { %v2724_v7 = vmul.f32 %v2708_v13, %v8770_v61  ;;  %v2710_v6 = vmul.f32 0.044715, %v2677_v39  ;;  %v2770_v56 = vmul.f32 0.7978846, %v2754_v25  ;;  %6607 = vtanh.f32 %v2768_v18 }
 0x680   : > { %v2739_v50 = vmul.f32 %v2723_v32, %v8765_v2  ;;  %v2725_v58 = vmul.f32 %v2709_v35, %v2675_v22  ;;  %6609 = vtanh.f32 %v2769_v37  ;;  %v2687_v13 = vmul.f32 0.5, %v8742_v5 }
 0x681   : > { %v2740_v23 = vmul.f32 %v2724_v7, %v8770_v61  ;;  %v2726_v57 = vmul.f32 %v2710_v6, %v2677_v39  ;;  %6611 = vtanh.f32 %v2770_v56  ;;  %v2689_v25 = vmul.f32 0.5, %v8749_v40 }
 0x682   : > { %v2741_v52 = vmul.f32 %v2725_v58, %v2675_v22  ;;  %v2755_v20 = vadd.f32 %v2739_v50, %v8765_v2  ;;  %v2688_v32 = vmul.f32 0.5, %v8745_v1  ;;  %v2690_v35 = vmul.f32 0.5, %v8753_v36 }
 0x683   : > { %v2742_v43 = vmul.f32 %v2726_v57, %v2677_v39  ;;  %v2756_v59 = vadd.f32 %v2740_v23, %v8770_v61  ;;  %v2691_v40 = vmul.f32 0.5, %v8765_v2  ;;  %v2693_v1 = vmul.f32 0.5, %v2675_v22  ;;  %v6358_v2 = vld [vmem:[#allocation8 + $0x128] ss:$12 sps:$4 sm:$0xff]  }
 0x684   : > { %v2757_v15 = vadd.f32 %v2741_v52, %v2675_v22  ;;  %v2771_v47 = vmul.f32 0.7978846, %v2755_v20  ;;  %v2692_v36 = vmul.f32 0.5, %v8770_v61  ;;  %v6361_v22 = vld [vmem:[#allocation8 + $0x16c] ss:$12 sps:$4 sm:$0xff]  }
 0x685   : > { %v2758_v14 = vadd.f32 %v2742_v43, %v2677_v39  ;;  %v2772_v30 = vmul.f32 0.7978846, %v2756_v59  ;;  %v6359_v61 = vld [vmem:[#allocation8 + $0x168] ss:$12 sps:$4 sm:$0xff]  }
 0x686   : > { %v2773_v27 = vmul.f32 0.7978846, %v2757_v15  ;;  %6613 = vtanh.f32 %v2771_v47  ;;  %v2694_v47 = vmul.f32 0.5, %v2677_v39  ;;  %v6363_v39 = vld [vmem:[#allocation8 + $0x158] ss:$12 sps:$4 sm:$0xff]  }
 0x687   : > { %v2774_v63 = vmul.f32 0.7978846, %v2758_v14  ;;  %6615 = vtanh.f32 %v2772_v30 }
 0x688   : > { %v6606_v31 = vpop.eup %6605  ;;  %6617 = vtanh.f32 %v2773_v27 }
 0x689   : > { %v6608_v21 = vpop.eup %6607  ;;  %v2799_v41 = vadd.f32 1.0, %v6606_v31  ;;  %6619 = vtanh.f32 %v2774_v63 }
 0x68a   : > { %v6610_v9 = vpop.eup %6609  ;;  %v2800_v4 = vadd.f32 1.0, %v6608_v21 }
 0x68b   : > { %v6612_v48 = vpop.eup %6611  ;;  %v2801_v18 = vadd.f32 1.0, %v6610_v9  ;;  %v2815_v7 = vmul.f32 %v2799_v41, %v2687_v13  ;;  %v6354_v9 = vld [vmem:[#allocation8 + $0x110] ss:$12 sps:$4 sm:$0xff]   ;;  %v6362_v13 = vld [vmem:[#allocation8 + $0x140] ss:$12 sps:$4 sm:$0xff]  }
 0x68c   : > { %v2802_v37 = vadd.f32 1.0, %v6612_v48  ;;  %v2816_v56 = vmul.f32 %v2800_v4, %v2688_v32  ;;  %5991 = vmatprep.subr.bf16.mxu0 %v6354_v9  ;;  %v6355_v4 = vld [vmem:[#allocation8 + $0x150] ss:$12 sps:$4 sm:$0xff]   ;;  %v6357_v48 = vld [vmem:[#allocation8 + $0x154] ss:$12 sps:$4 sm:$0xff]  }
 0x68d   : > { %v2817_v6 = vmul.f32 %v2801_v18, %v2689_v25  ;;  %5992 = vmatpush3.bf16.msra.mxu0 %v6354_v9  ;;  %3224 = vmatprep.subr.bf16.mxu1 %v6357_v48  ;;  %v8791_v25 = vld [vmem:[#allocation7] sm:$0xff]   ;;  %v6364_v18 = vld [vmem:[#allocation8 + $0x170] ss:$12 sps:$4 sm:$0xff]  }
 0x68e   : > { %v2818_v50 = vmul.f32 %v2802_v37, %v2690_v35  ;;  %5993 = vmatprep.subr.bf16.mxu0 %v6358_v2  ;;  %3225 = vmatpush1.bf16.msra.mxu1 %v6355_v4 }
 0x68f   : > { %v2827_v58 = vpack.c.bf16 %v2817_v6, %v2815_v7  ;;  %3226 = vmatprep.subr.bf16.mxu1 %v6361_v22 }
 0x690   : > { %v6614_v23 = vpop.eup %6613  ;;  %v2828_v57 = vpack.c.bf16 %v2818_v50, %v2816_v56 }
 0x691   : > { %v6616_v52 = vpop.eup %6615  ;;  %v2803_v20 = vadd.f32 1.0, %v6614_v23  ;;  %5994 = vmatpush3.bf16.msra.mxu0 %v6358_v2 }
 0x692   : > { %v6618_v43 = vpop.eup %6617  ;;  %3007 = vmatprep.mubr.bf16.mxu0 %v2828_v57  ;;  %v2804_v5 = vadd.f32 1.0, %v6616_v52  ;;  %5995 = vmatprep.subr.bf16.mxu0 %v6362_v13 }
 0x693   : > { %v6620_v59 = vpop.eup %6619  ;;  %3008 = vmatmul.mubr.bf16.gmra.mrb[48].mxu0 %v2827_v58  ;;  %v2805_v15 = vadd.f32 1.0, %v6618_v43  ;;  %v2819_v30 = vmul.f32 %v2803_v20, %v2691_v40  ;;  %3227 = vmatpush1.bf16.msra.mxu1 %v6359_v61  ;;  %v8799_v58 = vld [vmem:[%s10529_s12] ss:$0 sm:$0xff] }
 0x694   : > { %v2806_v14 = vadd.f32 1.0, %v6620_v59  ;;  %v2820_v63 = vmul.f32 %v2804_v5, %v2692_v36  ;;  %6009 = vmatprep.subr.bf16.mxu1 %v8791_v25  ;;  %v8814_v36 = vld [vmem:[#allocation7 + $0x8] sm:$0xff]  }
 0x695   : > { %v2821_v27 = vmul.f32 %v2805_v15, %v2693_v1  ;;  %5996 = vmatpush3.bf16.msra.mxu0 %v6362_v13 }
 0x696   : > { %v2822_v31 = vmul.f32 %v2806_v14, %v2694_v47  ;;  %5997 = vmatprep.subr.bf16.mxu0 %v6363_v39 }
 0x697   : > { %v2829_v21 = vpack.c.bf16 %v2821_v27, %v2819_v30  ;;  %v8826_v30 = vld [vmem:[#allocation7 + $0x10] sm:$0xff]   ;;  %v8837_v27 = vld [vmem:[#allocation7 + $0x20] sm:$0xff]  }
 0x698   : > { %v2830_v41 = vpack.c.bf16 %v2822_v31, %v2820_v63  ;;  %v8843_v63 = vld [vmem:[#allocation7 + $0x28] sm:$0xff]   ;;  %v8849_v31 = vld [vmem:[#allocation7 + $0x30] sm:$0xff]  }
 0x699   : > { %5998 = vmatpush3.bf16.msra.mxu0 %v6363_v39 }
 0x69a   : > { %3015 = vmatprep.mubr.bf16.mxu0 %v2830_v41  ;;  %5999 = vmatprep.subr.bf16.mxu0 %v6364_v18 }
 0x69b   : > { %3016 = vmatmul.mubr.bf16.gmra.mrb[52].mxu0 %v2829_v21  ;;  %v8855_v21 = vld [vmem:[#allocation7 + $0x38] sm:$0xff]  }
 0x69d   : > { %6000 = vmatpush3.bf16.msra.mxu0 %v6364_v18 }
 0x69e   : > { %6033 = vmatprep.subr.bf16.mxu0 %v8791_v25 }
 0x726   : > { %v5705_v32 = vpop.f32.mrb[40].mxu0 }
 0x727   : > { %v5706_v35 = vpop.f32.mrb[41].mxu0 }
 0x728   : > { %v5707_v37 = vadd.f32 %v5706_v35, %v5705_v32  ;;  %v5708_v7 = vpop.f32.mrb[42].mxu0 }
 0x729   : > { %v5709_v6 = vpop.f32.mrb[43].mxu0 }
 0x72a   : > { %v3024_v56 = vadd.f32 %v5707_v37, %v8589_v49  ;;  %v5710_v50 = vadd.f32 %v5709_v6, %v5708_v7 }
 0x72c   : > { %v3025_v23 = vadd.f32 %v5710_v50, %v8596_v53  ;;  %v8803_v57 = vadd.f32 %v8799_v58, %v3024_v56 }
 0x72e   : > { %10530 = vst [vmem:[#allocation35_spill] sm:$0xff] %v8803_v57  ;;  %v8806_v52 = vadd.f32 %v8799_v58, %v3025_v23  ;;  %v5711_v20 = vpop.f32.mrb[44].mxu0 }
 0x72f   : > { %v5712_v43 = vpop.f32.mrb[45].mxu0 }
 0x730   : > { %10531 = vst [vmem:[#allocation36_spill] sm:$0xff] %v8806_v52  ;;  %v3047_v5 = vpack.c.bf16 %v8806_v52, %v8803_v57  ;;  %v5713_v49 = vadd.f32 %v5712_v43, %v5711_v20  ;;  %v5714_v59 = vpop.f32.mrb[46].mxu0 }
 0x731   : > { %v5715_v40 = vpop.f32.mrb[47].mxu0 }
 0x732   : > { %v3026_v1 = vadd.f32 %v5713_v49, %v8586_v38  ;;  %v5716_v15 = vadd.f32 %v5715_v40, %v5714_v59  ;;  %3245 = vmatmul.mubr.bf16.vlgmr.msra.gmra.mrb[40].mxu1 %v3047_v5  ;;  %6001 = vmatprep.mubr.bf16.mxu0 %v3047_v5 }
 0x733   : > { %3254 = vmatprep.mubr.bf16.mxu1 %v10527_v8  ;;  %6010 = vmatpush3.bf16.msra.mxu1 %v8791_v25 }
 0x734   : > { %v3027_v53 = vadd.f32 %v5716_v15, %v8594_v0  ;;  %6011 = vmatprep.subr.bf16.mxu1 %v8814_v36  ;;  %v8818_v47 = vadd.f32 %v8799_v58, %v3026_v1  ;;  %v8831_v0 = vld [vmem:[#allocation7 + $0x18] sm:$0xff]  }
 0x736   : > { %10532 = vst [vmem:[#allocation37_spill] sm:$0xff] %v8818_v47  ;;  %v8821_v14 = vadd.f32 %v8799_v58, %v3027_v53 }
 0x737   : > { %6012 = vmatpush3.bf16.msra.mxu1 %v8814_v36 }
 0x738   : > { %10533 = vst [vmem:[#allocation29_spill] sm:$0xff] %v8821_v14  ;;  %v3048_v38 = vpack.c.bf16 %v8821_v14, %v8818_v47  ;;  %6013 = vmatprep.subr.bf16.mxu1 %v8826_v30 }
 0x73a   : > { %3255 = vmatmul.mubr.bf16.gmra.mrb[44].mxu1 %v3048_v38  ;;  %6002 = vmatmul.mubr.bf16.vlgmr.msra.gmra.mrb[56].mxu0 %v3048_v38 }
 0x73b   : > { %3264 = vmatprep.mubr.bf16.mxu1 %v10527_v8  ;;  %6014 = vmatpush3.bf16.msra.mxu1 %v8826_v30 }
 0x73c   : > { %6015 = vmatprep.subr.bf16.mxu1 %v8831_v0  ;;  %6034 = vmatpush3.bf16.msra.mxu0 %v8791_v25 }
 0x73d   : > { %6035 = vmatprep.subr.bf16.mxu0 %v8814_v36 }
 0x73f   : > { %6016 = vmatpush3.bf16.msra.mxu1 %v8831_v0 }
 0x740   : > { %6017 = vmatprep.subr.bf16.mxu1 %v8837_v27  ;;  %6036 = vmatpush3.bf16.msra.mxu0 %v8814_v36 }
 0x741   : > { %6037 = vmatprep.subr.bf16.mxu0 %v8826_v30 }
 0x743   : > { %6018 = vmatpush3.bf16.msra.mxu1 %v8837_v27 }
 0x744   : > { %6019 = vmatprep.subr.bf16.mxu1 %v8843_v63  ;;  %6038 = vmatpush3.bf16.msra.mxu0 %v8826_v30 }
 0x745   : > { %6039 = vmatprep.subr.bf16.mxu0 %v8831_v0 }
 0x747   : > { %6020 = vmatpush3.bf16.msra.mxu1 %v8843_v63 }
 0x748   : > { %6021 = vmatprep.subr.bf16.mxu1 %v8849_v31  ;;  %6040 = vmatpush3.bf16.msra.mxu0 %v8831_v0 }
 0x749   : > { %6041 = vmatprep.subr.bf16.mxu0 %v8837_v27 }
 0x74b   : > { %6022 = vmatpush3.bf16.msra.mxu1 %v8849_v31 }
 0x74c   : > { %6023 = vmatprep.subr.bf16.mxu1 %v8855_v21  ;;  %6042 = vmatpush3.bf16.msra.mxu0 %v8837_v27 }
 0x74d   : > { %6043 = vmatprep.subr.bf16.mxu0 %v8843_v63 }
 0x74f   : > { %6024 = vmatpush3.bf16.msra.mxu1 %v8855_v21 }
 0x750   : > { %6057 = vmatprep.subr.bf16.mxu1 %v8791_v25  ;;  %6044 = vmatpush3.bf16.msra.mxu0 %v8843_v63 }
 0x751   : > { %6045 = vmatprep.subr.bf16.mxu0 %v8849_v31 }
 0x754   : > { %6046 = vmatpush3.bf16.msra.mxu0 %v8849_v31 }
 0x755   : > { %6047 = vmatprep.subr.bf16.mxu0 %v8855_v21 }
 0x758   : > { %6048 = vmatpush3.bf16.msra.mxu0 %v8855_v21 }
 0x759   : > { %6081 = vmatprep.subr.bf16.mxu0 %v8791_v25 }
 0x766   : > { %v5717_v41 = vpop.f32.mrb[48].mxu0 }
 0x767   : > { %v5718_v9 = vpop.f32.mrb[49].mxu0 }
 0x768   : > { %v5719_v4 = vadd.f32 %v5718_v9, %v5717_v41  ;;  %v5720_v48 = vpop.f32.mrb[50].mxu0 }
 0x769   : > { %v5721_v2 = vpop.f32.mrb[51].mxu0 }
 0x76a   : > { %v3028_v22 = vadd.f32 %v5719_v4, %v8602_v33  ;;  %v5722_v13 = vadd.f32 %v5721_v2, %v5720_v48 }
 0x76c   : > { %v3029_v61 = vadd.f32 %v5722_v13, %v8606_v3  ;;  %v8871_v39 = vadd.f32 %v8799_v58, %v3028_v22 }
 0x76e   : > { %10534 = vst [vmem:[#allocation38_spill] sm:$0xff] %v8871_v39  ;;  %v8874_v18 = vadd.f32 %v8799_v58, %v3029_v61  ;;  %v5723_v32 = vpop.f32.mrb[52].mxu0 }
 0x76f   : > { %v5724_v35 = vpop.f32.mrb[53].mxu0 }
 0x770   : > { %10535 = vst [vmem:[#allocation39_spill] sm:$0xff] %v8874_v18  ;;  %v5725_v37 = vadd.f32 %v5724_v35, %v5723_v32  ;;  %v5726_v7 = vpop.f32.mrb[54].mxu0  ;;  %v3049_v6 = vpack.c.bf16 %v8874_v18, %v8871_v39 }
 0x771   : > { %v5727_v56 = vpop.f32.mrb[55].mxu0 }
 0x772   : > { %v3030_v50 = vadd.f32 %v5725_v37, %v8609_v16  ;;  %v5728_v33 = vadd.f32 %v5727_v56, %v5726_v7  ;;  %3265 = vmatmul.mubr.bf16.gmra.mrb[48].mxu1 %v3049_v6  ;;  %6005 = vmatprep.mubr.bf16.mxu0 %v3049_v6 }
 0x773   : > { %3274 = vmatprep.mubr.bf16.mxu1 %v10527_v8 }
 0x774   : > { %v3031_v3 = vadd.f32 %v5728_v33, %v8612_v17  ;;  %v8882_v23 = vadd.f32 %v8799_v58, %v3030_v50 }
 0x776   : > { %10536 = vst [vmem:[#allocation40_spill] sm:$0xff] %v8882_v23  ;;  %v8885_v20 = vadd.f32 %v8799_v58, %v3031_v3 }
 0x778   : > { %10537 = vst [vmem:[#allocation30_spill] sm:$0xff] %v8885_v20  ;;  %v3050_v43 = vpack.c.bf16 %v8885_v20, %v8882_v23 }
 0x77a   : > { %3275 = vmatmul.mubr.bf16.gmra.mrb[52].mxu1 %v3050_v43  ;;  %6006 = vmatmul.mubr.bf16.gmra.mrb[60].mxu0 %v3050_v43 }
 0x805   : > { %v8889_v5 = vpop.f32.mrb[40].mxu1 }
 0x806   : > { %v8891_v16 = vpop.f32.mrb[41].mxu1 }
 0x807   : > { %v3350_v49 = vmul.f32 %v8891_v16, %v8889_v5  ;;  %v3250_v59 = vpop.f32.mrb[42].mxu1  ;;  %v10306_v17 = vrot.slane %v8891_v16, 7  ;;  %v10305_v40 = vrot.slane %v8891_v16, 6  ;;  %v10304_v58 = vrot.slane %v8891_v16, 5 }
 0x808   : > { %v3252_v1 = vpop.f32.mrb[43].mxu1 }
 0x809   : > { %v3351_v15 = vmul.f32 %v3252_v1, %v3250_v59  ;;  %v3446_v53 = vrot.slane %v3252_v1, 7  ;;  %v3556_v38 = vrot.slane %v3252_v1, 6  ;;  %v3666_v41 = vrot.slane %v3252_v1, 5 }
 0x80b   : > { %v3358_v9 = vpack.c.bf16 %v3351_v15, %v3350_v49  ;;  %v3447_v4 = vsel %vm10538_vm10, %v10306_v17, %v3446_v53  ;;  %v3557_v48 = vsel %vm10539_vm4, %v10305_v40, %v3556_v38  ;;  %v3667_v2 = vsel %vm10540_vm0, %v10304_v58, %v3666_v41  ;;  %vm10543_vm0 = vmmov %vm10538_vm10 }
 0x80c   : > { %v8907_v22 = vmul.f32 %v3447_v4, %v3250_v59  ;;  %v8909_v13 = vmul.f32 %v3557_v48, %v3250_v59  ;;  %v8911_v61 = vmul.f32 %v3667_v2, %v3250_v59  ;;  %vm10544_vm10 = vcmask 1042432  }
 0x80d   : > { %v3256_v32 = vpop.f32.mrb[44].mxu1  ;;  %v8913_v35 = vpop.f32.mrb[56].mxu0  ;;  %6025 = vmatprep.mubr.bf16.mxu1 %v3358_v9 }
 0x80e   : > { %10541 = vst [vmem:[#allocation41_spill] sm:$0xff] %v8913_v35  ;;  %v4106_v37 = vrot.slane %v8913_v35, 7  ;;  %v4145_v7 = vrot.slane %v8913_v35, 1  ;;  %v3258_v6 = vpop.f32.mrb[45].mxu1  ;;  %v8917_v56 = vpop.f32.mrb[57].mxu0  ;;  %v4188_v50 = vrot.slane %v8913_v35, 6 }
 0x80f   : > { %v3352_v33 = vmul.f32 %v3258_v6, %v3256_v32  ;;  %v3448_v3 = vrot.slane %v3258_v6, 7  ;;  %v3558_v43 = vrot.slane %v3258_v6, 6  ;;  %v3260_v49 = vpop.f32.mrb[46].mxu1  ;;  %v8920_v1 = vpop.f32.mrb[58].mxu0  ;;  %v4227_v59 = vrot.slane %v8913_v35, 2 }
 0x810   : > { %v4270_v15 = vrot.slane %v8913_v35, 5  ;;  %v3668_v9 = vrot.slane %v3258_v6, 5  ;;  %v8925_v48 = vpop.f32.mrb[47].mxu1  ;;  %v8927_v2 = vpop.f32.mrb[59].mxu0  ;;  %v10311_v4 = vrot.slane %v8920_v1, 7  ;;  %v10313_v18 = vrot.slane %v8920_v1, 1 }
 0x811   : > { %10542 = vst [vmem:[#allocation43_spill] sm:$0xff] %v8927_v2  ;;  %v3449_v24 = vsel %vm10543_vm0, %v3446_v53, %v3448_v3  ;;  %v3559_v29 = vsel %vm10539_vm4, %v3556_v38, %v3558_v43  ;;  %v10315_v53 = vrot.slane %v8920_v1, 6  ;;  %v10317_v38 = vrot.slane %v8920_v1, 2 }
 0x812   : > { %v8933_v17 = vmul.f32 %v3449_v24, %v3256_v32  ;;  %v8935_v62 = vmul.f32 %v3559_v29, %v3256_v32  ;;  %v3669_v6 = vsel %vm10544_vm10, %v3666_v41, %v3668_v9  ;;  %v8948_v24 = vsel %vm10543_vm0, %v4106_v37, %v10311_v4 }
 0x813   : > { %v8939_v20 = vmul.f32 %v3669_v6, %v3256_v32  ;;  %10545 = vst [vmem:[#allocation44_spill] sm:$0xff] %v8948_v24  ;;  %v10320_v29 = vrot.slane %v8920_v1, 5  ;;  %v3353_v41 = vmul.f32 %v8925_v48, %v3260_v49  ;;  %vm10546_vm4 = vcmask 1046528  }
 0x814   : > { %v8955_v32 = vsel %vm10546_vm4, %v4145_v7, %v10313_v18  ;;  %vm10548_vm10 = vcmask 1041408   ;;  %v8965_v58 = vsel %vm10550_vm11, %v4227_v59, %v10317_v38  ;;  %v10321_v4 = vrot.slane %v8925_v48, 7 }
 0x815   : > { %10547 = vst [vmem:[#allocation31_spill] sm:$0xff] %v8955_v32  ;;  %v8960_v6 = vsel %vm10548_vm10, %v4188_v50, %v10315_v53  ;;  %10551 = vst [vmem:[#allocation47_spill] sm:$0xff] %v8965_v58  ;;  %vm10552_vm0 = vcmask 1042432   ;;  %v3359_v18 = vpack.c.bf16 %v3353_v41, %v3352_v33  ;;  %v10323_v39 = vrot.slane %v8925_v48, 6 }
 0x816   : > { %10549 = vst [vmem:[#allocation46_spill] sm:$0xff] %v8960_v6  ;;  %v8972_v23 = vsel %vm10552_vm0, %v4270_v15, %v10320_v29  ;;  %vm10554_vm4 = vcmask 1040384   ;;  %v3670_v14 = vrot.slane %v8925_v48, 5  ;;  %v4104_v38 = vrot.slane %v8927_v2, 7  ;;  %vm10555_vm11 = vmmov %vm10548_vm10 }
 0x817   : > { %10553 = vst [vmem:[#allocation48_spill] sm:$0xff] %v8972_v23  ;;  %v3451_v53 = vsel %vm10554_vm4, %v3448_v3, %v10321_v4  ;;  %v4143_v52 = vrot.slane %v8927_v2, 1  ;;  %v3561_v29 = vsel %vm10555_vm11, %v3558_v43, %v10323_v39  ;;  %v4186_v33 = vrot.slane %v8927_v2, 6  ;;  %6026 = vmatmul.mubr.bf16.vlgmr.msra.gmra.mrb[56].mxu1 %v3359_v18  ;;  %vm10556_vm10 = vmmov %vm10552_vm0 }
 0x818   : > { %v8981_v47 = vmul.f32 %v3451_v53, %v3260_v49  ;;  %v4225_v41 = vrot.slane %v8927_v2, 2  ;;  %v8988_v40 = vmul.f32 %v3561_v29, %v3260_v49  ;;  %v3671_v3 = vsel %vm10556_vm10, %v3668_v9, %v3670_v14  ;;  %vm10558_vm0 = vmmov %vm10554_vm4  ;;  %6058 = vmatpush3.bf16.msra.mxu1 %v8791_v25 }
 0x819   : > { %v10557_v4 = vrot.slane %v8917_v56, 7  ;;  %vm10560_vm4 = vmmov %vm10558_vm0  ;;  %v9000_v43 = vmul.f32 %v3671_v3, %v3260_v49  ;;  %v9003_v39 = vsel %vm10555_vm11, %v4186_v33, %v4188_v50  ;;  %v4268_v18 = vrot.slane %v8927_v2, 5  ;;  %6059 = vmatprep.subr.bf16.mxu1 %v8814_v36 }
 0x81a   : > { %v8997_v53 = vsel %vm10560_vm4, %v4104_v38, %v4106_v37  ;;  %10562 = vst [vmem:[#allocation70_spill] sm:$0xff] %v9003_v39  ;;  %v10563_v37 = vrot.slane %v8917_v56, 1  ;;  %vm10564_vm10 = vcmask 1046528   ;;  %v10568_v50 = vrot.slane %v8917_v56, 6  ;;  %vm10569_vm4 = vmmov %vm10555_vm11 }
 0x81b   : > { %v8994_v57 = vsel %vm10558_vm0, %v10557_v4, %v4104_v38  ;;  %10561 = vst [vmem:[#allocation64_spill] sm:$0xff] %v8997_v53  ;;  %vm10566_vm0 = vmmov %vm10564_vm10  ;;  %vm10571_vm11 = vcmask 1042432   ;;  %v4307_v4 = vrot.slane %v8927_v2, 3  ;;  %v4309_v3 = vrot.slane %v8913_v35, 3 }
 0x81c   : > { %10559 = vst [vmem:[#allocation63_spill] sm:$0xff] %v8994_v57  ;;  %v9014_v38 = vsel %vm10564_vm10, %v10563_v37, %v4143_v52  ;;  %v9017_v49 = vsel %vm10566_vm0, %v4143_v52, %v4145_v7  ;;  %v9022_v29 = vsel %vm10569_vm4, %v10568_v50, %v4186_v33  ;;  %v9026_v9 = vsel %vm10571_vm11, %v4268_v18, %v4270_v15  ;;  %vm10579_vm4 = vmmov %vm10571_vm11 }
 0x81d   : > { %10565 = vst [vmem:[#allocation76_spill] sm:$0xff] %v9014_v38  ;;  %10567 = vst [vmem:[#allocation32_spill] sm:$0xff] %v9017_v49  ;;  %6060 = vmatpush3.bf16.msra.mxu1 %v8814_v36  ;;  %v10573_v37 = vrot.slane %v8917_v56, 2  ;;  %vm10574_vm10 = vcmask 1045504   ;;  %v10578_v33 = vrot.slane %v8917_v56, 5  ;;  %v10324_v15 = vrot.slane %v8917_v56, 3 }
 0x81e   : > { %10570 = vst [vmem:[#allocation81_spill] sm:$0xff] %v9022_v29  ;;  %10572 = vst [vmem:[#allocation52_spill] sm:$0xff] %v9026_v9  ;;  %6061 = vmatprep.subr.bf16.mxu1 %v8826_v30  ;;  %vm10581_vm11 = vcmask 1044480   ;;  %v10590_v57 = vrot.slane %v8925_v48, 6 }
 0x81f   : > { %v9034_v52 = vsel %vm10574_vm10, %v10573_v37, %v4225_v41  ;;  %vm10576_vm0 = vmmov %vm10574_vm10  ;;  %v9042_v50 = vsel %vm10579_vm4, %v10578_v33, %v4268_v18  ;;  %v9051_v37 = vsel %vm10581_vm11, %v10324_v15, %v4307_v4  ;;  %vm10589_vm4 = vcmask 1040384  }
 0x820   : > { %10575 = vst [vmem:[#allocation53_spill] sm:$0xff] %v9034_v52  ;;  %v9037_v7 = vsel %vm10576_vm0, %v4225_v41, %v4227_v59  ;;  %10580 = vst [vmem:[#allocation33_spill] sm:$0xff] %v9042_v50  ;;  %v10585_v41 = vrot.slane %v8920_v1, 3  ;;  %v10588_v50 = vrot.slane %v8925_v48, 7 }
 0x821   : > { %10577 = vst [vmem:[#allocation54_spill] sm:$0xff] %v9037_v7  ;;  %10582 = vst [vmem:[#allocation77_spill] sm:$0xff] %v9051_v37  ;;  %6062 = vmatpush3.bf16.msra.mxu1 %v8826_v30  ;;  %v10607_v7 = vrot.slane %v8920_v1, 2 }
 0x822   : > { %vm10583_vm10 = vmmov %vm10581_vm11  ;;  %6063 = vmatprep.subr.bf16.mxu1 %v8831_v0  ;;  %vm10591_vm11 = vcmask 1041408  }
 0x823   : > { %v9054_v59 = vsel %vm10583_vm10, %v4307_v4, %v4309_v3  ;;  %vm10586_vm0 = vmmov %vm10583_vm10  ;;  %vm10592_vm10 = vcmask 1042432  }
 0x824   : > { %10584 = vst [vmem:[#allocation49_spill] sm:$0xff] %v9054_v59  ;;  %v9059_v18 = vsel %vm10586_vm0, %v4309_v3, %v10585_v41  ;;  %vm10593_vm0 = vmmov %vm10589_vm4  ;;  %v10604_v59 = vrot.slane %v8920_v1, 1 }
 0x825   : > { %10587 = vst [vmem:[#allocation50_spill] sm:$0xff] %v9059_v18  ;;  %6064 = vmatpush3.bf16.msra.mxu1 %v8831_v0  ;;  %vm10594_vm3 = vmmov %vm10591_vm11 }
 0x826   : > { %6065 = vmatprep.subr.bf16.mxu1 %v8837_v27 }
 0x829   : > { %6066 = vmatpush3.bf16.msra.mxu1 %v8837_v27 }
 0x82a   : > { %6067 = vmatprep.subr.bf16.mxu1 %v8843_v63 }
 0x82d   : > { %6068 = vmatpush3.bf16.msra.mxu1 %v8843_v63 }
 0x82e   : > { %6069 = vmatprep.subr.bf16.mxu1 %v8849_v31 }
 0x831   : > { %6070 = vmatpush3.bf16.msra.mxu1 %v8849_v31 }
 0x832   : > { %6071 = vmatprep.subr.bf16.mxu1 %v8855_v21 }
 0x835   : > { %6072 = vmatpush3.bf16.msra.mxu1 %v8855_v21 }
 0x845   : > { %v3266_v4 = vpop.f32.mrb[48].mxu1 }
 0x846   : > { %v3268_v3 = vpop.f32.mrb[49].mxu1 }
 0x847   : > { %v3354_v33 = vmul.f32 %v3268_v3, %v3266_v4  ;;  %v3452_v41 = vrot.slane %v3268_v3, 7  ;;  %v3562_v15 = vrot.slane %v3268_v3, 6  ;;  %v3672_v10 = vrot.slane %v3268_v3, 5  ;;  %v3270_v55 = vpop.f32.mrb[50].mxu1 }
 0x848   : > { %v9072_v11 = vpop.f32.mrb[51].mxu1 }
 0x849   : > { %v3355_v54 = vmul.f32 %v9072_v11, %v3270_v55  ;;  %v10335_v45 = vrot.slane %v9072_v11, 7  ;;  %v10334_v23 = vrot.slane %v9072_v11, 6  ;;  %v3453_v29 = vsel %vm10589_vm4, %v10588_v50, %v3452_v41  ;;  %vm10596_vm4 = vmmov %vm10592_vm10 }
 0x84a   : > { %v3563_v6 = vsel %vm10591_vm11, %v10590_v57, %v3562_v15  ;;  %v3673_v3 = vsel %vm10592_vm10, %v3670_v14, %v3672_v10  ;;  %v9088_v24 = vmul.f32 %v3453_v29, %v3266_v4  ;;  %v10595_v57 = vrot.slane %v9072_v11, 5 }
 0x84b   : > { %v3360_v2 = vpack.c.bf16 %v3355_v54, %v3354_v33  ;;  %v3455_v51 = vsel %vm10593_vm0, %v3452_v41, %v10335_v45  ;;  %v3565_v60 = vsel %vm10594_vm3, %v3562_v15, %v10334_v23  ;;  %v9095_v50 = vmul.f32 %v3563_v6, %v3266_v4  ;;  %vm10602_vm3 = vmmov %vm10593_vm0 }
 0x84c   : > { %v9093_v9 = vmul.f32 %v3455_v51, %v3270_v55  ;;  %v9097_v48 = vmul.f32 %v3565_v60, %v3270_v55  ;;  %v3675_v54 = vsel %vm10596_vm4, %v3672_v10, %v10595_v57  ;;  %v9106_v29 = vmul.f32 %v3673_v3, %v3266_v4  ;;  %vm10612_vm4 = vmmov %vm10593_vm0 }
 0x84d   : > { %v9102_v14 = vpop.f32.mrb[52].mxu1  ;;  %v9104_v33 = vpop.f32.mrb[60].mxu0  ;;  %6029 = vmatprep.mubr.bf16.mxu1 %v3360_v2  ;;  %v9108_v41 = vmul.f32 %v3675_v54, %v3270_v55  ;;  %v10601_v57 = vrot.slane %v8920_v1, 7  ;;  %vm10605_vm11 = vcmask 1046528   ;;  %vm10608_vm10 = vcmask 1045504  }
 0x84e   : > { %10597 = vst [vmem:[#allocation51_spill] sm:$0xff] %v9104_v33  ;;  %v9110_v15 = vpop.f32.mrb[53].mxu1  ;;  %v9112_v51 = vpop.f32.mrb[61].mxu0  ;;  %v4114_v60 = vrot.slane %v9104_v33, 7 }
 0x84f   : > { %10598 = vst [vmem:[#allocation34_spill] sm:$0xff] %v9112_v51  ;;  %v3356_v6 = vmul.f32 %v9110_v15, %v9102_v14  ;;  %v9117_v23 = vpop.f32.mrb[54].mxu1  ;;  %v9119_v10 = vpop.f32.mrb[62].mxu0  ;;  %v4110_v55 = vrot.slane %v9112_v51, 7  ;;  %v10337_v4 = vrot.slane %v9112_v51, 1  ;;  %v3456_v45 = vrot.slane %v9110_v15, 7 }
 0x850   : > { %10599 = vst [vmem:[#allocation55_spill] sm:$0xff] %v9119_v10  ;;  %v3282_v3 = vpop.f32.mrb[55].mxu1  ;;  %v9125_v54 = vpop.f32.mrb[63].mxu0  ;;  %v3566_v39 = vrot.slane %v9110_v15, 6  ;;  %v10338_v53 = vrot.slane %v9112_v51, 2  ;;  %v4094_v35 = vrot.slane %v9119_v10, 7 }
 0x851   : > { %10600 = vst [vmem:[#allocation56_spill] sm:$0xff] %v9125_v54  ;;  %v3676_v18 = vrot.slane %v9110_v15, 5  ;;  %v9135_v2 = vsel %vm10602_vm3, %v10601_v57, %v4110_v55  ;;  %v9142_v37 = vsel %vm10605_vm11, %v10604_v59, %v10337_v4  ;;  %v3357_v4 = vmul.f32 %v3282_v3, %v9117_v23  ;;  %vm10614_vm3 = vmmov %vm10593_vm0 }
 0x852   : > { %10603 = vst [vmem:[#allocation57_spill] sm:$0xff] %v9135_v2  ;;  %10606 = vst [vmem:[#allocation72_spill] sm:$0xff] %v9142_v37  ;;  %v9150_v15 = vsel %vm10608_vm10, %v10607_v7, %v10338_v53  ;;  %v9154_v57 = vsel %vm10593_vm0, %v4114_v60, %v4094_v35  ;;  %v10611_v2 = vrot.slane %v8917_v56, 7  ;;  %v3436_v37 = vrot.slane %v3282_v3, 7 }
 0x853   : > { %10609 = vst [vmem:[#allocation78_spill] sm:$0xff] %v9150_v15  ;;  %10610 = vst [vmem:[#allocation74_spill] sm:$0xff] %v9154_v57  ;;  %v3553_v53 = vrot.slane %v3282_v3, 6  ;;  %v3663_v15 = vrot.slane %v3282_v3, 5  ;;  %v4112_v52 = vrot.slane %v9125_v54, 7  ;;  %v4151_v57 = vrot.slane %v9125_v54, 1 }
 0x854   : > { %v9159_v49 = vsel %vm10612_vm4, %v4094_v35, %v10611_v2  ;;  %v4233_v35 = vrot.slane %v9125_v54, 2  ;;  %v3361_v2 = vpack.c.bf16 %v3357_v4, %v3356_v6  ;;  %vm10616_vm11 = vmmov %vm10593_vm0  ;;  %v10620_v3 = vrot.slane %v8891_v16, 6 }
 0x855   : > { %10613 = vst [vmem:[#allocation65_spill] sm:$0xff] %v9159_v49  ;;  %v9170_v59 = vsel %vm10614_vm3, %v4110_v55, %v4112_v52  ;;  %v9173_v58 = vsel %vm10616_vm11, %v4112_v52, %v4114_v60  ;;  %v10618_v49 = vrot.slane %v8891_v16, 7  ;;  %vm10619_vm10 = vmmov %vm10593_vm0  ;;  %vm10621_vm0 = vcmask 1041408  }
 0x856   : > { %10615 = vst [vmem:[#allocation66_spill] sm:$0xff] %v9170_v59  ;;  %10617 = vst [vmem:[#allocation42_spill] sm:$0xff] %v9173_v58  ;;  %v3577_v32 = vsel %vm10621_vm0, %v3553_v53, %v10620_v3  ;;  %6030 = vmatmul.mubr.bf16.gmra.mrb[60].mxu1 %v3361_v2  ;;  %v3478_v6 = vpack.c.bf16 %v9093_v9, %v9088_v24  ;;  %v10622_v55 = vrot.slane %v9072_v11, 7  ;;  %v10624_v4 = vrot.slane %v8891_v16, 5 }
 0x857   : > { %v3467_v7 = vsel %vm10619_vm10, %v3436_v37, %v10618_v49  ;;  %v3578_v19 = vmul.f32 %v3577_v32, %v8889_v5  ;;  %vm10623_vm4 = vmmov %vm10614_vm3  ;;  %v3458_v60 = vsel %vm10614_vm3, %v3456_v45, %v3436_v37  ;;  %vm10625_vm11 = vcmask 1042432  }
 0x858   : > { %v3468_v38 = vmul.f32 %v3467_v7, %v8889_v5  ;;  %v3457_v52 = vsel %vm10623_vm4, %v10622_v55, %v3456_v45  ;;  %v3687_v3 = vsel %vm10625_vm11, %v3663_v15, %v10624_v4  ;;  %v3588_v7 = vpack.c.bf16 %v9097_v48, %v9095_v50  ;;  %vm10627_vm10 = vmmov %vm10621_vm0 }
 0x859   : > { %v3474_v49 = vmul.f32 %v3457_v52, %v9102_v14  ;;  %v3586_v2 = vpack.c.bf16 %v8909_v13, %v3578_v19  ;;  %v3475_v24 = vmul.f32 %v3458_v60, %v9117_v23  ;;  %v3688_v9 = vmul.f32 %v3687_v3, %v8889_v5  ;;  %vm10629_vm4 = vmmov %vm10625_vm11 }
 0x85a   : > { %v3476_v32 = vpack.c.bf16 %v8907_v22, %v3468_v38  ;;  %v10626_v55 = vrot.slane %v9072_v11, 6  ;;  %v3568_v37 = vsel %vm10621_vm0, %v3566_v39, %v3553_v53  ;;  %v3698_v16 = vpack.c.bf16 %v9108_v41, %v9106_v29  ;;  %vm10631_vm3 = vmmov %vm10629_vm4  ;;  %v6365_v41 = vld [vmem:[#allocation10 + $0x40] sm:$0xff]  }
 0x85b   : > { %v10628_v52 = vrot.slane %v9072_v11, 5  ;;  %v4276_v22 = vrot.slane %v9125_v54, 5  ;;  %6073 = vmatprep.mubr.bf16.mxu1 %v3586_v2  ;;  %v3479_v19 = vpack.c.bf16 %v3475_v24, %v3474_v49  ;;  %v3696_v5 = vpack.c.bf16 %v8911_v61, %v3688_v9  ;;  %vm10634_vm11 = vmmov %vm10621_vm0  ;;  %6105 = vmatprep.subr.bf16.mxu1 %v6365_v41 }
 0x85c   : > { %v3567_v45 = vsel %vm10627_vm10, %v10626_v55, %v3566_v39  ;;  %6049 = vmatprep.mubr.bf16.mxu0 %v3476_v32  ;;  %v10630_v38 = vpack.c.bf16 %v8981_v47, %v8933_v17  ;;  %v3585_v39 = vmul.f32 %v3568_v37, %v9117_v23  ;;  %v3678_v53 = vsel %vm10631_vm3, %v3676_v18, %v3663_v15  ;;  %vm10637_vm10 = vmmov %vm10631_vm3 }
 0x85d   : > { %v3677_v50 = vsel %vm10629_vm4, %v10628_v52, %v3676_v18  ;;  %v3584_v13 = vmul.f32 %v3567_v45, %v9102_v14  ;;  %v10632_v48 = vrot.slane %v8917_v56, 6  ;;  %v10633_v60 = vrot.slane %v9119_v10, 6 }
 0x85e   : > { %6050 = vmatmul.mubr.bf16.vlgmr.msra.gmra.mrb[64].mxu0 %v10630_v38  ;;  %v3694_v11 = vmul.f32 %v3677_v50, %v9102_v14  ;;  %v3695_v61 = vmul.f32 %v3678_v53, %v9117_v23  ;;  %v10635_v47 = vrot.slane %v8917_v56, 5  ;;  %v10636_v17 = vrot.slane %v9119_v10, 5 }
 0x85f   : > { %v9222_v49 = vsel %vm10634_vm11, %v10633_v60, %v10632_v48  ;;  %6082 = vmatpush3.bf16.msra.mxu0 %v8791_v25  ;;  %6053 = vmatprep.mubr.bf16.mxu0 %v3478_v6  ;;  %v10638_v14 = vrot.slane %v9112_v51, 3  ;;  %v10639_v15 = vrot.slane %v8920_v1, 3  ;;  %vm10640_vm0 = vcmask 1044480  }
 0x860   : > { %v9231_v18 = vsel %vm10637_vm10, %v10636_v17, %v10635_v47  ;;  %v4315_v3 = vrot.slane %v9125_v54, 3  ;;  %v4155_v25 = vrot.slane %v9119_v10, 1  ;;  %6083 = vmatprep.subr.bf16.mxu0 %v8814_v36  ;;  %v3589_v23 = vpack.c.bf16 %v3585_v39, %v3584_v13  ;;  %vm10652_vm10 = vmmov %vm10634_vm11 }
 0x861   : > { %v9238_v4 = vsel %vm10640_vm0, %v10639_v15, %v10638_v14  ;;  %v10641_v6 = vrot.slane %v9112_v51, 1  ;;  %vm10642_vm4 = vcmask 1046528   ;;  %v10643_v2 = vrot.slane %v9104_v33, 1 }
 0x862   : > { %vm10644_vm3 = vmmov %vm10642_vm4  ;;  %v4237_v9 = vrot.slane %v9119_v10, 2  ;;  %v10646_v55 = vpack.c.bf16 %v8988_v40, %v8935_v62  ;;  %v3699_v45 = vpack.c.bf16 %v3695_v61, %v3694_v11  ;;  %v10647_v37 = vrot.slane %v9112_v51, 6 }
 0x863   : > { %v9246_v32 = vsel %vm10642_vm4, %v10641_v6, %v4151_v57  ;;  %v9251_v24 = vsel %vm10644_vm3, %v4151_v57, %v10643_v2  ;;  %v10648_v52 = vrot.slane %v8920_v1, 6  ;;  %v10650_v13 = vrot.slane %v9125_v54, 6  ;;  %6084 = vmatpush3.bf16.msra.mxu0 %v8814_v36  ;;  %v10702_v54 = vld [vmem:[#allocation80_spill] sm:$0xff] }
 0x864   : > { %10645 = vst [vmem:[#allocation67_spill] sm:$0xff] %v9251_v24  ;;  %6074 = vmatmul.mubr.bf16.vlgmr.msra.gmra.mrb[64].mxu1 %v10646_v55  ;;  %v10651_v57 = vmov %v10647_v37  ;;  %v10654_v39 = vrot.slane %v9112_v51, 2  ;;  %vm10655_vm0 = vcmask 1045504   ;;  %v10657_v40 = vrot.slane %v9104_v33, 2  ;;  %6085 = vmatprep.subr.bf16.mxu0 %v8826_v30 }
 0x865   : > { %v9262_v50 = vsel %vm10634_vm11, %v10648_v52, %v10647_v37  ;;  %6077 = vmatprep.mubr.bf16.mxu1 %v3588_v7  ;;  %v9269_v38 = vsel %vm10652_vm10, %v10651_v57, %v10650_v13  ;;  %vm10658_vm4 = vmmov %vm10655_vm0  ;;  %v10660_v11 = vrot.slane %v9112_v51, 5  ;;  %v10661_v7 = vrot.slane %v8920_v1, 5  ;;  %6106 = vmatpush3.bf16.msra.mxu1 %v6365_v41 }
 0x866   : > { %10649 = vst [vmem:[#allocation68_spill] sm:$0xff] %v9262_v50  ;;  %10653 = vst [vmem:[#allocation69_spill] sm:$0xff] %v9269_v38  ;;  %v9274_v62 = vsel %vm10655_vm0, %v10654_v39, %v4233_v35  ;;  %v9279_v53 = vsel %vm10658_vm4, %v4233_v35, %v10657_v40  ;;  %vm10662_vm3 = vcmask 1042432   ;;  %v4196_v60 = vrot.slane %v9104_v33, 6  ;;  %6054 = vmatmul.mubr.bf16.gmra.mrb[68].mxu0 %v3479_v19 }
 0x867   : > { %10656 = vst [vmem:[#allocation71_spill] sm:$0xff] %v9274_v62  ;;  %10659 = vst [vmem:[#allocation73_spill] sm:$0xff] %v9279_v53  ;;  %v9286_v48 = vsel %vm10662_vm3, %v10661_v7, %v10660_v11  ;;  %v10664_v61 = vmov %v10660_v11  ;;  %v10667_v17 = vmov %v10638_v14  ;;  %vm10668_vm10 = vcmask 1044480   ;;  %6086 = vmatpush3.bf16.msra.mxu0 %v8826_v30  ;;  %6097 = vmatprep.mubr.bf16.mxu0 %v3696_v5 }
 0x868   : > { %10663 = vst [vmem:[#allocation75_spill] sm:$0xff] %v9286_v48  ;;  %vm10665_vm11 = vmmov %vm10662_vm3  ;;  %v9298_v35 = vsel %vm10668_vm10, %v10667_v17, %v4315_v3  ;;  %v4278_v14 = vrot.slane %v9104_v33, 5  ;;  %v4317_v15 = vrot.slane %v9104_v33, 3  ;;  %v10670_v6 = vmov %v10643_v2  ;;  %6087 = vmatprep.subr.bf16.mxu0 %v8831_v0  ;;  %v6370_v48 = vld [vmem:[#allocation10 + $0x68] sm:$0xff]  }
 0x869   : > { %v9293_v47 = vsel %vm10665_vm11, %v10664_v61, %v4276_v22  ;;  %10669 = vst [vmem:[#allocation20_spill] sm:$0xff] %v9298_v35  ;;  %vm10671_vm0 = vcmask 1046528   ;;  %v10673_v2 = vrot.slane %v8917_v56, 1  ;;  %v10676_v37 = vmov %v10650_v13 }
 0x86a   : > { %10666 = vst [vmem:[#allocation22_spill] sm:$0xff] %v9293_v47  ;;  %v9306_v36 = vsel %vm10671_vm0, %v10670_v6, %v4155_v25  ;;  %vm10674_vm4 = vmmov %vm10671_vm0  ;;  %vm10677_vm3 = vcmask 1041408   ;;  %v10679_v13 = vrot.slane %v9119_v10, 6  ;;  %v9324_v39 = vsel %vm10668_vm10, %v4315_v3, %v4317_v15 }
 0x86b   : > { %10672 = vst [vmem:[#allocation23_spill] sm:$0xff] %v9306_v36  ;;  %v9311_v55 = vsel %vm10674_vm4, %v4155_v25, %v10673_v2  ;;  %v9316_v52 = vsel %vm10677_vm3, %v10676_v37, %v4196_v60  ;;  %vm10680_vm11 = vmmov %vm10677_vm3  ;;  %vm10683_vm0 = vcmask 1045504   ;;  %v10685_v25 = vrot.slane %v8917_v56, 2  ;;  %6088 = vmatpush3.bf16.msra.mxu0 %v8831_v0 }
 0x86c   : > { %10675 = vst [vmem:[#allocation21_spill] sm:$0xff] %v9311_v55  ;;  %10678 = vst [vmem:[#allocation24_spill] sm:$0xff] %v9316_v52  ;;  %v9321_v57 = vsel %vm10680_vm11, %v4196_v60, %v10679_v13  ;;  %v9329_v11 = vsel %vm10683_vm0, %v10657_v40, %v4237_v9  ;;  %vm10688_vm3 = vcmask 1042432   ;;  %v10690_v19 = vrot.slane %v9119_v10, 5  ;;  %6078 = vmatmul.mubr.bf16.gmra.mrb[68].mxu1 %v3589_v23  ;;  %6089 = vmatprep.subr.bf16.mxu0 %v8837_v27 }
 0x86d   : > { %10681 = vst [vmem:[#allocation26_spill] sm:$0xff] %v9321_v57  ;;  %10682 = vst [vmem:[#allocation25_spill] sm:$0xff] %v9324_v39  ;;  %v9337_v61 = vsel %vm10688_vm3, %v4276_v22, %v4278_v14  ;;  %v4319_v60 = vrot.slane %v9119_v10, 3  ;;  %v10697_v30 = vpack.c.bf16 %v9000_v43, %v8939_v20 }
 0x86e   : > { %10684 = vst [vmem:[#allocation27_spill] sm:$0xff] %v9329_v11  ;;  %vm10686_vm4 = vmmov %vm10683_vm0 }
 0x86f   : > { %v9334_v7 = vsel %vm10686_vm4, %v4237_v9, %v10685_v25  ;;  %10689 = vst [vmem:[#allocation84_spill] sm:$0xff] %v9337_v61  ;;  %vm10691_vm11 = vmmov %vm10688_vm3  ;;  %v9348_v17 = vsel %vm10668_vm10, %v4317_v15, %v4319_v60  ;;  %v10694_v9 = vrot.slane %v8917_v56, 3  ;;  %6090 = vmatpush3.bf16.msra.mxu0 %v8837_v27  ;;  %vm10698_vm4 = vcmp.ge.s32.totalorder %v7975_v28, 2 }
 0x870   : > { %10687 = vst [vmem:[#allocation83_spill] sm:$0xff] %v9334_v7  ;;  %v9343_v3 = vsel %vm10691_vm11, %v4278_v14, %v10690_v19  ;;  %10693 = vst [vmem:[#allocation86_spill] sm:$0xff] %v9348_v17  ;;  %6091 = vmatprep.subr.bf16.mxu0 %v8843_v63  ;;  %vm10699_vm3 = vcmp.ge.s32.totalorder %v8005_v34, 1  ;;  %vm10700_vm11 = vcmp.ge.s32.totalorder %v8009_v42, 1  ;;  %v6369_v17 = vld [vmem:[#allocation10 + $0x60] sm:$0xff]  }
 0x871   : > { %10692 = vst [vmem:[#allocation85_spill] sm:$0xff] %v9343_v3  ;;  %vm10695_vm0 = vmmov %vm10668_vm10  ;;  %vm10701_vm10 = vcmp.ge.s32.totalorder %v8012_v26, 1 }
 0x872   : > { %v9353_v22 = vsel %vm10695_vm0, %v4319_v60, %v10694_v9  ;;  %v6366_v9 = vld [vmem:[#allocation10 + $0x48] sm:$0xff]   ;;  %vm10703_vm0 = vcmp.ge.s32.totalorder %v10702_v54, 1 }
 0x873   : > { %10696 = vst [vmem:[#allocation87_spill] sm:$0xff] %v9353_v22  ;;  %6092 = vmatpush3.bf16.msra.mxu0 %v8843_v63  ;;  %6107 = vmatprep.subr.bf16.mxu1 %v6366_v9 }
 0x874   : > { %6093 = vmatprep.subr.bf16.mxu0 %v8849_v31  ;;  %6108 = vmatpush3.bf16.msra.mxu1 %v6366_v9 }
 0x877   : > { %6094 = vmatpush3.bf16.msra.mxu0 %v8849_v31 }
 0x878   : > { %6095 = vmatprep.subr.bf16.mxu0 %v8855_v21 }
 0x87b   : > { %6096 = vmatpush3.bf16.msra.mxu0 %v8855_v21 }
 0x87e   : > { %6098 = vmatmul.mubr.bf16.vlgmr.msra.gmra.mrb[72].mxu0 %v10697_v30 }
 0x87f   : > { %6101 = vmatprep.mubr.bf16.mxu0 %v3698_v16 }
 0x886   : > { %6102 = vmatmul.mubr.bf16.gmra.mrb[76].mxu0 %v3699_v45 }
 0x887   : > { %4787 = vmatprep.mubr.bf16.mxu0 %v10527_v8  ;;  %v6367_v8 = vld [vmem:[#allocation10 + $0x50] sm:$0xff]  }
 0x888   : > { %6109 = vmatprep.subr.bf16.mxu1 %v6367_v8 }
 0x889   : > { %6110 = vmatpush3.bf16.msra.mxu1 %v6367_v8 }
 0x8ea   : > { %v9371_v0 = vpop.f32.mrb[56].mxu1 }
 0x8eb   : > { %v9373_v27 = vpop.f32.mrb[57].mxu1 }
 0x8ec   : > { %v9375_v63 = vpop.f32.mrb[58].mxu1 }
 0x8ed   : > { %v9377_v31 = vpop.f32.mrb[59].mxu1 }
 0x929   : > { %v9379_v21 = vpop.f32.mrb[60].mxu1 }
 0x92a   : > { %v9381_v5 = vpop.f32.mrb[61].mxu1 }
 0x92b   : > { %v9383_v20 = vpop.f32.mrb[62].mxu1 }
 0x92c   : > { %v9385_v43 = vpop.f32.mrb[63].mxu1 }
 0x931   : > { %v6051_v29 = vpop.f32.mrb[64].mxu0 }
 0x932   : > { %v9389_v16 = vsel %vm1254_vm6, %v6051_v29, -1e+30  ;;  %v3514_v23 = vpop.f32.mrb[65].mxu0 }
 0x933   : > { %v3775_v45 = vmax.f32 %v9371_v0, %v9389_v16  ;;  %v9395_v14 = vsel %vm1252_vm7, %v3514_v23, -1e+30  ;;  %v6052_v15 = vpop.f32.mrb[66].mxu0 }
 0x934   : > { %v3773_v6 = vmax.f32 %v9373_v27, %v9395_v14  ;;  %v9401_v2 = vsel %vm1255_vm8, %v6052_v15, -1e+30  ;;  %v3517_v37 = vpop.f32.mrb[67].mxu0 }
 0x935   : > { %v3776_v40 = vmax.f32 %v9375_v63, %v9401_v2  ;;  %v9407_v25 = vsel %vm1253_vm9, %v3517_v37, -1e+30 }
 0x936   : > { %v3774_v30 = vmax.f32 %v9377_v31, %v9407_v25 }
 0x937   : > { %v6075_v13 = vpop.f32.mrb[64].mxu1 }
 0x938   : > { %v9411_v19 = vsel %vm1389_vm14, %v6075_v13, -1e+30  ;;  %v3624_v60 = vpop.f32.mrb[65].mxu1 }
 0x939   : > { %v3783_v29 = vmax.f32 %v3775_v45, %v9411_v19  ;;  %v9418_v41 = vsel %vm1387_vm15, %v3624_v60, -1e+30  ;;  %v6076_v23 = vpop.f32.mrb[66].mxu1  ;;  %v6055_v60 = vpop.f32.mrb[68].mxu0 }
 0x93a   : > { %v3781_v15 = vmax.f32 %v3773_v6, %v9418_v41  ;;  %v9423_v37 = vsel %vm1390_vm5, %v6076_v23, -1e+30  ;;  %v3627_v13 = vpop.f32.mrb[67].mxu1  ;;  %v6368_v6 = vld [vmem:[#allocation10 + $0x58] sm:$0xff]   ;;  %v9437_v23 = vsel %vm10699_vm3, %v6055_v60, -1e+30 }
 0x93b   : > { %v9426_v39 = vmax.f32 %v3776_v40, %v9423_v37  ;;  %v9430_v45 = vsel %vm10698_vm4, %v3627_v13, -1e+30  ;;  %v3530_v24 = vpop.f32.mrb[69].mxu0  ;;  %v3779_v40 = vmax.f32 %v9379_v21, %v9437_v23  ;;  %vm10704_vm4 = vcmp.ge.s32.totalorder %v8005_v34, 2  ;;  %6111 = vmatprep.subr.bf16.mxu1 %v6368_v6 }
 0x93c   : > { %v9433_v53 = vmax.f32 %v3774_v30, %v9430_v45  ;;  %v9443_v47 = vsel %vm10700_vm11, %v3530_v24, -1e+30  ;;  %v6056_v13 = vpop.f32.mrb[70].mxu0  ;;  %vm10705_vm3 = vcmp.ge.s32.totalorder %v8009_v42, 2  ;;  %vm10706_vm11 = vcmp.ge.s32.totalorder %v8012_v26, 2  ;;  %6112 = vmatpush3.bf16.msra.mxu1 %v6368_v6 }
 0x93d   : > { %v3777_v9 = vmax.f32 %v9381_v5, %v9443_v47  ;;  %v9449_v30 = vsel %vm10701_vm10, %v6056_v13, -1e+30  ;;  %v3533_v38 = vpop.f32.mrb[71].mxu0  ;;  %vm10707_vm10 = vcmp.ge.s32.totalorder %v10702_v54, 2  ;;  %6113 = vmatprep.subr.bf16.mxu1 %v6369_v17 }
 0x93e   : > { %v3780_v60 = vmax.f32 %v9383_v20, %v9449_v30  ;;  %v9455_v22 = vsel %vm10703_vm0, %v3533_v38, -1e+30  ;;  %vm10708_vm0 = vcmp.ge.s32.totalorder %v7975_v28, 3 }
 0x93f   : > { %v6079_v59 = vpop.f32.mrb[68].mxu1  ;;  %v3778_v13 = vmax.f32 %v9385_v43, %v9455_v22 }
 0x940   : > { %v9459_v24 = vsel %vm10704_vm4, %v6079_v59, -1e+30  ;;  %v3640_v7 = vpop.f32.mrb[69].mxu1  ;;  %6114 = vmatpush3.bf16.msra.mxu1 %v6369_v17  ;;  %vm10709_vm4 = vcmp.ge.s32.totalorder %v8005_v34, 3 }
 0x941   : > { %v9464_v3 = vmax.f32 %v3779_v40, %v9459_v24  ;;  %v9468_v8 = vsel %vm10705_vm3, %v3640_v7, -1e+30  ;;  %v6080_v57 = vpop.f32.mrb[70].mxu1  ;;  %6115 = vmatprep.subr.bf16.mxu1 %v6370_v48  ;;  %vm10710_vm3 = vcmp.ge.s32.totalorder %v8009_v42, 3 }
 0x942   : > { %v9471_v38 = vmax.f32 %v3777_v9, %v9468_v8  ;;  %v9475_v59 = vsel %vm10706_vm11, %v6080_v57, -1e+30  ;;  %v3643_v11 = vpop.f32.mrb[71].mxu1  ;;  %v6371_v9 = vld [vmem:[#allocation10 + $0x70] sm:$0xff]   ;;  %v6372_v57 = vld [vmem:[#allocation10 + $0x78] sm:$0xff]   ;;  %vm10711_vm11 = vcmp.ge.s32.totalorder %v8012_v26, 3 }
 0x943   : > { %v9478_v10 = vmax.f32 %v3780_v60, %v9475_v59  ;;  %v9482_v40 = vsel %vm10707_vm10, %v3643_v11, -1e+30  ;;  %vm10712_vm10 = vcmp.ge.s32.totalorder %v10702_v54, 3 }
 0x944   : > { %v9485_v7 = vmax.f32 %v3778_v13, %v9482_v40  ;;  %6116 = vmatpush3.bf16.msra.mxu1 %v6370_v48 }
 0x945   : > { %6117 = vmatprep.subr.bf16.mxu1 %v6371_v9 }
 0x948   : > { %6118 = vmatpush3.bf16.msra.mxu1 %v6371_v9 }
 0x949   : > { %6119 = vmatprep.subr.bf16.mxu1 %v6372_v57 }
 0x94c   : > { %6120 = vmatpush3.bf16.msra.mxu1 %v6372_v57 }
 0x951   : > { %v6099_v60 = vpop.f32.mrb[72].mxu0 }
 0x952   : > { %v3767_v11 = vsel %vm1524_vm13, %v6099_v60, -1e+30  ;;  %v3734_v50 = vpop.f32.mrb[73].mxu0 }
 0x953   : > { %v3791_v6 = vmax.f32 %v3783_v29, %v3767_v11  ;;  %v3765_v13 = vsel %vm1522_vm1, %v3734_v50, -1e+30  ;;  %v6100_v55 = vpop.f32.mrb[74].mxu0 }
 0x954   : > { %v3789_v36 = vmax.f32 %v3781_v15, %v3765_v13  ;;  %v3768_v17 = vsel %vm1525_vm12, %v6100_v55, -1e+30  ;;  %v3737_v48 = vpop.f32.mrb[75].mxu0 }
 0x955   : > { %v3799_v61 = vsub.f32 %v9371_v0, %v3791_v6  ;;  %v3823_v9 = vsub.f32 %v9389_v16, %v3791_v6  ;;  %v3847_v57 = vsub.f32 %v9411_v19, %v3791_v6  ;;  %v3871_v52 = vsub.f32 %v3767_v11, %v3791_v6 }
 0x956   : > { %v3797_v60 = vsub.f32 %v9373_v27, %v3789_v36  ;;  %v3821_v29 = vsub.f32 %v9395_v14, %v3789_v36  ;;  %v3845_v51 = vsub.f32 %v9418_v41, %v3789_v36  ;;  %v3869_v50 = vsub.f32 %v3765_v13, %v3789_v36 }
 0x957   : > { %v3809_v58 = vmul.f32 1.442695, %v3799_v61  ;;  %v3833_v15 = vmul.f32 1.442695, %v3823_v9  ;;  %v3857_v35 = vmul.f32 1.442695, %v3847_v57  ;;  %v3792_v55 = vmax.f32 %v9426_v39, %v3768_v17 }
 0x958   : > { %v3881_v33 = vmul.f32 1.442695, %v3871_v52  ;;  %v3805_v0 = vmul.f32 1.442695, %v3797_v60  ;;  %v3829_v62 = vmul.f32 1.442695, %v3821_v29 }
 0x959   : > { %6621 = vpow2.f32 %v3809_v58  ;;  %v3800_v16 = vsub.f32 %v9375_v63, %v3792_v55  ;;  %v6103_v19 = vpop.f32.mrb[76].mxu0  ;;  %v3824_v27 = vsub.f32 %v9401_v2, %v3792_v55  ;;  %v3848_v14 = vsub.f32 %v9423_v37, %v3792_v55 }
 0x95a   : > { %6623 = vpow2.f32 %v3833_v15  ;;  %v3872_v11 = vsub.f32 %v3768_v17, %v3792_v55  ;;  %v3750_v41 = vpop.f32.mrb[77].mxu0  ;;  %v3853_v36 = vmul.f32 1.442695, %v3845_v51  ;;  %v3766_v61 = vsel %vm10708_vm0, %v3737_v48, -1e+30 }
 0x95b   : > { %6625 = vpow2.f32 %v3857_v35  ;;  %v3771_v58 = vsel %vm10709_vm4, %v6103_v19, -1e+30  ;;  %v3877_v52 = vmul.f32 1.442695, %v3869_v50  ;;  %v3811_v39 = vmul.f32 1.442695, %v3800_v16 }
 0x95c   : > { %6627 = vpow2.f32 %v3881_v33  ;;  %v3835_v63 = vmul.f32 1.442695, %v3824_v27  ;;  %v3790_v6 = vmax.f32 %v9433_v53, %v3766_v61  ;;  %v3795_v2 = vmax.f32 %v9464_v3, %v3771_v58  ;;  %v6104_v51 = vpop.f32.mrb[78].mxu0 }
 0x95d   : > { %6629 = vpow2.f32 %v3805_v0  ;;  %v9511_v37 = vsel %vm10710_vm3, %v3750_v41, -1e+30  ;;  %v3859_v35 = vmul.f32 1.442695, %v3848_v14  ;;  %v3883_v13 = vmul.f32 1.442695, %v3872_v11 }
 0x95e   : > { %6631 = vpow2.f32 %v3829_v62  ;;  %v3793_v17 = vmax.f32 %v9471_v38, %v9511_v37  ;;  %v3753_v33 = vpop.f32.mrb[79].mxu0  ;;  %v3798_v48 = vsub.f32 %v9377_v31, %v3790_v6  ;;  %v3822_v9 = vsub.f32 %v9407_v25, %v3790_v6 }
 0x95f   : > { %6633 = vpow2.f32 %v3853_v36  ;;  %v3846_v53 = vsub.f32 %v9430_v45, %v3790_v6  ;;  %v3870_v3 = vsub.f32 %v3766_v61, %v3790_v6  ;;  %v3803_v57 = vsub.f32 %v9379_v21, %v3795_v2 }
 0x960   : > { %6635 = vpow2.f32 %v3877_v52  ;;  %v3827_v60 = vsub.f32 %v9437_v23, %v3795_v2  ;;  %v3807_v62 = vmul.f32 1.442695, %v3798_v48  ;;  %v9522_v29 = vsel %vm10711_vm11, %v6104_v51, -1e+30 }
 0x961   : > { %6637 = vpow2.f32 %v3811_v39  ;;  %v3831_v38 = vmul.f32 1.442695, %v3822_v9  ;;  %v3855_v50 = vmul.f32 1.442695, %v3846_v53  ;;  %v3879_v31 = vmul.f32 1.442695, %v3870_v3 }
 0x962   : > { %6639 = vpow2.f32 %v3835_v63  ;;  %v3851_v25 = vsub.f32 %v9459_v24, %v3795_v2  ;;  %v3875_v45 = vsub.f32 %v3771_v58, %v3795_v2  ;;  %v3801_v21 = vsub.f32 %v9381_v5, %v3793_v17 }
 0x963   : > { %v9524_v15 = vpop.eup %6621  ;;  %6641 = vpow2.f32 %v3859_v35  ;;  %v3825_v23 = vsub.f32 %v9443_v47, %v3793_v17  ;;  %v3849_v0 = vsub.f32 %v9468_v8, %v3793_v17  ;;  %v3873_v16 = vsub.f32 %v9511_v37, %v3793_v17 }
 0x964   : > { %v9528_v55 = vpop.eup %6623  ;;  %6643 = vpow2.f32 %v3883_v13  ;;  %v3817_v14 = vmul.f32 1.442695, %v3803_v57  ;;  %v3841_v5 = vmul.f32 1.442695, %v3827_v60  ;;  %v3865_v47 = vmul.f32 1.442695, %v3851_v25 }
 0x965   : > { %v9533_v19 = vpop.eup %6625  ;;  %v3895_v27 = vadd.f32 %v9528_v55, %v9524_v15  ;;  %6645 = vpow2.f32 %v3807_v62  ;;  %v3796_v8 = vmax.f32 %v9478_v10, %v9522_v29  ;;  %v3889_v61 = vmul.f32 1.442695, %v3875_v45 }
 0x966   : > { %v9537_v24 = vpop.eup %6627  ;;  %6647 = vpow2.f32 %v3831_v38  ;;  %v3813_v58 = vmul.f32 1.442695, %v3801_v21  ;;  %v9548_v52 = vsel %vm10712_vm10, %v3753_v33, -1e+30  ;;  %v3861_v9 = vmul.f32 1.442695, %v3849_v0 }
 0x967   : > { %v9539_v11 = vpop.eup %6629  ;;  %v3903_v41 = vadd.f32 %v9533_v19, %v3895_v27  ;;  %6649 = vpow2.f32 %v3855_v50  ;;  %v3804_v2 = vsub.f32 %v9383_v20, %v3796_v8  ;;  %v3828_v37 = vsub.f32 %v9449_v30, %v3796_v8 }
 0x968   : > { %v9544_v36 = vpop.eup %6631  ;;  %6651 = vpow2.f32 %v3879_v31  ;;  %v3852_v51 = vsub.f32 %v9475_v59, %v3796_v8  ;;  %v3876_v35 = vsub.f32 %v9522_v29, %v3796_v8  ;;  %v9566_v33 = vmax.f32 %v9485_v7, %v9548_v52 }
 0x969   : > { %v9550_v39 = vpop.eup %6633  ;;  %v3911_v63 = vadd.f32 %v9537_v24, %v3903_v41  ;;  %v3893_v6 = vadd.f32 %v9544_v36, %v9539_v11  ;;  %6653 = vpow2.f32 %v3817_v14  ;;  %v3837_v20 = vmul.f32 1.442695, %v3825_v23  ;;  %v10713_v14 = vld [vmem:[#allocation31_spill] sm:$0xff] }
 0x96a   : > { %v9556_v10 = vpop.eup %6635  ;;  %6655 = vpow2.f32 %v3841_v5  ;;  %v3885_v53 = vmul.f32 1.442695, %v3873_v16  ;;  %v3819_v25 = vmul.f32 1.442695, %v3804_v2  ;;  %v3843_v0 = vmul.f32 1.442695, %v3828_v37 }
 0x96b   : > { %v9561_v13 = vpop.eup %6637  ;;  %6657 = vrcp.f32 %v3911_v63  ;;  %v3901_v17 = vadd.f32 %v9550_v39, %v3893_v6  ;;  %vm10714_vm0 = vcmp.lt.s32.totalorder %v7960_v44, 3  ;;  %v3867_v8 = vmul.f32 1.442695, %v3852_v51  ;;  %v10716_v63 = vld [vmem:[#allocation32_spill] sm:$0xff] }
 0x96c   : > { %v9568_v48 = vpop.eup %6639  ;;  %6659 = vpow2.f32 %v3865_v47  ;;  %v9602_v5 = vsel %vm10714_vm0, %v10713_v14, 0.0  ;;  %vm10717_vm4 = vcmp.lt.s32.totalorder %v7975_v28, 3  ;;  %vm10721_vm3 = vcmp.lt.s32.totalorder %v7975_v28, 2 }
 0x96d   : > { %v9570_v30 = vpop.eup %6641  ;;  %v3909_v59 = vadd.f32 %v9556_v10, %v3901_v17  ;;  %v3896_v3 = vadd.f32 %v9568_v48, %v9561_v13  ;;  %6661 = vpow2.f32 %v3889_v61  ;;  %v10715_v61 = vld [vmem:[#allocation76_spill] sm:$0xff]  ;;  %v9615_v6 = vsel %vm10717_vm4, %v10716_v63, 0.0  ;;  %v10722_v63 = vld [vmem:[#allocation47_spill] sm:$0xff] }
 0x96e   : > { %v9577_v60 = vpop.eup %6643  ;;  %6663 = vpow2.f32 %v3813_v58  ;;  %v9610_v58 = vsel %vm1923_vm2, %v10715_v61, 0.0  ;;  %vm10719_vm2 = vcmp.lt.s32.totalorder %v7965_v12, 2  ;;  %vm10723_vm11 = vcmp.lt.s32.totalorder %v7960_v44, 2 }
 0x96f   : > { %v9585_v38 = vpop.eup %6645  ;;  %6665 = vrcp.f32 %v3909_v59  ;;  %v3904_v50 = vadd.f32 %v9570_v30, %v3896_v3  ;;  %vm10725_vm10 = vcmp.lt.s32.totalorder %v7965_v12, 1  ;;  %vm10727_vm0 = vcmp.lt.s32.totalorder %v7975_v28, 1 }
 0x970   : > { %v9588_v31 = vpop.eup %6647  ;;  %6667 = vpow2.f32 %v3837_v20  ;;  %v3891_v20 = vmul.f32 1.442695, %v3876_v35  ;;  %v10720_v35 = vld [vmem:[#allocation54_spill] sm:$0xff]  ;;  %vm10729_vm4 = vcmp.lt.s32.totalorder %v7960_v44, 1 }
 0x971   : > { %v9590_v45 = vpop.eup %6649  ;;  %v3912_v21 = vadd.f32 %v9577_v60, %v3904_v50  ;;  %v3894_v23 = vadd.f32 %v9588_v31, %v9585_v38  ;;  %6669 = vpow2.f32 %v3861_v9 }
 0x972   : > { %v9595_v16 = vpop.eup %6651  ;;  %6671 = vpow2.f32 %v3885_v53 }
 0x973   : > { %v9597_v27 = vpop.eup %6653  ;;  %6673 = vrcp.f32 %v3912_v21  ;;  %v3902_v41 = vadd.f32 %v9590_v45, %v3894_v23  ;;  %v10718_v21 = vld [vmem:[#allocation53_spill] sm:$0xff] }
 0x974   : > { %v9605_v47 = vpop.eup %6655  ;;  %6675 = vpow2.f32 %v3819_v25  ;;  %v9632_v23 = vsel %vm10719_vm2, %v10718_v21, 0.0  ;;  %vm10731_vm2 = vcmp.lt.s32.totalorder %v7970_v46, 3 }
 0x975   : > { %v6658_v2 = vpop.eup %6657  ;;  %v3910_v37 = vadd.f32 %v9595_v16, %v3902_v41  ;;  %v3899_v17 = vadd.f32 %v9605_v47, %v9597_v27  ;;  %6677 = vpow2.f32 %v3843_v0 }
 0x976   : > { %v9620_v9 = vpop.eup %6659  ;;  %v3927_v51 = vmul.f32 %v6658_v2, %v9524_v15  ;;  %v3959_v53 = vmul.f32 %v6658_v2, %v9528_v55  ;;  %v3991_v59 = vmul.f32 %v6658_v2, %v9533_v19  ;;  %v4023_v3 = vmul.f32 %v6658_v2, %v9537_v24 }
 0x977   : > { %v9626_v50 = vpop.eup %6661  ;;  %6679 = vrcp.f32 %v3910_v37  ;;  %v3907_v25 = vadd.f32 %v9620_v9, %v3899_v17  ;;  %v9637_v15 = vsel %vm10721_vm3, %v10720_v35, 0.0  ;;  %v9647_v2 = vsel %vm10723_vm11, %v10722_v63, 0.0 }
 0x978   : > { %v9639_v55 = vpop.eup %6663  ;;  %v3937_v19 = vmul.f32 1.442695, %v3927_v51  ;;  %v3969_v0 = vmul.f32 1.442695, %v3959_v53  ;;  %v4001_v24 = vmul.f32 1.442695, %v3991_v59  ;;  %6681 = vpow2.f32 %v3867_v8 }
 0x979   : > { %v6666_v14 = vpop.eup %6665  ;;  %v4033_v41 = vmul.f32 1.442695, %v4023_v3  ;;  %v9642_v61 = vadd.f32 %v9626_v50, %v3907_v25  ;;  %6683 = vpow2.f32 %v3891_v20  ;;  %v10724_v3 = vld [vmem:[#allocation77_spill] sm:$0xff]  ;;  %vm10733_vm3 = vcmp.lt.s32.totalorder %v7970_v46, 2 }
 0x97a   : > { %v9649_v37 = vpop.eup %6667  ;;  %6685 = vpow2.f32 %v3937_v19  ;;  %v3925_v17 = vmul.f32 %v6666_v14, %v9539_v11  ;;  %v3957_v51 = vmul.f32 %v6666_v14, %v9544_v36  ;;  %v3989_v8 = vmul.f32 %v6666_v14, %v9550_v39 }
 0x97b   : > { %v9654_v53 = vpop.eup %6669  ;;  %6687 = vpow2.f32 %v3969_v0  ;;  %v4021_v59 = vmul.f32 %v6666_v14, %v9556_v10  ;;  %v3897_v20 = vadd.f32 %v9649_v37, %v9639_v55  ;;  %v9662_v25 = vsel %vm10725_vm10, %v10724_v3, 0.0  ;;  %v10726_v10 = vld [vmem:[#allocation49_spill] sm:$0xff] }
 0x97c   : > { %v9664_v21 = vpop.eup %6671  ;;  %6689 = vpow2.f32 %v4001_v24  ;;  %v3933_v11 = vmul.f32 1.442695, %v3925_v17  ;;  %v3965_v36 = vmul.f32 1.442695, %v3957_v51  ;;  %v3997_v35 = vmul.f32 1.442695, %v3989_v8 }
 0x97d   : > { %v6674_v39 = vpop.eup %6673  ;;  %6691 = vpow2.f32 %v4033_v41  ;;  %v4029_v19 = vmul.f32 1.442695, %v4021_v59  ;;  %v3905_v0 = vadd.f32 %v9654_v53, %v3897_v20  ;;  %v9670_v14 = vsel %vm10727_vm0, %v10726_v10, 0.0  ;;  %v10728_v59 = vld [vmem:[#allocation50_spill] sm:$0xff] }
 0x97e   : > { %v9672_v63 = vpop.eup %6675  ;;  %6693 = vpow2.f32 %v3933_v11  ;;  %v3928_v3 = vmul.f32 %v6674_v39, %v9561_v13  ;;  %v3960_v24 = vmul.f32 %v6674_v39, %v9568_v48  ;;  %v3992_v17 = vmul.f32 %v6674_v39, %v9570_v30  ;;  %v10730_v48 = vld [vmem:[#allocation72_spill] sm:$0xff] }
 0x97f   : > { %v9677_v51 = vpop.eup %6677  ;;  %6695 = vpow2.f32 %v3965_v36  ;;  %v4024_v41 = vmul.f32 %v6674_v39, %v9577_v60  ;;  %v3913_v8 = vadd.f32 %v9664_v21, %v3905_v0  ;;  %v9684_v20 = vsel %vm10729_vm4, %v10728_v59, 0.0 }
 0x980   : > { %6697 = vpow2.f32 %v3997_v35  ;;  %v3939_v11 = vmul.f32 1.442695, %v3928_v3  ;;  %v3971_v10 = vmul.f32 1.442695, %v3960_v24  ;;  %v4003_v13 = vmul.f32 1.442695, %v3992_v17 }
 0x981   : > { %v6680_v29 = vpop.eup %6679  ;;  %v9689_v30 = vsel %vm10731_vm2, %v10730_v48, 0.0  ;;  %6699 = vpow2.f32 %v4029_v19  ;;  %v4035_v36 = vmul.f32 1.442695, %v4024_v41  ;;  %v3900_v60 = vadd.f32 %v9677_v51, %v9672_v63  ;;  %v10732_v41 = vld [vmem:[#allocation78_spill] sm:$0xff] }
 0x982   : > { %v9693_v39 = vpop.eup %6681  ;;  %6701 = vpow2.f32 %v3939_v11  ;;  %v3926_v0 = vmul.f32 %v6680_v29, %v9585_v38  ;;  %v3958_v35 = vmul.f32 %v6680_v29, %v9588_v31  ;;  %v3990_v3 = vmul.f32 %v6680_v29, %v9590_v45 }
 0x983   : > { %v9698_v24 = vpop.eup %6683  ;;  %6703 = vpow2.f32 %v3971_v10  ;;  %v4022_v17 = vmul.f32 %v6680_v29, %v9595_v16  ;;  %v3908_v19 = vadd.f32 %v9693_v39, %v3900_v60  ;;  %v9705_v59 = vsel %vm10733_vm3, %v10732_v41, 0.0  ;;  %v10734_v10 = vld [vmem:[#allocation41_spill] sm:$0xff] }
 0x984   : > { %v6686_v48 = vpop.eup %6685  ;;  %6705 = vpow2.f32 %v4003_v13  ;;  %v3935_v11 = vmul.f32 1.442695, %v3926_v0  ;;  %v3967_v38 = vmul.f32 1.442695, %v3958_v35  ;;  %v3999_v62 = vmul.f32 1.442695, %v3990_v3 }
 0x985   : > { %v6688_v31 = vpop.eup %6687  ;;  %6707 = vpow2.f32 %v4035_v36  ;;  %v4031_v45 = vmul.f32 1.442695, %v4022_v17  ;;  %v3916_v7 = vadd.f32 %v9698_v24, %v3908_v19  ;;  %v4087_v57 = vmul.f32 %v6686_v48, %v10734_v10  ;;  %v10737_v17 = vld [vmem:[#allocation64_spill] sm:$0xff] }
 0x986   : > { %v6690_v29 = vpop.eup %6689  ;;  %6709 = vpow2.f32 %v3935_v11  ;;  %v10735_v16 = vsub.f32 %v9385_v43, %v9566_v33  ;;  %v10736_v41 = vsub.f32 %v9455_v22, %v9566_v33  ;;  %v3983_v0 = vsel %vm1254_vm6, %v6688_v31, 0.0 }
 0x987   : > { %v6692_v35 = vpop.eup %6691  ;;  %6711 = vpow2.f32 %v3967_v38  ;;  %v4015_v36 = vsel %vm1389_vm14, %v6690_v29, 0.0  ;;  %v4055_v3 = vadd.f32 %v6686_v48, %v3983_v0  ;;  %v4128_v19 = vmul.f32 %v10737_v17, %v3983_v0  ;;  %v10741_v0 = vld [vmem:[#allocation52_spill] sm:$0xff] }
 0x988   : > { %v3815_v60 = vmul.f32 1.442695, %v10735_v16  ;;  %v3839_v13 = vmul.f32 1.442695, %v10736_v41  ;;  %v6694_v11 = vpop.eup %6693  ;;  %6713 = vpow2.f32 %v3999_v62  ;;  %v10738_v43 = vsub.f32 %v9482_v40, %v9566_v33  ;;  %v10739_v16 = vld [vmem:[#allocation70_spill] sm:$0xff] }
 0x989   : > { %v4047_v22 = vsel %vm1524_vm13, %v6692_v35, 0.0  ;;  %v9726_v41 = vmul.f32 %v10739_v16, %v4015_v36  ;;  %v6696_v31 = vpop.eup %6695  ;;  %6715 = vpow2.f32 %v4031_v45  ;;  %v4085_v38 = vmul.f32 %v6694_v11, %v8917_v56 }
 0x98a   : > { %v3863_v10 = vmul.f32 1.442695, %v10738_v43  ;;  %v4063_v29 = vadd.f32 %v4055_v3, %v4015_v36  ;;  %v4136_v48 = vadd.f32 %v4128_v19, %v4087_v57  ;;  %v6698_v54 = vpop.eup %6697  ;;  %6717 = vrcp.f32 %v9642_v61  ;;  %v10742_v57 = vld [vmem:[#allocation65_spill] sm:$0xff] }
 0x98b   : > { %v10740_v62 = vsub.f32 %v9548_v52, %v9566_v33  ;;  %v3981_v44 = vsel %vm1252_vm7, %v6696_v31, 0.0  ;;  %v9736_v35 = vmul.f32 %v10741_v0, %v4047_v22  ;;  %v6700_v17 = vpop.eup %6699  ;;  %6719 = vrcp.f32 %v3913_v8  ;;  %v10746_v0 = vld [vmem:[#allocation43_spill] sm:$0xff] }
 0x98c   : > { %v4013_v56 = vsel %vm1387_vm15, %v6698_v54, 0.0  ;;  %v4053_v45 = vadd.f32 %v6694_v11, %v3981_v44  ;;  %v4126_v36 = vmul.f32 %v10742_v57, %v3981_v44  ;;  %v6702_v3 = vpop.eup %6701  ;;  %6721 = vrcp.f32 %v3916_v7  ;;  %v10747_v57 = vld [vmem:[#allocation46_spill] sm:$0xff] }
 0x98d   : > { %v3887_v40 = vmul.f32 1.442695, %v10740_v62  ;;  %v4045_v52 = vsel %vm1522_vm1, %v6700_v17, 0.0  ;;  %v4208_v33 = vmul.f32 %v9222_v49, %v4013_v56  ;;  %v9744_v61 = vadd.f32 %v4063_v29, %v4047_v22  ;;  %v6704_v19 = vpop.eup %6703 }
 0x98e   : > { %6723 = vpow2.f32 %v3815_v60  ;;  %v4061_v43 = vadd.f32 %v4053_v45, %v4013_v56  ;;  %v4134_v16 = vadd.f32 %v4126_v36, %v4085_v38  ;;  %v9747_v8 = vmul.f32 %v9231_v18, %v4045_v52  ;;  %v6706_v54 = vpop.eup %6705  ;;  %v10744_v38 = vld [vmem:[#allocation44_spill] sm:$0xff] }
 0x98f   : > { %6725 = vpow2.f32 %v3839_v13  ;;  %v3984_v11 = vsel %vm1255_vm8, %v6704_v19, 0.0  ;;  %v4088_v7 = vmul.f32 %v6702_v3, %v8920_v1  ;;  %vm10743_vm1 = vcmp.lt.s32.totalorder %v7970_v46, 1  ;;  %v6708_v49 = vpop.eup %6707 }
 0x990   : > { %v9755_v12 = vsel %vm10743_vm1, %v9238_v4, 0.0  ;;  %6727 = vpow2.f32 %v3863_v10  ;;  %v4069_v60 = vadd.f32 %v4061_v43, %v4045_v52  ;;  %v4175_v22 = vadd.f32 %v9610_v58, %v4134_v16  ;;  %v6710_v31 = vpop.eup %6709  ;;  %v10745_v4 = vld [vmem:[#allocation45_spill] sm:$0xff]  ;;  %v10749_v43 = vld [vmem:[#allocation63_spill] sm:$0xff] }
 0x991   : > { %v4016_v18 = vsel %vm1390_vm5, %v6706_v54, 0.0  ;;  %6729 = vpow2.f32 %v3887_v40  ;;  %v9762_v13 = vsel %vm1525_vm12, %v6708_v49, 0.0  ;;  %v4056_v1 = vadd.f32 %v6702_v3, %v3984_v11  ;;  %v6712_v62 = vpop.eup %6711 }
 0x992   : > { %v4129_v29 = vmul.f32 %v10744_v38, %v3984_v11  ;;  %v4077_v44 = vadd.f32 %v4069_v60, %v10745_v4  ;;  %v4086_v10 = vmul.f32 %v6710_v31, %v10746_v0  ;;  %v4216_v17 = vadd.f32 %v4208_v33, %v4175_v22  ;;  %v6714_v56 = vpop.eup %6713 }
 0x993   : > { %v9768_v58 = vadd.f32 %v9602_v5, %v4136_v48  ;;  %v3982_v40 = vsel %vm1253_vm9, %v6712_v62, 0.0  ;;  %v4064_v45 = vadd.f32 %v4056_v1, %v4016_v18  ;;  %v9773_v36 = vmul.f32 %v10747_v57, %v4016_v18  ;;  %v6716_v3 = vpop.eup %6715  ;;  %v10750_v48 = vld [vmem:[#allocation81_spill] sm:$0xff] }
 0x994   : > { %v4137_v46 = vadd.f32 %v4129_v29, %v4088_v7  ;;  %vm10748_vm5 = vcmp.ge.s32.totalorder %v7975_v28, 2  ;;  %v4054_v19 = vadd.f32 %v6710_v31, %v3982_v40  ;;  %v4127_v16 = vmul.f32 %v10749_v43, %v3982_v40  ;;  %v6718_v5 = vpop.eup %6717 }
 0x995   : > { %v4014_v52 = vsel %vm10748_vm5, %v6714_v56, 0.0  ;;  %v4257_v33 = vadd.f32 %v9632_v23, %v4216_v17  ;;  %6731 = vrcp.f32 %v4077_v44  ;;  %v9781_v11 = vadd.f32 %v4064_v45, %v9762_v13  ;;  %v6720_v49 = vpop.eup %6719 }
 0x996   : > { %v4209_v54 = vmul.f32 %v10750_v48, %v4014_v52  ;;  %vm10751_vm6 = vcmp.lt.s32.totalorder %v8009_v42, 3  ;;  %v3931_v60 = vmul.f32 %v6718_v5, %v9597_v27  ;;  %v3963_v22 = vmul.f32 %v6718_v5, %v9605_v47  ;;  %v6722_v31 = vpop.eup %6721 }
 0x997   : > { %v9786_v7 = vsel %vm10751_vm6, %v9246_v32, 0.0  ;;  %v3995_v18 = vmul.f32 %v6718_v5, %v9620_v9  ;;  %v4027_v23 = vmul.f32 %v6718_v5, %v9626_v50  ;;  %v3929_v1 = vmul.f32 %v6720_v49, %v9639_v55 }
 0x998   : > { %v3961_v38 = vmul.f32 %v6720_v49, %v9649_v37  ;;  %v3993_v29 = vmul.f32 %v6720_v49, %v9654_v53  ;;  %v4025_v62 = vmul.f32 %v6720_v49, %v9664_v21  ;;  %v9796_v32 = vpop.eup %6723  ;;  %v3945_v4 = vmul.f32 1.442695, %v3931_v60  ;;  %v10753_v37 = vld [vmem:[#allocation71_spill] sm:$0xff]  ;;  %v10755_v49 = vld [vmem:[#allocation33_spill] sm:$0xff] }
 0x999   : > { %v3977_v44 = vmul.f32 1.442695, %v3963_v22  ;;  %v4009_v27 = vmul.f32 1.442695, %v3995_v18  ;;  %v3932_v47 = vmul.f32 %v6722_v31, %v9672_v63  ;;  %v9799_v0 = vpop.eup %6725  ;;  %v4041_v9 = vmul.f32 1.442695, %v4027_v23 }
 0x99a   : > { %v3964_v50 = vmul.f32 %v6722_v31, %v9677_v51  ;;  %vm10752_vm7 = vcmp.ge.s32.totalorder %v7975_v28, 3  ;;  %vm10754_vm8 = vcmp.lt.s32.totalorder %v8009_v42, 2  ;;  %v9809_v21 = vpop.eup %6727  ;;  %6733 = vpow2.f32 %v3945_v4 }
 0x99b   : > { %v4046_v55 = vsel %vm10752_vm7, %v6716_v3, 0.0  ;;  %v9807_v53 = vsel %vm10754_vm8, %v10753_v37, 0.0  ;;  %v3941_v17 = vmul.f32 1.442695, %v3929_v1  ;;  %v3973_v56 = vmul.f32 1.442695, %v3961_v38  ;;  %v9811_v63 = vpop.eup %6729 }
 0x99c   : > { %v4005_v40 = vmul.f32 1.442695, %v3993_v29  ;;  %6735 = vpow2.f32 %v3977_v44  ;;  %v4037_v45 = vmul.f32 1.442695, %v4025_v62  ;;  %v3996_v51 = vmul.f32 %v6722_v31, %v9693_v39  ;;  %v10756_v29 = vld [vmem:[#allocation59_spill] sm:$0xff]  ;;  %v10759_v44 = vld [vmem:[#allocation58_spill] sm:$0xff] }
 0x99d   : > { %v4028_v28 = vmul.f32 %v6722_v31, %v9698_v24  ;;  %6737 = vpow2.f32 %v4009_v27  ;;  %v3898_v57 = vadd.f32 %v9799_v0, %v9796_v32  ;;  %v4062_v3 = vadd.f32 %v4054_v19, %v4014_v52 }
 0x99e   : > { %v4135_v43 = vadd.f32 %v4127_v16, %v4086_v10  ;;  %6739 = vpow2.f32 %v4041_v9  ;;  %v3947_v5 = vmul.f32 1.442695, %v3932_v47  ;;  %v3979_v48 = vmul.f32 1.442695, %v3964_v50  ;;  %v10760_v9 = vld [vmem:[#allocation51_spill] sm:$0xff] }
 0x99f   : > { %v4291_v60 = vmul.f32 %v10755_v49, %v4046_v55  ;;  %6741 = vpow2.f32 %v3941_v17  ;;  %v3906_v22 = vadd.f32 %v9809_v21, %v3898_v57  ;;  %v4070_v18 = vadd.f32 %v4062_v3, %v4046_v55  ;;  %v6732_v39 = vpop.eup %6731  ;;  %v10767_v3 = vld [vmem:[#allocation34_spill] sm:$0xff] }
 0x9a0   : > { %v4176_v23 = vadd.f32 %v9615_v6, %v4135_v43  ;;  %6743 = vpow2.f32 %v3973_v56  ;;  %v4011_v24 = vmul.f32 1.442695, %v3996_v51  ;;  %v4298_v31 = vadd.f32 %v9747_v8, %v4257_v33  ;;  %v10766_v51 = vld [vmem:[#allocation42_spill] sm:$0xff] }
 0x9a1   : > { %v4178_v1 = vadd.f32 %v9689_v30, %v4137_v46  ;;  %6745 = vpow2.f32 %v4005_v40  ;;  %v4043_v10 = vmul.f32 1.442695, %v4028_v28  ;;  %v3914_v52 = vadd.f32 %v9811_v63, %v3906_v22  ;;  %v10757_v30 = vld [vmem:[#allocation48_spill] sm:$0xff] }
 0x9a2   : > { %v4217_v19 = vadd.f32 %v4209_v54, %v4176_v23  ;;  %6747 = vpow2.f32 %v4037_v45  ;;  %v4339_v16 = vadd.f32 %v9662_v25, %v4298_v31  ;;  %v4218_v38 = vadd.f32 %v9726_v41, %v9768_v58  ;;  %v10758_v58 = vld [vmem:[#allocation82_spill] sm:$0xff]  ;;  %v10771_v23 = vld [vmem:[#allocation23_spill] sm:$0xff] }
 0x9a3   : > { %v4219_v6 = vadd.f32 %v9773_v36, %v4178_v1  ;;  %6749 = vpow2.f32 %v3947_v5  ;;  %v4078_v62 = vadd.f32 %v4070_v18, %v10756_v29  ;;  %v4293_v46 = vmul.f32 %v10757_v30, %v9762_v13  ;;  %v10768_v5 = vld [vmem:[#allocation24_spill] sm:$0xff] }
 0x9a4   : > { %v4258_v8 = vadd.f32 %v9637_v15, %v4217_v19  ;;  %6751 = vpow2.f32 %v3979_v48  ;;  %v9831_v33 = vmul.f32 %v6732_v39, %v4339_v16  ;;  %v4259_v54 = vadd.f32 %v9647_v2, %v4218_v38  ;;  %v6734_v4 = vpop.eup %6733  ;;  %v10769_v48 = vld [vmem:[#allocation84_spill] sm:$0xff]  ;;  %v10775_v19 = vld [vmem:[#allocation21_spill] sm:$0xff] }
 0x9a5   : > { %v4260_v25 = vadd.f32 %v9705_v59, %v4219_v6  ;;  %6753 = vpow2.f32 %v4011_v24  ;;  %v4079_v36 = vadd.f32 %v9744_v61, %v10758_v58  ;;  %v4080_v27 = vadd.f32 %v9781_v11, %v10759_v44  ;;  %v10761_v59 = vld [vmem:[#allocation20_spill] sm:$0xff]  ;;  %v10780_v58 = vld [vmem:[#allocation55_spill] sm:$0xff] }
 0x9a6   : > { %v4299_v41 = vadd.f32 %v4291_v60, %v4258_v8  ;;  %v6736_v15 = vpop.eup %6735  ;;  %6755 = vpow2.f32 %v4043_v10  ;;  %v4300_v13 = vadd.f32 %v9736_v35, %v4259_v54  ;;  %v4091_v50 = vmul.f32 %v6734_v4, %v10760_v9  ;;  %v10774_v10 = vld [vmem:[#allocation57_spill] sm:$0xff]  ;;  %v10778_v29 = vld [vmem:[#allocation68_spill] sm:$0xff] }
 0x9a7   : > { %v4301_v47 = vadd.f32 %v4293_v46, %v4260_v25  ;;  %v6738_v55 = vpop.eup %6737  ;;  %6757 = vrcp.f32 %v3914_v52  ;;  %vm10762_vm9 = vcmp.lt.s32.totalorder %v8009_v42, 1  ;;  %vm10763_vm12 = vcmp.ge.s32.totalorder %v8005_v34, 1 }
 0x9a8   : > { %v4340_v2 = vadd.f32 %v9670_v14, %v4299_v41  ;;  %v9845_v37 = vsel %vm10762_vm9, %v10761_v59, 0.0  ;;  %v3987_v61 = vsel %vm10763_vm12, %v6736_v15, 0.0  ;;  %v6740_v11 = vpop.eup %6739  ;;  %6759 = vrcp.f32 %v4078_v62  ;;  %v10782_v15 = vld [vmem:[#allocation60_spill] sm:$0xff] }
 0x9a9   : > { %v4341_v17 = vadd.f32 %v9684_v20, %v4300_v13  ;;  %v9851_v35 = vadd.f32 %v9755_v12, %v4301_v47  ;;  %vm10764_vm13 = vcmp.ge.s32.totalorder %v8005_v34, 2  ;;  %v6742_v40 = vpop.eup %6741  ;;  %6761 = vrcp.f32 %v4079_v36 }
 0x9aa   : > { %v4019_v56 = vsel %vm10764_vm13, %v6738_v55, 0.0  ;;  %vm10765_vm14 = vcmp.ge.s32.totalorder %v8005_v34, 3  ;;  %v4059_v45 = vadd.f32 %v6734_v4, %v3987_v61  ;;  %v4132_v28 = vmul.f32 %v10766_v51, %v3987_v61  ;;  %v6744_v57 = vpop.eup %6743  ;;  %v10779_v4 = vld [vmem:[#allocation75_spill] sm:$0xff]  ;;  %v10788_v51 = vld [vmem:[#allocation26_spill] sm:$0xff] }
 0x9ab   : > { %v4051_v14 = vsel %vm10765_vm14, %v6740_v11, 0.0  ;;  %6763 = vrcp.f32 %v4080_v27  ;;  %v4089_v43 = vmul.f32 %v6742_v40, %v10767_v3  ;;  %v4214_v20 = vmul.f32 %v10768_v5, %v4019_v56  ;;  %v6746_v49 = vpop.eup %6745 }
 0x9ac   : > { %v9861_v12 = vmul.f32 %v10769_v48, %v4051_v14  ;;  %vm10770_vm15 = vcmp.ge.s32.totalorder %v8009_v42, 1  ;;  %v4067_v22 = vadd.f32 %v4059_v45, %v4019_v56  ;;  %v4140_v18 = vadd.f32 %v4132_v28, %v4091_v50  ;;  %v6748_v24 = vpop.eup %6747 }
 0x9ad   : > { %v3985_v60 = vsel %vm10770_vm15, %v6744_v57, 0.0  ;;  %vm10772_vm11 = vcmp.lt.s32.totalorder %v8005_v34, 3  ;;  %vm10773_vm10 = vcmp.ge.s32.totalorder %v8009_v42, 2  ;;  %vm10776_vm0 = vcmp.lt.s32.totalorder %v8012_v26, 3  ;;  %v6750_v38 = vpop.eup %6749 }
 0x9ae   : > { %v4173_v39 = vsel %vm10772_vm11, %v10771_v23, 0.0  ;;  %v4017_v31 = vsel %vm10773_vm10, %v6746_v49, 0.0  ;;  %v4057_v1 = vadd.f32 %v6742_v40, %v3985_v60  ;;  %v4130_v52 = vmul.f32 %v10774_v10, %v3985_v60  ;;  %v6752_v46 = vpop.eup %6751  ;;  %v10789_v60 = vld [vmem:[#allocation61_spill] sm:$0xff] }
 0x9af   : > { %v4174_v16 = vsel %vm10776_vm0, %v10775_v19, 0.0  ;;  %vm10777_vm4 = vcmp.ge.s32.totalorder %v8009_v42, 3  ;;  %v4212_v62 = vmul.f32 %v10778_v29, %v4017_v31  ;;  %v4075_v8 = vadd.f32 %v4067_v22, %v4051_v14  ;;  %v6754_v44 = vpop.eup %6753  ;;  %v10783_v42 = vld [vmem:[#allocation27_spill] sm:$0xff]  ;;  %v10787_v14 = vld [vmem:[#allocation74_spill] sm:$0xff] }
 0x9b0   : > { %v4049_v6 = vsel %vm10777_vm4, %v6748_v24, 0.0  ;;  %v4181_v30 = vadd.f32 %v4173_v39, %v4140_v18  ;;  %v4065_v54 = vadd.f32 %v4057_v1, %v4017_v31  ;;  %v4138_v25 = vadd.f32 %v4130_v52, %v4089_v43  ;;  %v6756_v50 = vpop.eup %6755 }
 0x9b1   : > { %v4294_v41 = vmul.f32 %v10779_v4, %v4049_v6  ;;  %v4092_v36 = vmul.f32 %v6750_v38, %v10780_v58  ;;  %vm10781_vm2 = vcmp.ge.s32.totalorder %v8012_v26, 1  ;;  %v4083_v13 = vadd.f32 %v4075_v8, %v10782_v15  ;;  %v6758_v56 = vpop.eup %6757 }
 0x9b2   : > { %v3988_v27 = vsel %vm10781_vm2, %v6752_v46, 0.0  ;;  %v4222_v47 = vadd.f32 %v4214_v20, %v4181_v30  ;;  %vm10784_vm3 = vcmp.lt.s32.totalorder %v8005_v34, 2  ;;  %v4073_v55 = vadd.f32 %v4065_v54, %v4049_v6  ;;  %v6760_v3 = vpop.eup %6759 }
 0x9b3   : > { %v4255_v9 = vsel %vm10784_vm3, %v10783_v42, 0.0  ;;  %v4179_v59 = vadd.f32 %v9786_v7, %v4138_v25  ;;  %vm10785_vm1 = vcmp.ge.s32.totalorder %v8012_v26, 2  ;;  %v4060_v11 = vadd.f32 %v6750_v38, %v3988_v27  ;;  %v6762_v48 = vpop.eup %6761  ;;  %v10794_v25 = vld [vmem:[#allocation83_spill] sm:$0xff] }
 0x9b4   : > { %v4020_v61 = vsel %vm10785_vm1, %v6754_v44, 0.0  ;;  %vm10786_vm5 = vcmp.ge.s32.totalorder %v8012_v26, 3  ;;  %v4133_v45 = vmul.f32 %v10787_v14, %v3988_v27  ;;  %v4263_v57 = vadd.f32 %v4255_v9, %v4222_v47  ;;  %v10798_v27 = vld [vmem:[#allocation56_spill] sm:$0xff] }
 0x9b5   : > { %v4052_v40 = vsel %vm10786_vm5, %v6756_v50, 0.0  ;;  %v4215_v28 = vmul.f32 %v10788_v51, %v4020_v61  ;;  %v3930_v43 = vmul.f32 %v6758_v56, %v9796_v32  ;;  %v3962_v5 = vmul.f32 %v6758_v56, %v9799_v0  ;;  %v6764_v39 = vpop.eup %6763  ;;  %v10799_v47 = vld [vmem:[#allocation80_spill] sm:$0xff]  ;;  %v10805_v51 = vld [vmem:[#allocation22_spill] sm:$0xff] }
 0x9b6   : > { %v3994_v7 = vmul.f32 %v6758_v56, %v9809_v21  ;;  %v4026_v20 = vmul.f32 %v6758_v56, %v9811_v63  ;;  %v4356_v49 = vmul.f32 %v6760_v3, %v4340_v2  ;;  %v4081_v22 = vadd.f32 %v4073_v55, %v10789_v60  ;;  %v10790_v2 = vld [vmem:[#allocation85_spill] sm:$0xff]  ;;  %v10802_v55 = vld [vmem:[#allocation66_spill] sm:$0xff]  ;;  %v10808_v60 = vld [vmem:[#allocation28_spill] sm:$0xff] }
 0x9b7   : > { %v4220_v18 = vadd.f32 %v4212_v62, %v4179_v59  ;;  %v4068_v23 = vadd.f32 %v4060_v11, %v4020_v61  ;;  %v3943_v24 = vmul.f32 1.442695, %v3930_v43  ;;  %v3975_v31 = vmul.f32 1.442695, %v3962_v5  ;;  %v10804_v11 = vld [vmem:[#allocation69_spill] sm:$0xff]  ;;  %v10806_v43 = vld [vmem:[#allocation67_spill] sm:$0xff] }
 0x9b8   : > { %v4007_v1 = vmul.f32 1.442695, %v3994_v7  ;;  %v4357_v10 = vmul.f32 %v6762_v48, %v4341_v17  ;;  %v4039_v52 = vmul.f32 1.442695, %v4026_v20  ;;  %v4363_v32 = vpack.c.bf16 %v4356_v49, %v9831_v33  ;;  %v10791_v17 = vld [vmem:[#allocation62_spill] sm:$0xff] }
 0x9b9   : > { %v4358_v0 = vmul.f32 %v6764_v39, %v9851_v35  ;;  %v4261_v21 = vadd.f32 %v9807_v53, %v4220_v18  ;;  %6765 = vpow2.f32 %v3943_v24  ;;  %v4076_v63 = vadd.f32 %v4068_v23, %v4052_v40  ;;  %v10792_v33 = vld [vmem:[#allocation86_spill] sm:$0xff]  ;;  %v10809_v39 = vld [vmem:[#allocation73_spill] sm:$0xff] }
 0x9ba   : > { %v4141_v19 = vadd.f32 %v4133_v45, %v4092_v36  ;;  %v4297_v38 = vmul.f32 %v10790_v2, %v4052_v40  ;;  %6767 = vpow2.f32 %v3975_v31  ;;  %6121 = vmatprep.mubr.bf16.mxu1 %v4363_v32  ;;  %v4304_v62 = vadd.f32 %v9861_v12, %v4263_v57  ;;  %v5512_v2 = vld [vmem:[%s10218_s5 + $0x1] ss:$0 sm:$0xff] }
 0x9bb   : > { %v4364_v6 = vpack.c.bf16 %v4358_v0, %v4357_v10  ;;  %v4302_v29 = vadd.f32 %v4294_v41, %v4261_v21  ;;  %6769 = vpow2.f32 %v4007_v1  ;;  %v4084_v8 = vadd.f32 %v4076_v63, %v10791_v17  ;;  %v10811_v10 = vld [vmem:[#allocation25_spill] sm:$0xff] }
 0x9bc   : > { %v4182_v30 = vadd.f32 %v4174_v16, %v4141_v19  ;;  %vm10793_vm6 = vcmp.lt.s32.totalorder %v8005_v34, 1  ;;  %6771 = vpow2.f32 %v4039_v52  ;;  %vm10795_vm7 = vcmp.lt.s32.totalorder %v8012_v26, 2  ;;  %v10796_v16 = vld [vmem:[#allocation87_spill] sm:$0xff] }
 0x9bd   : > { %v4337_v35 = vsel %vm10793_vm6, %v10792_v33, 0.0  ;;  %6122 = vmatmul.mubr.bf16.vlgmr.msra.gmra.mrb[72].mxu1 %v4364_v6  ;;  %v4343_v53 = vadd.f32 %v9845_v37, %v4302_v29  ;;  %6773 = vrcp.f32 %v4081_v22  ;;  %v4256_v4 = vsel %vm10795_vm7, %v10794_v25, 0.0  ;;  %v10813_v6 = vld [vmem:[#allocation35_spill] sm:$0xff] }
 0x9be   : > { %v4345_v46 = vadd.f32 %v4337_v35, %v4304_v62  ;;  %v4223_v54 = vadd.f32 %v4215_v28, %v4182_v30  ;;  %6775 = vrcp.f32 %v4083_v13  ;;  %vm10797_vm8 = vcmp.lt.s32.totalorder %v8012_v26, 1  ;;  %v10815_v35 = vld [vmem:[#allocation36_spill] sm:$0xff] }
 0x9bf   : > { %6777 = vrcp.f32 %v4084_v8  ;;  %v4338_v34 = vsel %vm10797_vm8, %v10796_v16, 0.0  ;;  %vm10800_vm9 = vcmp.ge.s32.totalorder %v10799_v47, 1  ;;  %vm10801_vm12 = vcmp.ge.s32.totalorder %v10799_v47, 2  ;;  %v10814_v8 = vld [vmem:[#allocation37_spill] sm:$0xff] }
 0x9c0   : > { %v4264_v12 = vadd.f32 %v4256_v4, %v4223_v54  ;;  %vm10803_vm13 = vcmp.ge.s32.totalorder %v10799_v47, 3  ;;  %vm10807_vm14 = vcmp.lt.s32.totalorder %v10799_v47, 3  ;;  %vm10810_vm15 = vcmp.lt.s32.totalorder %v10799_v47, 2 }
 0x9c1   : > { %v4172_v5 = vsel %vm10807_vm14, %v10806_v43, 0.0  ;;  %v4254_v24 = vsel %vm10810_vm15, %v10809_v39, 0.0  ;;  %vm10812_vm11 = vcmp.lt.s32.totalorder %v10799_v47, 1  ;;  %v10819_v47 = vld [vmem:[#allocation39_spill] sm:$0xff] }
 0x9c2   : > { %v4305_v41 = vadd.f32 %v4297_v38, %v4264_v12  ;;  %v4336_v52 = vsel %vm10812_vm11, %v10811_v10, 0.0 }
 0x9c3   : > { %v6766_v58 = vpop.eup %6765 }
 0x9c4   : > { %v4346_v36 = vadd.f32 %v4338_v34, %v4305_v41  ;;  %v6768_v44 = vpop.eup %6767  ;;  %v4090_v37 = vmul.f32 %v6766_v58, %v10798_v27  ;;  %v10817_v34 = vld [vmem:[#allocation38_spill] sm:$0xff]  ;;  %v10818_v27 = vld [vmem:[#allocation40_spill] sm:$0xff] }
 0x9c5   : > { %v6770_v15 = vpop.eup %6769  ;;  %v3986_v42 = vsel %vm10800_vm9, %v6768_v44, 0.0 }
 0x9c6   : > { %v6772_v9 = vpop.eup %6771  ;;  %v4018_v13 = vsel %vm10801_vm12, %v6770_v15, 0.0  ;;  %v4058_v50 = vadd.f32 %v6766_v58, %v3986_v42  ;;  %v4131_v59 = vmul.f32 %v10802_v55, %v3986_v42 }
 0x9c7   : > { %v6774_v61 = vpop.eup %6773  ;;  %v4050_v26 = vsel %vm10803_vm13, %v6772_v9, 0.0  ;;  %v4213_v56 = vmul.f32 %v10804_v11, %v4018_v13  ;;  %v10820_v9 = vld [vmem:[#allocation30_spill] sm:$0xff] }
 0x9c8   : > { %v6776_v40 = vpop.eup %6775  ;;  %v4066_v14 = vadd.f32 %v4058_v50, %v4018_v13  ;;  %v4139_v45 = vadd.f32 %v4131_v59, %v4090_v37  ;;  %v4295_v28 = vmul.f32 %v10805_v51, %v4050_v26  ;;  %v4359_v57 = vmul.f32 %v6774_v61, %v4343_v53  ;;  %v6373_v61 = vld [vmem:[#allocation11 + $0x80] ss:$8 sps:$4 sm:$0xff]   ;;  %v6378_v11 = vld [vmem:[#allocation11 + $0x94] ss:$8 sps:$4 sm:$0xff]  }
 0x9c9   : > { %v6778_v3 = vpop.eup %6777  ;;  %v4361_v7 = vmul.f32 %v6776_v40, %v4345_v46  ;;  %v10816_v46 = vld [vmem:[#allocation29_spill] sm:$0xff] }
 0x9ca   : > { %v4074_v20 = vadd.f32 %v4066_v14, %v4050_v26  ;;  %v4180_v48 = vadd.f32 %v4172_v5, %v4139_v45  ;;  %v4362_v49 = vmul.f32 %v6778_v3, %v4346_v36  ;;  %v6375_v26 = vld [vmem:[#allocation11 + $0x84] ss:$8 sps:$4 sm:$0xff]  }
 0x9cb   : > { %4755 = vmatprep.subr.bf16.mxu0 %v6375_v26 }
 0x9cc   : > { %v4082_v22 = vadd.f32 %v4074_v20, %v10808_v60  ;;  %v4221_v18 = vadd.f32 %v4213_v56, %v4180_v48  ;;  %v4366_v23 = vpack.c.bf16 %v4362_v49, %v4361_v7  ;;  %4756 = vmatpush1.bf16.msra.mxu0 %v6373_v61  ;;  %v6376_v56 = vld [vmem:[#allocation11 + $0x90] ss:$8 sps:$4 sm:$0xff]  }
 0x9cd   : > { %4757 = vmatprep.subr.bf16.mxu0 %v6378_v11 }
 0x9ce   : > { %v4262_v31 = vadd.f32 %v4254_v24, %v4221_v18  ;;  %6779 = vrcp.f32 %v4082_v22 }
 0x9d0   : > { %v4303_v1 = vadd.f32 %v4295_v28, %v4262_v31  ;;  %4758 = vmatpush1.bf16.msra.mxu0 %v6376_v56 }
 0x9d2   : > { %v4344_v32 = vadd.f32 %v4336_v52, %v4303_v1  ;;  %v6379_v52 = vld [vmem:[#allocation11 + $0xa0] ss:$8 sps:$4 sm:$0xff]  }
 0x9d8   : > { %v6780_v0 = vpop.eup %6779 }
 0x9d9   : > { %v4360_v21 = vmul.f32 %v6780_v0, %v4344_v32  ;;  %v6381_v32 = vld [vmem:[#allocation11 + $0xa4] ss:$8 sps:$4 sm:$0xff]  }
 0x9da   : > { %4759 = vmatprep.subr.bf16.mxu0 %v6381_v32 }
 0x9db   : > { %v4365_v63 = vpack.c.bf16 %v4360_v21, %v4359_v57  ;;  %4760 = vmatpush1.bf16.msra.mxu0 %v6379_v52 }
 0x9dd   : > { %6125 = vmatprep.mubr.bf16.mxu1 %v4365_v63 }
 0x9de   : > { %6126 = vmatmul.mubr.bf16.gmra.mrb[76].mxu1 %v4366_v23 }
 0xa90   : > { %v6123_v19 = vpop.f32.mrb[72].mxu1 }
 0xa91   : > { %v4466_v38 = vpop.f32.mrb[73].mxu1  ;;  %v4499_v30 = vadd.f32 %v6123_v19, %v10814_v8 }
 0xa92   : > { %v4497_v29 = vadd.f32 %v4466_v38, %v10813_v6  ;;  %v6124_v62 = vpop.f32.mrb[74].mxu1 }
 0xa93   : > { %v4469_v17 = vpop.f32.mrb[75].mxu1  ;;  %v4500_v54 = vadd.f32 %v6124_v62, %v10816_v46  ;;  %v9945_v4 = vadd.f32 %v5512_v2, %v4499_v30  ;;  %v6382_v62 = vld [vmem:[#allocation11 + $0xb0] ss:$8 sps:$4 sm:$0xff]   ;;  %v6390_v46 = vld [vmem:[#allocation11 + $0xd4] ss:$8 sps:$4 sm:$0xff]  }
 0xa94   : > { %v9938_v33 = vadd.f32 %v5512_v2, %v4497_v29  ;;  %v4498_v53 = vadd.f32 %v4469_v17, %v10815_v35  ;;  %v6387_v35 = vld [vmem:[#allocation11 + $0xc4] ss:$8 sps:$4 sm:$0xff]  }
 0xa95   : > { %v9948_v12 = vadd.f32 %v5512_v2, %v4500_v54  ;;  %v6388_v54 = vld [vmem:[#allocation11 + $0xd0] ss:$8 sps:$4 sm:$0xff]  }
 0xa96   : > { %v9942_v25 = vadd.f32 %v5512_v2, %v4498_v53  ;;  %4521 = vadd.xlane.f32.xlu0 %v9938_v33  ;;  %v6385_v53 = vld [vmem:[#allocation11 + $0xc0] ss:$8 sps:$4 sm:$0xff]  }
 0xa98   : > { %4523 = vadd.xlane.f32.xlu1 %v9942_v25 }
 0xa9a   : > { %4525 = vadd.xlane.f32.xlu0 %v9945_v4 }
 0xa9c   : > { %4527 = vadd.xlane.f32.xlu1 %v9948_v12 }
 0xab1   : > { %v6127_v41 = vpop.f32.mrb[76].mxu1 }
 0xab2   : > { %v4482_v16 = vpop.f32.mrb[77].mxu1  ;;  %v4503_v37 = vadd.f32 %v6127_v41, %v10818_v27  ;;  %v6393_v41 = vld [vmem:[#allocation11 + $0xe4] ss:$8 sps:$4 sm:$0xff]  }
 0xab3   : > { %v4501_v58 = vadd.f32 %v4482_v16, %v10817_v34  ;;  %v6128_v36 = vpop.f32.mrb[78].mxu1  ;;  %v6391_v16 = vld [vmem:[#allocation11 + $0xe0] ss:$8 sps:$4 sm:$0xff]   ;;  %v6396_v34 = vld [vmem:[#allocation11 + $0xf4] ss:$8 sps:$4 sm:$0xff]  }
 0xab4   : > { %v4485_v44 = vpop.f32.mrb[79].mxu1  ;;  %v4504_v13 = vadd.f32 %v6128_v36, %v10820_v9  ;;  %v9961_v55 = vadd.f32 %v5512_v2, %v4503_v37 }
 0xab5   : > { %v9954_v15 = vadd.f32 %v5512_v2, %v4501_v58  ;;  %v4502_v42 = vadd.f32 %v4485_v44, %v10819_v47  ;;  %v6394_v58 = vld [vmem:[#allocation11 + $0xf0] ss:$8 sps:$4 sm:$0xff]  }
 0xab6   : > { %v9964_v59 = vadd.f32 %v5512_v2, %v4504_v13 }
 0xab7   : > { %v9958_v50 = vadd.f32 %v5512_v2, %v4502_v42  ;;  %4529 = vadd.xlane.f32.xlu0 %v9954_v15  ;;  %v6384_v2 = vld [vmem:[#allocation11 + $0xb4] ss:$8 sps:$4 sm:$0xff]  }
 0xab8   : > { %4761 = vmatprep.subr.bf16.mxu0 %v6384_v2 }
 0xab9   : > { %4531 = vadd.xlane.f32.xlu1 %v9958_v50  ;;  %4762 = vmatpush1.bf16.msra.mxu0 %v6382_v62 }
 0xaba   : > { %4763 = vmatprep.subr.bf16.mxu0 %v6387_v35 }
 0xabb   : > { %4533 = vadd.xlane.f32.xlu0 %v9961_v55 }
 0xabd   : > { %4535 = vadd.xlane.f32.xlu1 %v9964_v59  ;;  %4764 = vmatpush1.bf16.msra.mxu0 %v6385_v53 }
 0xabe   : > { %4765 = vmatprep.subr.bf16.mxu0 %v6390_v46 }
 0xac1   : > { %4766 = vmatpush1.bf16.msra.mxu0 %v6388_v54 }
 0xac2   : > { %4767 = vmatprep.subr.bf16.mxu0 %v6393_v41 }
 0xac5   : > { %4768 = vmatpush1.bf16.msra.mxu0 %v6391_v16 }
 0xac6   : > { %4769 = vmatprep.subr.bf16.mxu0 %v6396_v34 }
 0xac9   : > { %4770 = vmatpush1.bf16.msra.mxu0 %v6394_v58 }
 0xb23   : > { %v4522_v40 = vpop.xlane.xlu0 %4521 }
 0xb24   : > { %v4537_v14 = vmul.f32 0.0078125, %v4522_v40 }
 0xb25   : > { %v4524_v45 = vpop.xlane.xlu1 %4523 }
 0xb26   : > { %v9969_v51 = vsub.f32 %v9938_v33, %v4537_v14  ;;  %v4538_v28 = vmul.f32 0.0078125, %v4524_v45  ;;  %v5514_v14 = vld [vmem:[%s10219_s6 + $0x1] ss:$0 sm:$0xff] }
 0xb27   : > { %v4526_v57 = vpop.xlane.xlu0 %4525 }
 0xb28   : > { %v9972_v3 = vsub.f32 %v9942_v25, %v4538_v28  ;;  %v4539_v43 = vmul.f32 0.0078125, %v4526_v57  ;;  %v4553_v5 = vmul.f32 %v9969_v51, %v9969_v51 }
 0xb29   : > { %v4528_v7 = vpop.xlane.xlu1 %4527 }
 0xb2a   : > { %v9977_v20 = vsub.f32 %v9945_v4, %v4539_v43  ;;  %v4540_v48 = vmul.f32 0.0078125, %v4528_v7  ;;  %4561 = vadd.xlane.f32.xlu0 %v4553_v5  ;;  %v4554_v49 = vmul.f32 %v9972_v3, %v9972_v3  ;;  %v5516_v7 = vld [vmem:[%s10220_s7 + $0x1] ss:$0 sm:$0xff] }
 0xb2c   : > { %v9982_v60 = vsub.f32 %v9948_v12, %v4540_v48  ;;  %4563 = vadd.xlane.f32.xlu1 %v4554_v49  ;;  %v4555_v22 = vmul.f32 %v9977_v20, %v9977_v20 }
 0xb2e   : > { %4565 = vadd.xlane.f32.xlu0 %v4555_v22  ;;  %v4556_v18 = vmul.f32 %v9982_v60, %v9982_v60 }
 0xb30   : > { %4567 = vadd.xlane.f32.xlu1 %v4556_v18 }
 0xb44   : > { %v4530_v23 = vpop.xlane.xlu0 %4529 }
 0xb45   : > { %v4541_v39 = vmul.f32 0.0078125, %v4530_v23 }
 0xb46   : > { %v4532_v24 = vpop.xlane.xlu1 %4531 }
 0xb47   : > { %v9989_v31 = vsub.f32 %v9954_v15, %v4541_v39  ;;  %v4542_v1 = vmul.f32 0.0078125, %v4532_v24 }
 0xb48   : > { %v4534_v10 = vpop.xlane.xlu0 %4533 }
 0xb49   : > { %v9992_v0 = vsub.f32 %v9958_v50, %v4542_v1  ;;  %v4543_v21 = vmul.f32 0.0078125, %v4534_v10  ;;  %v4557_v63 = vmul.f32 %v9989_v31, %v9989_v31  ;;  %v10821_v10 = vmov 0  }
 0xb4a   : > { %v4536_v19 = vpop.xlane.xlu1 %4535 }
 0xb4b   : > { %v9997_v38 = vsub.f32 %v9961_v55, %v4543_v21  ;;  %v4544_v6 = vmul.f32 0.0078125, %v4536_v19  ;;  %4569 = vadd.xlane.f32.xlu0 %v4557_v63  ;;  %v4558_v29 = vmul.f32 %v9992_v0, %v9992_v0 }
 0xb4d   : > { %v10002_v17 = vsub.f32 %v9964_v59, %v4544_v6  ;;  %4571 = vadd.xlane.f32.xlu1 %v4558_v29  ;;  %v4559_v8 = vmul.f32 %v9997_v38, %v9997_v38 }
 0xb4f   : > { %4573 = vadd.xlane.f32.xlu0 %v4559_v8  ;;  %v4560_v30 = vmul.f32 %v10002_v17, %v10002_v17 }
 0xb51   : > { %4575 = vadd.xlane.f32.xlu1 %v4560_v30 }
 0xbb7   : > { %v4562_v36 = vpop.xlane.xlu0 %4561 }
 0xbb8   : > { %v4577_v44 = vmul.f32 0.0078125, %v4562_v36 }
 0xbb9   : > { %v4564_v27 = vpop.xlane.xlu1 %4563 }
 0xbba   : > { %v4585_v37 = vadd.f32 1e-05, %v4577_v44  ;;  %v4578_v47 = vmul.f32 0.0078125, %v4564_v27 }
 0xbbb   : > { %v4566_v42 = vpop.xlane.xlu0 %4565 }
 0xbbc   : > { %6781 = vrsqrt.f32 %v4585_v37  ;;  %v4586_v9 = vadd.f32 1e-05, %v4578_v47  ;;  %v4579_v13 = vmul.f32 0.0078125, %v4566_v42 }
 0xbbd   : > { %v4568_v61 = vpop.xlane.xlu1 %4567 }
 0xbbe   : > { %6783 = vrsqrt.f32 %v4586_v9  ;;  %v4587_v26 = vadd.f32 1e-05, %v4579_v13  ;;  %v4580_v11 = vmul.f32 0.0078125, %v4568_v61 }
 0xbc0   : > { %6785 = vrsqrt.f32 %v4587_v26  ;;  %v4588_v56 = vadd.f32 1e-05, %v4580_v11  ;;  %v6398_v11 = vld [vmem:[#allocation13 + $0x80] sm:$0xff]  }
 0xbc2   : > { %6787 = vrsqrt.f32 %v4588_v56  ;;  %v6399_v56 = vld [vmem:[#allocation13 + $0xc8] sm:$0xff]  }
 0xbc6   : > { %v6782_v40 = vpop.eup %6781 }
 0xbc7   : > { %v4601_v45 = vmul.f32 %v6782_v40, %v9969_v51  ;;  %v6400_v40 = vld [vmem:[#allocation13 + $0x88] sm:$0xff]  }
 0xbc8   : > { %v6784_v28 = vpop.eup %6783 }
 0xbc9   : > { %v4617_v57 = vmul.f32 %v5514_v14, %v4601_v45  ;;  %v4602_v43 = vmul.f32 %v6784_v28, %v9972_v3  ;;  %v6403_v45 = vld [vmem:[#allocation13 + $0xd8] sm:$0xff]   ;;  %v6405_v28 = vld [vmem:[#allocation13 + $0xe0] sm:$0xff]  }
 0xbca   : > { %v6786_v5 = vpop.eup %6785 }
 0xbcb   : > { %v4618_v48 = vmul.f32 %v5514_v14, %v4602_v43  ;;  %v4633_v22 = vadd.f32 %v5516_v7, %v4617_v57  ;;  %v4603_v23 = vmul.f32 %v6786_v5, %v9977_v20  ;;  %v6406_v57 = vld [vmem:[#allocation13 + $0xa0] sm:$0xff]   ;;  %v6407_v43 = vld [vmem:[#allocation13 + $0xe8] sm:$0xff]  }
 0xbcc   : > { %v6788_v49 = vpop.eup %6787  ;;  %v6408_v5 = vld [vmem:[#allocation13 + $0xa8] sm:$0xff]  }
 0xbcd   : > { %v4634_v18 = vadd.f32 %v5516_v7, %v4618_v48  ;;  %v4604_v39 = vmul.f32 %v6788_v49, %v9982_v60  ;;  %v4619_v51 = vmul.f32 %v5514_v14, %v4603_v23  ;;  %v6410_v48 = vld [vmem:[#allocation13 + $0xb0] sm:$0xff]   ;;  %v6411_v49 = vld [vmem:[#allocation13 + $0xf8] sm:$0xff]  }
 0xbce   : > { %v10822_v23 = vld [vmem:[#allocation79_spill] sm:$0xff] }
 0xbcf   : > { %v4641_v24 = vpack.c.bf16 %v4634_v18, %v4633_v22  ;;  %v4620_v1 = vmul.f32 %v5514_v14, %v4604_v39  ;;  %v4635_v52 = vadd.f32 %v5516_v7, %v4619_v51  ;;  %v6412_v22 = vld [vmem:[#allocation13 + $0xb8] sm:$0xff]   ;;  %v10823_v39 = vsub.s32 0, %v10822_v23 }
 0xbd0   : > { %v5517_v18 = vld [vmem:[%s10222_s9 + $0x2] sm:$0x3] }
 0xbd1   : > { %4788 = vmatmul.mubr.bf16.vlgmr.msra.gmra.mrb[80].mxu0 %v4641_v24  ;;  %v4636_v3 = vadd.f32 %v5516_v7, %v4620_v1  ;;  %v10030_v24 = vrot.slane %v5517_v18, %v10823_v39  ;;  %v10824_v1 = vsub.s32 1, %v10822_v23 }
 0xbd2   : > { %4797 = vmatprep.mubr.bf16.mxu0 %v10821_v10 }
 0xbd3   : > { %v4642_v32 = vpack.c.bf16 %v4636_v3, %v4635_v52  ;;  %v10034_v51 = vrot.slane %v5517_v18, %v10824_v1 }
 0xbd8   : > { %v4570_v21 = vpop.xlane.xlu0 %4569 }
 0xbd9   : > { %4798 = vmatmul.mubr.bf16.gmra.mrb[84].mxu0 %v4642_v32  ;;  %v4581_v63 = vmul.f32 0.0078125, %v4570_v21 }
 0xbda   : > { %4807 = vmatprep.mubr.bf16.mxu0 %v10821_v10  ;;  %v4572_v19 = vpop.xlane.xlu1 %4571 }
 0xbdb   : > { %v4589_v2 = vadd.f32 1e-05, %v4581_v63  ;;  %v4582_v6 = vmul.f32 0.0078125, %v4572_v19 }
 0xbdc   : > { %v4574_v20 = vpop.xlane.xlu0 %4573 }
 0xbdd   : > { %6789 = vrsqrt.f32 %v4589_v2  ;;  %v4590_v60 = vadd.f32 1e-05, %v4582_v6  ;;  %v4583_v29 = vmul.f32 0.0078125, %v4574_v20 }
 0xbde   : > { %v4576_v62 = vpop.xlane.xlu1 %4575 }
 0xbdf   : > { %6791 = vrsqrt.f32 %v4590_v60  ;;  %v4591_v8 = vadd.f32 1e-05, %v4583_v29  ;;  %v4584_v30 = vmul.f32 0.0078125, %v4576_v62 }
 0xbe1   : > { %6793 = vrsqrt.f32 %v4591_v8  ;;  %v4592_v35 = vadd.f32 1e-05, %v4584_v30 }
 0xbe3   : > { %6795 = vrsqrt.f32 %v4592_v35 }
 0xbe7   : > { %v6790_v53 = vpop.eup %6789 }
 0xbe8   : > { %v4605_v46 = vmul.f32 %v6790_v53, %v9989_v31 }
 0xbe9   : > { %v6792_v54 = vpop.eup %6791 }
 0xbea   : > { %v4606_v41 = vmul.f32 %v6792_v54, %v9992_v0  ;;  %v4621_v16 = vmul.f32 %v5514_v14, %v4605_v46  ;;  %v6397_v0 = vld [vmem:[#allocation13 + $0xc0] sm:$0xff]  }
 0xbeb   : > { %v6794_v34 = vpop.eup %6793  ;;  %5801 = vmatprep.subr.bf16.mxu1 %v6397_v0 }
 0xbec   : > { %v4622_v58 = vmul.f32 %v5514_v14, %v4606_v41  ;;  %v4637_v44 = vadd.f32 %v5516_v7, %v4621_v16  ;;  %v4607_v37 = vmul.f32 %v6794_v34, %v9997_v38  ;;  %5802 = vmatpush3.bf16.msra.mxu1 %v6398_v11  ;;  %v6401_v38 = vld [vmem:[#allocation13 + $0xd0] sm:$0xff]  }
 0xbed   : > { %v6796_v36 = vpop.eup %6795  ;;  %5803 = vmatprep.subr.bf16.mxu1 %v6399_v56 }
 0xbee   : > { %v4638_v27 = vadd.f32 %v5516_v7, %v4622_v58  ;;  %v4608_v47 = vmul.f32 %v6796_v36, %v10002_v17  ;;  %v4623_v13 = vmul.f32 %v5514_v14, %v4607_v37  ;;  %v6402_v17 = vld [vmem:[#allocation13 + $0x90] sm:$0xff]  }
 0xbf0   : > { %v4643_v42 = vpack.c.bf16 %v4638_v27, %v4637_v44  ;;  %v4624_v9 = vmul.f32 %v5514_v14, %v4608_v47  ;;  %v4639_v61 = vadd.f32 %v5516_v7, %v4623_v13  ;;  %5804 = vmatpush3.bf16.msra.mxu1 %v6400_v40  ;;  %v6404_v14 = vld [vmem:[#allocation13 + $0x98] sm:$0xff]  }
 0xbf1   : > { %5805 = vmatprep.subr.bf16.mxu1 %v6401_v38 }
 0xbf2   : > { %4808 = vmatmul.mubr.bf16.gmra.mrb[88].mxu0 %v4643_v42  ;;  %v4640_v31 = vadd.f32 %v5516_v7, %v4624_v9  ;;  %v6409_v7 = vld [vmem:[#allocation13 + $0xf0] sm:$0xff]  }
 0xbf3   : > { %4817 = vmatprep.mubr.bf16.mxu0 %v10821_v10 }
 0xbf4   : > { %v4644_v26 = vpack.c.bf16 %v4640_v31, %v4639_v61  ;;  %5806 = vmatpush3.bf16.msra.mxu1 %v6402_v17 }
 0xbf5   : > { %5807 = vmatprep.subr.bf16.mxu1 %v6403_v45 }
 0xbf8   : > { %5808 = vmatpush3.bf16.msra.mxu1 %v6404_v14 }
 0xbf9   : > { %5809 = vmatprep.subr.bf16.mxu1 %v6405_v28 }
 0xbfa   : > { %4818 = vmatmul.mubr.bf16.gmra.mrb[92].mxu0 %v4644_v26 }
 0xbfc   : > { %5810 = vmatpush3.bf16.msra.mxu1 %v6406_v57 }
 0xbfd   : > { %5811 = vmatprep.subr.bf16.mxu1 %v6407_v43 }
 0xc00   : > { %5812 = vmatpush3.bf16.msra.mxu1 %v6408_v5 }
 0xc01   : > { %5813 = vmatprep.subr.bf16.mxu1 %v6409_v7 }
 0xc04   : > { %5814 = vmatpush3.bf16.msra.mxu1 %v6410_v48 }
 0xc05   : > { %5815 = vmatprep.subr.bf16.mxu1 %v6411_v49 }
 0xc08   : > { %5816 = vmatpush3.bf16.msra.mxu1 %v6412_v22 }
 0xca4   : > { %v4789_v10 = vpop.f32.mrb[80].mxu0 }
 0xca5   : > { %v10037_v3 = vadd.f32 %v4789_v10, %v10030_v24  ;;  %v4791_v52 = vpop.f32.mrb[81].mxu0 }
 0xca6   : > { %v10040_v32 = vadd.f32 %v4791_v52, %v10034_v51  ;;  %v4793_v21 = vpop.f32.mrb[82].mxu0 }
 0xca7   : > { %v4844_v63 = vmul.f32 0.044715, %v10037_v3  ;;  %v10044_v19 = vadd.f32 %v4793_v21, %v10030_v24  ;;  %v4795_v2 = vpop.f32.mrb[83].mxu0 }
 0xca8   : > { %v4845_v6 = vmul.f32 0.044715, %v10040_v32  ;;  %v10048_v20 = vadd.f32 %v4795_v2, %v10034_v51 }
 0xca9   : > { %v4860_v60 = vmul.f32 %v4844_v63, %v10037_v3  ;;  %v4846_v29 = vmul.f32 0.044715, %v10044_v19 }
 0xcaa   : > { %v4861_v62 = vmul.f32 %v4845_v6, %v10040_v32  ;;  %v4847_v8 = vmul.f32 0.044715, %v10048_v20 }
 0xcab   : > { %v4876_v30 = vmul.f32 %v4860_v60, %v10037_v3  ;;  %v4862_v35 = vmul.f32 %v4846_v29, %v10044_v19 }
 0xcac   : > { %v4877_v53 = vmul.f32 %v4861_v62, %v10040_v32  ;;  %v4863_v46 = vmul.f32 %v4847_v8, %v10048_v20  ;;  %v4799_v54 = vpop.f32.mrb[84].mxu0  ;;  %v4828_v62 = vmul.f32 0.5, %v10037_v3  ;;  %v4830_v8 = vmul.f32 0.5, %v10044_v19 }
 0xcad   : > { %v4892_v41 = vadd.f32 %v4876_v30, %v10037_v3  ;;  %v4878_v16 = vmul.f32 %v4862_v35, %v10044_v19  ;;  %v10061_v34 = vadd.f32 %v4799_v54, %v10030_v24  ;;  %v4801_v58 = vpop.f32.mrb[85].mxu0  ;;  %v4829_v35 = vmul.f32 0.5, %v10040_v32 }
 0xcae   : > { %v4879_v36 = vmul.f32 %v4863_v46, %v10048_v20  ;;  %v10065_v44 = vadd.f32 %v4801_v58, %v10034_v51  ;;  %v4803_v27 = vpop.f32.mrb[86].mxu0  ;;  %v4893_v37 = vadd.f32 %v4877_v53, %v10040_v32  ;;  %v4831_v53 = vmul.f32 0.5, %v10048_v20 }
 0xcaf   : > { %v4908_v47 = vmul.f32 0.7978846, %v4892_v41  ;;  %v4894_v42 = vadd.f32 %v4878_v16, %v10044_v19  ;;  %v4848_v9 = vmul.f32 0.044715, %v10061_v34  ;;  %v4804_v13 = vadd.f32 %v4803_v27, %v10030_v24  ;;  %v4805_v31 = vpop.f32.mrb[87].mxu0 }
 0xcb0   : > { %v4849_v61 = vmul.f32 0.044715, %v10065_v44  ;;  %v10073_v26 = vadd.f32 %v4805_v31, %v10034_v51  ;;  %v4895_v0 = vadd.f32 %v4879_v36, %v10048_v20  ;;  %v4909_v11 = vmul.f32 0.7978846, %v4893_v37 }
 0xcb1   : > { %6797 = vtanh.f32 %v4908_v47  ;;  %v4910_v56 = vmul.f32 0.7978846, %v4894_v42  ;;  %v4864_v40 = vmul.f32 %v4848_v9, %v10061_v34  ;;  %v4850_v38 = vmul.f32 0.044715, %v4804_v13 }
 0xcb2   : > { %v4865_v17 = vmul.f32 %v4849_v61, %v10065_v44  ;;  %v4851_v45 = vmul.f32 0.044715, %v10073_v26  ;;  %v4911_v14 = vmul.f32 0.7978846, %v4895_v0  ;;  %6799 = vtanh.f32 %v4909_v11 }
 0xcb3   : > { %6801 = vtanh.f32 %v4910_v56  ;;  %v4880_v28 = vmul.f32 %v4864_v40, %v10061_v34  ;;  %v4866_v57 = vmul.f32 %v4850_v38, %v4804_v13  ;;  %v4832_v32 = vmul.f32 0.5, %v10061_v34 }
 0xcb4   : > { %v4881_v43 = vmul.f32 %v4865_v17, %v10065_v44  ;;  %v4867_v5 = vmul.f32 %v4851_v45, %v10073_v26  ;;  %6803 = vtanh.f32 %v4911_v14  ;;  %v4834_v61 = vmul.f32 0.5, %v4804_v13 }
 0xcb5   : > { %v4882_v7 = vmul.f32 %v4866_v57, %v4804_v13  ;;  %v4896_v48 = vadd.f32 %v4880_v28, %v10061_v34  ;;  %v4833_v56 = vmul.f32 0.5, %v10065_v44  ;;  %v4835_v40 = vmul.f32 0.5, %v10073_v26 }
 0xcb6   : > { %v4883_v49 = vmul.f32 %v4867_v5, %v10073_v26  ;;  %v4897_v22 = vadd.f32 %v4881_v43, %v10065_v44 }
 0xcb7   : > { %v4898_v18 = vadd.f32 %v4882_v7, %v4804_v13  ;;  %v4912_v23 = vmul.f32 0.7978846, %v4896_v48 }
 0xcb8   : > { %v4899_v39 = vadd.f32 %v4883_v49, %v10073_v26  ;;  %v4913_v1 = vmul.f32 0.7978846, %v4897_v22 }
 0xcb9   : > { %v4914_v10 = vmul.f32 0.7978846, %v4898_v18  ;;  %6805 = vtanh.f32 %v4912_v23 }
 0xcba   : > { %v4915_v52 = vmul.f32 0.7978846, %v4899_v39  ;;  %6807 = vtanh.f32 %v4913_v1 }
 0xcbb   : > { %v6798_v21 = vpop.eup %6797  ;;  %6809 = vtanh.f32 %v4914_v10 }
 0xcbc   : > { %v6800_v63 = vpop.eup %6799  ;;  %v4940_v2 = vadd.f32 1.0, %v6798_v21  ;;  %6811 = vtanh.f32 %v4915_v52 }
 0xcbd   : > { %v6802_v6 = vpop.eup %6801  ;;  %v4941_v60 = vadd.f32 1.0, %v6800_v63 }
 0xcbe   : > { %v6804_v29 = vpop.eup %6803  ;;  %v4942_v30 = vadd.f32 1.0, %v6802_v6  ;;  %v4956_v54 = vmul.f32 %v4940_v2, %v4828_v62 }
 0xcbf   : > { %v4943_v46 = vadd.f32 1.0, %v6804_v29  ;;  %v4957_v16 = vmul.f32 %v4941_v60, %v4829_v35 }
 0xcc0   : > { %v4958_v41 = vmul.f32 %v4942_v30, %v4830_v8 }
 0xcc1   : > { %v4959_v58 = vmul.f32 %v4943_v46, %v4831_v53 }
 0xcc2   : > { %v4972_v36 = vpack.c.bf16 %v4958_v41, %v4956_v54 }
 0xcc3   : > { %v6806_v27 = vpop.eup %6805  ;;  %v4973_v37 = vpack.c.bf16 %v4959_v58, %v4957_v16 }
 0xcc4   : > { %v6808_v47 = vpop.eup %6807  ;;  %v4944_v42 = vadd.f32 1.0, %v6806_v27 }
 0xcc5   : > { %v6810_v9 = vpop.eup %6809  ;;  %5141 = vmatprep.mubr.bf16.mxu1 %v4973_v37  ;;  %v4945_v3 = vadd.f32 1.0, %v6808_v47  ;;  %v4809_v19 = vpop.f32.mrb[88].mxu0 }
 0xcc6   : > { %v6812_v31 = vpop.eup %6811  ;;  %5142 = vmatmul.mubr.bf16.vlgmr.msra.gmra.mrb[80].mxu1 %v4972_v36  ;;  %v4946_v20 = vadd.f32 1.0, %v6810_v9  ;;  %v10092_v0 = vadd.f32 %v4809_v19, %v10030_v24  ;;  %v4811_v11 = vpop.f32.mrb[89].mxu0  ;;  %v4960_v14 = vmul.f32 %v4944_v42, %v4832_v32 }
 0xcc7   : > { %v4947_v38 = vadd.f32 1.0, %v6812_v31  ;;  %v10097_v17 = vadd.f32 %v4811_v11, %v10034_v51  ;;  %v4813_v45 = vpop.f32.mrb[90].mxu0  ;;  %v4961_v43 = vmul.f32 %v4945_v3, %v4833_v56 }
 0xcc8   : > { %v4962_v28 = vmul.f32 %v4946_v20, %v4834_v61  ;;  %v4852_v57 = vmul.f32 0.044715, %v10092_v0  ;;  %v10101_v34 = vadd.f32 %v4813_v45, %v10030_v24  ;;  %v4815_v13 = vpop.f32.mrb[91].mxu0 }
 0xcc9   : > { %v4963_v5 = vmul.f32 %v4947_v38, %v4835_v40  ;;  %v4853_v7 = vmul.f32 0.044715, %v10097_v17  ;;  %v10105_v44 = vadd.f32 %v4815_v13, %v10034_v51 }
 0xcca   : > { %v4974_v26 = vpack.c.bf16 %v4962_v28, %v4960_v14  ;;  %v4868_v48 = vmul.f32 %v4852_v57, %v10092_v0  ;;  %v4854_v49 = vmul.f32 0.044715, %v10101_v34 }
 0xccb   : > { %v4975_v22 = vpack.c.bf16 %v4963_v5, %v4961_v43  ;;  %v4869_v18 = vmul.f32 %v4853_v7, %v10097_v17  ;;  %v4855_v23 = vmul.f32 0.044715, %v10105_v44 }
 0xccc   : > { %v4884_v39 = vmul.f32 %v4868_v48, %v10092_v0  ;;  %v4870_v1 = vmul.f32 %v4854_v49, %v10101_v34  ;;  %v4836_v49 = vmul.f32 0.5, %v10092_v0 }
 0xccd   : > { %5149 = vmatprep.mubr.bf16.mxu1 %v4975_v22  ;;  %v4885_v10 = vmul.f32 %v4869_v18, %v10097_v17  ;;  %v4871_v52 = vmul.f32 %v4855_v23, %v10105_v44  ;;  %v4819_v21 = vpop.f32.mrb[92].mxu0  ;;  %v4838_v22 = vmul.f32 0.5, %v10101_v34  ;;  %v4837_v23 = vmul.f32 0.5, %v10097_v17 }
 0xcce   : > { %5150 = vmatmul.mubr.bf16.gmra.mrb[84].mxu1 %v4974_v26  ;;  %v4886_v63 = vmul.f32 %v4870_v1, %v10101_v34  ;;  %v10117_v2 = vadd.f32 %v4819_v21, %v10030_v24  ;;  %v4821_v6 = vpop.f32.mrb[93].mxu0  ;;  %v4900_v60 = vadd.f32 %v4884_v39, %v10092_v0  ;;  %v4839_v39 = vmul.f32 0.5, %v10105_v44 }
 0xccf   : > { %v4887_v29 = vmul.f32 %v4871_v52, %v10105_v44  ;;  %v10122_v62 = vadd.f32 %v4821_v6, %v10034_v51  ;;  %v4823_v8 = vpop.f32.mrb[94].mxu0  ;;  %v4901_v30 = vadd.f32 %v4885_v10, %v10097_v17 }
 0xcd0   : > { %v4856_v35 = vmul.f32 0.044715, %v10117_v2  ;;  %v4824_v53 = vadd.f32 %v4823_v8, %v10030_v24  ;;  %v4825_v46 = vpop.f32.mrb[95].mxu0  ;;  %v4902_v54 = vadd.f32 %v4886_v63, %v10101_v34  ;;  %v4916_v41 = vmul.f32 0.7978846, %v4900_v60 }
 0xcd1   : > { %v4857_v16 = vmul.f32 0.044715, %v10122_v62  ;;  %v4826_v58 = vadd.f32 %v4825_v46, %v10034_v51  ;;  %v4903_v36 = vadd.f32 %v4887_v29, %v10105_v44  ;;  %v4917_v27 = vmul.f32 0.7978846, %v4901_v30 }
 0xcd2   : > { %v4872_v37 = vmul.f32 %v4856_v35, %v10117_v2  ;;  %v4858_v47 = vmul.f32 0.044715, %v4824_v53  ;;  %v4918_v42 = vmul.f32 0.7978846, %v4902_v54  ;;  %6813 = vtanh.f32 %v4916_v41 }
 0xcd3   : > { %v4873_v9 = vmul.f32 %v4857_v16, %v10122_v62  ;;  %v4859_v3 = vmul.f32 0.044715, %v4826_v58  ;;  %v4919_v24 = vmul.f32 0.7978846, %v4903_v36  ;;  %6815 = vtanh.f32 %v4917_v27 }
 0xcd4   : > { %v4888_v31 = vmul.f32 %v4872_v37, %v10117_v2  ;;  %v4874_v19 = vmul.f32 %v4858_v47, %v4824_v53  ;;  %6817 = vtanh.f32 %v4918_v42  ;;  %v4840_v34 = vmul.f32 0.5, %v10117_v2 }
 0xcd5   : > { %v4889_v32 = vmul.f32 %v4873_v9, %v10122_v62  ;;  %v4875_v51 = vmul.f32 %v4859_v3, %v4826_v58  ;;  %6819 = vtanh.f32 %v4919_v24  ;;  %v4842_v17 = vmul.f32 0.5, %v4824_v53 }
 0xcd6   : > { %v4890_v61 = vmul.f32 %v4874_v19, %v4824_v53  ;;  %v4904_v20 = vadd.f32 %v4888_v31, %v10117_v2  ;;  %v4841_v44 = vmul.f32 0.5, %v10122_v62  ;;  %v4843_v41 = vmul.f32 0.5, %v4826_v58 }
 0xcd7   : > { %v4891_v11 = vmul.f32 %v4875_v51, %v4826_v58  ;;  %v4905_v56 = vadd.f32 %v4889_v32, %v10122_v62  ;;  %v5551_v62 = vld [vmem:[%s10529_s12 + $0x1] ss:$0 sm:$0xff] }
 0xcd8   : > { %v4906_v40 = vadd.f32 %v4890_v61, %v4824_v53  ;;  %v4920_v38 = vmul.f32 0.7978846, %v4904_v20 }
 0xcd9   : > { %v4907_v45 = vadd.f32 %v4891_v11, %v4826_v58  ;;  %v4921_v14 = vmul.f32 0.7978846, %v4905_v56 }
 0xcda   : > { %v4922_v28 = vmul.f32 0.7978846, %v4906_v40  ;;  %6821 = vtanh.f32 %v4920_v38 }
 0xcdb   : > { %v4923_v57 = vmul.f32 0.7978846, %v4907_v45  ;;  %6823 = vtanh.f32 %v4921_v14 }
 0xcdc   : > { %v6814_v13 = vpop.eup %6813  ;;  %6825 = vtanh.f32 %v4922_v28 }
 0xcdd   : > { %v6816_v43 = vpop.eup %6815  ;;  %v4948_v5 = vadd.f32 1.0, %v6814_v13  ;;  %6827 = vtanh.f32 %v4923_v57 }
 0xcde   : > { %v6818_v7 = vpop.eup %6817  ;;  %v4949_v26 = vadd.f32 1.0, %v6816_v43 }
 0xcdf   : > { %v6820_v48 = vpop.eup %6819  ;;  %v4950_v18 = vadd.f32 1.0, %v6818_v7  ;;  %v4964_v10 = vmul.f32 %v4948_v5, %v4836_v49 }
 0xce0   : > { %v4951_v1 = vadd.f32 1.0, %v6820_v48  ;;  %v4965_v21 = vmul.f32 %v4949_v26, %v4837_v23 }
 0xce1   : > { %v4966_v52 = vmul.f32 %v4950_v18, %v4838_v22 }
 0xce2   : > { %v4967_v63 = vmul.f32 %v4951_v1, %v4839_v39 }
 0xce3   : > { %v4976_v6 = vpack.c.bf16 %v4966_v52, %v4964_v10 }
 0xce4   : > { %v6822_v60 = vpop.eup %6821  ;;  %v4977_v29 = vpack.c.bf16 %v4967_v63, %v4965_v21 }
 0xce5   : > { %v6824_v8 = vpop.eup %6823  ;;  %v4952_v30 = vadd.f32 1.0, %v6822_v60 }
 0xce6   : > { %v6826_v35 = vpop.eup %6825  ;;  %5157 = vmatprep.mubr.bf16.mxu1 %v4977_v29  ;;  %v4953_v0 = vadd.f32 1.0, %v6824_v8 }
 0xce7   : > { %v6828_v46 = vpop.eup %6827  ;;  %5158 = vmatmul.mubr.bf16.gmra.mrb[88].mxu1 %v4976_v6  ;;  %v4954_v54 = vadd.f32 1.0, %v6826_v35  ;;  %v4968_v36 = vmul.f32 %v4952_v30, %v4840_v34 }
 0xce8   : > { %v4955_v16 = vadd.f32 1.0, %v6828_v46  ;;  %v4969_v37 = vmul.f32 %v4953_v0, %v4841_v44 }
 0xce9   : > { %v4970_v27 = vmul.f32 %v4954_v54, %v4842_v17 }
 0xcea   : > { %v4971_v47 = vmul.f32 %v4955_v16, %v4843_v41 }
 0xceb   : > { %v4978_v42 = vpack.c.bf16 %v4970_v27, %v4968_v36 }
 0xcec   : > { %v4979_v9 = vpack.c.bf16 %v4971_v47, %v4969_v37 }
 0xcee   : > { %5165 = vmatprep.mubr.bf16.mxu1 %v4979_v9 }
 0xcef   : > { %5166 = vmatmul.mubr.bf16.gmra.mrb[92].mxu1 %v4978_v42 }
 0xd99   : > { %v5817_v3 = vpop.f32.mrb[80].mxu1 }
 0xd9a   : > { %v5818_v24 = vpop.f32.mrb[81].mxu1 }
 0xd9b   : > { %v5819_v31 = vadd.f32 %v5818_v24, %v5817_v3  ;;  %v5820_v19 = vpop.f32.mrb[82].mxu1 }
 0xd9c   : > { %v5821_v2 = vpop.f32.mrb[83].mxu1 }
 0xd9d   : > { %v5174_v53 = vadd.f32 %v5819_v31, %v9938_v33  ;;  %v5822_v32 = vadd.f32 %v5821_v2, %v5820_v19 }
 0xd9f   : > { %v5175_v58 = vadd.f32 %v5822_v32, %v9942_v25  ;;  %v5190_v51 = vadd.f32 %v5551_v62, %v5174_v53 }
 0xda1   : > { %v5191_v61 = vadd.f32 %v5551_v62, %v5175_v58  ;;  %v5823_v20 = vpop.f32.mrb[84].mxu1 }
 0xda2   : > { %v5824_v11 = vpop.f32.mrb[85].mxu1 }
 0xda3   : > { %v5594_v56 = vpack.c.bf16 %v5191_v61, %v5190_v51  ;;  %v5825_v40 = vadd.f32 %v5824_v11, %v5823_v20  ;;  %v5826_v38 = vpop.f32.mrb[86].mxu1 }
 0xda4   : > { %v5827_v45 = vpop.f32.mrb[87].mxu1 }
 0xda5   : > { %5595 = vst [vmem:[%s10150_s28] sm:$0xff] %v5594_v56   ;;  %v5176_v33 = vadd.f32 %v5825_v40, %v9945_v4  ;;  %v5828_v14 = vadd.f32 %v5827_v45, %v5826_v38 }
 0xda7   : > { %v5177_v28 = vadd.f32 %v5828_v14, %v9948_v12  ;;  %v5192_v25 = vadd.f32 %v5551_v62, %v5176_v33 }
 0xda9   : > { %v5193_v57 = vadd.f32 %v5551_v62, %v5177_v28 }
 0xdab   : > { %v5599_v13 = vpack.c.bf16 %v5193_v57, %v5192_v25 }
 0xdad   : > { %5614 = vst [vmem:[%s10150_s28 + $0x8] sm:$0xff] %v5599_v13  }
 0xdba   : > { %v5829_v43 = vpop.f32.mrb[88].mxu1 }
 0xdbb   : > { %v5830_v5 = vpop.f32.mrb[89].mxu1 }
 0xdbc   : > { %v5831_v7 = vadd.f32 %v5830_v5, %v5829_v43  ;;  %v5832_v26 = vpop.f32.mrb[90].mxu1 }
 0xdbd   : > { %v5833_v48 = vpop.f32.mrb[91].mxu1 }
 0xdbe   : > { %v5178_v49 = vadd.f32 %v5831_v7, %v9954_v15  ;;  %v5834_v22 = vadd.f32 %v5833_v48, %v5832_v26 }
 0xdc0   : > { %v5179_v4 = vadd.f32 %v5834_v22, %v9958_v50  ;;  %v5194_v18 = vadd.f32 %v5551_v62, %v5178_v49 }
 0xdc2   : > { %v5195_v23 = vadd.f32 %v5551_v62, %v5179_v4  ;;  %v5835_v12 = vpop.f32.mrb[92].mxu1 }
 0xdc3   : > { %v5836_v39 = vpop.f32.mrb[93].mxu1 }
 0xdc4   : > { %v5604_v1 = vpack.c.bf16 %v5195_v23, %v5194_v18  ;;  %v5837_v10 = vadd.f32 %v5836_v39, %v5835_v12  ;;  %v5838_v52 = vpop.f32.mrb[94].mxu1 }
 0xdc5   : > { %v5839_v21 = vpop.f32.mrb[95].mxu1 }
 0xdc6   : > { %5615 = vst [vmem:[%s10150_s28 + $0x10] sm:$0xff] %v5604_v1   ;;  %v5180_v63 = vadd.f32 %v5837_v10, %v9961_v55  ;;  %v5840_v6 = vadd.f32 %v5839_v21, %v5838_v52 }
 0xdc8   : > { %v5181_v15 = vadd.f32 %v5840_v6, %v9964_v59  ;;  %v5196_v50 = vadd.f32 %v5551_v62, %v5180_v63 }
 0xdca   : > { %v5197_v60 = vadd.f32 %v5551_v62, %v5181_v15 }
 0xdcc   : > { %v5609_v29 = vpack.c.bf16 %v5197_v60, %v5196_v50 }
 0xdce   : > { %5616 = vst [vmem:[%s10150_s28 + $0x18] sm:$0xff] %v5609_v29  }
 0xdcf   : > { %7048 = shalt.err (!%p7045_p8)
}
 0xdd0   : > { %s7049_s28 = scalar_lea.hbm %s10168_s19, 512  ;;  %s7053_s20 = scalar_lea.hbm %s10825_s14, 1024 }
 0xdd1   : > { %p7050_p13 = scmp.ne.s32.totalorder %s10168_s19, %s7049_s28  ;;  %p7054_p9 = scmp.lt.u32.totalorder %s10168_s19, %s10825_s14 }
 0xdd2   : > { %p7055_p10 = scmp.lt.u32.totalorder %s7053_s20, %s7049_s28  ;;  %p7057_p6 = scmp.lt.u32.totalorder %s7049_s28, %s10168_s19 }
 0xdd3   : > { %p7051_p0 = pnand %p7050_p13, %p10826_p12 }
 0xdd4   : > { %p7056_p11 = por %p7055_p10, %p7054_p9 }
 0xdd5   : > { %p7052_p2 = pneg %p7051_p0 }
 0xdd6   : > { %p7058_p5 = por %p7057_p6, %p7056_p11 }
 0xdd8   : > { %p7059_p7 = pnand %p7058_p5, %p7052_p2 }
 0xdda   : > { %7062 = shalt.err (!%p7059_p7)
}
 0xddb   : > { %s7130_s11 = smov 64   ;;  %s7131_s18 = smov 4  }
 0xddc   : > { %6155 = dma.vmem_to_hbm [thread:$0]  (%p10826_p12), %s10163_s30, 512, %s10168_s19, %s5239_s17, %s7130_s11, %s7130_s11, %s7131_s18  }
 0xddd PF: > { %s5267_s1 = sand.u32 1, %s7101_s21   ;;  %p10827_p4 = scmp.ne.s32.totalorder %s10359_s3, 0 }
 0xdde   : > { %p10828_p1 = scmp.ge.s32.totalorder %s7113_s24, 2  ;;  %s5268_s28 = scalar_lea.sflag [#allocation4], %s5267_s1 }
 0xde0   : > { %p6181_p3 = pnand %p10828_p1, %p10827_p4 }
 0xde2   : > { %7096 = dma.done.wait (!%p6181_p3), %s5268_s28, 512  }
 0xde3   : > { %7098 = vsyncadd (!%p6181_p3), %s5268_s28, 4294966784  ;;  %p28_p8 = scmp.ge.s32.totalorder %s7382_s25, 4   ;;  %s10829_s21 = smov %s7105_s22 }
 0xde4   : > { %s10830_s22 = smov %s7109_s23  ;;  %s10831_s23 = smov %s7393_s16 }
 0xde5   : > { %s10832_s24 = smov %s7382_s25  ;;  %30 = sbr.rel (!%p28_p8) target bundleno = 13 (0xd), region = 146 }
 0xdec   :  { %5273 = vsyncpa [#allocation3], 1 }
 0xded   :  { %5275 = vsyncpa [#allocation3 + $0x1], 1 }
 0xdee   :  { %5276 = vsyncpa [#allocation6], 1 }
 0xdef   :  { %5277 = vsyncpa [#allocation9], 1 }
 0xdf0   :  { %5278 = vsyncpa [#allocation12], 1 }
 0xdf1   :  { %5279 = vsyncpa [#allocation4], 1 }
 0xdf2   :  { %5281 = vsyncpa [#allocation4 + $0x1], 1 }

</bundles_post_ra>
